<compile_context>
chip_gen: v5e
topology: v5e:2x2
jax: 0.10.0
libtpu: 0.0.40
codegen_flags: <defaults>
</compile_context>

<pallas_src>
import functools
import math

import jax
import jax.numpy as jnp
from jax import lax
from jax.experimental import pallas as pl
from jax.experimental.pallas import tpu as pltpu


def _round_up(n, m):
    return ((n + m - 1) // m) * m


def _nbytes(a):
    return int(a.size) * a.dtype.itemsize


# ----------------------------- Pallas kernel ------------------------------- #

def gru_clf_kernel(x_ref, w_in_ref, w_hh_ref, b_ref, wd_ref, bd_ref,
                   out_ref, gx0_scr, *, cpb, hp, wp, t_len, bt):
    """One batch tile: full recurrence + dense head.

    x_ref   : (1, T*Bt, Cpb)   time-major ((t,b) flattened) input; channel C
                               holds the constant 1.0 bias column.
    w_in_ref: (Cpb + Hp, 3Hp)  [W_ih0 (with folded-bias row) ; W_ih1]
    w_hh_ref: (2Hp, 6Hp)       blockdiag(W_hh0, W_hh1)
    b_ref   : (8, 3Hp)         row 0 = layer-1 input bias (r/z pre-summed with
                               hidden r/z biases); row 1 = [b_hn0 | b_hn1 | 0]
    wd_ref  : (Hp + Wp, Wp)    [Wd1 ; Wd2]
    bd_ref  : (8, Wp)          rows 0,1 = dense biases
    out_ref : (Bt, Wp)         lane-dense (padded) logits
    gx0_scr : (T*Bt, 3Hp) VMEM hoisted layer-0 input projection
    """
    f32 = jnp.float32

    # Hoisted layer-0 input projection (biases folded via the 1.0 channel).
    gx0_scr[...] = jnp.dot(x_ref[0], w_in_ref[0:cpb, :],
                           preferred_element_type=f32)

    # Small per-step biases (a few vregs; cheap to hoist).
    b1_rzn = b_ref[0:1, :]                       # (1, 3Hp) layer-1 input bias
    b_hn0 = b_ref[1:2, 0:hp]                     # (1, Hp)
    b_hn1 = b_ref[1:2, hp:2 * hp]                # (1, Hp)

    def sig(v):                                  # 1 EUP push (tanh) per call
        return 0.5 * (1.0 + jnp.tanh(0.5 * v))

    def step(t, carry):
        h1, h2 = carry
        # Fused hidden matmul: gh0 and gh1 both depend only on t-1 states.
        hcat = jnp.concatenate([h1, h2], axis=1)                   # (Bt, 2Hp)
        gh = jnp.dot(hcat, w_hh_ref[...],
                     preferred_element_type=f32)                   # (Bt, 6Hp)
        row = pl.multiple_of(t * bt, bt)
        gx0 = gx0_scr[pl.ds(row, bt), :]                           # (Bt, 3Hp)
        # Layer 0 (PyTorch gate order r, z, n).
        r0 = sig(gx0[:, 0:hp] + gh[:, 0:hp])
        z0 = sig(gx0[:, hp:2 * hp] + gh[:, hp:2 * hp])
        n0 = jnp.tanh(gx0[:, 2 * hp:3 * hp]
                      + r0 * (gh[:, 2 * hp:3 * hp] + b_hn0))
        h1n = (1.0 - z0) * n0 + z0 * h1
        # Layer 1 (its input matmul depends on the NEW h1 -> cannot hoist).
        gx1 = jnp.dot(h1n, w_in_ref[cpb:cpb + hp, :],
                      preferred_element_type=f32) + b1_rzn         # (Bt, 3Hp)
        r1 = sig(gx1[:, 0:hp] + gh[:, 3 * hp:4 * hp])
        z1 = sig(gx1[:, hp:2 * hp] + gh[:, 4 * hp:5 * hp])
        n1 = jnp.tanh(gx1[:, 2 * hp:3 * hp]
                      + r1 * (gh[:, 5 * hp:6 * hp] + b_hn1))
        h2n = (1.0 - z1) * n1 + z1 * h2
        return (h1n, h2n)

    h0 = jnp.zeros((bt, hp), f32)
    unroll = t_len if t_len <= 8 else 8          # partial unroll for long T
    _, h2 = lax.fori_loop(0, t_len, step, (h0, h0), unroll=unroll)

    # Dense head: Linear -> ReLU -> Linear, all lane-dense (width Wp=128*k).
    d = jnp.dot(h2, wd_ref[0:hp, :], preferred_element_type=f32) + bd_ref[0:1, :]
    d = jnp.maximum(d, 0.0)                      # ReLU
    y = jnp.dot(d, wd_ref[hp:hp + wp, :], preferred_element_type=f32) + bd_ref[1:2, :]
    out_ref[...] = y.astype(out_ref.dtype)


# ------------------------------ JAX wrapper -------------------------------- #

def gru_clf_forward(x, params, *, batch_tile=None):
    """x: (B, in_channels, T) float32 -> (B, nclasses) float32."""
    B, C, T = x.shape
    H = params["w_hh0"].shape[1]            # GRU hidden size (out_channels)
    HID = params["wd1"].shape[0]            # dense hidden_dim
    NCLS = params["wd2"].shape[0]           # nclasses
    f32 = jnp.float32

    Hp = _round_up(H, 128)                  # lane-aligned hidden size
    Wp = _round_up(max(HID, NCLS), 128)     # lane-aligned dense width
    Cpb = _round_up(C + 1, 8)               # input channels + 1.0 bias channel
    if batch_tile is None:
        batch_tile = min(_round_up(B, 8), 128)
    Bt = _round_up(batch_tile, 8)
    Bp = _round_up(B, Bt)
    nbt = Bp // Bt

    # TODO(synk): for very large T*B, tile the time axis (chunked DMA of x and
    # of the GX0 scratch) instead of keeping them fully resident (v7x: 64 MiB).

    # --- x: (B, C, T) -> per-batch-tile (T*Bt, Cpb); bias channel = 1.0. ----
    xs = jnp.transpose(x, (2, 0, 1)).astype(f32)                   # (T, B, C)
    xs = jnp.pad(xs, ((0, 0), (0, Bp - B), (0, Cpb - C)))          # (T, Bp, Cpb)
    xs = xs.at[:, :, C].set(1.0)                                   # bias column
    xs = xs.reshape(T, nbt, Bt, Cpb).transpose(1, 0, 2, 3) \
           .reshape(nbt, T * Bt, Cpb)

    def pad2(a, rows, cols):
        a = a.astype(f32)
        return jnp.pad(a, ((0, rows - a.shape[0]), (0, cols - a.shape[1])))

    def pad1(a, n):
        return jnp.pad(a.astype(f32), (0, n - a.shape[0]))

    # --- layer-0 input weights with folded biases (r/z hidden biases too). --
    w_ih0, b_ih0, b_hh0 = params["w_ih0"], params["b_ih0"], params["b_hh0"]

    def in0_gate(w_g, b_g):              # w_g: (H, C) PyTorch slice, b_g: (H,)
        blk = jnp.zeros((Cpb, Hp), f32)
        blk = blk.at[0:C, 0:H].set(w_g.T.astype(f32))
        blk = blk.at[C, 0:H].set(b_g.astype(f32))      # bias row (channel C)
        return blk

    w_in0 = jnp.concatenate([
        in0_gate(w_ih0[0:H],         b_ih0[0:H] + b_hh0[0:H]),
        in0_gate(w_ih0[H:2 * H],     b_ih0[H:2 * H] + b_hh0[H:2 * H]),
        in0_gate(w_ih0[2 * H:3 * H], b_ih0[2 * H:3 * H]),
    ], axis=1)                                                     # (Cpb, 3Hp)

    # --- layer-1 input weights (biases stay as one per-step vector add). ----
    w_ih1 = params["w_ih1"]
    w_in1 = jnp.concatenate(
        [pad2(w_ih1[g * H:(g + 1) * H].T, Hp, Hp) for g in range(3)],
        axis=1)                                                    # (Hp, 3Hp)
    w_in = jnp.concatenate([w_in0, w_in1], axis=0)                 # (Cpb+Hp, 3Hp)

    # --- fused hidden weights: blockdiag(W_hh0, W_hh1). ---------------------
    def hh_pack(w_hh):
        return jnp.concatenate(
            [pad2(w_hh[g * H:(g + 1) * H].T, Hp, Hp) for g in range(3)],
            axis=1)                                                # (Hp, 3Hp)

    w_hh0p = hh_pack(params["w_hh0"])
    w_hh1p = hh_pack(params["w_hh1"])
    zblk = jnp.zeros((Hp, 3 * Hp), f32)
    w_hh = jnp.concatenate(
        [jnp.concatenate([w_hh0p, zblk], axis=1),
         jnp.concatenate([zblk, w_hh1p], axis=1)], axis=0)         # (2Hp, 6Hp)

    # --- remaining per-step biases. -----------------------------------------
    b_ih1, b_hh1 = params["b_ih1"], params["b_hh1"]
    b1_rzn = jnp.concatenate([pad1(b_ih1[0:H] + b_hh1[0:H], Hp),
                              pad1(b_ih1[H:2 * H] + b_hh1[H:2 * H], Hp),
                              pad1(b_ih1[2 * H:3 * H], Hp)])
    b_slab = jnp.zeros((8, 3 * Hp), f32)
    b_slab = b_slab.at[0].set(b1_rzn)
    b_slab = b_slab.at[1, 0:Hp].set(pad1(b_hh0[2 * H:3 * H], Hp))      # b_hn0
    b_slab = b_slab.at[1, Hp:2 * Hp].set(pad1(b_hh1[2 * H:3 * H], Hp))  # b_hn1

    # --- dense head slabs. ---------------------------------------------------
    w_dense = jnp.concatenate([pad2(params["wd1"].T, Hp, Wp),
                               pad2(params["wd2"].T, Wp, Wp)], axis=0)
    b_dense = jnp.zeros((8, Wp), f32)
    b_dense = b_dense.at[0].set(pad1(params["bd1"], Wp))
    b_dense = b_dense.at[1].set(pad1(params["bd2"], Wp))

    grid_spec = pltpu.PrefetchScalarGridSpec(
        num_scalar_prefetch=0,
        grid=(nbt,),                                   # parallel batch tiles
        in_specs=[
            pl.BlockSpec((1, T * Bt, Cpb), lambda i: (i, 0, 0)),
            pl.BlockSpec(w_in.shape, lambda i: (0, 0)),       # resident
            pl.BlockSpec(w_hh.shape, lambda i: (0, 0)),       # resident
            pl.BlockSpec(b_slab.shape, lambda i: (0, 0)),     # resident
            pl.BlockSpec(w_dense.shape, lambda i: (0, 0)),    # resident
            pl.BlockSpec(b_dense.shape, lambda i: (0, 0)),    # resident
        ],
        out_specs=pl.BlockSpec((Bt, Wp), lambda i: (i, 0)),
        scratch_shapes=[pltpu.VMEM((T * Bt, 3 * Hp), jnp.float32)],
    )

    flops = int(2 * T * Bp * Cpb * 3 * Hp                # hoisted GX0
                + 2 * T * Bp * (2 * Hp) * (6 * Hp)       # fused hidden matmul
                + 2 * T * Bp * Hp * 3 * Hp               # layer-1 input matmul
                + 2 * Bp * (Hp * Wp + Wp * Wp))          # dense head
    transcendentals = int(6 * T * Bp * Hp)
    bytes_accessed = int(_nbytes(xs) + _nbytes(w_in) + _nbytes(w_hh)
                         + _nbytes(b_slab) + _nbytes(w_dense)
                         + _nbytes(b_dense) + Bp * Wp * 4)

    per_core_bytes = 4 * (2 * T * Bt * Cpb + w_in.size + w_hh.size
                          + b_slab.size + w_dense.size + b_dense.size
                          + 2 * Bt * Wp + T * Bt * 3 * Hp)
    vmem_limit = int(min(64 << 20, max(32 << 20, 4 * per_core_bytes)))

    y_pad = pl.pallas_call(
        functools.partial(gru_clf_kernel, cpb=Cpb, hp=Hp, wp=Wp,
                          t_len=T, bt=Bt),
        out_shape=jax.ShapeDtypeStruct((Bp, Wp), jnp.float32),
        grid_spec=grid_spec,
        compiler_params=pltpu.CompilerParams(
            dimension_semantics=("parallel",),
            vmem_limit_bytes=vmem_limit),
        cost_estimate=pl.CostEstimate(flops=flops,
                                      transcendentals=transcendentals,
                                      bytes_accessed=bytes_accessed),
    )(xs, w_in, w_hh, b_slab, w_dense, b_dense)

    return y_pad[:B, :NCLS]


# ----------------------- Pure-JAX reference (for check) -------------------- #

def gru_clf_reference(x, params):
    B, C, T = x.shape
    H = params["w_hh0"].shape[1]
    xs = jnp.transpose(x, (2, 0, 1)).astype(jnp.float32)    # (T, B, C)

    def cell(x_t, h, w_ih, w_hh, b_ih, b_hh):
        gx = x_t @ w_ih.T + b_ih
        gh = h @ w_hh.T + b_hh
        r = jax.nn.sigmoid(gx[:, :H] + gh[:, :H])
        z = jax.nn.sigmoid(gx[:, H:2 * H] + gh[:, H:2 * H])
        n = jnp.tanh(gx[:, 2 * H:] + r * gh[:, 2 * H:])
        return (1.0 - z) * n + z * h

    def step(carry, x_t):
        h1, h2 = carry
        h1 = cell(x_t, h1, params["w_ih0"], params["w_hh0"],
                  params["b_ih0"], params["b_hh0"])
        h2 = cell(h1, h2, params["w_ih1"], params["w_hh1"],
                  params["b_ih1"], params["b_hh1"])
        return (h1, h2), None

    h0 = (jnp.zeros((B, H), jnp.float32), jnp.zeros((B, H), jnp.float32))
    (_, h2), _ = lax.scan(step, h0, xs)
    d = jnp.maximum(h2 @ params["wd1"].T + params["bd1"], 0.0)
    return d @ params["wd2"].T + params["bd2"]


# ------------------------------ Param init --------------------------------- #

def init_params(key, in_channels, out_channels, hidden_dim, nclasses):
    """PyTorch-style default init U(-1/sqrt(fan), 1/sqrt(fan))."""
    H = out_channels
    kg = 1.0 / math.sqrt(H)
    kd1 = 1.0 / math.sqrt(H)
    kd2 = 1.0 / math.sqrt(hidden_dim)
    keys = jax.random.split(key, 12)

    def u(k_, shape, bound):
        return jax.random.uniform(k_, shape, jnp.float32, -bound, bound)

    return {
        "w_ih0": u(keys[0], (3 * H, in_channels), kg),
        "w_hh0": u(keys[1], (3 * H, H), kg),
        "b_ih0": u(keys[2], (3 * H,), kg),
        "b_hh0": u(keys[3], (3 * H,), kg),
        "w_ih1": u(keys[4], (3 * H, H), kg),
        "w_hh1": u(keys[5], (3 * H, H), kg),
        "b_ih1": u(keys[6], (3 * H,), kg),
        "b_hh1": u(keys[7], (3 * H,), kg),
        "wd1": u(keys[8], (hidden_dim, H), kd1),
        "bd1": u(keys[9], (hidden_dim,), kd1),
        "wd2": u(keys[10], (nclasses, hidden_dim), kd2),
        "bd2": u(keys[11], (nclasses,), kd2),
    }


# --------------------------------- main ------------------------------------ #

if __name__ == "__main__":
    # batch=8 fills one f32 sublane tile; larger batches use 128-row tiles and
    # the parallel grid axis (megacore on v7x) automatically.
    B, C_IN, T = 8, 4, 8
    OUT_CH, HIDDEN, NCLASSES = 64, 32, 4

    key = jax.random.PRNGKey(0)
    kx, kp = jax.random.split(key)
    x = jax.random.normal(kx, (B, C_IN, T), jnp.float32)   # PyTorch layout (B, C, T)
    params = init_params(kp, C_IN, OUT_CH, HIDDEN, NCLASSES)

    y = jax.block_until_ready(gru_clf_forward(x, params))
    y_ref = gru_clf_reference(x, params)

    assert y.shape == (B, NCLASSES)
    assert jnp.allclose(y, y_ref, atol=1e-4, rtol=1e-4), (y, y_ref)

    print("KERNEL_OK")
</pallas_src>

<mosaic_0001>
module attributes {stable_mosaic.version = 11 : i64} {
  func.func @gru_clf_kernel(%arg0: i32, %arg1: memref<1x64x8xf32, #tpu.memory_space<vmem>>, %arg2: memref<136x384xf32, #tpu.memory_space<vmem>>, %arg3: memref<256x768xf32, #tpu.memory_space<vmem>>, %arg4: memref<8x384xf32, #tpu.memory_space<vmem>>, %arg5: memref<256x128xf32, #tpu.memory_space<vmem>>, %arg6: memref<8x128xf32, #tpu.memory_space<vmem>>, %arg7: memref<8x128xf32, #tpu.memory_space<vmem>>, %arg8: memref<64x384xf32, #tpu.memory_space<vmem>>) attributes {dimension_semantics = [#tpu.dimension_semantics<parallel>], iteration_bounds = array<i64: 1>, scalar_prefetch = 0 : i64, scratch_operands = 1 : i64, tpu.core_type = #tpu.core_type<tc>, window_params = [{transform_indices = @transform_0, window_bounds = array<i64: 1, 64, 8>}, {pipeline_mode = #tpu.pipeline_mode<synchronous>, transform_indices = @transform_1, window_bounds = array<i64: 136, 384>}, {pipeline_mode = #tpu.pipeline_mode<synchronous>, transform_indices = @transform_2, window_bounds = array<i64: 256, 768>}, {pipeline_mode = #tpu.pipeline_mode<synchronous>, transform_indices = @transform_3, window_bounds = array<i64: 8, 384>}, {pipeline_mode = #tpu.pipeline_mode<synchronous>, transform_indices = @transform_4, window_bounds = array<i64: 256, 128>}, {pipeline_mode = #tpu.pipeline_mode<synchronous>, transform_indices = @transform_5, window_bounds = array<i64: 8, 128>}, {transform_indices = @transform_6, window_bounds = array<i64: 8, 128>}]} {
    %c0 = arith.constant 0 : index
    %c0_0 = arith.constant 0 : index
    %c0_1 = arith.constant 0 : index
    %0 = vector.load %arg1[%c0, %c0_0, %c0_1] : memref<1x64x8xf32, #tpu.memory_space<vmem>>, vector<1x64x8xf32>
    %1 = vector.shape_cast %0 : vector<1x64x8xf32> to vector<64x8xf32>
    %c0_2 = arith.constant 0 : index
    %c0_3 = arith.constant 0 : index
    %2 = vector.load %arg2[%c0_2, %c0_3] : memref<136x384xf32, #tpu.memory_space<vmem>>, vector<8x384xf32>
    %cst = arith.constant dense<0.000000e+00> : vector<64x384xf32>
    %3 = tpu.matmul %1, %2, %cst {dimension_numbers = #tpu.dot_dimension_numbers<[1], [0], [0], [1], [0, 0, 1, 1], [], []>} : vector<64x8xf32>, vector<8x384xf32>, vector<64x384xf32> -> vector<64x384xf32>
    %c0_4 = arith.constant 0 : index
    %c0_5 = arith.constant 0 : index
    %4 = vector.load %arg8[%c0_4, %c0_5] : memref<64x384xf32, #tpu.memory_space<vmem>>, vector<64x384xf32>
    tpu.vector_store %arg8[%c0_4, %c0_5], %3 {strides = array<i32>} : memref<64x384xf32, #tpu.memory_space<vmem>>, vector<64x384xf32>,
    %c0_6 = arith.constant 0 : index
    %c0_7 = arith.constant 0 : index
    %5 = vector.load %arg4[%c0_6, %c0_7] : memref<8x384xf32, #tpu.memory_space<vmem>>, vector<1x384xf32>
    %c1 = arith.constant 1 : index
    %c0_8 = arith.constant 0 : index
    %6 = vector.load %arg4[%c1, %c0_8] : memref<8x384xf32, #tpu.memory_space<vmem>>, vector<1x128xf32>
    %c1_9 = arith.constant 1 : index
    %c128 = arith.constant 128 : index
    %7 = vector.load %arg4[%c1_9, %c128] : memref<8x384xf32, #tpu.memory_space<vmem>>, vector<1x128xf32>
    %cst_10 = arith.constant 0.000000e+00 : f32
    %8 = vector.broadcast %cst_10 : f32 to vector<8x128xf32>
    %c0_i32 = arith.constant 0 : i32
    %9 = tpu.concatenate %8, %8 in 1 : vector<8x128xf32>, vector<8x128xf32> -> vector<8x256xf32>
    %c0_11 = arith.constant 0 : index
    %c0_12 = arith.constant 0 : index
    %10 = vector.load %arg3[%c0_11, %c0_12] : memref<256x768xf32, #tpu.memory_space<vmem>>, vector<256x768xf32>
    %cst_13 = arith.constant dense<0.000000e+00> : vector<8x768xf32>
    %11 = tpu.matmul %9, %10, %cst_13 {dimension_numbers = #tpu.dot_dimension_numbers<[1], [0], [0], [1], [0, 0, 1, 1], [], []>} : vector<8x256xf32>, vector<256x768xf32>, vector<8x768xf32> -> vector<8x768xf32>
    %c8_i32 = arith.constant 8 : i32
    %12 = arith.muli %c0_i32, %c8_i32 : i32
    %13 = tpu.assume_multiple %12, 8 : i32
    %14 = arith.index_cast %13 : i32 to index
    %c0_14 = arith.constant 0 : index
    %15 = vector.load %arg8[%14, %c0_14] : memref<64x384xf32, #tpu.memory_space<vmem>>, vector<8x384xf32>
    %16 = vector.extract_strided_slice %15 {offsets = [0, 0], sizes = [8, 128], strides = [1, 1]} : vector<8x384xf32> to vector<8x128xf32>
    %17 = vector.extract_strided_slice %11 {offsets = [0, 0], sizes = [8, 128], strides = [1, 1]} : vector<8x768xf32> to vector<8x128xf32>
    %18 = arith.addf %16, %17 : vector<8x128xf32>
    %cst_15 = arith.constant 5.000000e-01 : f32
    %19 = vector.broadcast %cst_15 : f32 to vector<8x128xf32>
    %20 = arith.mulf %19, %18 : vector<8x128xf32>
    %21 = math.tanh %20 : vector<8x128xf32>
    %cst_16 = arith.constant 1.000000e+00 : f32
    %22 = vector.broadcast %cst_16 : f32 to vector<8x128xf32>
    %23 = arith.addf %22, %21 : vector<8x128xf32>
    %cst_17 = arith.constant 5.000000e-01 : f32
    %24 = vector.broadcast %cst_17 : f32 to vector<8x128xf32>
    %25 = arith.mulf %24, %23 : vector<8x128xf32>
    %26 = vector.extract_strided_slice %15 {offsets = [0, 128], sizes = [8, 128], strides = [1, 1]} : vector<8x384xf32> to vector<8x128xf32>
    %27 = vector.extract_strided_slice %11 {offsets = [0, 128], sizes = [8, 128], strides = [1, 1]} : vector<8x768xf32> to vector<8x128xf32>
    %28 = arith.addf %26, %27 : vector<8x128xf32>
    %cst_18 = arith.constant 5.000000e-01 : f32
    %29 = vector.broadcast %cst_18 : f32 to vector<8x128xf32>
    %30 = arith.mulf %29, %28 : vector<8x128xf32>
    %31 = math.tanh %30 : vector<8x128xf32>
    %cst_19 = arith.constant 1.000000e+00 : f32
    %32 = vector.broadcast %cst_19 : f32 to vector<8x128xf32>
    %33 = arith.addf %32, %31 : vector<8x128xf32>
    %cst_20 = arith.constant 5.000000e-01 : f32
    %34 = vector.broadcast %cst_20 : f32 to vector<8x128xf32>
    %35 = arith.mulf %34, %33 : vector<8x128xf32>
    %36 = vector.extract_strided_slice %15 {offsets = [0, 256], sizes = [8, 128], strides = [1, 1]} : vector<8x384xf32> to vector<8x128xf32>
    %37 = vector.extract_strided_slice %11 {offsets = [0, 256], sizes = [8, 128], strides = [1, 1]} : vector<8x768xf32> to vector<8x128xf32>
    %38 = vector.broadcast %6 : vector<1x128xf32> to vector<8x128xf32>
    %39 = arith.addf %37, %38 : vector<8x128xf32>
    %40 = arith.mulf %25, %39 : vector<8x128xf32>
    %41 = arith.addf %36, %40 : vector<8x128xf32>
    %42 = math.tanh %41 : vector<8x128xf32>
    %cst_21 = arith.constant 1.000000e+00 : f32
    %43 = vector.broadcast %cst_21 : f32 to vector<8x128xf32>
    %44 = arith.subf %43, %35 : vector<8x128xf32>
    %45 = arith.mulf %44, %42 : vector<8x128xf32>
    %46 = arith.mulf %35, %8 : vector<8x128xf32>
    %47 = arith.addf %45, %46 : vector<8x128xf32>
    %c8 = arith.constant 8 : index
    %c0_22 = arith.constant 0 : index
    %48 = vector.load %arg2[%c8, %c0_22] : memref<136x384xf32, #tpu.memory_space<vmem>>, vector<128x384xf32>
    %cst_23 = arith.constant dense<0.000000e+00> : vector<8x384xf32>
    %49 = tpu.matmul %47, %48, %cst_23 {dimension_numbers = #tpu.dot_dimension_numbers<[1], [0], [0], [1], [0, 0, 1, 1], [], []>} : vector<8x128xf32>, vector<128x384xf32>, vector<8x384xf32> -> vector<8x384xf32>
    %50 = vector.broadcast %5 : vector<1x384xf32> to vector<8x384xf32>
    %51 = arith.addf %49, %50 : vector<8x384xf32>
    %52 = vector.extract_strided_slice %51 {offsets = [0, 0], sizes = [8, 128], strides = [1, 1]} : vector<8x384xf32> to vector<8x128xf32>
    %53 = vector.extract_strided_slice %11 {offsets = [0, 384], sizes = [8, 128], strides = [1, 1]} : vector<8x768xf32> to vector<8x128xf32>
    %54 = arith.addf %52, %53 : vector<8x128xf32>
    %cst_24 = arith.constant 5.000000e-01 : f32
    %55 = vector.broadcast %cst_24 : f32 to vector<8x128xf32>
    %56 = arith.mulf %55, %54 : vector<8x128xf32>
    %57 = math.tanh %56 : vector<8x128xf32>
    %cst_25 = arith.constant 1.000000e+00 : f32
    %58 = vector.broadcast %cst_25 : f32 to vector<8x128xf32>
    %59 = arith.addf %58, %57 : vector<8x128xf32>
    %cst_26 = arith.constant 5.000000e-01 : f32
    %60 = vector.broadcast %cst_26 : f32 to vector<8x128xf32>
    %61 = arith.mulf %60, %59 : vector<8x128xf32>
    %62 = vector.extract_strided_slice %51 {offsets = [0, 128], sizes = [8, 128], strides = [1, 1]} : vector<8x384xf32> to vector<8x128xf32>
    %63 = vector.extract_strided_slice %11 {offsets = [0, 512], sizes = [8, 128], strides = [1, 1]} : vector<8x768xf32> to vector<8x128xf32>
    %64 = arith.addf %62, %63 : vector<8x128xf32>
    %cst_27 = arith.constant 5.000000e-01 : f32
    %65 = vector.broadcast %cst_27 : f32 to vector<8x128xf32>
    %66 = arith.mulf %65, %64 : vector<8x128xf32>
    %67 = math.tanh %66 : vector<8x128xf32>
    %cst_28 = arith.constant 1.000000e+00 : f32
    %68 = vector.broadcast %cst_28 : f32 to vector<8x128xf32>
    %69 = arith.addf %68, %67 : vector<8x128xf32>
    %cst_29 = arith.constant 5.000000e-01 : f32
    %70 = vector.broadcast %cst_29 : f32 to vector<8x128xf32>
    %71 = arith.mulf %70, %69 : vector<8x128xf32>
    %72 = vector.extract_strided_slice %51 {offsets = [0, 256], sizes = [8, 128], strides = [1, 1]} : vector<8x384xf32> to vector<8x128xf32>
    %73 = vector.extract_strided_slice %11 {offsets = [0, 640], sizes = [8, 128], strides = [1, 1]} : vector<8x768xf32> to vector<8x128xf32>
    %74 = vector.broadcast %7 : vector<1x128xf32> to vector<8x128xf32>
    %75 = arith.addf %73, %74 : vector<8x128xf32>
    %76 = arith.mulf %61, %75 : vector<8x128xf32>
    %77 = arith.addf %72, %76 : vector<8x128xf32>
    %78 = math.tanh %77 : vector<8x128xf32>
    %cst_30 = arith.constant 1.000000e+00 : f32
    %79 = vector.broadcast %cst_30 : f32 to vector<8x128xf32>
    %80 = arith.subf %79, %71 : vector<8x128xf32>
    %81 = arith.mulf %80, %78 : vector<8x128xf32>
    %82 = arith.mulf %71, %8 : vector<8x128xf32>
    %83 = arith.addf %81, %82 : vector<8x128xf32>
    %c1_i32 = arith.constant 1 : i32
    %84 = tpu.concatenate %47, %83 in 1 : vector<8x128xf32>, vector<8x128xf32> -> vector<8x256xf32>
    %c0_31 = arith.constant 0 : index
    %c0_32 = arith.constant 0 : index
    %85 = vector.load %arg3[%c0_31, %c0_32] : memref<256x768xf32, #tpu.memory_space<vmem>>, vector<256x768xf32>
    %cst_33 = arith.constant dense<0.000000e+00> : vector<8x768xf32>
    %86 = tpu.matmul %84, %85, %cst_33 {dimension_numbers = #tpu.dot_dimension_numbers<[1], [0], [0], [1], [0, 0, 1, 1], [], []>} : vector<8x256xf32>, vector<256x768xf32>, vector<8x768xf32> -> vector<8x768xf32>
    %c8_i32_34 = arith.constant 8 : i32
    %87 = arith.muli %c1_i32, %c8_i32_34 : i32
    %88 = tpu.assume_multiple %87, 8 : i32
    %89 = arith.index_cast %88 : i32 to index
    %c0_35 = arith.constant 0 : index
    %90 = vector.load %arg8[%89, %c0_35] : memref<64x384xf32, #tpu.memory_space<vmem>>, vector<8x384xf32>
    %91 = vector.extract_strided_slice %90 {offsets = [0, 0], sizes = [8, 128], strides = [1, 1]} : vector<8x384xf32> to vector<8x128xf32>
    %92 = vector.extract_strided_slice %86 {offsets = [0, 0], sizes = [8, 128], strides = [1, 1]} : vector<8x768xf32> to vector<8x128xf32>
    %93 = arith.addf %91, %92 : vector<8x128xf32>
    %cst_36 = arith.constant 5.000000e-01 : f32
    %94 = vector.broadcast %cst_36 : f32 to vector<8x128xf32>
    %95 = arith.mulf %94, %93 : vector<8x128xf32>
    %96 = math.tanh %95 : vector<8x128xf32>
    %cst_37 = arith.constant 1.000000e+00 : f32
    %97 = vector.broadcast %cst_37 : f32 to vector<8x128xf32>
    %98 = arith.addf %97, %96 : vector<8x128xf32>
    %cst_38 = arith.constant 5.000000e-01 : f32
    %99 = vector.broadcast %cst_38 : f32 to vector<8x128xf32>
    %100 = arith.mulf %99, %98 : vector<8x128xf32>
    %101 = vector.extract_strided_slice %90 {offsets = [0, 128], sizes = [8, 128], strides = [1, 1]} : vector<8x384xf32> to vector<8x128xf32>
    %102 = vector.extract_strided_slice %86 {offsets = [0, 128], sizes = [8, 128], strides = [1, 1]} : vector<8x768xf32> to vector<8x128xf32>
    %103 = arith.addf %101, %102 : vector<8x128xf32>
    %cst_39 = arith.constant 5.000000e-01 : f32
    %104 = vector.broadcast %cst_39 : f32 to vector<8x128xf32>
    %105 = arith.mulf %104, %103 : vector<8x128xf32>
    %106 = math.tanh %105 : vector<8x128xf32>
    %cst_40 = arith.constant 1.000000e+00 : f32
    %107 = vector.broadcast %cst_40 : f32 to vector<8x128xf32>
    %108 = arith.addf %107, %106 : vector<8x128xf32>
    %cst_41 = arith.constant 5.000000e-01 : f32
    %109 = vector.broadcast %cst_41 : f32 to vector<8x128xf32>
    %110 = arith.mulf %109, %108 : vector<8x128xf32>
    %111 = vector.extract_strided_slice %90 {offsets = [0, 256], sizes = [8, 128], strides = [1, 1]} : vector<8x384xf32> to vector<8x128xf32>
    %112 = vector.extract_strided_slice %86 {offsets = [0, 256], sizes = [8, 128], strides = [1, 1]} : vector<8x768xf32> to vector<8x128xf32>
    %113 = vector.broadcast %6 : vector<1x128xf32> to vector<8x128xf32>
    %114 = arith.addf %112, %113 : vector<8x128xf32>
    %115 = arith.mulf %100, %114 : vector<8x128xf32>
    %116 = arith.addf %111, %115 : vector<8x128xf32>
    %117 = math.tanh %116 : vector<8x128xf32>
    %cst_42 = arith.constant 1.000000e+00 : f32
    %118 = vector.broadcast %cst_42 : f32 to vector<8x128xf32>
    %119 = arith.subf %118, %110 : vector<8x128xf32>
    %120 = arith.mulf %119, %117 : vector<8x128xf32>
    %121 = arith.mulf %110, %47 : vector<8x128xf32>
    %122 = arith.addf %120, %121 : vector<8x128xf32>
    %c8_43 = arith.constant 8 : index
    %c0_44 = arith.constant 0 : index
    %123 = vector.load %arg2[%c8_43, %c0_44] : memref<136x384xf32, #tpu.memory_space<vmem>>, vector<128x384xf32>
    %cst_45 = arith.constant dense<0.000000e+00> : vector<8x384xf32>
    %124 = tpu.matmul %122, %123, %cst_45 {dimension_numbers = #tpu.dot_dimension_numbers<[1], [0], [0], [1], [0, 0, 1, 1], [], []>} : vector<8x128xf32>, vector<128x384xf32>, vector<8x384xf32> -> vector<8x384xf32>
    %125 = vector.broadcast %5 : vector<1x384xf32> to vector<8x384xf32>
    %126 = arith.addf %124, %125 : vector<8x384xf32>
    %127 = vector.extract_strided_slice %126 {offsets = [0, 0], sizes = [8, 128], strides = [1, 1]} : vector<8x384xf32> to vector<8x128xf32>
    %128 = vector.extract_strided_slice %86 {offsets = [0, 384], sizes = [8, 128], strides = [1, 1]} : vector<8x768xf32> to vector<8x128xf32>
    %129 = arith.addf %127, %128 : vector<8x128xf32>
    %cst_46 = arith.constant 5.000000e-01 : f32
    %130 = vector.broadcast %cst_46 : f32 to vector<8x128xf32>
    %131 = arith.mulf %130, %129 : vector<8x128xf32>
    %132 = math.tanh %131 : vector<8x128xf32>
    %cst_47 = arith.constant 1.000000e+00 : f32
    %133 = vector.broadcast %cst_47 : f32 to vector<8x128xf32>
    %134 = arith.addf %133, %132 : vector<8x128xf32>
    %cst_48 = arith.constant 5.000000e-01 : f32
    %135 = vector.broadcast %cst_48 : f32 to vector<8x128xf32>
    %136 = arith.mulf %135, %134 : vector<8x128xf32>
    %137 = vector.extract_strided_slice %126 {offsets = [0, 128], sizes = [8, 128], strides = [1, 1]} : vector<8x384xf32> to vector<8x128xf32>
    %138 = vector.extract_strided_slice %86 {offsets = [0, 512], sizes = [8, 128], strides = [1, 1]} : vector<8x768xf32> to vector<8x128xf32>
    %139 = arith.addf %137, %138 : vector<8x128xf32>
    %cst_49 = arith.constant 5.000000e-01 : f32
    %140 = vector.broadcast %cst_49 : f32 to vector<8x128xf32>
    %141 = arith.mulf %140, %139 : vector<8x128xf32>
    %142 = math.tanh %141 : vector<8x128xf32>
    %cst_50 = arith.constant 1.000000e+00 : f32
    %143 = vector.broadcast %cst_50 : f32 to vector<8x128xf32>
    %144 = arith.addf %143, %142 : vector<8x128xf32>
    %cst_51 = arith.constant 5.000000e-01 : f32
    %145 = vector.broadcast %cst_51 : f32 to vector<8x128xf32>
    %146 = arith.mulf %145, %144 : vector<8x128xf32>
    %147 = vector.extract_strided_slice %126 {offsets = [0, 256], sizes = [8, 128], strides = [1, 1]} : vector<8x384xf32> to vector<8x128xf32>
    %148 = vector.extract_strided_slice %86 {offsets = [0, 640], sizes = [8, 128], strides = [1, 1]} : vector<8x768xf32> to vector<8x128xf32>
    %149 = vector.broadcast %7 : vector<1x128xf32> to vector<8x128xf32>
    %150 = arith.addf %148, %149 : vector<8x128xf32>
    %151 = arith.mulf %136, %150 : vector<8x128xf32>
    %152 = arith.addf %147, %151 : vector<8x128xf32>
    %153 = math.tanh %152 : vector<8x128xf32>
    %cst_52 = arith.constant 1.000000e+00 : f32
    %154 = vector.broadcast %cst_52 : f32 to vector<8x128xf32>
    %155 = arith.subf %154, %146 : vector<8x128xf32>
    %156 = arith.mulf %155, %153 : vector<8x128xf32>
    %157 = arith.mulf %146, %83 : vector<8x128xf32>
    %158 = arith.addf %156, %157 : vector<8x128xf32>
    %c2_i32 = arith.constant 2 : i32
    %159 = tpu.concatenate %122, %158 in 1 : vector<8x128xf32>, vector<8x128xf32> -> vector<8x256xf32>
    %c0_53 = arith.constant 0 : index
    %c0_54 = arith.constant 0 : index
    %160 = vector.load %arg3[%c0_53, %c0_54] : memref<256x768xf32, #tpu.memory_space<vmem>>, vector<256x768xf32>
    %cst_55 = arith.constant dense<0.000000e+00> : vector<8x768xf32>
    %161 = tpu.matmul %159, %160, %cst_55 {dimension_numbers = #tpu.dot_dimension_numbers<[1], [0], [0], [1], [0, 0, 1, 1], [], []>} : vector<8x256xf32>, vector<256x768xf32>, vector<8x768xf32> -> vector<8x768xf32>
    %c8_i32_56 = arith.constant 8 : i32
    %162 = arith.muli %c2_i32, %c8_i32_56 : i32
    %163 = tpu.assume_multiple %162, 8 : i32
    %164 = arith.index_cast %163 : i32 to index
    %c0_57 = arith.constant 0 : index
    %165 = vector.load %arg8[%164, %c0_57] : memref<64x384xf32, #tpu.memory_space<vmem>>, vector<8x384xf32>
    %166 = vector.extract_strided_slice %165 {offsets = [0, 0], sizes = [8, 128], strides = [1, 1]} : vector<8x384xf32> to vector<8x128xf32>
    %167 = vector.extract_strided_slice %161 {offsets = [0, 0], sizes = [8, 128], strides = [1, 1]} : vector<8x768xf32> to vector<8x128xf32>
    %168 = arith.addf %166, %167 : vector<8x128xf32>
    %cst_58 = arith.constant 5.000000e-01 : f32
    %169 = vector.broadcast %cst_58 : f32 to vector<8x128xf32>
    %170 = arith.mulf %169, %168 : vector<8x128xf32>
    %171 = math.tanh %170 : vector<8x128xf32>
    %cst_59 = arith.constant 1.000000e+00 : f32
    %172 = vector.broadcast %cst_59 : f32 to vector<8x128xf32>
    %173 = arith.addf %172, %171 : vector<8x128xf32>
    %cst_60 = arith.constant 5.000000e-01 : f32
    %174 = vector.broadcast %cst_60 : f32 to vector<8x128xf32>
    %175 = arith.mulf %174, %173 : vector<8x128xf32>
    %176 = vector.extract_strided_slice %165 {offsets = [0, 128], sizes = [8, 128], strides = [1, 1]} : vector<8x384xf32> to vector<8x128xf32>
    %177 = vector.extract_strided_slice %161 {offsets = [0, 128], sizes = [8, 128], strides = [1, 1]} : vector<8x768xf32> to vector<8x128xf32>
    %178 = arith.addf %176, %177 : vector<8x128xf32>
    %cst_61 = arith.constant 5.000000e-01 : f32
    %179 = vector.broadcast %cst_61 : f32 to vector<8x128xf32>
    %180 = arith.mulf %179, %178 : vector<8x128xf32>
    %181 = math.tanh %180 : vector<8x128xf32>
    %cst_62 = arith.constant 1.000000e+00 : f32
    %182 = vector.broadcast %cst_62 : f32 to vector<8x128xf32>
    %183 = arith.addf %182, %181 : vector<8x128xf32>
    %cst_63 = arith.constant 5.000000e-01 : f32
    %184 = vector.broadcast %cst_63 : f32 to vector<8x128xf32>
    %185 = arith.mulf %184, %183 : vector<8x128xf32>
    %186 = vector.extract_strided_slice %165 {offsets = [0, 256], sizes = [8, 128], strides = [1, 1]} : vector<8x384xf32> to vector<8x128xf32>
    %187 = vector.extract_strided_slice %161 {offsets = [0, 256], sizes = [8, 128], strides = [1, 1]} : vector<8x768xf32> to vector<8x128xf32>
    %188 = vector.broadcast %6 : vector<1x128xf32> to vector<8x128xf32>
    %189 = arith.addf %187, %188 : vector<8x128xf32>
    %190 = arith.mulf %175, %189 : vector<8x128xf32>
    %191 = arith.addf %186, %190 : vector<8x128xf32>
    %192 = math.tanh %191 : vector<8x128xf32>
    %cst_64 = arith.constant 1.000000e+00 : f32
    %193 = vector.broadcast %cst_64 : f32 to vector<8x128xf32>
    %194 = arith.subf %193, %185 : vector<8x128xf32>
    %195 = arith.mulf %194, %192 : vector<8x128xf32>
    %196 = arith.mulf %185, %122 : vector<8x128xf32>
    %197 = arith.addf %195, %196 : vector<8x128xf32>
    %c8_65 = arith.constant 8 : index
    %c0_66 = arith.constant 0 : index
    %198 = vector.load %arg2[%c8_65, %c0_66] : memref<136x384xf32, #tpu.memory_space<vmem>>, vector<128x384xf32>
    %cst_67 = arith.constant dense<0.000000e+00> : vector<8x384xf32>
    %199 = tpu.matmul %197, %198, %cst_67 {dimension_numbers = #tpu.dot_dimension_numbers<[1], [0], [0], [1], [0, 0, 1, 1], [], []>} : vector<8x128xf32>, vector<128x384xf32>, vector<8x384xf32> -> vector<8x384xf32>
    %200 = vector.broadcast %5 : vector<1x384xf32> to vector<8x384xf32>
    %201 = arith.addf %199, %200 : vector<8x384xf32>
    %202 = vector.extract_strided_slice %201 {offsets = [0, 0], sizes = [8, 128], strides = [1, 1]} : vector<8x384xf32> to vector<8x128xf32>
    %203 = vector.extract_strided_slice %161 {offsets = [0, 384], sizes = [8, 128], strides = [1, 1]} : vector<8x768xf32> to vector<8x128xf32>
    %204 = arith.addf %202, %203 : vector<8x128xf32>
    %cst_68 = arith.constant 5.000000e-01 : f32
    %205 = vector.broadcast %cst_68 : f32 to vector<8x128xf32>
    %206 = arith.mulf %205, %204 : vector<8x128xf32>
    %207 = math.tanh %206 : vector<8x128xf32>
    %cst_69 = arith.constant 1.000000e+00 : f32
    %208 = vector.broadcast %cst_69 : f32 to vector<8x128xf32>
    %209 = arith.addf %208, %207 : vector<8x128xf32>
    %cst_70 = arith.constant 5.000000e-01 : f32
    %210 = vector.broadcast %cst_70 : f32 to vector<8x128xf32>
    %211 = arith.mulf %210, %209 : vector<8x128xf32>
    %212 = vector.extract_strided_slice %201 {offsets = [0, 128], sizes = [8, 128], strides = [1, 1]} : vector<8x384xf32> to vector<8x128xf32>
    %213 = vector.extract_strided_slice %161 {offsets = [0, 512], sizes = [8, 128], strides = [1, 1]} : vector<8x768xf32> to vector<8x128xf32>
    %214 = arith.addf %212, %213 : vector<8x128xf32>
    %cst_71 = arith.constant 5.000000e-01 : f32
    %215 = vector.broadcast %cst_71 : f32 to vector<8x128xf32>
    %216 = arith.mulf %215, %214 : vector<8x128xf32>
    %217 = math.tanh %216 : vector<8x128xf32>
    %cst_72 = arith.constant 1.000000e+00 : f32
    %218 = vector.broadcast %cst_72 : f32 to vector<8x128xf32>
    %219 = arith.addf %218, %217 : vector<8x128xf32>
    %cst_73 = arith.constant 5.000000e-01 : f32
    %220 = vector.broadcast %cst_73 : f32 to vector<8x128xf32>
    %221 = arith.mulf %220, %219 : vector<8x128xf32>
    %222 = vector.extract_strided_slice %201 {offsets = [0, 256], sizes = [8, 128], strides = [1, 1]} : vector<8x384xf32> to vector<8x128xf32>
    %223 = vector.extract_strided_slice %161 {offsets = [0, 640], sizes = [8, 128], strides = [1, 1]} : vector<8x768xf32> to vector<8x128xf32>
    %224 = vector.broadcast %7 : vector<1x128xf32> to vector<8x128xf32>
    %225 = arith.addf %223, %224 : vector<8x128xf32>
    %226 = arith.mulf %211, %225 : vector<8x128xf32>
    %227 = arith.addf %222, %226 : vector<8x128xf32>
    %228 = math.tanh %227 : vector<8x128xf32>
    %cst_74 = arith.constant 1.000000e+00 : f32
    %229 = vector.broadcast %cst_74 : f32 to vector<8x128xf32>
    %230 = arith.subf %229, %221 : vector<8x128xf32>
    %231 = arith.mulf %230, %228 : vector<8x128xf32>
    %232 = arith.mulf %221, %158 : vector<8x128xf32>
    %233 = arith.addf %231, %232 : vector<8x128xf32>
    %c3_i32 = arith.constant 3 : i32
    %234 = tpu.concatenate %197, %233 in 1 : vector<8x128xf32>, vector<8x128xf32> -> vector<8x256xf32>
    %c0_75 = arith.constant 0 : index
    %c0_76 = arith.constant 0 : index
    %235 = vector.load %arg3[%c0_75, %c0_76] : memref<256x768xf32, #tpu.memory_space<vmem>>, vector<256x768xf32>
    %cst_77 = arith.constant dense<0.000000e+00> : vector<8x768xf32>
    %236 = tpu.matmul %234, %235, %cst_77 {dimension_numbers = #tpu.dot_dimension_numbers<[1], [0], [0], [1], [0, 0, 1, 1], [], []>} : vector<8x256xf32>, vector<256x768xf32>, vector<8x768xf32> -> vector<8x768xf32>
    %c8_i32_78 = arith.constant 8 : i32
    %237 = arith.muli %c3_i32, %c8_i32_78 : i32
    %238 = tpu.assume_multiple %237, 8 : i32
    %239 = arith.index_cast %238 : i32 to index
    %c0_79 = arith.constant 0 : index
    %240 = vector.load %arg8[%239, %c0_79] : memref<64x384xf32, #tpu.memory_space<vmem>>, vector<8x384xf32>
    %241 = vector.extract_strided_slice %240 {offsets = [0, 0], sizes = [8, 128], strides = [1, 1]} : vector<8x384xf32> to vector<8x128xf32>
    %242 = vector.extract_strided_slice %236 {offsets = [0, 0], sizes = [8, 128], strides = [1, 1]} : vector<8x768xf32> to vector<8x128xf32>
    %243 = arith.addf %241, %242 : vector<8x128xf32>
    %cst_80 = arith.constant 5.000000e-01 : f32
    %244 = vector.broadcast %cst_80 : f32 to vector<8x128xf32>
    %245 = arith.mulf %244, %243 : vector<8x128xf32>
    %246 = math.tanh %245 : vector<8x128xf32>
    %cst_81 = arith.constant 1.000000e+00 : f32
    %247 = vector.broadcast %cst_81 : f32 to vector<8x128xf32>
    %248 = arith.addf %247, %246 : vector<8x128xf32>
    %cst_82 = arith.constant 5.000000e-01 : f32
    %249 = vector.broadcast %cst_82 : f32 to vector<8x128xf32>
    %250 = arith.mulf %249, %248 : vector<8x128xf32>
    %251 = vector.extract_strided_slice %240 {offsets = [0, 128], sizes = [8, 128], strides = [1, 1]} : vector<8x384xf32> to vector<8x128xf32>
    %252 = vector.extract_strided_slice %236 {offsets = [0, 128], sizes = [8, 128], strides = [1, 1]} : vector<8x768xf32> to vector<8x128xf32>
    %253 = arith.addf %251, %252 : vector<8x128xf32>
    %cst_83 = arith.constant 5.000000e-01 : f32
    %254 = vector.broadcast %cst_83 : f32 to vector<8x128xf32>
    %255 = arith.mulf %254, %253 : vector<8x128xf32>
    %256 = math.tanh %255 : vector<8x128xf32>
    %cst_84 = arith.constant 1.000000e+00 : f32
    %257 = vector.broadcast %cst_84 : f32 to vector<8x128xf32>
    %258 = arith.addf %257, %256 : vector<8x128xf32>
    %cst_85 = arith.constant 5.000000e-01 : f32
    %259 = vector.broadcast %cst_85 : f32 to vector<8x128xf32>
    %260 = arith.mulf %259, %258 : vector<8x128xf32>
    %261 = vector.extract_strided_slice %240 {offsets = [0, 256], sizes = [8, 128], strides = [1, 1]} : vector<8x384xf32> to vector<8x128xf32>
    %262 = vector.extract_strided_slice %236 {offsets = [0, 256], sizes = [8, 128], strides = [1, 1]} : vector<8x768xf32> to vector<8x128xf32>
    %263 = vector.broadcast %6 : vector<1x128xf32> to vector<8x128xf32>
    %264 = arith.addf %262, %263 : vector<8x128xf32>
    %265 = arith.mulf %250, %264 : vector<8x128xf32>
    %266 = arith.addf %261, %265 : vector<8x128xf32>
    %267 = math.tanh %266 : vector<8x128xf32>
    %cst_86 = arith.constant 1.000000e+00 : f32
    %268 = vector.broadcast %cst_86 : f32 to vector<8x128xf32>
    %269 = arith.subf %268, %260 : vector<8x128xf32>
    %270 = arith.mulf %269, %267 : vector<8x128xf32>
    %271 = arith.mulf %260, %197 : vector<8x128xf32>
    %272 = arith.addf %270, %271 : vector<8x128xf32>
    %c8_87 = arith.constant 8 : index
    %c0_88 = arith.constant 0 : index
    %273 = vector.load %arg2[%c8_87, %c0_88] : memref<136x384xf32, #tpu.memory_space<vmem>>, vector<128x384xf32>
    %cst_89 = arith.constant dense<0.000000e+00> : vector<8x384xf32>
    %274 = tpu.matmul %272, %273, %cst_89 {dimension_numbers = #tpu.dot_dimension_numbers<[1], [0], [0], [1], [0, 0, 1, 1], [], []>} : vector<8x128xf32>, vector<128x384xf32>, vector<8x384xf32> -> vector<8x384xf32>
    %275 = vector.broadcast %5 : vector<1x384xf32> to vector<8x384xf32>
    %276 = arith.addf %274, %275 : vector<8x384xf32>
    %277 = vector.extract_strided_slice %276 {offsets = [0, 0], sizes = [8, 128], strides = [1, 1]} : vector<8x384xf32> to vector<8x128xf32>
    %278 = vector.extract_strided_slice %236 {offsets = [0, 384], sizes = [8, 128], strides = [1, 1]} : vector<8x768xf32> to vector<8x128xf32>
    %279 = arith.addf %277, %278 : vector<8x128xf32>
    %cst_90 = arith.constant 5.000000e-01 : f32
    %280 = vector.broadcast %cst_90 : f32 to vector<8x128xf32>
    %281 = arith.mulf %280, %279 : vector<8x128xf32>
    %282 = math.tanh %281 : vector<8x128xf32>
    %cst_91 = arith.constant 1.000000e+00 : f32
    %283 = vector.broadcast %cst_91 : f32 to vector<8x128xf32>
    %284 = arith.addf %283, %282 : vector<8x128xf32>
    %cst_92 = arith.constant 5.000000e-01 : f32
    %285 = vector.broadcast %cst_92 : f32 to vector<8x128xf32>
    %286 = arith.mulf %285, %284 : vector<8x128xf32>
    %287 = vector.extract_strided_slice %276 {offsets = [0, 128], sizes = [8, 128], strides = [1, 1]} : vector<8x384xf32> to vector<8x128xf32>
    %288 = vector.extract_strided_slice %236 {offsets = [0, 512], sizes = [8, 128], strides = [1, 1]} : vector<8x768xf32> to vector<8x128xf32>
    %289 = arith.addf %287, %288 : vector<8x128xf32>
    %cst_93 = arith.constant 5.000000e-01 : f32
    %290 = vector.broadcast %cst_93 : f32 to vector<8x128xf32>
    %291 = arith.mulf %290, %289 : vector<8x128xf32>
    %292 = math.tanh %291 : vector<8x128xf32>
    %cst_94 = arith.constant 1.000000e+00 : f32
    %293 = vector.broadcast %cst_94 : f32 to vector<8x128xf32>
    %294 = arith.addf %293, %292 : vector<8x128xf32>
    %cst_95 = arith.constant 5.000000e-01 : f32
    %295 = vector.broadcast %cst_95 : f32 to vector<8x128xf32>
    %296 = arith.mulf %295, %294 : vector<8x128xf32>
    %297 = vector.extract_strided_slice %276 {offsets = [0, 256], sizes = [8, 128], strides = [1, 1]} : vector<8x384xf32> to vector<8x128xf32>
    %298 = vector.extract_strided_slice %236 {offsets = [0, 640], sizes = [8, 128], strides = [1, 1]} : vector<8x768xf32> to vector<8x128xf32>
    %299 = vector.broadcast %7 : vector<1x128xf32> to vector<8x128xf32>
    %300 = arith.addf %298, %299 : vector<8x128xf32>
    %301 = arith.mulf %286, %300 : vector<8x128xf32>
    %302 = arith.addf %297, %301 : vector<8x128xf32>
    %303 = math.tanh %302 : vector<8x128xf32>
    %cst_96 = arith.constant 1.000000e+00 : f32
    %304 = vector.broadcast %cst_96 : f32 to vector<8x128xf32>
    %305 = arith.subf %304, %296 : vector<8x128xf32>
    %306 = arith.mulf %305, %303 : vector<8x128xf32>
    %307 = arith.mulf %296, %233 : vector<8x128xf32>
    %308 = arith.addf %306, %307 : vector<8x128xf32>
    %c4_i32 = arith.constant 4 : i32
    %309 = tpu.concatenate %272, %308 in 1 : vector<8x128xf32>, vector<8x128xf32> -> vector<8x256xf32>
    %c0_97 = arith.constant 0 : index
    %c0_98 = arith.constant 0 : index
    %310 = vector.load %arg3[%c0_97, %c0_98] : memref<256x768xf32, #tpu.memory_space<vmem>>, vector<256x768xf32>
    %cst_99 = arith.constant dense<0.000000e+00> : vector<8x768xf32>
    %311 = tpu.matmul %309, %310, %cst_99 {dimension_numbers = #tpu.dot_dimension_numbers<[1], [0], [0], [1], [0, 0, 1, 1], [], []>} : vector<8x256xf32>, vector<256x768xf32>, vector<8x768xf32> -> vector<8x768xf32>
    %c8_i32_100 = arith.constant 8 : i32
    %312 = arith.muli %c4_i32, %c8_i32_100 : i32
    %313 = tpu.assume_multiple %312, 8 : i32
    %314 = arith.index_cast %313 : i32 to index
    %c0_101 = arith.constant 0 : index
    %315 = vector.load %arg8[%314, %c0_101] : memref<64x384xf32, #tpu.memory_space<vmem>>, vector<8x384xf32>
    %316 = vector.extract_strided_slice %315 {offsets = [0, 0], sizes = [8, 128], strides = [1, 1]} : vector<8x384xf32> to vector<8x128xf32>
    %317 = vector.extract_strided_slice %311 {offsets = [0, 0], sizes = [8, 128], strides = [1, 1]} : vector<8x768xf32> to vector<8x128xf32>
    %318 = arith.addf %316, %317 : vector<8x128xf32>
    %cst_102 = arith.constant 5.000000e-01 : f32
    %319 = vector.broadcast %cst_102 : f32 to vector<8x128xf32>
    %320 = arith.mulf %319, %318 : vector<8x128xf32>
    %321 = math.tanh %320 : vector<8x128xf32>
    %cst_103 = arith.constant 1.000000e+00 : f32
    %322 = vector.broadcast %cst_103 : f32 to vector<8x128xf32>
    %323 = arith.addf %322, %321 : vector<8x128xf32>
    %cst_104 = arith.constant 5.000000e-01 : f32
    %324 = vector.broadcast %cst_104 : f32 to vector<8x128xf32>
    %325 = arith.mulf %324, %323 : vector<8x128xf32>
    %326 = vector.extract_strided_slice %315 {offsets = [0, 128], sizes = [8, 128], strides = [1, 1]} : vector<8x384xf32> to vector<8x128xf32>
    %327 = vector.extract_strided_slice %311 {offsets = [0, 128], sizes = [8, 128], strides = [1, 1]} : vector<8x768xf32> to vector<8x128xf32>
    %328 = arith.addf %326, %327 : vector<8x128xf32>
    %cst_105 = arith.constant 5.000000e-01 : f32
    %329 = vector.broadcast %cst_105 : f32 to vector<8x128xf32>
    %330 = arith.mulf %329, %328 : vector<8x128xf32>
    %331 = math.tanh %330 : vector<8x128xf32>
    %cst_106 = arith.constant 1.000000e+00 : f32
    %332 = vector.broadcast %cst_106 : f32 to vector<8x128xf32>
    %333 = arith.addf %332, %331 : vector<8x128xf32>
    %cst_107 = arith.constant 5.000000e-01 : f32
    %334 = vector.broadcast %cst_107 : f32 to vector<8x128xf32>
    %335 = arith.mulf %334, %333 : vector<8x128xf32>
    %336 = vector.extract_strided_slice %315 {offsets = [0, 256], sizes = [8, 128], strides = [1, 1]} : vector<8x384xf32> to vector<8x128xf32>
    %337 = vector.extract_strided_slice %311 {offsets = [0, 256], sizes = [8, 128], strides = [1, 1]} : vector<8x768xf32> to vector<8x128xf32>
    %338 = vector.broadcast %6 : vector<1x128xf32> to vector<8x128xf32>
    %339 = arith.addf %337, %338 : vector<8x128xf32>
    %340 = arith.mulf %325, %339 : vector<8x128xf32>
    %341 = arith.addf %336, %340 : vector<8x128xf32>
    %342 = math.tanh %341 : vector<8x128xf32>
    %cst_108 = arith.constant 1.000000e+00 : f32
    %343 = vector.broadcast %cst_108 : f32 to vector<8x128xf32>
    %344 = arith.subf %343, %335 : vector<8x128xf32>
    %345 = arith.mulf %344, %342 : vector<8x128xf32>
    %346 = arith.mulf %335, %272 : vector<8x128xf32>
    %347 = arith.addf %345, %346 : vector<8x128xf32>
    %c8_109 = arith.constant 8 : index
    %c0_110 = arith.constant 0 : index
    %348 = vector.load %arg2[%c8_109, %c0_110] : memref<136x384xf32, #tpu.memory_space<vmem>>, vector<128x384xf32>
    %cst_111 = arith.constant dense<0.000000e+00> : vector<8x384xf32>
    %349 = tpu.matmul %347, %348, %cst_111 {dimension_numbers = #tpu.dot_dimension_numbers<[1], [0], [0], [1], [0, 0, 1, 1], [], []>} : vector<8x128xf32>, vector<128x384xf32>, vector<8x384xf32> -> vector<8x384xf32>
    %350 = vector.broadcast %5 : vector<1x384xf32> to vector<8x384xf32>
    %351 = arith.addf %349, %350 : vector<8x384xf32>
    %352 = vector.extract_strided_slice %351 {offsets = [0, 0], sizes = [8, 128], strides = [1, 1]} : vector<8x384xf32> to vector<8x128xf32>
    %353 = vector.extract_strided_slice %311 {offsets = [0, 384], sizes = [8, 128], strides = [1, 1]} : vector<8x768xf32> to vector<8x128xf32>
    %354 = arith.addf %352, %353 : vector<8x128xf32>
    %cst_112 = arith.constant 5.000000e-01 : f32
    %355 = vector.broadcast %cst_112 : f32 to vector<8x128xf32>
    %356 = arith.mulf %355, %354 : vector<8x128xf32>
    %357 = math.tanh %356 : vector<8x128xf32>
    %cst_113 = arith.constant 1.000000e+00 : f32
    %358 = vector.broadcast %cst_113 : f32 to vector<8x128xf32>
    %359 = arith.addf %358, %357 : vector<8x128xf32>
    %cst_114 = arith.constant 5.000000e-01 : f32
    %360 = vector.broadcast %cst_114 : f32 to vector<8x128xf32>
    %361 = arith.mulf %360, %359 : vector<8x128xf32>
    %362 = vector.extract_strided_slice %351 {offsets = [0, 128], sizes = [8, 128], strides = [1, 1]} : vector<8x384xf32> to vector<8x128xf32>
    %363 = vector.extract_strided_slice %311 {offsets = [0, 512], sizes = [8, 128], strides = [1, 1]} : vector<8x768xf32> to vector<8x128xf32>
    %364 = arith.addf %362, %363 : vector<8x128xf32>
    %cst_115 = arith.constant 5.000000e-01 : f32
    %365 = vector.broadcast %cst_115 : f32 to vector<8x128xf32>
    %366 = arith.mulf %365, %364 : vector<8x128xf32>
    %367 = math.tanh %366 : vector<8x128xf32>
    %cst_116 = arith.constant 1.000000e+00 : f32
    %368 = vector.broadcast %cst_116 : f32 to vector<8x128xf32>
    %369 = arith.addf %368, %367 : vector<8x128xf32>
    %cst_117 = arith.constant 5.000000e-01 : f32
    %370 = vector.broadcast %cst_117 : f32 to vector<8x128xf32>
    %371 = arith.mulf %370, %369 : vector<8x128xf32>
    %372 = vector.extract_strided_slice %351 {offsets = [0, 256], sizes = [8, 128], strides = [1, 1]} : vector<8x384xf32> to vector<8x128xf32>
    %373 = vector.extract_strided_slice %311 {offsets = [0, 640], sizes = [8, 128], strides = [1, 1]} : vector<8x768xf32> to vector<8x128xf32>
    %374 = vector.broadcast %7 : vector<1x128xf32> to vector<8x128xf32>
    %375 = arith.addf %373, %374 : vector<8x128xf32>
    %376 = arith.mulf %361, %375 : vector<8x128xf32>
    %377 = arith.addf %372, %376 : vector<8x128xf32>
    %378 = math.tanh %377 : vector<8x128xf32>
    %cst_118 = arith.constant 1.000000e+00 : f32
    %379 = vector.broadcast %cst_118 : f32 to vector<8x128xf32>
    %380 = arith.subf %379, %371 : vector<8x128xf32>
    %381 = arith.mulf %380, %378 : vector<8x128xf32>
    %382 = arith.mulf %371, %308 : vector<8x128xf32>
    %383 = arith.addf %381, %382 : vector<8x128xf32>
    %c5_i32 = arith.constant 5 : i32
    %384 = tpu.concatenate %347, %383 in 1 : vector<8x128xf32>, vector<8x128xf32> -> vector<8x256xf32>
    %c0_119 = arith.constant 0 : index
    %c0_120 = arith.constant 0 : index
    %385 = vector.load %arg3[%c0_119, %c0_120] : memref<256x768xf32, #tpu.memory_space<vmem>>, vector<256x768xf32>
    %cst_121 = arith.constant dense<0.000000e+00> : vector<8x768xf32>
    %386 = tpu.matmul %384, %385, %cst_121 {dimension_numbers = #tpu.dot_dimension_numbers<[1], [0], [0], [1], [0, 0, 1, 1], [], []>} : vector<8x256xf32>, vector<256x768xf32>, vector<8x768xf32> -> vector<8x768xf32>
    %c8_i32_122 = arith.constant 8 : i32
    %387 = arith.muli %c5_i32, %c8_i32_122 : i32
    %388 = tpu.assume_multiple %387, 8 : i32
    %389 = arith.index_cast %388 : i32 to index
    %c0_123 = arith.constant 0 : index
    %390 = vector.load %arg8[%389, %c0_123] : memref<64x384xf32, #tpu.memory_space<vmem>>, vector<8x384xf32>
    %391 = vector.extract_strided_slice %390 {offsets = [0, 0], sizes = [8, 128], strides = [1, 1]} : vector<8x384xf32> to vector<8x128xf32>
    %392 = vector.extract_strided_slice %386 {offsets = [0, 0], sizes = [8, 128], strides = [1, 1]} : vector<8x768xf32> to vector<8x128xf32>
    %393 = arith.addf %391, %392 : vector<8x128xf32>
    %cst_124 = arith.constant 5.000000e-01 : f32
    %394 = vector.broadcast %cst_124 : f32 to vector<8x128xf32>
    %395 = arith.mulf %394, %393 : vector<8x128xf32>
    %396 = math.tanh %395 : vector<8x128xf32>
    %cst_125 = arith.constant 1.000000e+00 : f32
    %397 = vector.broadcast %cst_125 : f32 to vector<8x128xf32>
    %398 = arith.addf %397, %396 : vector<8x128xf32>
    %cst_126 = arith.constant 5.000000e-01 : f32
    %399 = vector.broadcast %cst_126 : f32 to vector<8x128xf32>
    %400 = arith.mulf %399, %398 : vector<8x128xf32>
    %401 = vector.extract_strided_slice %390 {offsets = [0, 128], sizes = [8, 128], strides = [1, 1]} : vector<8x384xf32> to vector<8x128xf32>
    %402 = vector.extract_strided_slice %386 {offsets = [0, 128], sizes = [8, 128], strides = [1, 1]} : vector<8x768xf32> to vector<8x128xf32>
    %403 = arith.addf %401, %402 : vector<8x128xf32>
    %cst_127 = arith.constant 5.000000e-01 : f32
    %404 = vector.broadcast %cst_127 : f32 to vector<8x128xf32>
    %405 = arith.mulf %404, %403 : vector<8x128xf32>
    %406 = math.tanh %405 : vector<8x128xf32>
    %cst_128 = arith.constant 1.000000e+00 : f32
    %407 = vector.broadcast %cst_128 : f32 to vector<8x128xf32>
    %408 = arith.addf %407, %406 : vector<8x128xf32>
    %cst_129 = arith.constant 5.000000e-01 : f32
    %409 = vector.broadcast %cst_129 : f32 to vector<8x128xf32>
    %410 = arith.mulf %409, %408 : vector<8x128xf32>
    %411 = vector.extract_strided_slice %390 {offsets = [0, 256], sizes = [8, 128], strides = [1, 1]} : vector<8x384xf32> to vector<8x128xf32>
    %412 = vector.extract_strided_slice %386 {offsets = [0, 256], sizes = [8, 128], strides = [1, 1]} : vector<8x768xf32> to vector<8x128xf32>
    %413 = vector.broadcast %6 : vector<1x128xf32> to vector<8x128xf32>
    %414 = arith.addf %412, %413 : vector<8x128xf32>
    %415 = arith.mulf %400, %414 : vector<8x128xf32>
    %416 = arith.addf %411, %415 : vector<8x128xf32>
    %417 = math.tanh %416 : vector<8x128xf32>
    %cst_130 = arith.constant 1.000000e+00 : f32
    %418 = vector.broadcast %cst_130 : f32 to vector<8x128xf32>
    %419 = arith.subf %418, %410 : vector<8x128xf32>
    %420 = arith.mulf %419, %417 : vector<8x128xf32>
    %421 = arith.mulf %410, %347 : vector<8x128xf32>
    %422 = arith.addf %420, %421 : vector<8x128xf32>
    %c8_131 = arith.constant 8 : index
    %c0_132 = arith.constant 0 : index
    %423 = vector.load %arg2[%c8_131, %c0_132] : memref<136x384xf32, #tpu.memory_space<vmem>>, vector<128x384xf32>
    %cst_133 = arith.constant dense<0.000000e+00> : vector<8x384xf32>
    %424 = tpu.matmul %422, %423, %cst_133 {dimension_numbers = #tpu.dot_dimension_numbers<[1], [0], [0], [1], [0, 0, 1, 1], [], []>} : vector<8x128xf32>, vector<128x384xf32>, vector<8x384xf32> -> vector<8x384xf32>
    %425 = vector.broadcast %5 : vector<1x384xf32> to vector<8x384xf32>
    %426 = arith.addf %424, %425 : vector<8x384xf32>
    %427 = vector.extract_strided_slice %426 {offsets = [0, 0], sizes = [8, 128], strides = [1, 1]} : vector<8x384xf32> to vector<8x128xf32>
    %428 = vector.extract_strided_slice %386 {offsets = [0, 384], sizes = [8, 128], strides = [1, 1]} : vector<8x768xf32> to vector<8x128xf32>
    %429 = arith.addf %427, %428 : vector<8x128xf32>
    %cst_134 = arith.constant 5.000000e-01 : f32
    %430 = vector.broadcast %cst_134 : f32 to vector<8x128xf32>
    %431 = arith.mulf %430, %429 : vector<8x128xf32>
    %432 = math.tanh %431 : vector<8x128xf32>
    %cst_135 = arith.constant 1.000000e+00 : f32
    %433 = vector.broadcast %cst_135 : f32 to vector<8x128xf32>
    %434 = arith.addf %433, %432 : vector<8x128xf32>
    %cst_136 = arith.constant 5.000000e-01 : f32
    %435 = vector.broadcast %cst_136 : f32 to vector<8x128xf32>
    %436 = arith.mulf %435, %434 : vector<8x128xf32>
    %437 = vector.extract_strided_slice %426 {offsets = [0, 128], sizes = [8, 128], strides = [1, 1]} : vector<8x384xf32> to vector<8x128xf32>
    %438 = vector.extract_strided_slice %386 {offsets = [0, 512], sizes = [8, 128], strides = [1, 1]} : vector<8x768xf32> to vector<8x128xf32>
    %439 = arith.addf %437, %438 : vector<8x128xf32>
    %cst_137 = arith.constant 5.000000e-01 : f32
    %440 = vector.broadcast %cst_137 : f32 to vector<8x128xf32>
    %441 = arith.mulf %440, %439 : vector<8x128xf32>
    %442 = math.tanh %441 : vector<8x128xf32>
    %cst_138 = arith.constant 1.000000e+00 : f32
    %443 = vector.broadcast %cst_138 : f32 to vector<8x128xf32>
    %444 = arith.addf %443, %442 : vector<8x128xf32>
    %cst_139 = arith.constant 5.000000e-01 : f32
    %445 = vector.broadcast %cst_139 : f32 to vector<8x128xf32>
    %446 = arith.mulf %445, %444 : vector<8x128xf32>
    %447 = vector.extract_strided_slice %426 {offsets = [0, 256], sizes = [8, 128], strides = [1, 1]} : vector<8x384xf32> to vector<8x128xf32>
    %448 = vector.extract_strided_slice %386 {offsets = [0, 640], sizes = [8, 128], strides = [1, 1]} : vector<8x768xf32> to vector<8x128xf32>
    %449 = vector.broadcast %7 : vector<1x128xf32> to vector<8x128xf32>
    %450 = arith.addf %448, %449 : vector<8x128xf32>
    %451 = arith.mulf %436, %450 : vector<8x128xf32>
    %452 = arith.addf %447, %451 : vector<8x128xf32>
    %453 = math.tanh %452 : vector<8x128xf32>
    %cst_140 = arith.constant 1.000000e+00 : f32
    %454 = vector.broadcast %cst_140 : f32 to vector<8x128xf32>
    %455 = arith.subf %454, %446 : vector<8x128xf32>
    %456 = arith.mulf %455, %453 : vector<8x128xf32>
    %457 = arith.mulf %446, %383 : vector<8x128xf32>
    %458 = arith.addf %456, %457 : vector<8x128xf32>
    %c6_i32 = arith.constant 6 : i32
    %459 = tpu.concatenate %422, %458 in 1 : vector<8x128xf32>, vector<8x128xf32> -> vector<8x256xf32>
    %c0_141 = arith.constant 0 : index
    %c0_142 = arith.constant 0 : index
    %460 = vector.load %arg3[%c0_141, %c0_142] : memref<256x768xf32, #tpu.memory_space<vmem>>, vector<256x768xf32>
    %cst_143 = arith.constant dense<0.000000e+00> : vector<8x768xf32>
    %461 = tpu.matmul %459, %460, %cst_143 {dimension_numbers = #tpu.dot_dimension_numbers<[1], [0], [0], [1], [0, 0, 1, 1], [], []>} : vector<8x256xf32>, vector<256x768xf32>, vector<8x768xf32> -> vector<8x768xf32>
    %c8_i32_144 = arith.constant 8 : i32
    %462 = arith.muli %c6_i32, %c8_i32_144 : i32
    %463 = tpu.assume_multiple %462, 8 : i32
    %464 = arith.index_cast %463 : i32 to index
    %c0_145 = arith.constant 0 : index
    %465 = vector.load %arg8[%464, %c0_145] : memref<64x384xf32, #tpu.memory_space<vmem>>, vector<8x384xf32>
    %466 = vector.extract_strided_slice %465 {offsets = [0, 0], sizes = [8, 128], strides = [1, 1]} : vector<8x384xf32> to vector<8x128xf32>
    %467 = vector.extract_strided_slice %461 {offsets = [0, 0], sizes = [8, 128], strides = [1, 1]} : vector<8x768xf32> to vector<8x128xf32>
    %468 = arith.addf %466, %467 : vector<8x128xf32>
    %cst_146 = arith.constant 5.000000e-01 : f32
    %469 = vector.broadcast %cst_146 : f32 to vector<8x128xf32>
    %470 = arith.mulf %469, %468 : vector<8x128xf32>
    %471 = math.tanh %470 : vector<8x128xf32>
    %cst_147 = arith.constant 1.000000e+00 : f32
    %472 = vector.broadcast %cst_147 : f32 to vector<8x128xf32>
    %473 = arith.addf %472, %471 : vector<8x128xf32>
    %cst_148 = arith.constant 5.000000e-01 : f32
    %474 = vector.broadcast %cst_148 : f32 to vector<8x128xf32>
    %475 = arith.mulf %474, %473 : vector<8x128xf32>
    %476 = vector.extract_strided_slice %465 {offsets = [0, 128], sizes = [8, 128], strides = [1, 1]} : vector<8x384xf32> to vector<8x128xf32>
    %477 = vector.extract_strided_slice %461 {offsets = [0, 128], sizes = [8, 128], strides = [1, 1]} : vector<8x768xf32> to vector<8x128xf32>
    %478 = arith.addf %476, %477 : vector<8x128xf32>
    %cst_149 = arith.constant 5.000000e-01 : f32
    %479 = vector.broadcast %cst_149 : f32 to vector<8x128xf32>
    %480 = arith.mulf %479, %478 : vector<8x128xf32>
    %481 = math.tanh %480 : vector<8x128xf32>
    %cst_150 = arith.constant 1.000000e+00 : f32
    %482 = vector.broadcast %cst_150 : f32 to vector<8x128xf32>
    %483 = arith.addf %482, %481 : vector<8x128xf32>
    %cst_151 = arith.constant 5.000000e-01 : f32
    %484 = vector.broadcast %cst_151 : f32 to vector<8x128xf32>
    %485 = arith.mulf %484, %483 : vector<8x128xf32>
    %486 = vector.extract_strided_slice %465 {offsets = [0, 256], sizes = [8, 128], strides = [1, 1]} : vector<8x384xf32> to vector<8x128xf32>
    %487 = vector.extract_strided_slice %461 {offsets = [0, 256], sizes = [8, 128], strides = [1, 1]} : vector<8x768xf32> to vector<8x128xf32>
    %488 = vector.broadcast %6 : vector<1x128xf32> to vector<8x128xf32>
    %489 = arith.addf %487, %488 : vector<8x128xf32>
    %490 = arith.mulf %475, %489 : vector<8x128xf32>
    %491 = arith.addf %486, %490 : vector<8x128xf32>
    %492 = math.tanh %491 : vector<8x128xf32>
    %cst_152 = arith.constant 1.000000e+00 : f32
    %493 = vector.broadcast %cst_152 : f32 to vector<8x128xf32>
    %494 = arith.subf %493, %485 : vector<8x128xf32>
    %495 = arith.mulf %494, %492 : vector<8x128xf32>
    %496 = arith.mulf %485, %422 : vector<8x128xf32>
    %497 = arith.addf %495, %496 : vector<8x128xf32>
    %c8_153 = arith.constant 8 : index
    %c0_154 = arith.constant 0 : index
    %498 = vector.load %arg2[%c8_153, %c0_154] : memref<136x384xf32, #tpu.memory_space<vmem>>, vector<128x384xf32>
    %cst_155 = arith.constant dense<0.000000e+00> : vector<8x384xf32>
    %499 = tpu.matmul %497, %498, %cst_155 {dimension_numbers = #tpu.dot_dimension_numbers<[1], [0], [0], [1], [0, 0, 1, 1], [], []>} : vector<8x128xf32>, vector<128x384xf32>, vector<8x384xf32> -> vector<8x384xf32>
    %500 = vector.broadcast %5 : vector<1x384xf32> to vector<8x384xf32>
    %501 = arith.addf %499, %500 : vector<8x384xf32>
    %502 = vector.extract_strided_slice %501 {offsets = [0, 0], sizes = [8, 128], strides = [1, 1]} : vector<8x384xf32> to vector<8x128xf32>
    %503 = vector.extract_strided_slice %461 {offsets = [0, 384], sizes = [8, 128], strides = [1, 1]} : vector<8x768xf32> to vector<8x128xf32>
    %504 = arith.addf %502, %503 : vector<8x128xf32>
    %cst_156 = arith.constant 5.000000e-01 : f32
    %505 = vector.broadcast %cst_156 : f32 to vector<8x128xf32>
    %506 = arith.mulf %505, %504 : vector<8x128xf32>
    %507 = math.tanh %506 : vector<8x128xf32>
    %cst_157 = arith.constant 1.000000e+00 : f32
    %508 = vector.broadcast %cst_157 : f32 to vector<8x128xf32>
    %509 = arith.addf %508, %507 : vector<8x128xf32>
    %cst_158 = arith.constant 5.000000e-01 : f32
    %510 = vector.broadcast %cst_158 : f32 to vector<8x128xf32>
    %511 = arith.mulf %510, %509 : vector<8x128xf32>
    %512 = vector.extract_strided_slice %501 {offsets = [0, 128], sizes = [8, 128], strides = [1, 1]} : vector<8x384xf32> to vector<8x128xf32>
    %513 = vector.extract_strided_slice %461 {offsets = [0, 512], sizes = [8, 128], strides = [1, 1]} : vector<8x768xf32> to vector<8x128xf32>
    %514 = arith.addf %512, %513 : vector<8x128xf32>
    %cst_159 = arith.constant 5.000000e-01 : f32
    %515 = vector.broadcast %cst_159 : f32 to vector<8x128xf32>
    %516 = arith.mulf %515, %514 : vector<8x128xf32>
    %517 = math.tanh %516 : vector<8x128xf32>
    %cst_160 = arith.constant 1.000000e+00 : f32
    %518 = vector.broadcast %cst_160 : f32 to vector<8x128xf32>
    %519 = arith.addf %518, %517 : vector<8x128xf32>
    %cst_161 = arith.constant 5.000000e-01 : f32
    %520 = vector.broadcast %cst_161 : f32 to vector<8x128xf32>
    %521 = arith.mulf %520, %519 : vector<8x128xf32>
    %522 = vector.extract_strided_slice %501 {offsets = [0, 256], sizes = [8, 128], strides = [1, 1]} : vector<8x384xf32> to vector<8x128xf32>
    %523 = vector.extract_strided_slice %461 {offsets = [0, 640], sizes = [8, 128], strides = [1, 1]} : vector<8x768xf32> to vector<8x128xf32>
    %524 = vector.broadcast %7 : vector<1x128xf32> to vector<8x128xf32>
    %525 = arith.addf %523, %524 : vector<8x128xf32>
    %526 = arith.mulf %511, %525 : vector<8x128xf32>
    %527 = arith.addf %522, %526 : vector<8x128xf32>
    %528 = math.tanh %527 : vector<8x128xf32>
    %cst_162 = arith.constant 1.000000e+00 : f32
    %529 = vector.broadcast %cst_162 : f32 to vector<8x128xf32>
    %530 = arith.subf %529, %521 : vector<8x128xf32>
    %531 = arith.mulf %530, %528 : vector<8x128xf32>
    %532 = arith.mulf %521, %458 : vector<8x128xf32>
    %533 = arith.addf %531, %532 : vector<8x128xf32>
    %c7_i32 = arith.constant 7 : i32
    %534 = tpu.concatenate %497, %533 in 1 : vector<8x128xf32>, vector<8x128xf32> -> vector<8x256xf32>
    %c0_163 = arith.constant 0 : index
    %c0_164 = arith.constant 0 : index
    %535 = vector.load %arg3[%c0_163, %c0_164] : memref<256x768xf32, #tpu.memory_space<vmem>>, vector<256x768xf32>
    %cst_165 = arith.constant dense<0.000000e+00> : vector<8x768xf32>
    %536 = tpu.matmul %534, %535, %cst_165 {dimension_numbers = #tpu.dot_dimension_numbers<[1], [0], [0], [1], [0, 0, 1, 1], [], []>} : vector<8x256xf32>, vector<256x768xf32>, vector<8x768xf32> -> vector<8x768xf32>
    %c8_i32_166 = arith.constant 8 : i32
    %537 = arith.muli %c7_i32, %c8_i32_166 : i32
    %538 = tpu.assume_multiple %537, 8 : i32
    %539 = arith.index_cast %538 : i32 to index
    %c0_167 = arith.constant 0 : index
    %540 = vector.load %arg8[%539, %c0_167] : memref<64x384xf32, #tpu.memory_space<vmem>>, vector<8x384xf32>
    %541 = vector.extract_strided_slice %540 {offsets = [0, 0], sizes = [8, 128], strides = [1, 1]} : vector<8x384xf32> to vector<8x128xf32>
    %542 = vector.extract_strided_slice %536 {offsets = [0, 0], sizes = [8, 128], strides = [1, 1]} : vector<8x768xf32> to vector<8x128xf32>
    %543 = arith.addf %541, %542 : vector<8x128xf32>
    %cst_168 = arith.constant 5.000000e-01 : f32
    %544 = vector.broadcast %cst_168 : f32 to vector<8x128xf32>
    %545 = arith.mulf %544, %543 : vector<8x128xf32>
    %546 = math.tanh %545 : vector<8x128xf32>
    %cst_169 = arith.constant 1.000000e+00 : f32
    %547 = vector.broadcast %cst_169 : f32 to vector<8x128xf32>
    %548 = arith.addf %547, %546 : vector<8x128xf32>
    %cst_170 = arith.constant 5.000000e-01 : f32
    %549 = vector.broadcast %cst_170 : f32 to vector<8x128xf32>
    %550 = arith.mulf %549, %548 : vector<8x128xf32>
    %551 = vector.extract_strided_slice %540 {offsets = [0, 128], sizes = [8, 128], strides = [1, 1]} : vector<8x384xf32> to vector<8x128xf32>
    %552 = vector.extract_strided_slice %536 {offsets = [0, 128], sizes = [8, 128], strides = [1, 1]} : vector<8x768xf32> to vector<8x128xf32>
    %553 = arith.addf %551, %552 : vector<8x128xf32>
    %cst_171 = arith.constant 5.000000e-01 : f32
    %554 = vector.broadcast %cst_171 : f32 to vector<8x128xf32>
    %555 = arith.mulf %554, %553 : vector<8x128xf32>
    %556 = math.tanh %555 : vector<8x128xf32>
    %cst_172 = arith.constant 1.000000e+00 : f32
    %557 = vector.broadcast %cst_172 : f32 to vector<8x128xf32>
    %558 = arith.addf %557, %556 : vector<8x128xf32>
    %cst_173 = arith.constant 5.000000e-01 : f32
    %559 = vector.broadcast %cst_173 : f32 to vector<8x128xf32>
    %560 = arith.mulf %559, %558 : vector<8x128xf32>
    %561 = vector.extract_strided_slice %540 {offsets = [0, 256], sizes = [8, 128], strides = [1, 1]} : vector<8x384xf32> to vector<8x128xf32>
    %562 = vector.extract_strided_slice %536 {offsets = [0, 256], sizes = [8, 128], strides = [1, 1]} : vector<8x768xf32> to vector<8x128xf32>
    %563 = vector.broadcast %6 : vector<1x128xf32> to vector<8x128xf32>
    %564 = arith.addf %562, %563 : vector<8x128xf32>
    %565 = arith.mulf %550, %564 : vector<8x128xf32>
    %566 = arith.addf %561, %565 : vector<8x128xf32>
    %567 = math.tanh %566 : vector<8x128xf32>
    %cst_174 = arith.constant 1.000000e+00 : f32
    %568 = vector.broadcast %cst_174 : f32 to vector<8x128xf32>
    %569 = arith.subf %568, %560 : vector<8x128xf32>
    %570 = arith.mulf %569, %567 : vector<8x128xf32>
    %571 = arith.mulf %560, %497 : vector<8x128xf32>
    %572 = arith.addf %570, %571 : vector<8x128xf32>
    %c8_175 = arith.constant 8 : index
    %c0_176 = arith.constant 0 : index
    %573 = vector.load %arg2[%c8_175, %c0_176] : memref<136x384xf32, #tpu.memory_space<vmem>>, vector<128x384xf32>
    %cst_177 = arith.constant dense<0.000000e+00> : vector<8x384xf32>
    %574 = tpu.matmul %572, %573, %cst_177 {dimension_numbers = #tpu.dot_dimension_numbers<[1], [0], [0], [1], [0, 0, 1, 1], [], []>} : vector<8x128xf32>, vector<128x384xf32>, vector<8x384xf32> -> vector<8x384xf32>
    %575 = vector.broadcast %5 : vector<1x384xf32> to vector<8x384xf32>
    %576 = arith.addf %574, %575 : vector<8x384xf32>
    %577 = vector.extract_strided_slice %576 {offsets = [0, 0], sizes = [8, 128], strides = [1, 1]} : vector<8x384xf32> to vector<8x128xf32>
    %578 = vector.extract_strided_slice %536 {offsets = [0, 384], sizes = [8, 128], strides = [1, 1]} : vector<8x768xf32> to vector<8x128xf32>
    %579 = arith.addf %577, %578 : vector<8x128xf32>
    %cst_178 = arith.constant 5.000000e-01 : f32
    %580 = vector.broadcast %cst_178 : f32 to vector<8x128xf32>
    %581 = arith.mulf %580, %579 : vector<8x128xf32>
    %582 = math.tanh %581 : vector<8x128xf32>
    %cst_179 = arith.constant 1.000000e+00 : f32
    %583 = vector.broadcast %cst_179 : f32 to vector<8x128xf32>
    %584 = arith.addf %583, %582 : vector<8x128xf32>
    %cst_180 = arith.constant 5.000000e-01 : f32
    %585 = vector.broadcast %cst_180 : f32 to vector<8x128xf32>
    %586 = arith.mulf %585, %584 : vector<8x128xf32>
    %587 = vector.extract_strided_slice %576 {offsets = [0, 128], sizes = [8, 128], strides = [1, 1]} : vector<8x384xf32> to vector<8x128xf32>
    %588 = vector.extract_strided_slice %536 {offsets = [0, 512], sizes = [8, 128], strides = [1, 1]} : vector<8x768xf32> to vector<8x128xf32>
    %589 = arith.addf %587, %588 : vector<8x128xf32>
    %cst_181 = arith.constant 5.000000e-01 : f32
    %590 = vector.broadcast %cst_181 : f32 to vector<8x128xf32>
    %591 = arith.mulf %590, %589 : vector<8x128xf32>
    %592 = math.tanh %591 : vector<8x128xf32>
    %cst_182 = arith.constant 1.000000e+00 : f32
    %593 = vector.broadcast %cst_182 : f32 to vector<8x128xf32>
    %594 = arith.addf %593, %592 : vector<8x128xf32>
    %cst_183 = arith.constant 5.000000e-01 : f32
    %595 = vector.broadcast %cst_183 : f32 to vector<8x128xf32>
    %596 = arith.mulf %595, %594 : vector<8x128xf32>
    %597 = vector.extract_strided_slice %576 {offsets = [0, 256], sizes = [8, 128], strides = [1, 1]} : vector<8x384xf32> to vector<8x128xf32>
    %598 = vector.extract_strided_slice %536 {offsets = [0, 640], sizes = [8, 128], strides = [1, 1]} : vector<8x768xf32> to vector<8x128xf32>
    %599 = vector.broadcast %7 : vector<1x128xf32> to vector<8x128xf32>
    %600 = arith.addf %598, %599 : vector<8x128xf32>
    %601 = arith.mulf %586, %600 : vector<8x128xf32>
    %602 = arith.addf %597, %601 : vector<8x128xf32>
    %603 = math.tanh %602 : vector<8x128xf32>
    %cst_184 = arith.constant 1.000000e+00 : f32
    %604 = vector.broadcast %cst_184 : f32 to vector<8x128xf32>
    %605 = arith.subf %604, %596 : vector<8x128xf32>
    %606 = arith.mulf %605, %603 : vector<8x128xf32>
    %607 = arith.mulf %596, %533 : vector<8x128xf32>
    %608 = arith.addf %606, %607 : vector<8x128xf32>
    %c8_i32_185 = arith.constant 8 : i32
    %c0_186 = arith.constant 0 : index
    %c0_187 = arith.constant 0 : index
    %609 = vector.load %arg5[%c0_186, %c0_187] : memref<256x128xf32, #tpu.memory_space<vmem>>, vector<128x128xf32>
    %cst_188 = arith.constant dense<0.000000e+00> : vector<8x128xf32>
    %610 = tpu.matmul %608, %609, %cst_188 {dimension_numbers = #tpu.dot_dimension_numbers<[1], [0], [0], [1], [0, 0, 1, 1], [], []>} : vector<8x128xf32>, vector<128x128xf32>, vector<8x128xf32> -> vector<8x128xf32>
    %c0_189 = arith.constant 0 : index
    %c0_190 = arith.constant 0 : index
    %611 = vector.load %arg6[%c0_189, %c0_190] : memref<8x128xf32, #tpu.memory_space<vmem>>, vector<1x128xf32>
    %612 = vector.broadcast %611 : vector<1x128xf32> to vector<8x128xf32>
    %613 = arith.addf %610, %612 : vector<8x128xf32>
    %cst_191 = arith.constant 0.000000e+00 : f32
    %614 = vector.broadcast %cst_191 : f32 to vector<8x128xf32>
    %615 = arith.maximumf %613, %614 : vector<8x128xf32>
    %c128_192 = arith.constant 128 : index
    %c0_193 = arith.constant 0 : index
    %616 = vector.load %arg5[%c128_192, %c0_193] : memref<256x128xf32, #tpu.memory_space<vmem>>, vector<128x128xf32>
    %cst_194 = arith.constant dense<0.000000e+00> : vector<8x128xf32>
    %617 = tpu.matmul %615, %616, %cst_194 {dimension_numbers = #tpu.dot_dimension_numbers<[1], [0], [0], [1], [0, 0, 1, 1], [], []>} : vector<8x128xf32>, vector<128x128xf32>, vector<8x128xf32> -> vector<8x128xf32>
    %c1_195 = arith.constant 1 : index
    %c0_196 = arith.constant 0 : index
    %618 = vector.load %arg6[%c1_195, %c0_196] : memref<8x128xf32, #tpu.memory_space<vmem>>, vector<1x128xf32>
    %619 = vector.broadcast %618 : vector<1x128xf32> to vector<8x128xf32>
    %620 = arith.addf %617, %619 : vector<8x128xf32>
    %c0_197 = arith.constant 0 : index
    %c0_198 = arith.constant 0 : index
    %621 = vector.load %arg7[%c0_197, %c0_198] : memref<8x128xf32, #tpu.memory_space<vmem>>, vector<8x128xf32>
    tpu.vector_store %arg7[%c0_197, %c0_198], %620 {strides = array<i32>} : memref<8x128xf32, #tpu.memory_space<vmem>>, vector<8x128xf32>,
    return
  }
  func.func @transform_0(%arg0: i32) -> (i32, i32, i32) {
    %c0_i32 = arith.constant 0 : i32
    %c0_i32_0 = arith.constant 0 : i32
    %c0_i32_1 = arith.constant 0 : i32
    return %arg0, %c0_i32, %c0_i32_0 : i32, i32, i32
  }
  func.func @transform_1(%arg0: i32) -> (i32, i32) {
    %c0_i32 = arith.constant 0 : i32
    %c0_i32_0 = arith.constant 0 : i32
    %c0_i32_1 = arith.constant 0 : i32
    return %c0_i32, %c0_i32_0 : i32, i32
  }
  func.func @transform_2(%arg0: i32) -> (i32, i32) {
    %c0_i32 = arith.constant 0 : i32
    %c0_i32_0 = arith.constant 0 : i32
    %c0_i32_1 = arith.constant 0 : i32
    return %c0_i32, %c0_i32_0 : i32, i32
  }
  func.func @transform_3(%arg0: i32) -> (i32, i32) {
    %c0_i32 = arith.constant 0 : i32
    %c0_i32_0 = arith.constant 0 : i32
    %c0_i32_1 = arith.constant 0 : i32
    return %c0_i32, %c0_i32_0 : i32, i32
  }
  func.func @transform_4(%arg0: i32) -> (i32, i32) {
    %c0_i32 = arith.constant 0 : i32
    %c0_i32_0 = arith.constant 0 : i32
    %c0_i32_1 = arith.constant 0 : i32
    return %c0_i32, %c0_i32_0 : i32, i32
  }
  func.func @transform_5(%arg0: i32) -> (i32, i32) {
    %c0_i32 = arith.constant 0 : i32
    %c0_i32_0 = arith.constant 0 : i32
    %c0_i32_1 = arith.constant 0 : i32
    return %c0_i32, %c0_i32_0 : i32, i32
  }
  func.func @transform_6(%arg0: i32) -> (i32, i32) {
    %c0_i32 = arith.constant 0 : i32
    %c0_i32_0 = arith.constant 0 : i32
    return %arg0, %c0_i32 : i32, i32
  }
}

</mosaic_0001>

<bundles_post_ra>
// kernel: tpu_custom_call.1
= control target key start
LH: loop header
LB: loop body
LE: loop exit
PB: predicated region body
PF: predicated region fallthrough
CT: control target
= control target key end

     0   :  { %11 = vsyncpa [#allocation4], 0  ;;  %s8414_s0 = inlined_call_operand.vmem [shape: f32[1,64,8], index: 0, kind: input, shape index: {}]   ;;  %s8415_s1 = inlined_call_operand.hbm [shape: f32[136,384], index: 1, kind: input, shape index: {}]   ;;  %s8416_s2 = inlined_call_operand.hbm [shape: f32[256,768], index: 2, kind: input, shape index: {}]   ;;  %s8417_s3 = inlined_call_operand.vmem [shape: f32[8,384], index: 3, kind: input, shape index: {}]   ;;  %s8418_s4 = inlined_call_operand.hbm [shape: f32[256,128], index: 4, kind: input, shape index: {}]   ;;  %s8419_s5 = inlined_call_operand.vmem [shape: f32[8,128], index: 5, kind: input, shape index: {}]   ;;  %s8420_s6 = inlined_call_operand.hbm [shape: f32[8,128], index: 6, kind: output, shape index: {}]  }
   0x1   :  { %12 = vsyncpa [#allocation7], 0  ;;  %s33_s23 = sshll.u32 %s8416_s2, 4  ;;  %s34_s23 = int_to_ptr.hbm [resolvable:$true] %s33_s23 }
   0x2   :  { %13 = vsyncpa [#allocation5], 0  ;;  %s4341_s24 = smov [#allocation6]   ;;  %s20_s28 = sshll.u32 %s8415_s1, 4  ;;  %s21_s28 = int_to_ptr.hbm [resolvable:$true] %s20_s28 }
   0x3   :  { %s35_s25 = sshll.u32 %s4341_s24, 4  ;;  %s4342_s29 = smov 768   ;;  %s36_s25 = int_to_ptr.vmem [resolvable:$true] %s35_s25 }
   0x4   :  { %s4343_s30 = smov 48   ;;  %s4344_s7 = smov [#allocation3]  }
   0x5   :  { %41 = dma.hbm_to_vmem [thread:$0]  %s34_s23, 24576, %s36_s25, [#allocation7], %s4342_s29, %s4342_s29, %s4343_s30  }
   0x6   :  { %s22_s8 = sshll.u32 %s4344_s7, 4  ;;  %s4345_s9 = smov 384   ;;  %s23_s8 = int_to_ptr.vmem [resolvable:$true] %s22_s8 }
   0x7   :  { %s4346_s10 = smov 24   ;;  %s48_s12 = sshll.u32 %s8418_s4, 4  ;;  %s49_s12 = int_to_ptr.hbm [resolvable:$true] %s48_s12 }
   0x8   :  { %28 = dma.hbm_to_vmem [thread:$0]  %s21_s28, 6528, %s23_s8, [#allocation4], %s4345_s9, %s4345_s9, %s4346_s10  }
   0x9   :  { %s4347_s13 = smov [#allocation8]   ;;  %s4348_s15 = smov 128  }
   0xa   :  { %s50_s14 = sshll.u32 %s4347_s13, 4  ;;  %s4349_s1 = smov 8   ;;  %s51_s14 = int_to_ptr.vmem [resolvable:$true] %s50_s14 }
   0xb   :  { %56 = dma.hbm_to_vmem [thread:$0]  %s49_s12, 4096, %s51_s14, [#allocation7], %s4348_s15, %s4348_s15, %s4349_s1  }
   0xc   :  { %4335 = dma.done.wait [#allocation4], 6528  }
   0xd   :  { %4336 = vsyncadd [#allocation4], 4294960768 }
   0xe   :  { %4337 = dma.done.wait [#allocation7], 28672  }
   0xf   :  { %4338 = vsyncadd [#allocation7], 4294938624  ;;  %vm82_vm0 = vcmask 64512   ;;  %v79_v0 = vld [vmem:[#allocation3] sm:$0xff]  ;;  %v80_v1 = vld [vmem:[#allocation3 + $0x8] sm:$0xff]  ;;  %v8421_v61 = vmov 0.0  }
  0x10   :  { %v4396_v2 = vld [vmem:[#allocation6 + $0x2d0] sm:$0xff]  ;;  %122 = vmatpush.msra.mxu0 %v79_v0  ;;  %163 = vmatpush.msra.mxu1 %v80_v1  ;;  %v71_v3 = vld [vmem:[%s8414_s0] sm:$0xff]  ;;  %v4401_v4 = vld [vmem:[#allocation6 + $0x2a0] sm:$0xff]  ;;  %s4351_s24 = smov [#allocation9]   ;;  %s3325_s28 = sshll.u32 %s8420_s6, 4  ;;  %s3326_s28 = int_to_ptr.hbm [resolvable:$true] %s3325_s28 }
  0x11   :  { %449 = vmatpush.msra.mxu3 %v4396_v2  ;;  %3343 = vmatmul.msk.f32.vlgmr.msra.gmra.mxu0 %vm82_vm0, %v71_v3  ;;  %v4406_v5 = vld [vmem:[#allocation6 + $0x270] sm:$0xff]  ;;  %v4409_v6 = vld [vmem:[#allocation6 + $0x240] sm:$0xff]  ;;  %v81_v7 = vld [vmem:[#allocation3 + $0x10] sm:$0xff]  ;;  %s3323_s25 = sshll.u32 %s4351_s24, 4  ;;  %s3324_s25 = int_to_ptr.vmem [resolvable:$true] %s3323_s25 }
  0x12   :  { %3351 = vmatmul.msk.f32.vlgmr.msra.gmra.mxu1 %vm82_vm0, %v71_v3  ;;  %v4412_v8 = vld [vmem:[#allocation6 + $0x210] sm:$0xff]  ;;  %204 = vmatpush.msra.mxu2 %v81_v7  ;;  %v4417_v10 = vld [vmem:[#allocation6 + $0x2e0] sm:$0xff]  ;;  %v4421_v11 = vld [vmem:[#allocation6 + $0x2d8] sm:$0xff] }
  0x13   :  { %450 = vmatpush.msra.mxu3 %v4401_v4  ;;  %v72_v9 = vld [vmem:[%s8414_s0 + $0x8] sm:$0xff]  ;;  %3359 = vmatmul.msk.f32.vlgmr.msra.gmra.mxu2 %vm82_vm0, %v71_v3  ;;  %v4423_v12 = vld [vmem:[#allocation6 + $0x1e0] sm:$0xff]  ;;  %v444_v13 = vld [vmem:[#allocation6 + $0x5d8] sm:$0xff] }
  0x14   :  { %529 = vmatpush.msrb.mxu2 %v4417_v10  ;;  %489 = vmatpush.msrb.mxu0 %v4421_v11  ;;  %v4427_v14 = vld [vmem:[#allocation6 + $0x2b0] sm:$0xff]  ;;  %v4431_v15 = vld [vmem:[#allocation6 + $0x2a8] sm:$0xff]  ;;  %v4437_v18 = vld [vmem:[#allocation6 + $0x280] sm:$0xff] }
  0x15   :  { %451 = vmatpush.msra.mxu3 %v4406_v5  ;;  %v4434_v16 = vld [vmem:[#allocation6 + $0x1b0] sm:$0xff]  ;;  %v438_v17 = vld [vmem:[#allocation6 + $0x5a8] sm:$0xff]  ;;  %509 = vmatpush.msrb.mxu1 %v444_v13  ;;  %v4440_v19 = vld [vmem:[#allocation6 + $0x278] sm:$0xff] }
  0x16   :  { %530 = vmatpush.msrb.mxu2 %v4427_v14  ;;  %v4442_v20 = vld [vmem:[#allocation6 + $0x180] sm:$0xff]  ;;  %490 = vmatpush.msrb.mxu0 %v4431_v15  ;;  %v432_v21 = vld [vmem:[#allocation6 + $0x578] sm:$0xff]  ;;  %v4447_v22 = vld [vmem:[#allocation6 + $0x248] sm:$0xff] }
  0x17   :  { %452 = vmatpush.msra.mxu3 %v4409_v6  ;;  %510 = vmatpush.msrb.mxu1 %v438_v17  ;;  %v4449_v23 = vld [vmem:[#allocation6 + $0x250] sm:$0xff]  ;;  %v73_v25 = vld [vmem:[%s8414_s0 + $0x10] sm:$0xff]  ;;  %v4462_v27 = vld [vmem:[#allocation6 + $0x120] sm:$0xff] }
  0x18   :  { %531 = vmatpush.msrb.mxu2 %v4437_v18  ;;  %v4451_v24 = vld [vmem:[#allocation6 + $0x150] sm:$0xff]  ;;  %491 = vmatpush.msrb.mxu0 %v4440_v19  ;;  %v4460_v26 = vld [vmem:[#allocation6 + $0x218] sm:$0xff]  ;;  %v426_v28 = vld [vmem:[#allocation6 + $0x548] sm:$0xff] }
  0x19   :  { %453 = vmatpush.msra.mxu3 %v4412_v8  ;;  %3344 = vmatmul.msk.f32.gmra.mxu0 %vm82_vm0, %v72_v9  ;;  %v4467_v29 = vld [vmem:[#allocation6 + $0x1e8] sm:$0xff]  ;;  %v4469_v30 = vld [vmem:[#allocation6 + $0x220] sm:$0xff]  ;;  %v4472_v31 = vld [vmem:[#allocation6 + $0xf0] sm:$0xff] }
  0x1a   :  { %3352 = vmatmul.msk.f32.gmra.mxu1 %vm82_vm0, %v72_v9  ;;  %532 = vmatpush.msrb.mxu2 %v4449_v23  ;;  %v420_v32 = vld [vmem:[#allocation6 + $0x518] sm:$0xff]  ;;  %v4478_v34 = vld [vmem:[#allocation6 + $0x1f0] sm:$0xff]  ;;  %v4480_v35 = vld [vmem:[#allocation6 + $0xc0] sm:$0xff] }
  0x1b   :  { %454 = vmatpush.msra.mxu3 %v4423_v12  ;;  %3360 = vmatmul.msk.f32.gmra.mxu2 %vm82_vm0, %v72_v9  ;;  %v4475_v33 = vld [vmem:[#allocation6 + $0x1b8] sm:$0xff]  ;;  %v414_v36 = vld [vmem:[#allocation6 + $0x4e8] sm:$0xff]  ;;  %v4487_v38 = vld [vmem:[#allocation6 + $0x90] sm:$0xff] }
  0x1c   :  { %511 = vmatpush.msrb.mxu1 %v432_v21  ;;  %492 = vmatpush.msrb.mxu0 %v4447_v22  ;;  %v4485_v37 = vld [vmem:[#allocation6 + $0x188] sm:$0xff]  ;;  %v74_v39 = vld [vmem:[%s8414_s0 + $0x18] sm:$0xff]  ;;  %v4495_v40 = vld [vmem:[#allocation6 + $0x158] sm:$0xff] }
  0x1d   :  { %455 = vmatpush.msra.mxu3 %v4434_v16  ;;  %533 = vmatpush.msrb.mxu2 %v4469_v30  ;;  %v4497_v41 = vld [vmem:[#allocation6 + $0x60] sm:$0xff]  ;;  %v408_v42 = vld [vmem:[#allocation6 + $0x4b8] sm:$0xff]  ;;  %v4503_v43 = vld [vmem:[#allocation6 + $0x128] sm:$0xff] }
  0x1e   :  { %493 = vmatpush.msrb.mxu0 %v4460_v26  ;;  %512 = vmatpush.msrb.mxu1 %v426_v28  ;;  %v4505_v44 = vld [vmem:[#allocation6 + $0x1c0] sm:$0xff]  ;;  %v4508_v45 = vld [vmem:[#allocation6 + $0x30] sm:$0xff]  ;;  %v402_v46 = vld [vmem:[#allocation6 + $0x488] sm:$0xff] }
  0x1f   :  { %456 = vmatpush.msra.mxu3 %v4442_v20  ;;  %534 = vmatpush.msrb.mxu2 %v4478_v34  ;;  %v4512_v47 = vld [vmem:[#allocation6 + $0xf8] sm:$0xff]  ;;  %v4514_v48 = vld [vmem:[#allocation6 + $0x190] sm:$0xff]  ;;  %v4516_v49 = vld [vmem:[#allocation6] sm:$0xff] }
  0x20   :  { %494 = vmatpush.msrb.mxu0 %v4467_v29  ;;  %513 = vmatpush.msrb.mxu1 %v420_v32  ;;  %v396_v50 = vld [vmem:[#allocation6 + $0x458] sm:$0xff]  ;;  %v4521_v51 = vld [vmem:[#allocation6 + $0x5d0] sm:$0xff]  ;;  %v75_v52 = vld [vmem:[%s8414_s0 + $0x20] sm:$0xff] }
  0x21   :  { %457 = vmatpush.msra.mxu3 %v4451_v24  ;;  %3345 = vmatmul.msk.f32.gmra.mxu0 %vm82_vm0, %v73_v25  ;;  %9014 = vst [vmem:[#allocation13_spill] sm:$0xff] %v4521_v51  ;;  %v390_v53 = vld [vmem:[#allocation6 + $0x428] sm:$0xff]  ;;  %v4529_v54 = vld [vmem:[#allocation6 + $0x5a0] sm:$0xff]  ;;  %v384_v55 = vld [vmem:[#allocation6 + $0x3f8] sm:$0xff] }
  0x22   :  { %3353 = vmatmul.msk.f32.gmra.mxu1 %vm82_vm0, %v73_v25  ;;  %495 = vmatpush.msrb.mxu0 %v4475_v33  ;;  %9015 = vst [vmem:[#allocation14_spill] sm:$0xff] %v4529_v54  ;;  %v4534_v56 = vld [vmem:[#allocation6 + $0x570] sm:$0xff]  ;;  %v4536_v57 = vld [vmem:[#allocation6 + $0xc8] sm:$0xff]  ;;  %v4540_v59 = vld [vmem:[#allocation6 + $0x160] sm:$0xff] }
  0x23   :  { %458 = vmatpush.msra.mxu3 %v4462_v27  ;;  %514 = vmatpush.msrb.mxu1 %v414_v36  ;;  %9016 = vst [vmem:[#allocation15_spill] sm:$0xff] %v4534_v56  ;;  %v378_v58 = vld [vmem:[#allocation6 + $0x3c8] sm:$0xff]  ;;  %v4542_v60 = vld [vmem:[#allocation6 + $0x540] sm:$0xff]  ;;  %v4545_v62 = vld [vmem:[#allocation6 + $0x98] sm:$0xff] }
  0x24   :  { %3361 = vmatmul.msk.f32.gmra.mxu2 %vm82_vm0, %v73_v25  ;;  %496 = vmatpush.msrb.mxu0 %v4485_v37  ;;  %9017 = vst [vmem:[#allocation16_spill] sm:$0xff] %v4542_v60  ;;  %v372_v63 = vld [vmem:[#allocation6 + $0x398] sm:$0xff]  ;;  %v4549_v0 = vld [vmem:[#allocation6 + $0x130] sm:$0xff]  ;;  %v4553_v3 = vld [vmem:[#allocation6 + $0x68] sm:$0xff] }
  0x25   :  { %459 = vmatpush.msra.mxu3 %v4472_v31  ;;  %515 = vmatpush.msrb.mxu1 %v408_v42  ;;  %v4551_v1 = vld [vmem:[#allocation6 + $0x510] sm:$0xff]  ;;  %v366_v9 = vld [vmem:[#allocation6 + $0x368] sm:$0xff]  ;;  %v4561_v13 = vld [vmem:[#allocation6 + $0x4e0] sm:$0xff] }
  0x26   :  { %497 = vmatpush.msrb.mxu0 %v4495_v40  ;;  %535 = vmatpush.msrb.mxu2 %v4505_v44  ;;  %9018 = vst [vmem:[#allocation17_spill] sm:$0xff] %v4551_v1  ;;  %v76_v7 = vld [vmem:[%s8414_s0 + $0x28] sm:$0xff]  ;;  %v4566_v17 = vld [vmem:[#allocation6 + $0x38] sm:$0xff]  ;;  %v4573_v28 = vld [vmem:[#allocation6 + $0x8] sm:$0xff] }
  0x27   :  { %460 = vmatpush.msra.mxu3 %v4480_v35  ;;  %516 = vmatpush.msrb.mxu1 %v402_v46  ;;  %9019 = vst [vmem:[#allocation18_spill] sm:$0xff] %v4561_v13  ;;  %v4569_v21 = vld [vmem:[#allocation6 + $0x4b0] sm:$0xff]  ;;  %v360_v25 = vld [vmem:[#allocation6 + $0x338] sm:$0xff]  ;;  %v4575_v32 = vld [vmem:[#allocation6 + $0x100] sm:$0xff] }
  0x28   :  { %498 = vmatpush.msrb.mxu0 %v4503_v43  ;;  %536 = vmatpush.msrb.mxu2 %v4514_v48  ;;  %9020 = vst [vmem:[#allocation19_spill] sm:$0xff] %v4569_v21  ;;  %v4577_v36 = vld [vmem:[#allocation6 + $0x480] sm:$0xff]  ;;  %v4582_v42 = vld [vmem:[#allocation6 + $0xd0] sm:$0xff] }
  0x29   :  { %461 = vmatpush.msra.mxu3 %v4487_v38  ;;  %3346 = vmatmul.msk.f32.gmra.mxu0 %vm82_vm0, %v74_v39  ;;  %9021 = vst [vmem:[#allocation20_spill] sm:$0xff] %v4577_v36  ;;  %v4584_v46 = vld [vmem:[#allocation6 + $0x450] sm:$0xff] }
  0x2a   :  { %3354 = vmatmul.msk.f32.gmra.mxu1 %vm82_vm0, %v74_v39  ;;  %499 = vmatpush.msrb.mxu0 %v4512_v47  ;;  %9022 = vst [vmem:[#allocation21_spill] sm:$0xff] %v4584_v46 }
  0x2b   :  { %462 = vmatpush.msra.mxu3 %v4497_v41  ;;  %517 = vmatpush.msrb.mxu1 %v396_v50  ;;  %v77_v50 = vld [vmem:[%s8414_s0 + $0x30] sm:$0xff] }
  0x2c   :  { %3362 = vmatmul.msk.f32.gmra.mxu2 %vm82_vm0, %v74_v39  ;;  %500 = vmatpush.msrb.mxu0 %v4536_v57  ;;  %v354_v39 = vld [vmem:[#allocation6 + $0x308] sm:$0xff] }
  0x2d   :  { %463 = vmatpush.msra.mxu3 %v4508_v45  ;;  %518 = vmatpush.msrb.mxu1 %v390_v53  ;;  %v4594_v53 = vld [vmem:[#allocation6 + $0x420] sm:$0xff] }
  0x2e   :  { %537 = vmatpush.msrb.mxu2 %v4540_v59  ;;  %501 = vmatpush.msrb.mxu0 %v4545_v62  ;;  %9023 = vst [vmem:[#allocation22_spill] sm:$0xff] %v4594_v53 }
  0x2f   :  { %464 = vmatpush.msra.mxu3 %v4516_v49  ;;  %519 = vmatpush.msrb.mxu1 %v384_v55  ;;  %v4599_v55 = vld [vmem:[#allocation6 + $0x3f0] sm:$0xff] }
  0x30   :  { %465 = vmatmul.f32.vlgmr.msra.gmra.mxu3 %v8421_v61  ;;  %538 = vmatpush.msrb.mxu2 %v4549_v0  ;;  %9024 = vst [vmem:[#allocation23_spill] sm:$0xff] %v4599_v55  ;;  %v4619_v61 = vld [vmem:[#allocation6 + $0x360] sm:$0xff] }
  0x31   :  { %469 = vmatpush.msrb.mxu3 %v4521_v51  ;;  %3347 = vmatmul.msk.f32.gmra.mxu0 %vm82_vm0, %v75_v52  ;;  %9027 = vst [vmem:[#allocation26_spill] sm:$0xff] %v4619_v61  ;;  %v382_v51 = vld [vmem:[#allocation6 + $0x3e8] sm:$0xff] }
  0x32   :  { %3355 = vmatmul.msk.f32.gmra.mxu1 %vm82_vm0, %v75_v52  ;;  %502 = vmatpush.msrb.mxu0 %v4553_v3 }
  0x33   :  { %470 = vmatpush.msrb.mxu3 %v4529_v54  ;;  %520 = vmatpush.msrb.mxu1 %v378_v58  ;;  %v4604_v58 = vld [vmem:[#allocation6 + $0x70] sm:$0xff]  ;;  %v394_v54 = vld [vmem:[#allocation6 + $0x448] sm:$0xff] }
  0x34   :  { %3363 = vmatmul.msk.f32.gmra.mxu2 %vm82_vm0, %v75_v52  ;;  %503 = vmatpush.msrb.mxu0 %v4566_v17  ;;  %v4592_v52 = vld [vmem:[#allocation6 + $0xa0] sm:$0xff] }
  0x35   :  { %471 = vmatpush.msrb.mxu3 %v4534_v56  ;;  %521 = vmatpush.msrb.mxu1 %v372_v63  ;;  %v4606_v63 = vld [vmem:[#allocation6 + $0x3c0] sm:$0xff]  ;;  %v418_v56 = vld [vmem:[#allocation6 + $0x508] sm:$0xff] }
  0x36   :  { %504 = vmatpush.msrb.mxu0 %v4573_v28  ;;  %539 = vmatpush.msrb.mxu2 %v4575_v32  ;;  %9025 = vst [vmem:[#allocation24_spill] sm:$0xff] %v4606_v63 }
  0x37   :  { %472 = vmatpush.msrb.mxu3 %v4542_v60  ;;  %522 = vmatpush.msrb.mxu1 %v366_v9  ;;  %v4611_v9 = vld [vmem:[#allocation6 + $0x390] sm:$0xff] }
  0x38   :  { %540 = vmatpush.msrb.mxu2 %v4582_v42  ;;  %9026 = vst [vmem:[#allocation25_spill] sm:$0xff] %v4611_v9 }
  0x39   :  { %473 = vmatpush.msrb.mxu3 %v4551_v1  ;;  %3348 = vmatmul.msk.f32.gmra.mxu0 %vm82_vm0, %v76_v7  ;;  %v430_v1 = vld [vmem:[#allocation6 + $0x568] sm:$0xff] }
  0x3a   :  { %3356 = vmatmul.msk.f32.gmra.mxu1 %vm82_vm0, %v76_v7  ;;  %541 = vmatpush.msrb.mxu2 %v4592_v52 }
  0x3b   :  { %474 = vmatpush.msrb.mxu3 %v4561_v13  ;;  %523 = vmatpush.msrb.mxu1 %v360_v25  ;;  %v78_v25 = vld [vmem:[%s8414_s0 + $0x38] sm:$0xff]  ;;  %v4743_v13 = vld [vmem:[#allocation6 + $0x288] sm:$0xff] }
  0x3c   :  { %3364 = vmatmul.msk.f32.gmra.mxu2 %vm82_vm0, %v76_v7  ;;  %v4624_v7 = vld [vmem:[#allocation6 + $0x330] sm:$0xff]  ;;  %9065 = vst [vmem:[#allocation63_spill] sm:$0xff] %v4743_v13 }
  0x3d   :  { %475 = vmatpush.msrb.mxu3 %v4569_v21  ;;  %524 = vmatpush.msrb.mxu1 %v354_v39  ;;  %v4617_v39 = vld [vmem:[#allocation6 + $0x40] sm:$0xff]  ;;  %9028 = vst [vmem:[#allocation27_spill] sm:$0xff] %v4624_v7  ;;  %v4669_v21 = vld [vmem:[#allocation6 + $0x490] sm:$0xff] }
  0x3e   :  { %542 = vmatpush.msrb.mxu2 %v4604_v58  ;;  %9041 = vst [vmem:[#allocation39_spill] sm:$0xff] %v4669_v21 }
  0x3f   :  { %476 = vmatpush.msrb.mxu3 %v4577_v36  ;;  %v4641_v36 = vld [vmem:[#allocation6 + $0x5e8] sm:$0xff] }
  0x40   :  { %543 = vmatpush.msrb.mxu2 %v4617_v39  ;;  %9033 = vst [vmem:[#allocation31_spill] sm:$0xff] %v4641_v36  ;;  %589 = vmatpush.msra.mxu1 %v4641_v36  ;;  %v4659_v36 = vld [vmem:[#allocation6 + $0x520] sm:$0xff] }
  0x41   :  { %477 = vmatpush.msrb.mxu3 %v4584_v46  ;;  %3349 = vmatmul.msk.f32.gmra.mxu0 %vm82_vm0, %v77_v50  ;;  %v4639_v46 = vld [vmem:[#allocation6 + $0x5b0] sm:$0xff]  ;;  %9038 = vst [vmem:[#allocation36_spill] sm:$0xff] %v4659_v36 }
  0x42   :  { %3357 = vmatmul.msk.f32.gmra.mxu1 %vm82_vm0, %v77_v50  ;;  %9032 = vst [vmem:[#allocation30_spill] sm:$0xff] %v4639_v46 }
  0x43   :  { %478 = vmatpush.msrb.mxu3 %v4594_v53  ;;  %v4635_v53 = vld [vmem:[#allocation6 + $0x5e0] sm:$0xff] }
  0x44   :  { %3365 = vmatmul.msk.f32.gmra.mxu2 %vm82_vm0, %v77_v50  ;;  %9030 = vst [vmem:[#allocation29_spill] sm:$0xff] %v4635_v53  ;;  %v4648_v50 = vld [vmem:[#allocation6 + $0x580] sm:$0xff] }
  0x45   :  { %479 = vmatpush.msrb.mxu3 %v4599_v55  ;;  %v4630_v55 = vld [vmem:[#allocation6 + $0x300] sm:$0xff]  ;;  %9035 = vst [vmem:[#allocation33_spill] sm:$0xff] %v4648_v50 }
  0x46   :  { %9029 = vst [vmem:[#allocation28_spill] sm:$0xff] %v4630_v55 }
  0x47   :  { %480 = vmatpush.msrb.mxu3 %v4606_v63  ;;  %v4628_v63 = vld [vmem:[#allocation6 + $0x10] sm:$0xff] }
  0x48   :  { %544 = vmatpush.msrb.mxu2 %v4628_v63 }
  0x49   :  { %481 = vmatpush.msrb.mxu3 %v4611_v9  ;;  %3350 = vmatmul.msk.f32.gmra.mxu0 %vm82_vm0, %v78_v25  ;;  %v9031_v9 = vmov 0.0  }
  0x4a   :  { %3358 = vmatmul.msk.f32.gmra.mxu1 %vm82_vm0, %v78_v25 }
  0x4b   :  { %482 = vmatpush.msrb.mxu3 %v4619_v61  ;;  %v4645_v61 = vld [vmem:[#allocation6 + $0x5b8] sm:$0xff] }
  0x4c   :  { %9034 = vst [vmem:[#allocation32_spill] sm:$0xff] %v4645_v61  ;;  %3366 = vmatmul.msk.f32.gmra.mxu2 %vm82_vm0, %v78_v25  ;;  %590 = vmatpush.msra.mxu1 %v4645_v61  ;;  %v4673_v25 = vld [vmem:[#allocation6 + $0x460] sm:$0xff] }
  0x4d   :  { %483 = vmatpush.msrb.mxu3 %v4624_v7  ;;  %v4654_v7 = vld [vmem:[#allocation6 + $0x550] sm:$0xff]  ;;  %9042 = vst [vmem:[#allocation40_spill] sm:$0xff] %v4673_v25  ;;  %v441_v61 = vld [vmem:[#allocation6 + $0x5c0] sm:$0xff] }
  0x4e   :  { %9037 = vst [vmem:[#allocation35_spill] sm:$0xff] %v4654_v7 }
  0x4f   :  { %484 = vmatpush.msrb.mxu3 %v4630_v55  ;;  %v4652_v55 = vld [vmem:[#allocation6 + $0x588] sm:$0xff] }
  0x50   :  { %485 = vmatmul.f32.vlgmr.msrb.gmra.mxu3 %v9031_v9  ;;  %9036 = vst [vmem:[#allocation34_spill] sm:$0xff] %v4652_v55  ;;  %591 = vmatpush.msra.mxu1 %v4652_v55  ;;  %v4676_v55 = vld [vmem:[#allocation6 + $0x430] sm:$0xff] }
  0x51   :  { %549 = vmatpush.msra.mxu3 %v4635_v53  ;;  %505 = vmatmul.f32.vlgmr.msrb.gmra.mxu0 %v9031_v9  ;;  %v4663_v53 = vld [vmem:[#allocation6 + $0x4f0] sm:$0xff]  ;;  %9043 = vst [vmem:[#allocation41_spill] sm:$0xff] %v4676_v55 }
  0x52   :  { %525 = vmatmul.f32.vlgmr.msrb.gmra.mxu1 %v9031_v9  ;;  %9039 = vst [vmem:[#allocation37_spill] sm:$0xff] %v4663_v53 }
  0x53   :  { %550 = vmatpush.msra.mxu3 %v4639_v46  ;;  %v4666_v46 = vld [vmem:[#allocation6 + $0x4c0] sm:$0xff] }
  0x54   :  { %9040 = vst [vmem:[#allocation38_spill] sm:$0xff] %v4666_v46  ;;  %545 = vmatmul.f32.vlgmr.msrb.gmra.mxu2 %v9031_v9 }
  0x55   :  { %551 = vmatpush.msra.mxu3 %v4648_v50  ;;  %v4741_v50 = vld [vmem:[#allocation6 + $0x2b8] sm:$0xff] }
  0x56   :  { %9064 = vst [vmem:[#allocation62_spill] sm:$0xff] %v4741_v50 }
  0x57   :  { %552 = vmatpush.msra.mxu3 %v4654_v7  ;;  %v4679_v7 = vld [vmem:[#allocation6 + $0x400] sm:$0xff] }
  0x58   :  { %9044 = vst [vmem:[#allocation42_spill] sm:$0xff] %v4679_v7 }
  0x59   :  { %553 = vmatpush.msra.mxu3 %v4659_v36  ;;  %v4682_v36 = vld [vmem:[#allocation6 + $0x3d0] sm:$0xff] }
  0x5a   :  { %9045 = vst [vmem:[#allocation43_spill] sm:$0xff] %v4682_v36 }
  0x5b   :  { %554 = vmatpush.msra.mxu3 %v4663_v53  ;;  %v4685_v53 = vld [vmem:[#allocation6 + $0x3a0] sm:$0xff] }
  0x5c   :  { %9046 = vst [vmem:[#allocation44_spill] sm:$0xff] %v4685_v53 }
  0x5d   :  { %555 = vmatpush.msra.mxu3 %v4666_v46  ;;  %v4688_v46 = vld [vmem:[#allocation6 + $0x370] sm:$0xff] }
  0x5e   :  { %9047 = vst [vmem:[#allocation45_spill] sm:$0xff] %v4688_v46 }
  0x5f   :  { %556 = vmatpush.msra.mxu3 %v4669_v21  ;;  %v4691_v21 = vld [vmem:[#allocation6 + $0x340] sm:$0xff] }
  0x60   :  { %9048 = vst [vmem:[#allocation46_spill] sm:$0xff] %v4691_v21 }
  0x61   :  { %557 = vmatpush.msra.mxu3 %v4673_v25  ;;  %v4694_v25 = vld [vmem:[#allocation6 + $0x310] sm:$0xff] }
  0x62   :  { %9049 = vst [vmem:[#allocation47_spill] sm:$0xff] %v4694_v25 }
  0x63   :  { %558 = vmatpush.msra.mxu3 %v4676_v55  ;;  %v4701_v55 = vld [vmem:[#allocation6 + $0x528] sm:$0xff] }
  0x64   :  { %9051 = vst [vmem:[#allocation49_spill] sm:$0xff] %v4701_v55 }
  0x65   :  { %559 = vmatpush.msra.mxu3 %v4679_v7  ;;  %v4699_v7 = vld [vmem:[#allocation6 + $0x558] sm:$0xff] }
  0x66   :  { %9050 = vst [vmem:[#allocation48_spill] sm:$0xff] %v4699_v7  ;;  %592 = vmatpush.msra.mxu1 %v4699_v7  ;;  %v4719_v7 = vld [vmem:[#allocation6 + $0x408] sm:$0xff] }
  0x67   :  { %560 = vmatpush.msra.mxu3 %v4682_v36  ;;  %v4704_v36 = vld [vmem:[#allocation6 + $0x4f8] sm:$0xff]  ;;  %9057 = vst [vmem:[#allocation55_spill] sm:$0xff] %v4719_v7 }
  0x68   :  { %9052 = vst [vmem:[#allocation50_spill] sm:$0xff] %v4704_v36  ;;  %593 = vmatpush.msra.mxu1 %v4701_v55  ;;  %v4723_v55 = vld [vmem:[#allocation6 + $0x3d8] sm:$0xff] }
  0x69   :  { %561 = vmatpush.msra.mxu3 %v4685_v53  ;;  %v4707_v53 = vld [vmem:[#allocation6 + $0x4c8] sm:$0xff]  ;;  %9058 = vst [vmem:[#allocation56_spill] sm:$0xff] %v4723_v55 }
  0x6a   :  { %9053 = vst [vmem:[#allocation51_spill] sm:$0xff] %v4707_v53  ;;  %594 = vmatpush.msra.mxu1 %v4704_v36  ;;  %v4725_v36 = vld [vmem:[#allocation6 + $0x3a8] sm:$0xff] }
  0x6b   :  { %562 = vmatpush.msra.mxu3 %v4688_v46  ;;  %v4716_v46 = vld [vmem:[#allocation6 + $0x438] sm:$0xff]  ;;  %9059 = vst [vmem:[#allocation57_spill] sm:$0xff] %v4725_v36 }
  0x6c   :  { %595 = vmatpush.msra.mxu1 %v4707_v53  ;;  %9056 = vst [vmem:[#allocation54_spill] sm:$0xff] %v4716_v46  ;;  %v4728_v53 = vld [vmem:[#allocation6 + $0x378] sm:$0xff] }
  0x6d   :  { %563 = vmatpush.msra.mxu3 %v4691_v21  ;;  %v4711_v21 = vld [vmem:[#allocation6 + $0x498] sm:$0xff]  ;;  %9060 = vst [vmem:[#allocation58_spill] sm:$0xff] %v4728_v53 }
  0x6e   :  { %9054 = vst [vmem:[#allocation52_spill] sm:$0xff] %v4711_v21  ;;  %596 = vmatpush.msra.mxu1 %v4711_v21  ;;  %v4731_v21 = vld [vmem:[#allocation6 + $0x348] sm:$0xff] }
  0x6f   :  { %564 = vmatpush.msra.mxu3 %v4694_v25  ;;  %v4713_v25 = vld [vmem:[#allocation6 + $0x468] sm:$0xff]  ;;  %9061 = vst [vmem:[#allocation59_spill] sm:$0xff] %v4731_v21 }
  0x70   :  { %565 = vmatmul.f32.vlgmr.msra.gmra.mxu3 %v9031_v9  ;;  %9055 = vst [vmem:[#allocation53_spill] sm:$0xff] %v4713_v25  ;;  %597 = vmatpush.msra.mxu1 %v4713_v25  ;;  %v4735_v25 = vld [vmem:[#allocation6 + $0x318] sm:$0xff] }
  0x71   :  { %9062 = vst [vmem:[#allocation60_spill] sm:$0xff] %v4735_v25 }
  0x72   :  { %598 = vmatpush.msra.mxu1 %v4716_v46  ;;  %v4737_v46 = vld [vmem:[#allocation6 + $0x2e8] sm:$0xff] }
  0x73   :  { %9063 = vst [vmem:[#allocation61_spill] sm:$0xff] %v4737_v46  ;;  %569 = vmatpush.msra.mxu0 %v4737_v46  ;;  %v429_v46 = vld [vmem:[#allocation6 + $0x560] sm:$0xff] }
  0x74   :  { %599 = vmatpush.msra.mxu1 %v4719_v7  ;;  %v447_v7 = vld [vmem:[#allocation6 + $0x5f0] sm:$0xff] }
  0x75   :  { %629 = vmatpush.msrb.mxu3 %v447_v7  ;;  %570 = vmatpush.msra.mxu0 %v4741_v50  ;;  %v423_v7 = vld [vmem:[#allocation6 + $0x530] sm:$0xff]  ;;  %v424_v50 = vld [vmem:[#allocation6 + $0x538] sm:$0xff] }
  0x76   :  { %600 = vmatpush.msra.mxu1 %v4723_v55  ;;  %v448_v55 = vld [vmem:[#allocation6 + $0x5f8] sm:$0xff] }
  0x77   :  { %630 = vmatpush.msrb.mxu3 %v441_v61  ;;  %571 = vmatpush.msra.mxu0 %v4743_v13  ;;  %v417_v13 = vld [vmem:[#allocation6 + $0x500] sm:$0xff] }
  0x78   :  { %601 = vmatpush.msra.mxu1 %v4725_v36  ;;  %v442_v36 = vld [vmem:[#allocation6 + $0x5c8] sm:$0xff] }
  0x7a   :  { %602 = vmatpush.msra.mxu1 %v4728_v53  ;;  %v436_v53 = vld [vmem:[#allocation6 + $0x598] sm:$0xff] }
  0x7c   :  { %603 = vmatpush.msra.mxu1 %v4731_v21  ;;  %v435_v21 = vld [vmem:[#allocation6 + $0x590] sm:$0xff] }
  0x7d   :  { %631 = vmatpush.msrb.mxu3 %v435_v21  ;;  %v4760_v21 = vld [vmem:[#allocation6 + $0x1c8] sm:$0xff] }
  0x7e   :  { %604 = vmatpush.msra.mxu1 %v4735_v25  ;;  %v4747_v25 = vld [vmem:[#allocation6 + $0x258] sm:$0xff]  ;;  %9069 = vst [vmem:[#allocation67_spill] sm:$0xff] %v4760_v21 }
  0x7f   :  { %605 = vmatmul.f32.vlgmr.msra.gmra.mxu1 %v9031_v9  ;;  %9066 = vst [vmem:[#allocation64_spill] sm:$0xff] %v4747_v25  ;;  %572 = vmatpush.msra.mxu0 %v4747_v25  ;;  %v405_v25 = vld [vmem:[#allocation6 + $0x4a0] sm:$0xff] }
  0x80   :  { %669 = vmatpush.msrb.mxu1 %v448_v55  ;;  %632 = vmatpush.msrb.mxu3 %v429_v46  ;;  %v4751_v55 = vld [vmem:[#allocation6 + $0x228] sm:$0xff]  ;;  %v412_v46 = vld [vmem:[#allocation6 + $0x4d8] sm:$0xff] }
  0x81   :  { %9067 = vst [vmem:[#allocation65_spill] sm:$0xff] %v4751_v55  ;;  %573 = vmatpush.msra.mxu0 %v4751_v55  ;;  %v406_v55 = vld [vmem:[#allocation6 + $0x4a8] sm:$0xff] }
  0x82   :  { %670 = vmatpush.msrb.mxu1 %v442_v36  ;;  %v4758_v36 = vld [vmem:[#allocation6 + $0x1f8] sm:$0xff]  ;;  %633 = vmatpush.msrb.mxu3 %v423_v7  ;;  %v399_v7 = vld [vmem:[#allocation6 + $0x470] sm:$0xff] }
  0x83   :  { %9068 = vst [vmem:[#allocation66_spill] sm:$0xff] %v4758_v36  ;;  %574 = vmatpush.msra.mxu0 %v4758_v36  ;;  %v400_v36 = vld [vmem:[#allocation6 + $0x478] sm:$0xff] }
  0x84   :  { %671 = vmatpush.msrb.mxu1 %v436_v53  ;;  %634 = vmatpush.msrb.mxu3 %v417_v13  ;;  %v4763_v53 = vld [vmem:[#allocation6 + $0x198] sm:$0xff] }
  0x85   :  { %9070 = vst [vmem:[#allocation68_spill] sm:$0xff] %v4763_v53  ;;  %575 = vmatpush.msra.mxu0 %v4760_v21  ;;  %v4770_v13 = vld [vmem:[#allocation6 + $0x138] sm:$0xff]  ;;  %v4772_v21 = vld [vmem:[#allocation6 + $0x108] sm:$0xff] }
  0x86   :  { %672 = vmatpush.msrb.mxu1 %v430_v1  ;;  %v411_v1 = vld [vmem:[#allocation6 + $0x4d0] sm:$0xff]  ;;  %9072 = vst [vmem:[#allocation70_spill] sm:$0xff] %v4770_v13 }
  0x87   :  { %635 = vmatpush.msrb.mxu3 %v411_v1  ;;  %576 = vmatpush.msra.mxu0 %v4763_v53  ;;  %9073 = vst [vmem:[#allocation71_spill] sm:$0xff] %v4772_v21  ;;  %v4779_v53 = vld [vmem:[#allocation6 + $0xd8] sm:$0xff] }
  0x88   :  { %673 = vmatpush.msrb.mxu1 %v424_v50  ;;  %v4767_v50 = vld [vmem:[#allocation6 + $0x168] sm:$0xff]  ;;  %9076 = vst [vmem:[#allocation74_spill] sm:$0xff] %v4779_v53 }
  0x89   :  { %636 = vmatpush.msrb.mxu3 %v405_v25  ;;  %9071 = vst [vmem:[#allocation69_spill] sm:$0xff] %v4767_v50  ;;  %577 = vmatpush.msra.mxu0 %v4767_v50  ;;  %v387_v25 = vld [vmem:[#allocation6 + $0x410] sm:$0xff]  ;;  %v381_v50 = vld [vmem:[#allocation6 + $0x3e0] sm:$0xff] }
  0x8a   :  { %674 = vmatpush.msrb.mxu1 %v418_v56  ;;  %v393_v56 = vld [vmem:[#allocation6 + $0x440] sm:$0xff] }
  0x8b   :  { %637 = vmatpush.msrb.mxu3 %v399_v7  ;;  %578 = vmatpush.msra.mxu0 %v4770_v13  ;;  %v375_v7 = vld [vmem:[#allocation6 + $0x3b0] sm:$0xff] }
  0x8c   :  { %675 = vmatpush.msrb.mxu1 %v412_v46 }
  0x8d   :  { %638 = vmatpush.msrb.mxu3 %v393_v56  ;;  %579 = vmatpush.msra.mxu0 %v4772_v21  ;;  %v369_v56 = vld [vmem:[#allocation6 + $0x380] sm:$0xff]  ;;  %v370_v21 = vld [vmem:[#allocation6 + $0x388] sm:$0xff] }
  0x8e   :  { %v4753_v60 = vpop.f32.mrf.mxu0  ;;  %676 = vmatpush.msrb.mxu1 %v406_v55  ;;  %v388_v55 = vld [vmem:[#allocation6 + $0x418] sm:$0xff] }
  0x8f   :  { %v4755_v61 = vpop.f32.mrf.mxu1  ;;  %639 = vmatpush.msrb.mxu3 %v387_v25  ;;  %580 = vmatpush.msra.mxu0 %v4779_v53  ;;  %v4790_v25 = vld [vmem:[#allocation6 + $0x48] sm:$0xff] }
  0x90   :  { %677 = vmatpush.msrb.mxu1 %v400_v36  ;;  %v4783_v36 = vld [vmem:[#allocation6 + $0xa8] sm:$0xff] }
  0x91   :  { %640 = vmatpush.msrb.mxu3 %v381_v50  ;;  %9077 = vst [vmem:[#allocation75_spill] sm:$0xff] %v4783_v36  ;;  %581 = vmatpush.msra.mxu0 %v4783_v36  ;;  %v363_v50 = vld [vmem:[#allocation6 + $0x350] sm:$0xff]  ;;  %v357_v36 = vld [vmem:[#allocation6 + $0x320] sm:$0xff] }
  0x92   :  { %678 = vmatpush.msrb.mxu1 %v394_v54  ;;  %v4788_v54 = vld [vmem:[#allocation6 + $0x78] sm:$0xff] }
  0x93   :  { %641 = vmatpush.msrb.mxu3 %v375_v7  ;;  %582 = vmatpush.msra.mxu0 %v4788_v54  ;;  %v4803_v7 = vld [vmem:[#allocation6 + $0x2f8] sm:$0xff] }
  0x94   :  { %679 = vmatpush.msrb.mxu1 %v388_v55  ;;  %v4793_v55 = vld [vmem:[#allocation6 + $0x18] sm:$0xff]  ;;  %9082 = vst [vmem:[#allocation80_spill] sm:$0xff] %v4803_v7 }
  0x95   :  { %642 = vmatpush.msrb.mxu3 %v369_v56  ;;  %9079 = vst [vmem:[#allocation77_spill] sm:$0xff] %v4793_v55  ;;  %583 = vmatpush.msra.mxu0 %v4790_v25  ;;  %v4807_v56 = vld [vmem:[#allocation6 + $0x2c0] sm:$0xff] }
  0x96   :  { %v4774_v1 = vpop.f32.mrf.mxu0  ;;  %680 = vmatpush.msrb.mxu1 %v382_v51  ;;  %v364_v51 = vld [vmem:[#allocation6 + $0x358] sm:$0xff] }
  0x97   :  { %9074 = vst [vmem:[#allocation72_spill] sm:$0xff] %v4774_v1  ;;  %v4776_v46 = vpop.f32.mrf.mxu1  ;;  %v376_v1 = vld [vmem:[#allocation6 + $0x3b8] sm:$0xff]  ;;  %643 = vmatpush.msrb.mxu3 %v363_v50  ;;  %584 = vmatpush.msra.mxu0 %v4793_v55  ;;  %v4812_v50 = vld [vmem:[#allocation6 + $0x290] sm:$0xff]  ;;  %v4823_v55 = vld [vmem:[#allocation6 + $0x268] sm:$0xff] }
  0x98   :  { %9075 = vst [vmem:[#allocation73_spill] sm:$0xff] %v4776_v46  ;;  %v4785_v46 = vpop.f32.mrf.mxu2  ;;  %681 = vmatpush.msrb.mxu1 %v376_v1  ;;  %v4801_v1 = vld [vmem:[#allocation6 + $0x2f0] sm:$0xff]  ;;  %585 = vmatmul.f32.vlgmr.msra.gmra.mxu0 %v9031_v9 }
  0x99   :  { %9078 = vst [vmem:[#allocation76_spill] sm:$0xff] %v4785_v46  ;;  %v358_v46 = vld [vmem:[#allocation6 + $0x328] sm:$0xff]  ;;  %644 = vmatpush.msrb.mxu3 %v357_v36  ;;  %609 = vmatpush.msra.mxu2 %v4801_v1 }
  0x9a   :  { %682 = vmatpush.msrb.mxu1 %v370_v21  ;;  %v759_v21 = vld [vmem:[#allocation3 + $0x188] sm:$0xff]  ;;  %649 = vmatpush.msrb.mxu0 %v4803_v7  ;;  %v4821_v7 = vld [vmem:[#allocation6 + $0x260] sm:$0xff]  ;;  %9085 = vst [vmem:[#allocation83_spill] sm:$0xff] %v4823_v55 }
  0x9b   :  { %788 = vmatpush.msra.mxu3 %v759_v21  ;;  %610 = vmatpush.msra.mxu2 %v4807_v56 }
  0x9c   :  { %683 = vmatpush.msrb.mxu1 %v364_v51  ;;  %v753_v51 = vld [vmem:[#allocation3 + $0x158] sm:$0xff]  ;;  %645 = vmatmul.f32.vlgmr.msrb.gmra.mxu3 %v9031_v9 }
  0x9d   :  { %611 = vmatpush.msra.mxu2 %v4812_v50 }
  0x9e   :  { %v4795_v53 = vpop.f32.mrf.mxu0  ;;  %684 = vmatpush.msrb.mxu1 %v358_v46  ;;  %v4814_v46 = vld [vmem:[#allocation6 + $0x298] sm:$0xff] }
  0x9f   :  { %9080 = vst [vmem:[#allocation78_spill] sm:$0xff] %v4795_v53  ;;  %v4797_v13 = vpop.f32.mrf.mxu1  ;;  %v756_v53 = vld [vmem:[#allocation3 + $0x170] sm:$0xff]  ;;  %612 = vmatpush.msra.mxu2 %v4821_v7  ;;  %685 = vmatmul.f32.vlgmr.msrb.gmra.mxu1 %v9031_v9 }
  0xa0   :  { %9081 = vst [vmem:[#allocation79_spill] sm:$0xff] %v4797_v13  ;;  %v4809_v13 = vld [vmem:[#allocation6 + $0x2c8] sm:$0xff]  ;;  %846 = vmatpush.msra.mxu1 %v4396_v2  ;;  %v4816_v36 = vpop.f32.mrf.mxu2  ;;  %789 = vmatpush.msra.mxu3 %v756_v53  ;;  %v4840_v53 = vld [vmem:[#allocation6 + $0x238] sm:$0xff] }
  0xa1   :  { %9083 = vst [vmem:[#allocation81_spill] sm:$0xff] %v4814_v46  ;;  %650 = vmatpush.msrb.mxu0 %v4809_v13  ;;  %v4827_v2 = vld [vmem:[#allocation3 + $0x140] sm:$0xff] }
  0xa2   :  { %9084 = vst [vmem:[#allocation82_spill] sm:$0xff] %v4816_v36  ;;  %847 = vmatpush.msra.mxu1 %v4401_v4  ;;  %790 = vmatpush.msra.mxu3 %v753_v51  ;;  %v4838_v4 = vld [vmem:[#allocation6 + $0x230] sm:$0xff]  ;;  %v4850_v51 = vld [vmem:[#allocation6 + $0x208] sm:$0xff] }
  0xa3   :  { %651 = vmatpush.msrb.mxu0 %v4814_v46  ;;  %9086 = vst [vmem:[#allocation84_spill] sm:$0xff] %v4827_v2  ;;  %v4842_v46 = vld [vmem:[#allocation3 + $0x128] sm:$0xff]  ;;  %613 = vmatpush.msra.mxu2 %v4838_v4 }
  0xa4   :  { %848 = vmatpush.msra.mxu1 %v4406_v5  ;;  %791 = vmatpush.msra.mxu3 %v4827_v2  ;;  %9089 = vst [vmem:[#allocation87_spill] sm:$0xff] %v4840_v53  ;;  %v4848_v5 = vld [vmem:[#allocation6 + $0x200] sm:$0xff] }
  0xa5   :  { %652 = vmatpush.msrb.mxu0 %v4823_v55  ;;  %9090 = vst [vmem:[#allocation88_spill] sm:$0xff] %v4842_v46  ;;  %614 = vmatpush.msra.mxu2 %v4848_v5  ;;  %v4870_v2 = vld [vmem:[#allocation6 + $0x1a0] sm:$0xff]  ;;  %v4958_v55 = vld [vmem:[#allocation6 + $0x28] sm:$0xff] }
  0xa6   :  { %v4830_v21 = vpop.f32.mrf.mxu0  ;;  %849 = vmatpush.msra.mxu1 %v4409_v6  ;;  %792 = vmatpush.msra.mxu3 %v4842_v46  ;;  %9091 = vst [vmem:[#allocation89_spill] sm:$0xff] %v4850_v51  ;;  %v4858_v6 = vld [vmem:[#allocation6 + $0x1d0] sm:$0xff]  ;;  %v4862_v46 = vld [vmem:[#allocation3 + $0xf8] sm:$0xff] }
  0xa7   :  { %9087 = vst [vmem:[#allocation85_spill] sm:$0xff] %v4830_v21  ;;  %v4832_v36 = vpop.f32.mrf.mxu1  ;;  %653 = vmatpush.msrb.mxu0 %v4840_v53  ;;  %v4860_v21 = vld [vmem:[#allocation6 + $0x1d8] sm:$0xff]  ;;  %615 = vmatpush.msra.mxu2 %v4858_v6  ;;  %v4948_v53 = vld [vmem:[#allocation6 + $0x50] sm:$0xff] }
  0xa8   :  { %9088 = vst [vmem:[#allocation86_spill] sm:$0xff] %v4832_v36  ;;  %850 = vmatpush.msra.mxu1 %v4412_v8  ;;  %v4852_v36 = vld [vmem:[#allocation3 + $0x110] sm:$0xff]  ;;  %v4864_v8 = vpop.f32.mrf.mxu2 }
  0xa9   :  { %9092 = vst [vmem:[#allocation90_spill] sm:$0xff] %v4852_v36  ;;  %654 = vmatpush.msrb.mxu0 %v4850_v51  ;;  %793 = vmatpush.msra.mxu3 %v4852_v36  ;;  %v4872_v36 = vld [vmem:[#allocation6 + $0x1a8] sm:$0xff] }
  0xaa   :  { %851 = vmatpush.msra.mxu1 %v4423_v12  ;;  %9093 = vst [vmem:[#allocation91_spill] sm:$0xff] %v4860_v21  ;;  %v4874_v12 = vld [vmem:[#allocation3 + $0xe0] sm:$0xff]  ;;  %616 = vmatpush.msra.mxu2 %v4870_v2 }
  0xab   :  { %9094 = vst [vmem:[#allocation92_spill] sm:$0xff] %v4862_v46  ;;  %655 = vmatpush.msrb.mxu0 %v4860_v21  ;;  %794 = vmatpush.msra.mxu3 %v4862_v46  ;;  %v4882_v21 = vld [vmem:[#allocation6 + $0x178] sm:$0xff]  ;;  %v4884_v46 = vld [vmem:[#allocation3 + $0xc8] sm:$0xff] }
  0xac   :  { %9095 = vst [vmem:[#allocation93_spill] sm:$0xff] %v4864_v8  ;;  %852 = vmatpush.msra.mxu1 %v4434_v16  ;;  %v4880_v8 = vld [vmem:[#allocation6 + $0x170] sm:$0xff] }
  0xad   :  { %9096 = vst [vmem:[#allocation94_spill] sm:$0xff] %v4872_v36  ;;  %656 = vmatpush.msrb.mxu0 %v4872_v36  ;;  %795 = vmatpush.msra.mxu3 %v4874_v12  ;;  %v4898_v36 = vld [vmem:[#allocation3 + $0xb0] sm:$0xff] }
  0xae   :  { %9097 = vst [vmem:[#allocation95_spill] sm:$0xff] %v4874_v12  ;;  %853 = vmatpush.msra.mxu1 %v4442_v20  ;;  %v4886_v16 = vpop.f32.mrf.mxu0  ;;  %617 = vmatpush.msra.mxu2 %v4880_v8  ;;  %v4894_v12 = vld [vmem:[#allocation6 + $0x140] sm:$0xff]  ;;  %v4896_v20 = vld [vmem:[#allocation6 + $0x148] sm:$0xff] }
  0xaf   :  { %9098 = vst [vmem:[#allocation96_spill] sm:$0xff] %v4882_v21  ;;  %v4888_v51 = vpop.f32.mrf.mxu1  ;;  %657 = vmatpush.msrb.mxu0 %v4882_v21  ;;  %796 = vmatpush.msra.mxu3 %v4884_v46 }
  0xb0   :  { %9099 = vst [vmem:[#allocation97_spill] sm:$0xff] %v4884_v46  ;;  %854 = vmatpush.msra.mxu1 %v4451_v24  ;;  %618 = vmatpush.msra.mxu2 %v4894_v12  ;;  %v4908_v46 = vld [vmem:[#allocation3 + $0x98] sm:$0xff] }
  0xb1   :  { %9100 = vst [vmem:[#allocation98_spill] sm:$0xff] %v4886_v16  ;;  %658 = vmatpush.msrb.mxu0 %v4896_v20  ;;  %797 = vmatpush.msra.mxu3 %v4898_v36  ;;  %v4904_v16 = vld [vmem:[#allocation6 + $0x110] sm:$0xff]  ;;  %v4914_v24 = vld [vmem:[#allocation6 + $0xe0] sm:$0xff] }
  0xb2   :  { %9101 = vst [vmem:[#allocation99_spill] sm:$0xff] %v4888_v51  ;;  %855 = vmatpush.msra.mxu1 %v4462_v27  ;;  %v4906_v51 = vld [vmem:[#allocation6 + $0x118] sm:$0xff]  ;;  %619 = vmatpush.msra.mxu2 %v4904_v16  ;;  %v4920_v27 = vpop.f32.mrf.mxu2 }
  0xb3   :  { %9102 = vst [vmem:[#allocation100_spill] sm:$0xff] %v4896_v20  ;;  %659 = vmatpush.msrb.mxu0 %v4906_v51  ;;  %798 = vmatpush.msra.mxu3 %v4908_v46  ;;  %v4916_v20 = vld [vmem:[#allocation6 + $0xe8] sm:$0xff] }
  0xb4   :  { %9103 = vst [vmem:[#allocation101_spill] sm:$0xff] %v4898_v36  ;;  %856 = vmatpush.msra.mxu1 %v4472_v31  ;;  %v4918_v36 = vld [vmem:[#allocation3 + $0x80] sm:$0xff]  ;;  %620 = vmatpush.msra.mxu2 %v4914_v24  ;;  %v4930_v31 = vld [vmem:[#allocation3 + $0x68] sm:$0xff] }
  0xb5   :  { %9104 = vst [vmem:[#allocation102_spill] sm:$0xff] %v4906_v51  ;;  %660 = vmatpush.msrb.mxu0 %v4916_v20  ;;  %799 = vmatpush.msra.mxu3 %v4918_v36  ;;  %v4926_v51 = vld [vmem:[#allocation6 + $0xb0] sm:$0xff] }
  0xb6   :  { %9105 = vst [vmem:[#allocation103_spill] sm:$0xff] %v4908_v46  ;;  %857 = vmatpush.msra.mxu1 %v4480_v35  ;;  %v4928_v46 = vld [vmem:[#allocation6 + $0xb8] sm:$0xff]  ;;  %621 = vmatpush.msra.mxu2 %v4926_v51  ;;  %v4942_v35 = vpop.f32.mrf.mxu0 }
  0xb7   :  { %9106 = vst [vmem:[#allocation104_spill] sm:$0xff] %v4916_v20  ;;  %661 = vmatpush.msrb.mxu0 %v4928_v46  ;;  %800 = vmatpush.msra.mxu3 %v4930_v31  ;;  %v4938_v20 = vld [vmem:[#allocation6 + $0x88] sm:$0xff]  ;;  %v4944_v21 = vpop.f32.mrf.mxu1 }
  0xb8   :  { %9107 = vst [vmem:[#allocation105_spill] sm:$0xff] %v4918_v36  ;;  %858 = vmatpush.msra.mxu1 %v4487_v38  ;;  %v4940_v36 = vld [vmem:[#allocation3 + $0x50] sm:$0xff]  ;;  %v4956_v38 = vld [vmem:[#allocation6 + $0x20] sm:$0xff] }
  0xb9   :  { %9108 = vst [vmem:[#allocation106_spill] sm:$0xff] %v4920_v27  ;;  %v4936_v27 = vld [vmem:[#allocation6 + $0x80] sm:$0xff]  ;;  %662 = vmatpush.msrb.mxu0 %v4938_v20  ;;  %801 = vmatpush.msra.mxu3 %v4940_v36 }
  0xba   :  { %9109 = vst [vmem:[#allocation107_spill] sm:$0xff] %v4928_v46  ;;  %622 = vmatpush.msra.mxu2 %v4936_v27  ;;  %v4950_v46 = vld [vmem:[#allocation6 + $0x58] sm:$0xff]  ;;  %859 = vmatpush.msra.mxu1 %v4497_v41 }
  0xbb   :  { %9110 = vst [vmem:[#allocation108_spill] sm:$0xff] %v4930_v31  ;;  %v4952_v31 = vld [vmem:[#allocation3 + $0x38] sm:$0xff]  ;;  %663 = vmatpush.msrb.mxu0 %v4950_v46  ;;  %v4972_v41 = vld [vmem:[#allocation3 + $0x190] sm:$0xff] }
  0xbc   :  { %9111 = vst [vmem:[#allocation109_spill] sm:$0xff] %v4940_v36  ;;  %623 = vmatpush.msra.mxu2 %v4948_v53  ;;  %802 = vmatpush.msra.mxu3 %v4952_v31  ;;  %v4974_v36 = vpop.f32.mrf.mxu2 }
  0xbd   :  { %9112 = vst [vmem:[#allocation110_spill] sm:$0xff] %v4942_v35  ;;  %v4962_v35 = vld [vmem:[#allocation3 + $0x20] sm:$0xff]  ;;  %860 = vmatpush.msra.mxu1 %v4508_v45  ;;  %664 = vmatpush.msrb.mxu0 %v4958_v55  ;;  %v4982_v45 = vld [vmem:[#allocation3 + $0x178] sm:$0xff] }
  0xbe   :  { %9113 = vst [vmem:[#allocation111_spill] sm:$0xff] %v4944_v21  ;;  %624 = vmatpush.msra.mxu2 %v4956_v38  ;;  %v4968_v21 = vld [vmem:[#allocation3 + $0x180] sm:$0xff]  ;;  %803 = vmatpush.msra.mxu3 %v4962_v35 }
  0xbf   :  { %9114 = vst [vmem:[#allocation112_spill] sm:$0xff] %v4950_v46  ;;  %861 = vmatpush.msra.mxu1 %v4516_v49  ;;  %808 = vmatpush.msra.mxu0 %v4972_v41  ;;  %v4986_v49 = vld [vmem:[#allocation3 + $0x150] sm:$0xff]  ;;  %v4998_v46 = vld [vmem:[#allocation3 + $0x138] sm:$0xff] }
  0xc0   :  { %9115 = vst [vmem:[#allocation113_spill] sm:$0xff] %v4952_v31  ;;  %v4978_v31 = vld [vmem:[#allocation3 + $0x168] sm:$0xff]  ;;  %768 = vmatpush.msrb.mxu2 %v4968_v21  ;;  %886 = vmatpush.msrb.mxu3 %v4421_v11 }
  0xc1   :  { %9116 = vst [vmem:[#allocation114_spill] sm:$0xff] %v4958_v55  ;;  %926 = vmatpush.msrb.mxu1 %v4417_v10  ;;  %v4994_v55 = vpop.f32.mrf.mxu1  ;;  %809 = vmatpush.msra.mxu0 %v4982_v45  ;;  %v5002_v11 = vld [vmem:[#allocation3 + $0x148] sm:$0xff]  ;;  %v5006_v10 = vld [vmem:[#allocation3 + $0x120] sm:$0xff] }
  0xc2   :  { %9117 = vst [vmem:[#allocation115_spill] sm:$0xff] %v4962_v35  ;;  %769 = vmatpush.msrb.mxu2 %v4978_v31  ;;  %v4992_v35 = vpop.f32.mrf.mxu0  ;;  %887 = vmatpush.msrb.mxu3 %v4431_v15  ;;  %v5010_v15 = vld [vmem:[#allocation3 + $0x130] sm:$0xff] }
  0xc3   :  { %9118 = vst [vmem:[#allocation116_spill] sm:$0xff] %v4974_v36  ;;  %v4990_v36 = vld [vmem:[#allocation3 + $0x160] sm:$0xff]  ;;  %927 = vmatpush.msrb.mxu1 %v4427_v14  ;;  %v5014_v14 = vld [vmem:[#allocation3 + $0x108] sm:$0xff]  ;;  %625 = vmatmul.f32.vlgmr.msra.gmra.mxu2 %v9031_v9 }
  0xc4   :  { %9119 = vst [vmem:[#allocation117_spill] sm:$0xff] %v4992_v35  ;;  %770 = vmatpush.msrb.mxu2 %v4986_v49  ;;  %810 = vmatpush.msra.mxu0 %v4990_v36  ;;  %v466_v35 = vpop.f32.mrf.mxu3 }
  0xc5   :  { %9120 = vst [vmem:[#allocation118_spill] sm:$0xff] %v4994_v55  ;;  %888 = vmatpush.msrb.mxu3 %v4440_v19  ;;  %928 = vmatpush.msrb.mxu1 %v4437_v18  ;;  %v5018_v19 = vld [vmem:[#allocation3 + $0x118] sm:$0xff]  ;;  %v5020_v55 = vpop.f32.mrf.mxu2  ;;  %v5024_v18 = vld [vmem:[#allocation3 + $0xf0] sm:$0xff] }
  0xc6   :  { %771 = vmatpush.msrb.mxu2 %v4998_v46  ;;  %9121 = vst [vmem:[#allocation119_spill] sm:$0xff] %v5010_v15  ;;  %811 = vmatpush.msra.mxu0 %v5002_v11 }
  0xc7   :  { %889 = vmatpush.msrb.mxu3 %v4447_v22  ;;  %929 = vmatpush.msrb.mxu1 %v4449_v23  ;;  %9122 = vst [vmem:[#allocation120_spill] sm:$0xff] %v5020_v55  ;;  %v5028_v22 = vld [vmem:[#allocation3 + $0x100] sm:$0xff]  ;;  %v5032_v23 = vld [vmem:[#allocation3 + $0xd8] sm:$0xff]  ;;  %v5036_v55 = vld [vmem:[#allocation3 + $0xe8] sm:$0xff] }
  0xc8   :  { %772 = vmatpush.msrb.mxu2 %v5006_v10  ;;  %812 = vmatpush.msra.mxu0 %v5010_v15  ;;  %9123 = vst [vmem:[#allocation121_spill] sm:$0xff] %v5036_v55 }
  0xc9   :  { %890 = vmatpush.msrb.mxu3 %v4460_v26  ;;  %930 = vmatpush.msrb.mxu1 %v4469_v30  ;;  %v5040_v15 = vpop.f32.mrf.mxu1  ;;  %v5044_v30 = vld [vmem:[#allocation3 + $0xc0] sm:$0xff] }
  0xca   :  { %773 = vmatpush.msrb.mxu2 %v5014_v14  ;;  %813 = vmatpush.msra.mxu0 %v5018_v19  ;;  %v5038_v26 = vpop.f32.mrf.mxu0  ;;  %9125 = vst [vmem:[#allocation123_spill] sm:$0xff] %v5040_v15 }
  0xcb   :  { %891 = vmatpush.msrb.mxu3 %v4467_v29  ;;  %931 = vmatpush.msrb.mxu1 %v4478_v34  ;;  %9124 = vst [vmem:[#allocation122_spill] sm:$0xff] %v5038_v26  ;;  %v5048_v29 = vld [vmem:[#allocation3 + $0xd0] sm:$0xff]  ;;  %v5052_v34 = vld [vmem:[#allocation3 + $0xa8] sm:$0xff] }
  0xcc   :  { %774 = vmatpush.msrb.mxu2 %v5024_v18  ;;  %814 = vmatpush.msra.mxu0 %v5028_v22 }
  0xcd   :  { %892 = vmatpush.msrb.mxu3 %v4475_v33  ;;  %932 = vmatpush.msrb.mxu1 %v4505_v44  ;;  %v5056_v33 = vld [vmem:[#allocation3 + $0xb8] sm:$0xff]  ;;  %v5060_v44 = vld [vmem:[#allocation3 + $0x90] sm:$0xff] }
  0xce   :  { %775 = vmatpush.msrb.mxu2 %v5032_v23  ;;  %815 = vmatpush.msra.mxu0 %v5036_v55  ;;  %v5066_v55 = vpop.f32.mrf.mxu2 }
  0xcf   :  { %893 = vmatpush.msrb.mxu3 %v4485_v37  ;;  %933 = vmatpush.msrb.mxu1 %v4514_v48  ;;  %v5064_v37 = vld [vmem:[#allocation3 + $0xa0] sm:$0xff]  ;;  %9126 = vst [vmem:[#allocation124_spill] sm:$0xff] %v5066_v55  ;;  %v5070_v48 = vld [vmem:[#allocation3 + $0x78] sm:$0xff] }
  0xd0   :  { %776 = vmatpush.msrb.mxu2 %v5044_v30  ;;  %816 = vmatpush.msra.mxu0 %v5048_v29 }
  0xd1   :  { %894 = vmatpush.msrb.mxu3 %v4495_v40  ;;  %934 = vmatpush.msrb.mxu1 %v4540_v59  ;;  %v5074_v40 = vld [vmem:[#allocation3 + $0x88] sm:$0xff]  ;;  %v5080_v59 = vld [vmem:[#allocation3 + $0x60] sm:$0xff] }
  0xd2   :  { %777 = vmatpush.msrb.mxu2 %v5052_v34  ;;  %817 = vmatpush.msra.mxu0 %v5056_v33 }
  0xd3   :  { %v486_v26 = vpop.f32.mrf.mxu3  ;;  %895 = vmatpush.msrb.mxu3 %v4503_v43  ;;  %935 = vmatpush.msrb.mxu1 %v4549_v0  ;;  %v526_v43 = vpop.f32.mrf.mxu1  ;;  %v5085_v0 = vld [vmem:[#allocation3 + $0x70] sm:$0xff] }
  0xd4   :  { %v487_v15 = vadd.f32 %v486_v26, %v466_v35  ;;  %778 = vmatpush.msrb.mxu2 %v5060_v44  ;;  %818 = vmatpush.msra.mxu0 %v5064_v37  ;;  %v506_v35 = vpop.f32.mrf.mxu0 }
  0xd5   :  { %896 = vmatpush.msrb.mxu3 %v4512_v47  ;;  %936 = vmatpush.msrb.mxu1 %v4575_v32  ;;  %v5089_v47 = vld [vmem:[#allocation3 + $0x48] sm:$0xff]  ;;  %v5093_v32 = vld [vmem:[#allocation3 + $0x58] sm:$0xff]  ;;  %v527_v55 = vadd.f32 %v526_v43, %v506_v35  ;;  %v5122_v35 = vld [vmem:[#allocation6 + $0x5d8] sm:$0xff] }
  0xd6   :  { %779 = vmatpush.msrb.mxu2 %v5070_v48  ;;  %v695_v26 = vadd.f32 %v487_v15, %v4753_v60  ;;  %819 = vmatpush.msra.mxu0 %v5074_v40  ;;  %v5107_v15 = vpop.f32.mrf.mxu2  ;;  %v9135_v43 = vld [vmem:[#allocation16_spill] sm:$0xff] }
  0xd7   :  { %897 = vmatpush.msrb.mxu3 %v4536_v57  ;;  %937 = vmatpush.msrb.mxu1 %v4582_v42  ;;  %v5097_v57 = vld [vmem:[#allocation3 + $0x30] sm:$0xff]  ;;  %v5101_v42 = vld [vmem:[#allocation3 + $0x40] sm:$0xff]  ;;  %9127 = vst [vmem:[#allocation125_spill] sm:$0xff] %v5107_v15  ;;  %v9140_v15 = vld [vmem:[#allocation18_spill] sm:$0xff] }
  0xd8   :  { %665 = vmatmul.f32.vlgmr.msrb.gmra.mxu0 %v9031_v9  ;;  %780 = vmatpush.msrb.mxu2 %v5080_v59  ;;  %v696_v60 = vmul.f32 0.5, %v695_v26  ;;  %v5105_v9 = vld [vmem:[#allocation3 + $0x18] sm:$0xff] }
  0xd9   :  { %820 = vmatpush.msra.mxu0 %v5085_v0  ;;  %898 = vmatpush.msrb.mxu3 %v4545_v62  ;;  %v5111_v62 = vld [vmem:[#allocation3 + $0x28] sm:$0xff] }
  0xda   :  { %938 = vmatpush.msrb.mxu1 %v4592_v52  ;;  %781 = vmatpush.msrb.mxu2 %v5089_v47  ;;  %9128 = vst [vmem:[#allocation126_spill] sm:$0xff] %v5111_v62  ;;  %v700_v52 = vadd.f32 %v527_v55, %v4755_v61  ;;  %3380 = vtanh.f32 %v696_v60  ;;  %v9131_v61 = vld [vmem:[#allocation14_spill] sm:$0xff]  ;;  %v9133_v55 = vld [vmem:[#allocation15_spill] sm:$0xff]  ;;  %v5134_v60 = vld [vmem:[#allocation6 + $0x548] sm:$0xff] }
  0xdb   :  { %821 = vmatpush.msra.mxu0 %v5093_v32  ;;  %899 = vmatpush.msrb.mxu3 %v4553_v3  ;;  %v9129_v3 = vld [vmem:[#allocation13_spill] sm:$0xff]  ;;  %9136 = vst [vmem:[#allocation16_spill] sm:$0xff] %v5134_v60 }
  0xdc   :  { %939 = vmatpush.msrb.mxu1 %v4604_v58  ;;  %782 = vmatpush.msrb.mxu2 %v5097_v57  ;;  %v701_v58 = vmul.f32 0.5, %v700_v52  ;;  %9130 = vst [vmem:[#allocation13_spill] sm:$0xff] %v5122_v35  ;;  %v5140_v52 = vld [vmem:[%s8417_s3 + $0x1] ss:$0 sm:$0xff] }
  0xdd   :  { %822 = vmatpush.msra.mxu0 %v5101_v42  ;;  %900 = vmatpush.msrb.mxu3 %v4566_v17  ;;  %v5126_v17 = vld [vmem:[#allocation6 + $0x5a8] sm:$0xff]  ;;  %9137 = vst [vmem:[#allocation127_spill] sm:$0xff] %v5140_v52 }
  0xde   :  { %940 = vmatpush.msrb.mxu1 %v4617_v39  ;;  %783 = vmatpush.msrb.mxu2 %v5105_v9  ;;  %9132 = vst [vmem:[#allocation14_spill] sm:$0xff] %v5126_v17  ;;  %3382 = vtanh.f32 %v701_v58 }
  0xdf   :  { %823 = vmatpush.msra.mxu0 %v5111_v62  ;;  %901 = vmatpush.msrb.mxu3 %v4573_v28  ;;  %v5130_v28 = vld [vmem:[#allocation6 + $0x578] sm:$0xff] }
  0xe0   :  { %941 = vmatpush.msrb.mxu1 %v4628_v63  ;;  %866 = vmatpush.msra.mxu2 %v9129_v3  ;;  %v3381_v39 = vpop.eup %3380  ;;  %9134 = vst [vmem:[#allocation15_spill] sm:$0xff] %v5130_v28  ;;  %v546_v63 = vpop.f32.mrf.mxu2  ;;  %v5152_v62 = vld [vmem:[#allocation6 + $0x4b8] sm:$0xff] }
  0xe1   :  { %906 = vmatpush.msrb.mxu0 %v5122_v35  ;;  %v698_v26 = vadd.f32 1.0, %v3381_v39 }
  0xe2   :  { %867 = vmatpush.msra.mxu2 %v9131_v61  ;;  %v9138_v61 = vld [vmem:[#allocation17_spill] sm:$0xff] }
  0xe3   :  { %907 = vmatpush.msrb.mxu0 %v5126_v17  ;;  %v9141_v17 = vld [vmem:[#allocation19_spill] sm:$0xff] }
  0xe4   :  { %868 = vmatpush.msra.mxu2 %v9133_v55  ;;  %v5143_v55 = vld [vmem:[#allocation6 + $0x518] sm:$0xff]  ;;  %v3383_v39 = vpop.eup %3382 }
  0xe5   :  { %908 = vmatpush.msrb.mxu0 %v5130_v28  ;;  %9139 = vst [vmem:[#allocation17_spill] sm:$0xff] %v5143_v55 }
  0xe6   :  { %869 = vmatpush.msra.mxu2 %v9135_v43  ;;  %v699_v43 = vmul.f32 0.5, %v698_v26  ;;  %v9144_v26 = vld [vmem:[#allocation21_spill] sm:$0xff] }
  0xe7   :  { %909 = vmatpush.msrb.mxu0 %v5134_v60  ;;  %v5148_v60 = vld [vmem:[#allocation6 + $0x4e8] sm:$0xff] }
  0xe8   :  { %870 = vmatpush.msra.mxu2 %v9138_v61  ;;  %v9143_v61 = vld [vmem:[#allocation76_spill] sm:$0xff] }
  0xe9   :  { %910 = vmatpush.msrb.mxu0 %v5143_v55  ;;  %v5157_v55 = vld [vmem:[#allocation6 + $0x488] sm:$0xff] }
  0xea   :  { %871 = vmatpush.msra.mxu2 %v9140_v15 }
  0xeb   :  { %911 = vmatpush.msrb.mxu0 %v5148_v60 }
  0xec   :  { %872 = vmatpush.msra.mxu2 %v9141_v17 }
  0xed   :  { %912 = vmatpush.msrb.mxu0 %v5152_v62 }
  0xef   :  { %913 = vmatpush.msrb.mxu0 %v5157_v55 }
  0xf3   :  { %v566_v3 = vpop.f32.mrf.mxu3 }
  0xf4   :  { %v567_v58 = vadd.f32 %v566_v3, %v546_v63  ;;  %v703_v63 = vadd.f32 1.0, %v3383_v39  ;;  %v9142_v3 = vld [vmem:[#allocation20_spill] sm:$0xff]  ;;  %v9148_v39 = vld [vmem:[#allocation23_spill] sm:$0xff] }
  0xf5   :  { %873 = vmatpush.msra.mxu2 %v9142_v3 }
  0xf6   :  { %v705_v28 = vadd.f32 %v567_v58, %v5140_v52  ;;  %v5161_v58 = vld [vmem:[#allocation6 + $0x458] sm:$0xff]  ;;  %v704_v17 = vmul.f32 0.5, %v703_v63  ;;  %v9151_v52 = vld [vmem:[#allocation25_spill] sm:$0xff] }
  0xf7   :  { %874 = vmatpush.msra.mxu2 %v9144_v26  ;;  %9145 = vst [vmem:[#allocation18_spill] sm:$0xff] %v5161_v58  ;;  %914 = vmatpush.msrb.mxu0 %v5161_v58  ;;  %v5173_v26 = vld [vmem:[#allocation6 + $0x3c8] sm:$0xff]  ;;  %v5177_v58 = vld [vmem:[#allocation6 + $0x398] sm:$0xff] }
  0xf8   :  { %v706_v35 = vmul.f32 %v705_v28, %v699_v43  ;;  %v9146_v28 = vld [vmem:[#allocation22_spill] sm:$0xff]  ;;  %v5165_v43 = vld [vmem:[#allocation6 + $0x428] sm:$0xff]  ;;  %v709_v3 = vsub.f32 1.0, %v704_v17  ;;  %v711_v63 = vmul.f32 0.0, %v704_v17  ;;  %v9154_v17 = vld [vmem:[#allocation27_spill] sm:$0xff] }
  0xf9   :  { %875 = vmatpush.msra.mxu2 %v9146_v28  ;;  %9147 = vst [vmem:[#allocation19_spill] sm:$0xff] %v5165_v43  ;;  %915 = vmatpush.msrb.mxu0 %v5165_v43  ;;  %v9152_v43 = vld [vmem:[#allocation26_spill] sm:$0xff] }
  0xfa   :  { %v707_v15 = vadd.f32 %v706_v35, %v9143_v61  ;;  %v5169_v35 = vld [vmem:[#allocation6 + $0x3f8] sm:$0xff]  ;;  %v9150_v61 = vld [vmem:[#allocation24_spill] sm:$0xff] }
  0xfb   :  { %876 = vmatpush.msra.mxu2 %v9148_v39  ;;  %9149 = vst [vmem:[#allocation20_spill] sm:$0xff] %v5169_v35  ;;  %916 = vmatpush.msrb.mxu0 %v5169_v35  ;;  %v5183_v35 = vld [vmem:[#allocation6 + $0x368] sm:$0xff] }
  0xfc   :  { %3384 = vtanh.f32 %v707_v15 }
  0xfd   :  { %877 = vmatpush.msra.mxu2 %v9150_v61  ;;  %917 = vmatpush.msrb.mxu0 %v5173_v26  ;;  %v9156_v61 = vld [vmem:[#allocation28_spill] sm:$0xff] }
  0xff   :  { %878 = vmatpush.msra.mxu2 %v9151_v52  ;;  %918 = vmatpush.msrb.mxu0 %v5177_v58  ;;  %v9153_v52 = vld [vmem:[#allocation61_spill] sm:$0xff] }
 0x101   :  { %879 = vmatpush.msra.mxu2 %v9152_v43  ;;  %919 = vmatpush.msrb.mxu0 %v5183_v35  ;;  %v9155_v43 = vld [vmem:[#allocation62_spill] sm:$0xff] }
 0x102   :  { %v3385_v15 = vpop.eup %3384 }
 0x103   :  { %v710_v28 = vmul.f32 %v3385_v15, %v709_v3  ;;  %880 = vmatpush.msra.mxu2 %v9154_v17  ;;  %v5193_v3 = vld [vmem:[#allocation6 + $0x338] sm:$0xff]  ;;  %v5199_v15 = vld [vmem:[#allocation6 + $0x308] sm:$0xff]  ;;  %v9162_v17 = vld [vmem:[#allocation30_spill] sm:$0xff] }
 0x104   :  { %920 = vmatpush.msrb.mxu0 %v5193_v3 }
 0x105   :  { %v5180_v39 = vadd.f32 %v711_v63, %v710_v28  ;;  %881 = vmatpush.msra.mxu2 %v9156_v61  ;;  %v9157_v63 = vld [vmem:[#allocation63_spill] sm:$0xff]  ;;  %v9165_v61 = vld [vmem:[#allocation33_spill] sm:$0xff] }
 0x106   :  { %921 = vmatpush.msrb.mxu0 %v5199_v15  ;;  %v9159_v28 = vld [vmem:[#allocation31_spill] sm:$0xff] }
 0x107   :  { %784 = vmatmul.f32.vlgmr.msrb.gmra.mxu2 %v5180_v39  ;;  %804 = vmatmul.f32.vlgmr.msra.gmra.mxu3 %v5180_v39 }
 0x108   :  { %824 = vmatmul.f32.vlgmr.msra.gmra.mxu0 %v5180_v39  ;;  %862 = vmatmul.f32.vlgmr.msra.gmra.mxu1 %v5180_v39 }
 0x109   :  { %966 = vmatpush.msra.mxu3 %v9153_v52  ;;  %1006 = vmatpush.msra.mxu1 %v4801_v1  ;;  %v9158_v1 = vld [vmem:[#allocation29_spill] sm:$0xff]  ;;  %v9160_v52 = vld [vmem:[#allocation64_spill] sm:$0xff] }
 0x10a   :  { %946 = vmatpush.msrb.mxu2 %v9158_v1  ;;  %986 = vmatpush.msra.mxu0 %v9159_v28  ;;  %v9168_v1 = vld [vmem:[#allocation35_spill] sm:$0xff]  ;;  %v9169_v28 = vld [vmem:[#allocation48_spill] sm:$0xff] }
 0x10b   :  { %967 = vmatpush.msra.mxu3 %v9155_v43  ;;  %1007 = vmatpush.msra.mxu1 %v4807_v56  ;;  %v9161_v56 = vld [vmem:[#allocation65_spill] sm:$0xff]  ;;  %v9163_v43 = vld [vmem:[#allocation32_spill] sm:$0xff] }
 0x10c   :  { %947 = vmatpush.msrb.mxu2 %v9162_v17  ;;  %987 = vmatpush.msra.mxu0 %v9163_v43  ;;  %v9174_v17 = vld [vmem:[#allocation37_spill] sm:$0xff]  ;;  %v9175_v43 = vld [vmem:[#allocation50_spill] sm:$0xff] }
 0x10d   :  { %968 = vmatpush.msra.mxu3 %v9157_v63  ;;  %1008 = vmatpush.msra.mxu1 %v4812_v50  ;;  %v9164_v50 = vld [vmem:[#allocation66_spill] sm:$0xff] }
 0x10e   :  { %948 = vmatpush.msrb.mxu2 %v9165_v61  ;;  %v9166_v63 = vld [vmem:[#allocation34_spill] sm:$0xff]  ;;  %v9178_v61 = vld [vmem:[#allocation51_spill] sm:$0xff] }
 0x10f   :  { %969 = vmatpush.msra.mxu3 %v9160_v52  ;;  %1009 = vmatpush.msra.mxu1 %v4821_v7  ;;  %v9167_v7 = vld [vmem:[#allocation67_spill] sm:$0xff]  ;;  %v9171_v52 = vld [vmem:[#allocation36_spill] sm:$0xff] }
 0x110   :  { %902 = vmatmul.f32.vlgmr.msrb.gmra.mxu3 %v5180_v39  ;;  %942 = vmatmul.f32.vlgmr.msrb.gmra.mxu1 %v5180_v39 }
 0x111   :  { %970 = vmatpush.msra.mxu3 %v9161_v56  ;;  %1010 = vmatpush.msra.mxu1 %v4838_v4  ;;  %v9170_v4 = vld [vmem:[#allocation68_spill] sm:$0xff]  ;;  %v9172_v56 = vld [vmem:[#allocation49_spill] sm:$0xff] }
 0x112   :  { %988 = vmatpush.msra.mxu0 %v9166_v63  ;;  %949 = vmatpush.msrb.mxu2 %v9168_v1  ;;  %v9180_v63 = vld [vmem:[#allocation39_spill] sm:$0xff]  ;;  %v9183_v1 = vld [vmem:[#allocation40_spill] sm:$0xff] }
 0x113   :  { %971 = vmatpush.msra.mxu3 %v9164_v50  ;;  %1011 = vmatpush.msra.mxu1 %v4848_v5  ;;  %v9173_v5 = vld [vmem:[#allocation69_spill] sm:$0xff]  ;;  %v9177_v50 = vld [vmem:[#allocation38_spill] sm:$0xff] }
 0x114   :  { %989 = vmatpush.msra.mxu0 %v9169_v28  ;;  %950 = vmatpush.msrb.mxu2 %v9171_v52  ;;  %v9184_v28 = vld [vmem:[#allocation53_spill] sm:$0xff]  ;;  %v9187_v52 = vld [vmem:[#allocation54_spill] sm:$0xff] }
 0x115   :  { %972 = vmatpush.msra.mxu3 %v9167_v7  ;;  %1012 = vmatpush.msra.mxu1 %v4858_v6  ;;  %v9176_v6 = vld [vmem:[#allocation70_spill] sm:$0xff]  ;;  %v9181_v7 = vld [vmem:[#allocation52_spill] sm:$0xff] }
 0x116   :  { %990 = vmatpush.msra.mxu0 %v9172_v56  ;;  %951 = vmatpush.msrb.mxu2 %v9174_v17  ;;  %v9189_v56 = vld [vmem:[#allocation55_spill] sm:$0xff]  ;;  %v9195_v17 = vld [vmem:[#allocation57_spill] sm:$0xff] }
 0x117   :  { %973 = vmatpush.msra.mxu3 %v9170_v4  ;;  %1013 = vmatpush.msra.mxu1 %v4870_v2  ;;  %v9179_v2 = vld [vmem:[#allocation71_spill] sm:$0xff]  ;;  %v9186_v4 = vld [vmem:[#allocation41_spill] sm:$0xff] }
 0x118   :  { %991 = vmatpush.msra.mxu0 %v9175_v43  ;;  %952 = vmatpush.msrb.mxu2 %v9177_v50  ;;  %v9199_v43 = vld [vmem:[#allocation46_spill] sm:$0xff]  ;;  %v9201_v50 = vld [vmem:[#allocation83_spill] sm:$0xff] }
 0x119   :  { %974 = vmatpush.msra.mxu3 %v9173_v5  ;;  %1014 = vmatpush.msra.mxu1 %v4880_v8  ;;  %v9182_v8 = vld [vmem:[#allocation74_spill] sm:$0xff]  ;;  %v9191_v5 = vld [vmem:[#allocation56_spill] sm:$0xff] }
 0x11a   :  { %992 = vmatpush.msra.mxu0 %v9178_v61  ;;  %953 = vmatpush.msrb.mxu2 %v9180_v63  ;;  %v9202_v61 = vld [vmem:[#allocation47_spill] sm:$0xff]  ;;  %v9208_v63 = vld [vmem:[#allocation96_spill] sm:$0xff] }
 0x11b   :  { %975 = vmatpush.msra.mxu3 %v9176_v6  ;;  %1015 = vmatpush.msra.mxu1 %v4894_v12  ;;  %v9185_v12 = vld [vmem:[#allocation75_spill] sm:$0xff] }
 0x11c   :  { %993 = vmatpush.msra.mxu0 %v9181_v7  ;;  %954 = vmatpush.msrb.mxu2 %v9183_v1  ;;  %v9200_v6 = vld [vmem:[#allocation59_spill] sm:$0xff]  ;;  %v5328_v7 = vld [vmem:[#allocation6 + $0x480] sm:$0xff] }
 0x11d   :  { %976 = vmatpush.msra.mxu3 %v9179_v2  ;;  %1016 = vmatpush.msra.mxu1 %v4904_v16  ;;  %v9188_v16 = vld [vmem:[#allocation42_spill] sm:$0xff]  ;;  %v9206_v2 = vld [vmem:[#allocation91_spill] sm:$0xff]  ;;  %v5344_v1 = vld [vmem:[#allocation6 + $0x3c0] sm:$0xff] }
 0x11e   :  { %994 = vmatpush.msra.mxu0 %v9184_v28  ;;  %955 = vmatpush.msrb.mxu2 %v9186_v4  ;;  %v5360_v28 = vld [vmem:[#allocation6 + $0x300] sm:$0xff] }
 0x11f   :  { %977 = vmatpush.msra.mxu3 %v9182_v8  ;;  %1017 = vmatpush.msra.mxu1 %v4914_v24  ;;  %v9190_v24 = vld [vmem:[#allocation43_spill] sm:$0xff]  ;;  %v5332_v8 = vld [vmem:[#allocation6 + $0x450] sm:$0xff]  ;;  %v9221_v4 = vld [vmem:[#allocation16_spill] sm:$0xff] }
 0x120   :  { %995 = vmatpush.msra.mxu0 %v9187_v52  ;;  %956 = vmatpush.msrb.mxu2 %v9188_v16  ;;  %v9222_v52 = vld [vmem:[#allocation17_spill] sm:$0xff]  ;;  %v9224_v16 = vld [vmem:[#allocation19_spill] sm:$0xff] }
 0x121   :  { %978 = vmatpush.msra.mxu3 %v9185_v12  ;;  %1018 = vmatpush.msra.mxu1 %v4926_v51  ;;  %v9192_v51 = vld [vmem:[#allocation77_spill] sm:$0xff]  ;;  %v9219_v12 = vld [vmem:[#allocation14_spill] sm:$0xff] }
 0x122   :  { %996 = vmatpush.msra.mxu0 %v9189_v56  ;;  %957 = vmatpush.msrb.mxu2 %v9190_v24  ;;  %v9225_v56 = vld [vmem:[#allocation20_spill] sm:$0xff] }
 0x123   :  { %979 = vmatpush.msra.mxu3 %v4788_v54  ;;  %1019 = vmatpush.msra.mxu1 %v4936_v27  ;;  %v9193_v54 = vld [vmem:[#allocation80_spill] sm:$0xff] }
 0x124   :  { %997 = vmatpush.msra.mxu0 %v9191_v5  ;;  %v9194_v27 = vld [vmem:[#allocation44_spill] sm:$0xff]  ;;  %v646_v5 = vpop.f32.mrf.mxu3 }
 0x125   :  { %980 = vmatpush.msra.mxu3 %v4790_v25  ;;  %1020 = vmatpush.msra.mxu1 %v4948_v53  ;;  %v9196_v25 = vld [vmem:[#allocation45_spill] sm:$0xff]  ;;  %v9197_v53 = vld [vmem:[#allocation58_spill] sm:$0xff] }
 0x126   :  { %958 = vmatpush.msrb.mxu2 %v9194_v27  ;;  %998 = vmatpush.msra.mxu0 %v9195_v17 }
 0x127   :  { %981 = vmatpush.msra.mxu3 %v9192_v51  ;;  %1021 = vmatpush.msra.mxu1 %v4956_v38  ;;  %v9198_v38 = vld [vmem:[#allocation81_spill] sm:$0xff]  ;;  %v586_v51 = vpop.f32.mrf.mxu0 }
 0x128   :  { %982 = vmatmul.f32.vlgmr.msra.gmra.mxu3 %v5180_v39  ;;  %1022 = vmatmul.f32.vlgmr.msra.gmra.mxu1 %v5180_v39 }
 0x129   :  { %1046 = vmatpush.msrb.mxu3 %v9193_v54  ;;  %1110 = vmatpush.msrb.mxu1 %v4968_v21  ;;  %v9203_v21 = vld [vmem:[#allocation60_spill] sm:$0xff]  ;;  %v254_v54 = vld [vmem:[%s8417_s3] ss:$8 sm:$0x7] }
 0x12a   :  { %959 = vmatpush.msrb.mxu2 %v9196_v25  ;;  %999 = vmatpush.msra.mxu0 %v9197_v53  ;;  %v5382_v27 = vperm.slane %v254_v54, 0  ;;  %v5384_v17 = vperm.slane %v254_v54, 1  ;;  %v606_v25 = vpop.f32.mrf.mxu1 }
 0x12b   :  { %1047 = vmatpush.msrb.mxu3 %v4809_v13  ;;  %1111 = vmatpush.msrb.mxu1 %v4978_v31  ;;  %v9204_v13 = vld [vmem:[#allocation87_spill] sm:$0xff]  ;;  %v9205_v31 = vld [vmem:[#allocation89_spill] sm:$0xff] }
 0x12c   :  { %960 = vmatpush.msrb.mxu2 %v9199_v43  ;;  %1000 = vmatpush.msra.mxu0 %v9200_v6  ;;  %v607_v43 = vadd.f32 %v606_v25, %v586_v51 }
 0x12d   :  { %1048 = vmatpush.msrb.mxu3 %v9198_v38  ;;  %1112 = vmatpush.msrb.mxu1 %v4986_v49  ;;  %v9207_v49 = vld [vmem:[#allocation94_spill] sm:$0xff] }
 0x12e   :  { %961 = vmatpush.msrb.mxu2 %v9202_v61  ;;  %1001 = vmatpush.msra.mxu0 %v9203_v21 }
 0x12f   :  { %1049 = vmatpush.msrb.mxu3 %v9201_v50  ;;  %1113 = vmatpush.msrb.mxu1 %v4998_v46  ;;  %v9209_v46 = vld [vmem:[#allocation100_spill] sm:$0xff] }
 0x131   :  { %1050 = vmatpush.msrb.mxu3 %v9204_v13  ;;  %1114 = vmatpush.msrb.mxu1 %v5006_v10  ;;  %v9210_v10 = vld [vmem:[#allocation102_spill] sm:$0xff] }
 0x133   :  { %1051 = vmatpush.msrb.mxu3 %v9205_v31  ;;  %1115 = vmatpush.msrb.mxu1 %v5014_v14  ;;  %v9211_v14 = vld [vmem:[#allocation104_spill] sm:$0xff] }
 0x135   :  { %1052 = vmatpush.msrb.mxu3 %v9206_v2  ;;  %1116 = vmatpush.msrb.mxu1 %v5024_v18  ;;  %v9212_v18 = vld [vmem:[#allocation107_spill] sm:$0xff] }
 0x137   :  { %1053 = vmatpush.msrb.mxu3 %v9207_v49  ;;  %1117 = vmatpush.msrb.mxu1 %v5032_v23  ;;  %v9213_v23 = vld [vmem:[#allocation112_spill] sm:$0xff] }
 0x139   :  { %1054 = vmatpush.msrb.mxu3 %v9208_v63  ;;  %1118 = vmatpush.msrb.mxu1 %v5044_v30  ;;  %v9214_v30 = vld [vmem:[#allocation114_spill] sm:$0xff]  ;;  %v686_v63 = vpop.f32.mrf.mxu1 }
 0x13b   :  { %1055 = vmatpush.msrb.mxu3 %v9209_v46  ;;  %1119 = vmatpush.msrb.mxu1 %v5052_v34  ;;  %v5300_v34 = vld [vmem:[#allocation6 + $0x5d0] sm:$0xff] }
 0x13d   :  { %1056 = vmatpush.msrb.mxu3 %v9210_v10  ;;  %1120 = vmatpush.msrb.mxu1 %v5060_v44  ;;  %v5308_v44 = vld [vmem:[#allocation6 + $0x570] sm:$0xff] }
 0x13f   :  { %1057 = vmatpush.msrb.mxu3 %v9211_v14  ;;  %1121 = vmatpush.msrb.mxu1 %v5070_v48  ;;  %v5312_v48 = vld [vmem:[#allocation6 + $0x540] sm:$0xff]  ;;  %v5391_v14 = vld [vmem:[%s8417_s3 + $0x9] ss:$0 sm:$0xff] }
 0x141   :  { %1058 = vmatpush.msrb.mxu3 %v9212_v18  ;;  %1122 = vmatpush.msrb.mxu1 %v5080_v59  ;;  %v5316_v59 = vld [vmem:[#allocation6 + $0x510] sm:$0xff]  ;;  %v5393_v18 = vperm.slane %v254_v54, 2 }
 0x142   :  { %v5401_v54 = vld [vmem:[#allocation6 + $0x5f0] sm:$0xff] }
 0x143   :  { %1059 = vmatpush.msrb.mxu3 %v4938_v20  ;;  %1123 = vmatpush.msrb.mxu1 %v5089_v47  ;;  %v5304_v20 = vld [vmem:[#allocation6 + $0x5a0] sm:$0xff] }
 0x145   :  { %1060 = vmatpush.msrb.mxu3 %v9213_v23  ;;  %1124 = vmatpush.msrb.mxu1 %v5097_v57 }
 0x146   :  { %v626_v24 = vpop.f32.mrf.mxu2 }
 0x147   :  { %1061 = vmatpush.msrb.mxu3 %v9214_v30  ;;  %1125 = vmatpush.msrb.mxu1 %v5105_v9  ;;  %v647_v6 = vadd.f32 %v646_v5, %v626_v24 }
 0x148   :  { %1062 = vmatmul.f32.vlgmr.msrb.gmra.mxu3 %v5180_v39 }
 0x149   :  { %1150 = vmatpush.msra.mxu3 %v4972_v41  ;;  %1208 = vmatpush.msra.mxu1 %v5300_v34  ;;  %v9215_v41 = vld [vmem:[#allocation119_spill] sm:$0xff] }
 0x14b   :  { %1151 = vmatpush.msra.mxu3 %v4982_v45  ;;  %1209 = vmatpush.msra.mxu1 %v5304_v20  ;;  %v5320_v45 = vld [vmem:[#allocation6 + $0x4e0] sm:$0xff] }
 0x14d   :  { %1152 = vmatpush.msra.mxu3 %v4990_v36  ;;  %1210 = vmatpush.msra.mxu1 %v5308_v44  ;;  %v5324_v36 = vld [vmem:[#allocation6 + $0x4b0] sm:$0xff] }
 0x14f   :  { %1153 = vmatpush.msra.mxu3 %v5002_v11  ;;  %1211 = vmatpush.msra.mxu1 %v5312_v48  ;;  %v9216_v11 = vld [vmem:[#allocation121_spill] sm:$0xff] }
 0x151   :  { %1154 = vmatpush.msra.mxu3 %v9215_v41  ;;  %1212 = vmatpush.msra.mxu1 %v5316_v59 }
 0x153   :  { %1155 = vmatpush.msra.mxu3 %v5018_v19  ;;  %1213 = vmatpush.msra.mxu1 %v5320_v45  ;;  %v5336_v19 = vld [vmem:[#allocation6 + $0x420] sm:$0xff] }
 0x155   :  { %1156 = vmatpush.msra.mxu3 %v5028_v22  ;;  %1214 = vmatpush.msra.mxu1 %v5324_v36  ;;  %v5340_v22 = vld [vmem:[#allocation6 + $0x3f0] sm:$0xff]  ;;  %v666_v31 = vpop.f32.mrf.mxu0 }
 0x156   :  { %v687_v46 = vadd.f32 %v686_v63, %v666_v31  ;;  %v5416_v31 = vld [vmem:[#allocation6 + $0x598] sm:$0xff]  ;;  %v5427_v63 = vld [vmem:[#allocation6 + $0x530] sm:$0xff] }
 0x157   :  { %1157 = vmatpush.msra.mxu3 %v9216_v11  ;;  %1215 = vmatpush.msra.mxu1 %v5328_v7  ;;  %9227 = vst [vmem:[#allocation21_spill] sm:$0xff] %v5416_v31 }
 0x158   :  { %v838_v11 = vadd.f32 %v687_v46, %v5391_v14  ;;  %9230 = vst [vmem:[#allocation24_spill] sm:$0xff] %v5427_v63  ;;  %v5430_v46 = vld [vmem:[#allocation6 + $0x538] sm:$0xff] }
 0x159   :  { %1158 = vmatpush.msra.mxu3 %v5048_v29  ;;  %1216 = vmatpush.msra.mxu1 %v5332_v8  ;;  %v5348_v29 = vld [vmem:[#allocation6 + $0x390] sm:$0xff]  ;;  %9231 = vst [vmem:[#allocation25_spill] sm:$0xff] %v5430_v46 }
 0x15b   :  { %1159 = vmatpush.msra.mxu3 %v5056_v33  ;;  %1217 = vmatpush.msra.mxu1 %v5336_v19  ;;  %v5352_v33 = vld [vmem:[#allocation6 + $0x360] sm:$0xff] }
 0x15d   :  { %1160 = vmatpush.msra.mxu3 %v5064_v37  ;;  %1218 = vmatpush.msra.mxu1 %v5340_v22  ;;  %v5356_v37 = vld [vmem:[#allocation6 + $0x330] sm:$0xff] }
 0x15f   :  { %1161 = vmatpush.msra.mxu3 %v5074_v40  ;;  %1219 = vmatpush.msra.mxu1 %v5344_v1  ;;  %v9217_v40 = vld [vmem:[#allocation126_spill] sm:$0xff] }
 0x161   :  { %1162 = vmatpush.msra.mxu3 %v5085_v0  ;;  %1220 = vmatpush.msra.mxu1 %v5348_v29  ;;  %v9218_v0 = vld [vmem:[#allocation13_spill] sm:$0xff] }
 0x163   :  { %1163 = vmatpush.msra.mxu3 %v5093_v32  ;;  %1221 = vmatpush.msra.mxu1 %v5352_v33  ;;  %v9220_v32 = vld [vmem:[#allocation15_spill] sm:$0xff] }
 0x165   :  { %1164 = vmatpush.msra.mxu3 %v5101_v42  ;;  %1222 = vmatpush.msra.mxu1 %v5356_v37  ;;  %v9223_v42 = vld [vmem:[#allocation18_spill] sm:$0xff] }
 0x167   :  { %1165 = vmatpush.msra.mxu3 %v9217_v40  ;;  %1223 = vmatpush.msra.mxu1 %v5360_v28 }
 0x169   :  { %1248 = vmatpush.msrb.mxu3 %v9218_v0 }
 0x16b   :  { %1249 = vmatpush.msrb.mxu3 %v9219_v12 }
 0x16d   :  { %1250 = vmatpush.msrb.mxu3 %v9220_v32 }
 0x16f   :  { %1251 = vmatpush.msrb.mxu3 %v9221_v4 }
 0x171   :  { %1252 = vmatpush.msrb.mxu3 %v9222_v52 }
 0x173   :  { %1253 = vmatpush.msrb.mxu3 %v5148_v60 }
 0x175   :  { %1254 = vmatpush.msrb.mxu3 %v5152_v62 }
 0x177   :  { %1255 = vmatpush.msrb.mxu3 %v5157_v55 }
 0x179   :  { %1256 = vmatpush.msrb.mxu3 %v9223_v42 }
 0x17b   :  { %1257 = vmatpush.msrb.mxu3 %v9224_v16 }
 0x17d   :  { %1258 = vmatpush.msrb.mxu3 %v9225_v56 }
 0x17f   :  { %1259 = vmatpush.msrb.mxu3 %v5173_v26 }
 0x181   :  { %1260 = vmatpush.msrb.mxu3 %v5177_v58 }
 0x183   :  { %1261 = vmatpush.msrb.mxu3 %v5183_v35 }
 0x185   :  { %1262 = vmatpush.msrb.mxu3 %v5193_v3  ;;  %v825_v30 = vpop.f32.mrf.mxu0 }
 0x186   :  { %v826_v0 = vadd.f32 %v825_v30, %v5393_v18  ;;  %v5439_v30 = vld [vmem:[#allocation6 + $0x4d0] sm:$0xff] }
 0x187   :  { %1263 = vmatpush.msrb.mxu3 %v5199_v15  ;;  %9234 = vst [vmem:[#allocation27_spill] sm:$0xff] %v5439_v30 }
 0x18a   :  { %v785_v53 = vpop.f32.mrf.mxu2  ;;  %v805_v38 = vpop.f32.mrf.mxu3 }
 0x18b   :  { %v786_v50 = vadd.f32 %v785_v53, %v5382_v27  ;;  %v806_v61 = vadd.f32 %v805_v38, %v5384_v17 }
 0x18d   :  { %v828_v21 = vadd.f32 %v786_v50, %v607_v43  ;;  %v833_v13 = vadd.f32 %v806_v61, %v647_v6  ;;  %v5404_v50 = vld [vmem:[#allocation6 + $0x5f8] sm:$0xff]  ;;  %v5407_v61 = vld [vmem:[#allocation6 + $0x5c0] sm:$0xff] }
 0x18f   :  { %v829_v2 = vmul.f32 0.5, %v828_v21  ;;  %v834_v49 = vmul.f32 0.5, %v833_v13  ;;  %v5410_v21 = vld [vmem:[#allocation6 + $0x5c8] sm:$0xff]  ;;  %v5413_v13 = vld [vmem:[#allocation6 + $0x590] sm:$0xff] }
 0x190   :  { %9226 = vst [vmem:[#allocation76_spill] sm:$0xff] %v5413_v13 }
 0x191   :  { %3386 = vtanh.f32 %v829_v2  ;;  %v5419_v2 = vld [vmem:[#allocation6 + $0x560] sm:$0xff] }
 0x192   :  { %3388 = vtanh.f32 %v834_v49  ;;  %9228 = vst [vmem:[#allocation22_spill] sm:$0xff] %v5419_v2  ;;  %v5422_v49 = vld [vmem:[#allocation6 + $0x568] sm:$0xff] }
 0x193   :  { %9229 = vst [vmem:[#allocation23_spill] sm:$0xff] %v5422_v49 }
 0x197   :  { %v3387_v10 = vpop.eup %3386 }
 0x198   :  { %v831_v23 = vadd.f32 1.0, %v3387_v10  ;;  %v3389_v41 = vpop.eup %3388  ;;  %v5433_v10 = vld [vmem:[#allocation6 + $0x500] sm:$0xff] }
 0x199   :  { %v836_v24 = vadd.f32 1.0, %v3389_v41  ;;  %9232 = vst [vmem:[#allocation26_spill] sm:$0xff] %v5433_v10  ;;  %v5442_v41 = vld [vmem:[#allocation6 + $0x4d8] sm:$0xff] }
 0x19a   :  { %v832_v40 = vmul.f32 0.5, %v831_v23  ;;  %v5436_v23 = vld [vmem:[#allocation6 + $0x508] sm:$0xff]  ;;  %9235 = vst [vmem:[#allocation62_spill] sm:$0xff] %v5442_v41 }
 0x19b   :  { %v837_v51 = vmul.f32 0.5, %v836_v24  ;;  %9233 = vst [vmem:[#allocation61_spill] sm:$0xff] %v5436_v23  ;;  %v5457_v24 = vld [vmem:[#allocation6 + $0x440] sm:$0xff] }
 0x19c   :  { %v839_v12 = vmul.f32 %v838_v11, %v832_v40  ;;  %v5445_v11 = vld [vmem:[#allocation6 + $0x4a0] sm:$0xff]  ;;  %v5448_v40 = vld [vmem:[#allocation6 + $0x4a8] sm:$0xff]  ;;  %9240 = vst [vmem:[#allocation64_spill] sm:$0xff] %v5457_v24 }
 0x19d   :  { %v842_v25 = vsub.f32 1.0, %v837_v51  ;;  %v844_v43 = vmul.f32 0.0, %v837_v51  ;;  %9236 = vst [vmem:[#allocation28_spill] sm:$0xff] %v5445_v11  ;;  %v5463_v51 = vld [vmem:[#allocation6 + $0x410] sm:$0xff] }
 0x19e   :  { %v840_v5 = vadd.f32 %v839_v12, %v826_v0  ;;  %9237 = vst [vmem:[#allocation63_spill] sm:$0xff] %v5448_v40  ;;  %v5451_v0 = vld [vmem:[#allocation6 + $0x470] sm:$0xff]  ;;  %v5454_v12 = vld [vmem:[#allocation6 + $0x478] sm:$0xff] }
 0x19f   :  { %9238 = vst [vmem:[#allocation29_spill] sm:$0xff] %v5451_v0 }
 0x1a0   :  { %3390 = vtanh.f32 %v840_v5  ;;  %9239 = vst [vmem:[#allocation31_spill] sm:$0xff] %v5454_v12  ;;  %v5460_v5 = vld [vmem:[#allocation6 + $0x448] sm:$0xff] }
 0x1a1   :  { %9241 = vst [vmem:[#allocation65_spill] sm:$0xff] %v5460_v5 }
 0x1a2   :  { %9242 = vst [vmem:[#allocation30_spill] sm:$0xff] %v5463_v51 }
 0x1a6   :  { %v3391_v53 = vpop.eup %3390 }
 0x1a7   :  { %v843_v38 = vmul.f32 %v3391_v53, %v842_v25  ;;  %v5466_v25 = vld [vmem:[#allocation6 + $0x418] sm:$0xff]  ;;  %v5469_v53 = vld [vmem:[#allocation6 + $0x3e0] sm:$0xff] }
 0x1a8   :  { %9243 = vst [vmem:[#allocation32_spill] sm:$0xff] %v5466_v25 }
 0x1a9   :  { %v5397_v6 = vadd.f32 %v844_v43, %v843_v38  ;;  %9244 = vst [vmem:[#allocation66_spill] sm:$0xff] %v5469_v53  ;;  %v5472_v38 = vld [vmem:[#allocation6 + $0x3e8] sm:$0xff]  ;;  %v5475_v43 = vld [vmem:[#allocation6 + $0x3b0] sm:$0xff] }
 0x1aa   :  { %9245 = vst [vmem:[#allocation33_spill] sm:$0xff] %v5472_v38 }
 0x1ab   :  { %882 = vmatmul.f32.vlgmr.msra.gmra.mxu2 %v5397_v6  ;;  %922 = vmatmul.f32.vlgmr.msrb.gmra.mxu0 %v5397_v6  ;;  %9246 = vst [vmem:[#allocation34_spill] sm:$0xff] %v5475_v43 }
 0x1ac   :  { %1026 = vmatpush.msra.mxu2 %v5401_v54  ;;  %1066 = vmatpush.msrb.mxu0 %v5404_v50 }
 0x1ae   :  { %1027 = vmatpush.msra.mxu2 %v5407_v61  ;;  %1067 = vmatpush.msrb.mxu0 %v5410_v21 }
 0x1b0   :  { %1028 = vmatpush.msra.mxu2 %v5413_v13  ;;  %1068 = vmatpush.msrb.mxu0 %v5416_v31  ;;  %v9320_v31 = vld [vmem:[#allocation127_spill] sm:$0xff] }
 0x1b2   :  { %1029 = vmatpush.msra.mxu2 %v5419_v2  ;;  %1069 = vmatpush.msrb.mxu0 %v5422_v49 }
 0x1b3   :  { %962 = vmatmul.f32.vlgmr.msrb.gmra.mxu2 %v5397_v6  ;;  %1002 = vmatmul.f32.vlgmr.msra.gmra.mxu0 %v5397_v6 }
 0x1b4   :  { %1030 = vmatpush.msra.mxu2 %v5427_v63  ;;  %1070 = vmatpush.msrb.mxu0 %v5430_v46 }
 0x1b6   :  { %1031 = vmatpush.msra.mxu2 %v5433_v10  ;;  %1071 = vmatpush.msrb.mxu0 %v5436_v23 }
 0x1b8   :  { %1032 = vmatpush.msra.mxu2 %v5439_v30  ;;  %1072 = vmatpush.msrb.mxu0 %v5442_v41  ;;  %v9319_v41 = vld [vmem:[#allocation72_spill] sm:$0xff] }
 0x1ba   :  { %1033 = vmatpush.msra.mxu2 %v5445_v11  ;;  %1073 = vmatpush.msrb.mxu0 %v5448_v40  ;;  %v9318_v11 = vld [vmem:[#allocation73_spill] sm:$0xff] }
 0x1bc   :  { %1034 = vmatpush.msra.mxu2 %v5451_v0  ;;  %1074 = vmatpush.msrb.mxu0 %v5454_v12  ;;  %v5528_v12 = vld [vmem:[#allocation6 + $0x1e0] sm:$0xff] }
 0x1bd   :  { %9265 = vst [vmem:[#allocation74_spill] sm:$0xff] %v5528_v12 }
 0x1be   :  { %1035 = vmatpush.msra.mxu2 %v5457_v24  ;;  %1075 = vmatpush.msrb.mxu0 %v5460_v5  ;;  %v5478_v5 = vld [vmem:[#allocation6 + $0x3b8] sm:$0xff]  ;;  %v5520_v24 = vld [vmem:[#allocation6 + $0x240] sm:$0xff] }
 0x1bf   :  { %9247 = vst [vmem:[#allocation67_spill] sm:$0xff] %v5478_v5 }
 0x1c0   :  { %1036 = vmatpush.msra.mxu2 %v5463_v51  ;;  %1076 = vmatpush.msrb.mxu0 %v5466_v25  ;;  %v5481_v51 = vld [vmem:[#allocation6 + $0x380] sm:$0xff]  ;;  %v5484_v25 = vld [vmem:[#allocation6 + $0x388] sm:$0xff]  ;;  %9261 = vst [vmem:[#allocation39_spill] sm:$0xff] %v5520_v24 }
 0x1c1   :  { %9248 = vst [vmem:[#allocation35_spill] sm:$0xff] %v5481_v51 }
 0x1c2   :  { %1037 = vmatpush.msra.mxu2 %v5469_v53  ;;  %1077 = vmatpush.msrb.mxu0 %v5472_v38  ;;  %9249 = vst [vmem:[#allocation48_spill] sm:$0xff] %v5484_v25  ;;  %v5487_v53 = vld [vmem:[#allocation6 + $0x350] sm:$0xff]  ;;  %v5490_v38 = vld [vmem:[#allocation6 + $0x358] sm:$0xff] }
 0x1c3   :  { %9250 = vst [vmem:[#allocation68_spill] sm:$0xff] %v5487_v53 }
 0x1c4   :  { %1038 = vmatpush.msra.mxu2 %v5475_v43  ;;  %1078 = vmatpush.msrb.mxu0 %v5478_v5  ;;  %9251 = vst [vmem:[#allocation36_spill] sm:$0xff] %v5490_v38  ;;  %v5493_v43 = vld [vmem:[#allocation6 + $0x320] sm:$0xff]  ;;  %v5496_v5 = vld [vmem:[#allocation6 + $0x328] sm:$0xff] }
 0x1c5   :  { %9252 = vst [vmem:[#allocation49_spill] sm:$0xff] %v5493_v43 }
 0x1c6   :  { %1039 = vmatpush.msra.mxu2 %v5481_v51  ;;  %1079 = vmatpush.msrb.mxu0 %v5484_v25  ;;  %9253 = vst [vmem:[#allocation69_spill] sm:$0xff] %v5496_v5  ;;  %v5501_v25 = vld [vmem:[#allocation3 + $0x188] sm:$0xff] }
 0x1c7   :  { %9254 = vst [vmem:[#allocation37_spill] sm:$0xff] %v5501_v25  ;;  %v5516_v51 = vld [vmem:[#allocation6 + $0x270] sm:$0xff] }
 0x1c8   :  { %1040 = vmatpush.msra.mxu2 %v5487_v53  ;;  %1080 = vmatpush.msrb.mxu0 %v5490_v38  ;;  %v5504_v53 = vld [vmem:[#allocation6 + $0x2d0] sm:$0xff]  ;;  %v5507_v38 = vld [vmem:[#allocation3 + $0x170] sm:$0xff]  ;;  %9259 = vst [vmem:[#allocation71_spill] sm:$0xff] %v5516_v51 }
 0x1c9   :  { %9255 = vst [vmem:[#allocation50_spill] sm:$0xff] %v5504_v53 }
 0x1ca   :  { %1041 = vmatpush.msra.mxu2 %v5493_v43  ;;  %1081 = vmatpush.msrb.mxu0 %v5496_v5  ;;  %9256 = vst [vmem:[#allocation70_spill] sm:$0xff] %v5507_v38  ;;  %v5510_v43 = vld [vmem:[#allocation6 + $0x2a0] sm:$0xff] }
 0x1cb   :  { %1042 = vmatmul.f32.vlgmr.msra.gmra.mxu2 %v5397_v6  ;;  %1082 = vmatmul.f32.vlgmr.msrb.gmra.mxu0 %v5397_v6  ;;  %9257 = vst [vmem:[#allocation38_spill] sm:$0xff] %v5510_v43  ;;  %v5513_v5 = vld [vmem:[#allocation3 + $0x158] sm:$0xff] }
 0x1cc   :  { %1130 = vmatpush.msrb.mxu2 %v5501_v25  ;;  %1188 = vmatpush.msra.mxu0 %v5504_v53  ;;  %9258 = vst [vmem:[#allocation51_spill] sm:$0xff] %v5513_v5  ;;  %v9260_v25 = vld [vmem:[#allocation84_spill] sm:$0xff] }
 0x1cd   :  { %v9262_v53 = vld [vmem:[#allocation88_spill] sm:$0xff] }
 0x1ce   :  { %1131 = vmatpush.msrb.mxu2 %v5507_v38  ;;  %1189 = vmatpush.msra.mxu0 %v5510_v43  ;;  %v5524_v38 = vld [vmem:[#allocation6 + $0x210] sm:$0xff] }
 0x1cf   :  { %9263 = vst [vmem:[#allocation52_spill] sm:$0xff] %v5524_v38  ;;  %v9264_v43 = vld [vmem:[#allocation90_spill] sm:$0xff] }
 0x1d0   :  { %1132 = vmatpush.msrb.mxu2 %v5513_v5  ;;  %1190 = vmatpush.msra.mxu0 %v5516_v51  ;;  %v9266_v5 = vld [vmem:[#allocation92_spill] sm:$0xff]  ;;  %v5532_v51 = vld [vmem:[#allocation6 + $0x1b0] sm:$0xff] }
 0x1d1   :  { %9267 = vst [vmem:[#allocation40_spill] sm:$0xff] %v5532_v51 }
 0x1d2   :  { %1133 = vmatpush.msrb.mxu2 %v9260_v25  ;;  %1191 = vmatpush.msra.mxu0 %v5520_v24  ;;  %v9268_v25 = vld [vmem:[#allocation95_spill] sm:$0xff]  ;;  %v5536_v24 = vld [vmem:[#allocation6 + $0x180] sm:$0xff] }
 0x1d3   :  { %9269 = vst [vmem:[#allocation53_spill] sm:$0xff] %v5536_v24 }
 0x1d4   :  { %1134 = vmatpush.msrb.mxu2 %v9262_v53  ;;  %1192 = vmatpush.msra.mxu0 %v5524_v38  ;;  %v9270_v53 = vld [vmem:[#allocation97_spill] sm:$0xff]  ;;  %v5540_v38 = vld [vmem:[#allocation6 + $0x150] sm:$0xff] }
 0x1d5   :  { %9271 = vst [vmem:[#allocation75_spill] sm:$0xff] %v5540_v38 }
 0x1d6   :  { %1135 = vmatpush.msrb.mxu2 %v9264_v43  ;;  %1193 = vmatpush.msra.mxu0 %v5528_v12  ;;  %v9272_v43 = vld [vmem:[#allocation101_spill] sm:$0xff]  ;;  %v5544_v12 = vld [vmem:[#allocation6 + $0x120] sm:$0xff] }
 0x1d7   :  { %9273 = vst [vmem:[#allocation41_spill] sm:$0xff] %v5544_v12 }
 0x1d8   :  { %1136 = vmatpush.msrb.mxu2 %v9266_v5  ;;  %1194 = vmatpush.msra.mxu0 %v5532_v51  ;;  %v9274_v5 = vld [vmem:[#allocation103_spill] sm:$0xff]  ;;  %v5548_v51 = vld [vmem:[#allocation6 + $0xf0] sm:$0xff] }
 0x1d9   :  { %9275 = vst [vmem:[#allocation54_spill] sm:$0xff] %v5548_v51 }
 0x1da   :  { %1137 = vmatpush.msrb.mxu2 %v9268_v25  ;;  %1195 = vmatpush.msra.mxu0 %v5536_v24  ;;  %v9276_v25 = vld [vmem:[#allocation105_spill] sm:$0xff]  ;;  %v5552_v24 = vld [vmem:[#allocation6 + $0xc0] sm:$0xff] }
 0x1db   :  { %9277 = vst [vmem:[#allocation42_spill] sm:$0xff] %v5552_v24 }
 0x1dc   :  { %1138 = vmatpush.msrb.mxu2 %v9270_v53  ;;  %1196 = vmatpush.msra.mxu0 %v5540_v38  ;;  %v9278_v53 = vld [vmem:[#allocation108_spill] sm:$0xff]  ;;  %v5556_v38 = vld [vmem:[#allocation6 + $0x90] sm:$0xff] }
 0x1dd   :  { %9279 = vst [vmem:[#allocation55_spill] sm:$0xff] %v5556_v38 }
 0x1de   :  { %1139 = vmatpush.msrb.mxu2 %v9272_v43  ;;  %1197 = vmatpush.msra.mxu0 %v5544_v12  ;;  %v9280_v43 = vld [vmem:[#allocation109_spill] sm:$0xff]  ;;  %v5560_v12 = vld [vmem:[#allocation6 + $0x60] sm:$0xff] }
 0x1df   :  { %9281 = vst [vmem:[#allocation43_spill] sm:$0xff] %v5560_v12 }
 0x1e0   :  { %1140 = vmatpush.msrb.mxu2 %v9274_v5  ;;  %1198 = vmatpush.msra.mxu0 %v5548_v51  ;;  %v9282_v5 = vld [vmem:[#allocation113_spill] sm:$0xff]  ;;  %v5564_v51 = vld [vmem:[#allocation6 + $0x30] sm:$0xff] }
 0x1e1   :  { %9283 = vst [vmem:[#allocation56_spill] sm:$0xff] %v5564_v51 }
 0x1e2   :  { %1141 = vmatpush.msrb.mxu2 %v9276_v25  ;;  %1199 = vmatpush.msra.mxu0 %v5552_v24  ;;  %v9284_v25 = vld [vmem:[#allocation115_spill] sm:$0xff]  ;;  %v5568_v24 = vld [vmem:[#allocation6] sm:$0xff] }
 0x1e3   :  { %9285 = vst [vmem:[#allocation77_spill] sm:$0xff] %v5568_v24 }
 0x1e4   :  { %1142 = vmatpush.msrb.mxu2 %v9278_v53  ;;  %1200 = vmatpush.msra.mxu0 %v5556_v38  ;;  %v5571_v53 = vld [vmem:[#allocation6 + $0x2d8] sm:$0xff] }
 0x1e5   :  { %9286 = vst [vmem:[#allocation80_spill] sm:$0xff] %v5571_v53 }
 0x1e6   :  { %1143 = vmatpush.msrb.mxu2 %v9280_v43  ;;  %1201 = vmatpush.msra.mxu0 %v5560_v12  ;;  %v5574_v43 = vld [vmem:[#allocation6 + $0x2e0] sm:$0xff]  ;;  %v5577_v12 = vld [vmem:[#allocation6 + $0x2a8] sm:$0xff] }
 0x1e7   :  { %9287 = vst [vmem:[#allocation44_spill] sm:$0xff] %v5574_v43 }
 0x1e8   :  { %1144 = vmatpush.msrb.mxu2 %v9282_v5  ;;  %1202 = vmatpush.msra.mxu0 %v5564_v51  ;;  %9288 = vst [vmem:[#allocation57_spill] sm:$0xff] %v5577_v12  ;;  %v5580_v5 = vld [vmem:[#allocation6 + $0x2b0] sm:$0xff]  ;;  %v903_v51 = vpop.f32.mrf.mxu3 }
 0x1e9   :  { %9289 = vst [vmem:[#allocation45_spill] sm:$0xff] %v5580_v5 }
 0x1ea   :  { %1145 = vmatpush.msrb.mxu2 %v9284_v25  ;;  %1203 = vmatpush.msra.mxu0 %v5568_v24  ;;  %v5583_v25 = vld [vmem:[#allocation6 + $0x278] sm:$0xff]  ;;  %v5586_v24 = vld [vmem:[#allocation6 + $0x280] sm:$0xff] }
 0x1eb   :  { %9290 = vst [vmem:[#allocation58_spill] sm:$0xff] %v5583_v25 }
 0x1ec   :  { %1228 = vmatpush.msra.mxu2 %v5571_v53  ;;  %1268 = vmatpush.msrb.mxu0 %v5574_v43  ;;  %9291 = vst [vmem:[#allocation81_spill] sm:$0xff] %v5586_v24  ;;  %v5589_v53 = vld [vmem:[#allocation6 + $0x248] sm:$0xff]  ;;  %v5592_v43 = vld [vmem:[#allocation6 + $0x250] sm:$0xff] }
 0x1ed   :  { %9292 = vst [vmem:[#allocation46_spill] sm:$0xff] %v5589_v53 }
 0x1ee   :  { %1229 = vmatpush.msra.mxu2 %v5577_v12  ;;  %1269 = vmatpush.msrb.mxu0 %v5580_v5  ;;  %9293 = vst [vmem:[#allocation59_spill] sm:$0xff] %v5592_v43  ;;  %v5595_v12 = vld [vmem:[#allocation6 + $0x218] sm:$0xff]  ;;  %v5598_v5 = vld [vmem:[#allocation6 + $0x220] sm:$0xff] }
 0x1ef   :  { %9294 = vst [vmem:[#allocation83_spill] sm:$0xff] %v5595_v12 }
 0x1f0   :  { %1230 = vmatpush.msra.mxu2 %v5583_v25  ;;  %1270 = vmatpush.msrb.mxu0 %v5586_v24  ;;  %9295 = vst [vmem:[#allocation47_spill] sm:$0xff] %v5598_v5  ;;  %v5601_v25 = vld [vmem:[#allocation6 + $0x1e8] sm:$0xff]  ;;  %v5604_v24 = vld [vmem:[#allocation6 + $0x1f0] sm:$0xff] }
 0x1f1   :  { %9296 = vst [vmem:[#allocation60_spill] sm:$0xff] %v5601_v25 }
 0x1f2   :  { %1231 = vmatpush.msra.mxu2 %v5589_v53  ;;  %1271 = vmatpush.msrb.mxu0 %v5592_v43  ;;  %9297 = vst [vmem:[#allocation87_spill] sm:$0xff] %v5604_v24  ;;  %v5607_v53 = vld [vmem:[#allocation6 + $0x1b8] sm:$0xff]  ;;  %v5610_v43 = vld [vmem:[#allocation6 + $0x1c0] sm:$0xff] }
 0x1f3   :  { %9298 = vst [vmem:[#allocation89_spill] sm:$0xff] %v5607_v53 }
 0x1f4   :  { %1232 = vmatpush.msra.mxu2 %v5595_v12  ;;  %1272 = vmatpush.msrb.mxu0 %v5598_v5  ;;  %9299 = vst [vmem:[#allocation91_spill] sm:$0xff] %v5610_v43  ;;  %v5613_v12 = vld [vmem:[#allocation6 + $0x188] sm:$0xff]  ;;  %v5616_v5 = vld [vmem:[#allocation6 + $0x190] sm:$0xff] }
 0x1f5   :  { %9300 = vst [vmem:[#allocation94_spill] sm:$0xff] %v5613_v12 }
 0x1f6   :  { %1233 = vmatpush.msra.mxu2 %v5601_v25  ;;  %1273 = vmatpush.msrb.mxu0 %v5604_v24  ;;  %9301 = vst [vmem:[#allocation96_spill] sm:$0xff] %v5616_v5  ;;  %v5619_v25 = vld [vmem:[#allocation6 + $0x158] sm:$0xff]  ;;  %v5622_v24 = vld [vmem:[#allocation6 + $0x160] sm:$0xff] }
 0x1f7   :  { %9302 = vst [vmem:[#allocation100_spill] sm:$0xff] %v5619_v25 }
 0x1f8   :  { %1234 = vmatpush.msra.mxu2 %v5607_v53  ;;  %1274 = vmatpush.msrb.mxu0 %v5610_v43  ;;  %9303 = vst [vmem:[#allocation102_spill] sm:$0xff] %v5622_v24  ;;  %v5625_v53 = vld [vmem:[#allocation6 + $0x128] sm:$0xff]  ;;  %v5628_v43 = vld [vmem:[#allocation6 + $0x130] sm:$0xff] }
 0x1f9   :  { %9304 = vst [vmem:[#allocation104_spill] sm:$0xff] %v5625_v53 }
 0x1fa   :  { %1235 = vmatpush.msra.mxu2 %v5613_v12  ;;  %1275 = vmatpush.msrb.mxu0 %v5616_v5  ;;  %9305 = vst [vmem:[#allocation107_spill] sm:$0xff] %v5628_v43  ;;  %v5631_v12 = vld [vmem:[#allocation6 + $0xf8] sm:$0xff]  ;;  %v5634_v5 = vld [vmem:[#allocation6 + $0x100] sm:$0xff] }
 0x1fb   :  { %9306 = vst [vmem:[#allocation112_spill] sm:$0xff] %v5631_v12 }
 0x1fc   :  { %1236 = vmatpush.msra.mxu2 %v5619_v25  ;;  %1276 = vmatpush.msrb.mxu0 %v5622_v24  ;;  %9307 = vst [vmem:[#allocation114_spill] sm:$0xff] %v5634_v5  ;;  %v5637_v25 = vld [vmem:[#allocation6 + $0xc8] sm:$0xff]  ;;  %v5640_v24 = vld [vmem:[#allocation6 + $0xd0] sm:$0xff] }
 0x1fd   :  { %9308 = vst [vmem:[#allocation119_spill] sm:$0xff] %v5637_v25 }
 0x1fe   :  { %1237 = vmatpush.msra.mxu2 %v5625_v53  ;;  %1277 = vmatpush.msrb.mxu0 %v5628_v43  ;;  %9309 = vst [vmem:[#allocation121_spill] sm:$0xff] %v5640_v24  ;;  %v5643_v53 = vld [vmem:[#allocation6 + $0x98] sm:$0xff]  ;;  %v5646_v43 = vld [vmem:[#allocation6 + $0xa0] sm:$0xff] }
 0x1ff   :  { %9310 = vst [vmem:[#allocation126_spill] sm:$0xff] %v5643_v53 }
 0x200   :  { %1238 = vmatpush.msra.mxu2 %v5631_v12  ;;  %1278 = vmatpush.msrb.mxu0 %v5634_v5  ;;  %9311 = vst [vmem:[#allocation13_spill] sm:$0xff] %v5646_v43  ;;  %v5649_v12 = vld [vmem:[#allocation6 + $0x68] sm:$0xff]  ;;  %v5652_v5 = vld [vmem:[#allocation6 + $0x70] sm:$0xff] }
 0x201   :  { %9312 = vst [vmem:[#allocation14_spill] sm:$0xff] %v5649_v12 }
 0x202   :  { %1239 = vmatpush.msra.mxu2 %v5637_v25  ;;  %1279 = vmatpush.msrb.mxu0 %v5640_v24  ;;  %9313 = vst [vmem:[#allocation15_spill] sm:$0xff] %v5652_v5  ;;  %v5655_v25 = vld [vmem:[#allocation6 + $0x38] sm:$0xff]  ;;  %v5658_v24 = vld [vmem:[#allocation6 + $0x40] sm:$0xff] }
 0x203   :  { %9314 = vst [vmem:[#allocation16_spill] sm:$0xff] %v5655_v25 }
 0x204   :  { %1240 = vmatpush.msra.mxu2 %v5643_v53  ;;  %1280 = vmatpush.msrb.mxu0 %v5646_v43  ;;  %9315 = vst [vmem:[#allocation17_spill] sm:$0xff] %v5658_v24  ;;  %v5661_v53 = vld [vmem:[#allocation6 + $0x8] sm:$0xff]  ;;  %v5664_v43 = vld [vmem:[#allocation6 + $0x10] sm:$0xff] }
 0x205   :  { %9316 = vst [vmem:[#allocation18_spill] sm:$0xff] %v5661_v53 }
 0x206   :  { %1241 = vmatpush.msra.mxu2 %v5649_v12  ;;  %1281 = vmatpush.msrb.mxu0 %v5652_v5  ;;  %9317 = vst [vmem:[#allocation19_spill] sm:$0xff] %v5664_v43  ;;  %v863_v5 = vpop.f32.mrf.mxu1 }
 0x208   :  { %1242 = vmatpush.msra.mxu2 %v5655_v25  ;;  %1282 = vmatpush.msrb.mxu0 %v5658_v24 }
 0x20a   :  { %1243 = vmatpush.msra.mxu2 %v5661_v53  ;;  %1283 = vmatpush.msrb.mxu0 %v5664_v43 }
 0x20e   :  { %v943_v53 = vpop.f32.mrf.mxu1 }
 0x228   :  { %v923_v12 = vpop.f32.mrf.mxu0 }
 0x229   :  { %v924_v38 = vadd.f32 %v923_v12, %v903_v51 }
 0x22b   :  { %v1097_v25 = vadd.f32 %v924_v38, %v9318_v11  ;;  %v5702_v38 = vld [vmem:[#allocation6 + $0x288] sm:$0xff] }
 0x22d   :  { %v1098_v24 = vmul.f32 0.5, %v1097_v25  ;;  %v5711_v25 = vld [vmem:[#allocation6 + $0x588] sm:$0xff] }
 0x22e   :  { %v883_v0 = vpop.f32.mrf.mxu2 }
 0x22f   :  { %v884_v40 = vadd.f32 %v883_v0, %v863_v5  ;;  %v9321_v0 = vld [vmem:[#allocation82_spill] sm:$0xff] }
 0x231   :  { %v1092_v30 = vadd.f32 %v884_v40, %v9319_v41 }
 0x233   :  { %v1093_v23 = vmul.f32 0.5, %v1092_v30 }
 0x235   :  { %3392 = vtanh.f32 %v1093_v23 }
 0x236   :  { %v963_v10 = vpop.f32.mrf.mxu2  ;;  %3394 = vtanh.f32 %v1098_v24 }
 0x237   :  { %v964_v46 = vadd.f32 %v963_v10, %v943_v53  ;;  %v5699_v10 = vld [vmem:[#allocation6 + $0x5b8] sm:$0xff]  ;;  %v5705_v53 = vld [vmem:[#allocation6 + $0x290] sm:$0xff] }
 0x239   :  { %v1102_v12 = vadd.f32 %v964_v46, %v9320_v31  ;;  %v5678_v31 = vld [vmem:[#allocation6 + $0x2e8] sm:$0xff]  ;;  %v5696_v46 = vld [vmem:[#allocation6 + $0x5b0] sm:$0xff] }
 0x23b   :  { %v3393_v63 = vpop.eup %3392 }
 0x23c   :  { %v1095_v49 = vadd.f32 1.0, %v3393_v63  ;;  %v3395_v43 = vpop.eup %3394  ;;  %v5693_v63 = vld [vmem:[#allocation6 + $0x2c0] sm:$0xff] }
 0x23d   :  { %v1100_v13 = vadd.f32 1.0, %v3395_v43  ;;  %v5708_v43 = vld [vmem:[#allocation6 + $0x580] sm:$0xff] }
 0x23e   :  { %v1096_v2 = vmul.f32 0.5, %v1095_v49  ;;  %v5690_v49 = vld [vmem:[#allocation6 + $0x2b8] sm:$0xff] }
 0x23f   :  { %v1101_v11 = vmul.f32 0.5, %v1100_v13  ;;  %v5681_v13 = vld [vmem:[#allocation6 + $0x2f0] sm:$0xff] }
 0x240   :  { %v1103_v51 = vmul.f32 %v1102_v12, %v1096_v2  ;;  %v5687_v2 = vld [vmem:[#allocation6 + $0x5e8] sm:$0xff]  ;;  %v5714_v12 = vld [vmem:[#allocation6 + $0x258] sm:$0xff] }
 0x241   :  { %v1106_v41 = vsub.f32 1.0, %v1101_v11  ;;  %v1108_v23 = vmul.f32 %v1101_v11, %v5180_v39  ;;  %v5684_v39 = vld [vmem:[#allocation6 + $0x5e0] sm:$0xff]  ;;  %v5728_v11 = vld [vmem:[#allocation6 + $0x550] sm:$0xff] }
 0x242   :  { %v1104_v5 = vadd.f32 %v1103_v51, %v9321_v0  ;;  %v5717_v51 = vld [vmem:[#allocation6 + $0x260] sm:$0xff]  ;;  %v5722_v0 = vld [vmem:[#allocation6 + $0x228] sm:$0xff]  ;;  %9323 = vst [vmem:[#allocation84_spill] sm:$0xff] %v5728_v11 }
 0x244   :  { %3396 = vtanh.f32 %v1104_v5  ;;  %v5725_v5 = vld [vmem:[#allocation6 + $0x230] sm:$0xff] }
 0x245   :  { %9322 = vst [vmem:[#allocation20_spill] sm:$0xff] %v5725_v5 }
 0x24a   :  { %v3397_v30 = vpop.eup %3396 }
 0x24b   :  { %v1107_v40 = vmul.f32 %v3397_v30, %v1106_v41  ;;  %v5731_v41 = vld [vmem:[#allocation6 + $0x558] sm:$0xff] }
 0x24c   :  { %9324 = vst [vmem:[#allocation88_spill] sm:$0xff] %v5731_v41  ;;  %v5734_v30 = vld [vmem:[#allocation6 + $0x1f8] sm:$0xff] }
 0x24d   :  { %v5672_v24 = vadd.f32 %v1108_v23, %v1107_v40  ;;  %9325 = vst [vmem:[#allocation90_spill] sm:$0xff] %v5734_v30  ;;  %v5737_v23 = vld [vmem:[#allocation6 + $0x200] sm:$0xff] }
 0x24e   :  { %9326 = vst [vmem:[#allocation92_spill] sm:$0xff] %v5737_v23  ;;  %v5740_v40 = vld [vmem:[#allocation6 + $0x520] sm:$0xff] }
 0x24f   :  { %1126 = vmatmul.f32.vlgmr.msrb.gmra.mxu1 %v5672_v24  ;;  %1146 = vmatmul.f32.vlgmr.msrb.gmra.mxu2 %v5672_v24  ;;  %9327 = vst [vmem:[#allocation95_spill] sm:$0xff] %v5740_v40 }
 0x250   :  { %1166 = vmatmul.f32.vlgmr.msra.gmra.mxu3 %v5672_v24  ;;  %1204 = vmatmul.f32.vlgmr.msra.gmra.mxu0 %v5672_v24 }
 0x251   :  { %1308 = vmatpush.msrb.mxu2 %v5678_v31  ;;  %1348 = vmatpush.msra.mxu0 %v5681_v13 }
 0x252   :  { %1288 = vmatpush.msrb.mxu1 %v5684_v39  ;;  %1328 = vmatpush.msra.mxu3 %v5687_v2 }
 0x253   :  { %1309 = vmatpush.msrb.mxu2 %v5690_v49  ;;  %1349 = vmatpush.msra.mxu0 %v5693_v63 }
 0x254   :  { %1289 = vmatpush.msrb.mxu1 %v5696_v46  ;;  %1329 = vmatpush.msra.mxu3 %v5699_v10 }
 0x255   :  { %1310 = vmatpush.msrb.mxu2 %v5702_v38  ;;  %1350 = vmatpush.msra.mxu0 %v5705_v53 }
 0x256   :  { %1290 = vmatpush.msrb.mxu1 %v5708_v43  ;;  %1330 = vmatpush.msra.mxu3 %v5711_v25 }
 0x257   :  { %1311 = vmatpush.msrb.mxu2 %v5714_v12  ;;  %1351 = vmatpush.msra.mxu0 %v5717_v51 }
 0x258   :  { %1244 = vmatmul.f32.vlgmr.msra.gmra.mxu2 %v5672_v24  ;;  %1284 = vmatmul.f32.vlgmr.msrb.gmra.mxu0 %v5672_v24 }
 0x259   :  { %1312 = vmatpush.msrb.mxu2 %v5722_v0  ;;  %1352 = vmatpush.msra.mxu0 %v5725_v5  ;;  %v5743_v5 = vld [vmem:[#allocation6 + $0x528] sm:$0xff] }
 0x25a   :  { %1291 = vmatpush.msrb.mxu1 %v5728_v11  ;;  %1331 = vmatpush.msra.mxu3 %v5731_v41  ;;  %9328 = vst [vmem:[#allocation97_spill] sm:$0xff] %v5743_v5  ;;  %v5746_v11 = vld [vmem:[#allocation6 + $0x1c8] sm:$0xff]  ;;  %v5749_v41 = vld [vmem:[#allocation6 + $0x1d0] sm:$0xff] }
 0x25b   :  { %1313 = vmatpush.msrb.mxu2 %v5734_v30  ;;  %1353 = vmatpush.msra.mxu0 %v5737_v23  ;;  %9329 = vst [vmem:[#allocation101_spill] sm:$0xff] %v5746_v11  ;;  %v5752_v30 = vld [vmem:[#allocation6 + $0x4f0] sm:$0xff]  ;;  %v5755_v23 = vld [vmem:[#allocation6 + $0x4f8] sm:$0xff] }
 0x25c   :  { %1292 = vmatpush.msrb.mxu1 %v5740_v40  ;;  %1332 = vmatpush.msra.mxu3 %v5743_v5  ;;  %9330 = vst [vmem:[#allocation103_spill] sm:$0xff] %v5749_v41  ;;  %v5758_v40 = vld [vmem:[#allocation6 + $0x198] sm:$0xff]  ;;  %v5761_v5 = vld [vmem:[#allocation6 + $0x1a0] sm:$0xff] }
 0x25d   :  { %1314 = vmatpush.msrb.mxu2 %v5746_v11  ;;  %1354 = vmatpush.msra.mxu0 %v5749_v41  ;;  %9331 = vst [vmem:[#allocation105_spill] sm:$0xff] %v5752_v30  ;;  %v5764_v11 = vld [vmem:[#allocation6 + $0x4c0] sm:$0xff]  ;;  %v5767_v41 = vld [vmem:[#allocation6 + $0x4c8] sm:$0xff] }
 0x25e   :  { %1293 = vmatpush.msrb.mxu1 %v5752_v30  ;;  %9332 = vst [vmem:[#allocation108_spill] sm:$0xff] %v5755_v23  ;;  %1333 = vmatpush.msra.mxu3 %v5755_v23  ;;  %v5770_v30 = vld [vmem:[#allocation6 + $0x168] sm:$0xff]  ;;  %v5773_v23 = vld [vmem:[#allocation6 + $0x170] sm:$0xff] }
 0x25f   :  { %9333 = vst [vmem:[#allocation109_spill] sm:$0xff] %v5758_v40  ;;  %1315 = vmatpush.msrb.mxu2 %v5758_v40  ;;  %1355 = vmatpush.msra.mxu0 %v5761_v5  ;;  %v5776_v40 = vld [vmem:[#allocation6 + $0x490] sm:$0xff] }
 0x260   :  { %9334 = vst [vmem:[#allocation113_spill] sm:$0xff] %v5761_v5  ;;  %1294 = vmatpush.msrb.mxu1 %v5764_v11  ;;  %1334 = vmatpush.msra.mxu3 %v5767_v41  ;;  %v5779_v5 = vld [vmem:[#allocation6 + $0x498] sm:$0xff] }
 0x261   :  { %9335 = vst [vmem:[#allocation115_spill] sm:$0xff] %v5764_v11  ;;  %1316 = vmatpush.msrb.mxu2 %v5770_v30  ;;  %1356 = vmatpush.msra.mxu0 %v5773_v23  ;;  %v5782_v11 = vld [vmem:[#allocation6 + $0x138] sm:$0xff] }
 0x262   :  { %9336 = vst [vmem:[#allocation73_spill] sm:$0xff] %v5767_v41  ;;  %1295 = vmatpush.msrb.mxu1 %v5776_v40  ;;  %1335 = vmatpush.msra.mxu3 %v5779_v5  ;;  %v5785_v41 = vld [vmem:[#allocation6 + $0x140] sm:$0xff] }
 0x263   :  { %9337 = vst [vmem:[#allocation72_spill] sm:$0xff] %v5770_v30  ;;  %1317 = vmatpush.msrb.mxu2 %v5782_v11  ;;  %1357 = vmatpush.msra.mxu0 %v5785_v41  ;;  %v5788_v30 = vld [vmem:[#allocation6 + $0x460] sm:$0xff] }
 0x264   :  { %9338 = vst [vmem:[#allocation127_spill] sm:$0xff] %v5773_v23  ;;  %1296 = vmatpush.msrb.mxu1 %v5788_v30  ;;  %v5791_v23 = vld [vmem:[#allocation6 + $0x468] sm:$0xff] }
 0x265   :  { %9339 = vst [vmem:[#allocation82_spill] sm:$0xff] %v5776_v40  ;;  %1336 = vmatpush.msra.mxu3 %v5791_v23  ;;  %v5794_v40 = vld [vmem:[#allocation6 + $0x108] sm:$0xff] }
 0x266   :  { %9340 = vst [vmem:[#allocation128_spill] sm:$0xff] %v5779_v5  ;;  %1318 = vmatpush.msrb.mxu2 %v5794_v40  ;;  %v5797_v5 = vld [vmem:[#allocation6 + $0x110] sm:$0xff] }
 0x267   :  { %9341 = vst [vmem:[#allocation129_spill] sm:$0xff] %v5782_v11  ;;  %1358 = vmatpush.msra.mxu0 %v5797_v5  ;;  %v5800_v11 = vld [vmem:[#allocation6 + $0x430] sm:$0xff] }
 0x268   :  { %9342 = vst [vmem:[#allocation130_spill] sm:$0xff] %v5785_v41  ;;  %1297 = vmatpush.msrb.mxu1 %v5800_v11  ;;  %v5803_v41 = vld [vmem:[#allocation6 + $0x438] sm:$0xff] }
 0x269   :  { %9343 = vst [vmem:[#allocation131_spill] sm:$0xff] %v5788_v30  ;;  %1337 = vmatpush.msra.mxu3 %v5803_v41  ;;  %v5806_v30 = vld [vmem:[#allocation6 + $0xd8] sm:$0xff] }
 0x26a   :  { %9344 = vst [vmem:[#allocation132_spill] sm:$0xff] %v5791_v23  ;;  %1319 = vmatpush.msrb.mxu2 %v5806_v30  ;;  %v5809_v23 = vld [vmem:[#allocation6 + $0xe0] sm:$0xff] }
 0x26b   :  { %9345 = vst [vmem:[#allocation133_spill] sm:$0xff] %v5794_v40  ;;  %1359 = vmatpush.msra.mxu0 %v5809_v23  ;;  %v5812_v40 = vld [vmem:[#allocation6 + $0x400] sm:$0xff] }
 0x26c   :  { %9346 = vst [vmem:[#allocation134_spill] sm:$0xff] %v5797_v5  ;;  %1298 = vmatpush.msrb.mxu1 %v5812_v40  ;;  %v5815_v5 = vld [vmem:[#allocation6 + $0x408] sm:$0xff] }
 0x26d   :  { %9347 = vst [vmem:[#allocation135_spill] sm:$0xff] %v5800_v11  ;;  %1338 = vmatpush.msra.mxu3 %v5815_v5  ;;  %v5818_v11 = vld [vmem:[#allocation6 + $0xa8] sm:$0xff] }
 0x26e   :  { %9348 = vst [vmem:[#allocation136_spill] sm:$0xff] %v5803_v41  ;;  %1320 = vmatpush.msrb.mxu2 %v5818_v11  ;;  %v5821_v41 = vld [vmem:[#allocation6 + $0xb0] sm:$0xff] }
 0x26f   :  { %9349 = vst [vmem:[#allocation137_spill] sm:$0xff] %v5806_v30  ;;  %1360 = vmatpush.msra.mxu0 %v5821_v41  ;;  %v5824_v30 = vld [vmem:[#allocation6 + $0x3d0] sm:$0xff] }
 0x270   :  { %9350 = vst [vmem:[#allocation138_spill] sm:$0xff] %v5809_v23  ;;  %1299 = vmatpush.msrb.mxu1 %v5824_v30  ;;  %v5827_v23 = vld [vmem:[#allocation6 + $0x3d8] sm:$0xff] }
 0x271   :  { %9351 = vst [vmem:[#allocation139_spill] sm:$0xff] %v5812_v40  ;;  %1339 = vmatpush.msra.mxu3 %v5827_v23  ;;  %v5830_v40 = vld [vmem:[#allocation6 + $0x78] sm:$0xff] }
 0x272   :  { %9352 = vst [vmem:[#allocation140_spill] sm:$0xff] %v5815_v5  ;;  %1321 = vmatpush.msrb.mxu2 %v5830_v40  ;;  %v5833_v5 = vld [vmem:[#allocation6 + $0x80] sm:$0xff] }
 0x273   :  { %9353 = vst [vmem:[#allocation141_spill] sm:$0xff] %v5818_v11  ;;  %1361 = vmatpush.msra.mxu0 %v5833_v5  ;;  %v5836_v11 = vld [vmem:[#allocation6 + $0x3a0] sm:$0xff] }
 0x274   :  { %9354 = vst [vmem:[#allocation142_spill] sm:$0xff] %v5821_v41  ;;  %1300 = vmatpush.msrb.mxu1 %v5836_v11  ;;  %v5839_v41 = vld [vmem:[#allocation6 + $0x3a8] sm:$0xff] }
 0x275   :  { %9355 = vst [vmem:[#allocation143_spill] sm:$0xff] %v5824_v30  ;;  %1340 = vmatpush.msra.mxu3 %v5839_v41  ;;  %v5842_v30 = vld [vmem:[#allocation6 + $0x48] sm:$0xff] }
 0x276   :  { %9356 = vst [vmem:[#allocation144_spill] sm:$0xff] %v5827_v23  ;;  %1322 = vmatpush.msrb.mxu2 %v5842_v30  ;;  %v5845_v23 = vld [vmem:[#allocation6 + $0x50] sm:$0xff] }
 0x277   :  { %9357 = vst [vmem:[#allocation145_spill] sm:$0xff] %v5830_v40  ;;  %1362 = vmatpush.msra.mxu0 %v5845_v23  ;;  %v5848_v40 = vld [vmem:[#allocation6 + $0x370] sm:$0xff] }
 0x278   :  { %9358 = vst [vmem:[#allocation146_spill] sm:$0xff] %v5833_v5  ;;  %1301 = vmatpush.msrb.mxu1 %v5848_v40  ;;  %v5851_v5 = vld [vmem:[#allocation6 + $0x378] sm:$0xff] }
 0x279   :  { %9359 = vst [vmem:[#allocation147_spill] sm:$0xff] %v5836_v11  ;;  %1341 = vmatpush.msra.mxu3 %v5851_v5  ;;  %v5854_v11 = vld [vmem:[#allocation6 + $0x18] sm:$0xff] }
 0x27a   :  { %9360 = vst [vmem:[#allocation148_spill] sm:$0xff] %v5839_v41  ;;  %1323 = vmatpush.msrb.mxu2 %v5854_v11  ;;  %v5857_v41 = vld [vmem:[#allocation6 + $0x20] sm:$0xff] }
 0x27b   :  { %9361 = vst [vmem:[#allocation149_spill] sm:$0xff] %v5842_v30  ;;  %1363 = vmatpush.msra.mxu0 %v5857_v41  ;;  %1324 = vmatmul.f32.vlgmr.msrb.gmra.mxu2 %v5672_v24  ;;  %v5877_v30 = vld [vmem:[#allocation6 + $0x310] sm:$0xff] }
 0x27c   :  { %9362 = vst [vmem:[#allocation150_spill] sm:$0xff] %v5845_v23  ;;  %1364 = vmatmul.f32.vlgmr.msra.gmra.mxu0 %v5672_v24  ;;  %v5862_v23 = vld [vmem:[#allocation6 + $0x2f8] sm:$0xff] }
 0x27d   :  { %9363 = vst [vmem:[#allocation151_spill] sm:$0xff] %v5848_v40  ;;  %1388 = vmatpush.msra.mxu2 %v5862_v23  ;;  %v5865_v40 = vld [vmem:[#allocation6 + $0x340] sm:$0xff] }
 0x27e   :  { %9364 = vst [vmem:[#allocation152_spill] sm:$0xff] %v5851_v5  ;;  %1302 = vmatpush.msrb.mxu1 %v5865_v40  ;;  %v5868_v5 = vld [vmem:[#allocation6 + $0x348] sm:$0xff] }
 0x27f   :  { %9365 = vst [vmem:[#allocation153_spill] sm:$0xff] %v5854_v11  ;;  %1342 = vmatpush.msra.mxu3 %v5868_v5  ;;  %v5871_v11 = vld [vmem:[#allocation3 + $0x180] sm:$0xff] }
 0x280   :  { %9366 = vst [vmem:[#allocation154_spill] sm:$0xff] %v5857_v41  ;;  %1452 = vmatpush.msrb.mxu0 %v5871_v11  ;;  %v5874_v41 = vld [vmem:[#allocation6 + $0x2c8] sm:$0xff]  ;;  %1303 = vmatpush.msrb.mxu1 %v5877_v30 }
 0x281   :  { %9367 = vst [vmem:[#allocation155_spill] sm:$0xff] %v5862_v23  ;;  %1389 = vmatpush.msra.mxu2 %v5874_v41  ;;  %v5880_v23 = vld [vmem:[#allocation6 + $0x318] sm:$0xff] }
 0x282   :  { %9368 = vst [vmem:[#allocation156_spill] sm:$0xff] %v5865_v40  ;;  %1343 = vmatpush.msra.mxu3 %v5880_v23  ;;  %v5883_v40 = vld [vmem:[#allocation3 + $0x168] sm:$0xff] }
 0x283   :  { %9369 = vst [vmem:[#allocation157_spill] sm:$0xff] %v5868_v5  ;;  %1453 = vmatpush.msrb.mxu0 %v5883_v40  ;;  %v5886_v5 = vld [vmem:[#allocation6 + $0x298] sm:$0xff] }
 0x284   :  { %9370 = vst [vmem:[#allocation158_spill] sm:$0xff] %v5871_v11  ;;  %1390 = vmatpush.msra.mxu2 %v5886_v5  ;;  %v5889_v11 = vld [vmem:[#allocation3 + $0x150] sm:$0xff] }
 0x285   :  { %9371 = vst [vmem:[#allocation159_spill] sm:$0xff] %v5874_v41  ;;  %1454 = vmatpush.msrb.mxu0 %v5889_v11  ;;  %v5892_v41 = vld [vmem:[#allocation6 + $0x268] sm:$0xff] }
 0x286   :  { %9372 = vst [vmem:[#allocation160_spill] sm:$0xff] %v5877_v30  ;;  %1391 = vmatpush.msra.mxu2 %v5892_v41  ;;  %v5895_v30 = vld [vmem:[#allocation3 + $0x138] sm:$0xff] }
 0x287   :  { %9373 = vst [vmem:[#allocation161_spill] sm:$0xff] %v5880_v23  ;;  %1455 = vmatpush.msrb.mxu0 %v5895_v30  ;;  %v5898_v23 = vld [vmem:[#allocation6 + $0x238] sm:$0xff] }
 0x288   :  { %9374 = vst [vmem:[#allocation162_spill] sm:$0xff] %v5883_v40  ;;  %1392 = vmatpush.msra.mxu2 %v5898_v23  ;;  %v5901_v40 = vld [vmem:[#allocation3 + $0x120] sm:$0xff] }
 0x289   :  { %9375 = vst [vmem:[#allocation163_spill] sm:$0xff] %v5886_v5  ;;  %1456 = vmatpush.msrb.mxu0 %v5901_v40  ;;  %v5904_v5 = vld [vmem:[#allocation6 + $0x208] sm:$0xff] }
 0x28a   :  { %9376 = vst [vmem:[#allocation164_spill] sm:$0xff] %v5889_v11  ;;  %1393 = vmatpush.msra.mxu2 %v5904_v5  ;;  %v5907_v11 = vld [vmem:[#allocation3 + $0x108] sm:$0xff] }
 0x28b   :  { %9377 = vst [vmem:[#allocation165_spill] sm:$0xff] %v5892_v41  ;;  %1457 = vmatpush.msrb.mxu0 %v5907_v11  ;;  %v5910_v41 = vld [vmem:[#allocation6 + $0x1d8] sm:$0xff] }
 0x28c   :  { %9378 = vst [vmem:[#allocation166_spill] sm:$0xff] %v5895_v30  ;;  %1394 = vmatpush.msra.mxu2 %v5910_v41  ;;  %v5913_v30 = vld [vmem:[#allocation3 + $0xf0] sm:$0xff] }
 0x28d   :  { %9379 = vst [vmem:[#allocation167_spill] sm:$0xff] %v5898_v23  ;;  %1458 = vmatpush.msrb.mxu0 %v5913_v30  ;;  %v5916_v23 = vld [vmem:[#allocation6 + $0x1a8] sm:$0xff] }
 0x28e   :  { %9380 = vst [vmem:[#allocation168_spill] sm:$0xff] %v5901_v40  ;;  %1395 = vmatpush.msra.mxu2 %v5916_v23  ;;  %v5919_v40 = vld [vmem:[#allocation3 + $0xd8] sm:$0xff] }
 0x28f   :  { %9381 = vst [vmem:[#allocation169_spill] sm:$0xff] %v5904_v5  ;;  %1459 = vmatpush.msrb.mxu0 %v5919_v40  ;;  %v5922_v5 = vld [vmem:[#allocation6 + $0x178] sm:$0xff] }
 0x290   :  { %9382 = vst [vmem:[#allocation170_spill] sm:$0xff] %v5907_v11  ;;  %1396 = vmatpush.msra.mxu2 %v5922_v5  ;;  %v5925_v11 = vld [vmem:[#allocation3 + $0xc0] sm:$0xff] }
 0x291   :  { %9383 = vst [vmem:[#allocation171_spill] sm:$0xff] %v5910_v41  ;;  %1460 = vmatpush.msrb.mxu0 %v5925_v11  ;;  %v5928_v41 = vld [vmem:[#allocation6 + $0x148] sm:$0xff] }
 0x292   :  { %9384 = vst [vmem:[#allocation172_spill] sm:$0xff] %v5913_v30  ;;  %1397 = vmatpush.msra.mxu2 %v5928_v41  ;;  %v5931_v30 = vld [vmem:[#allocation3 + $0xa8] sm:$0xff] }
 0x293   :  { %9385 = vst [vmem:[#allocation173_spill] sm:$0xff] %v5916_v23  ;;  %1461 = vmatpush.msrb.mxu0 %v5931_v30  ;;  %v5934_v23 = vld [vmem:[#allocation6 + $0x118] sm:$0xff] }
 0x294   :  { %9386 = vst [vmem:[#allocation174_spill] sm:$0xff] %v5919_v40  ;;  %1398 = vmatpush.msra.mxu2 %v5934_v23  ;;  %v5937_v40 = vld [vmem:[#allocation3 + $0x90] sm:$0xff] }
 0x295   :  { %9387 = vst [vmem:[#allocation175_spill] sm:$0xff] %v5922_v5  ;;  %1462 = vmatpush.msrb.mxu0 %v5937_v40  ;;  %v5940_v5 = vld [vmem:[#allocation6 + $0xe8] sm:$0xff] }
 0x296   :  { %9388 = vst [vmem:[#allocation176_spill] sm:$0xff] %v5925_v11  ;;  %1399 = vmatpush.msra.mxu2 %v5940_v5  ;;  %v5943_v11 = vld [vmem:[#allocation3 + $0x78] sm:$0xff] }
 0x297   :  { %9389 = vst [vmem:[#allocation177_spill] sm:$0xff] %v5928_v41  ;;  %1463 = vmatpush.msrb.mxu0 %v5943_v11  ;;  %v5946_v41 = vld [vmem:[#allocation6 + $0xb8] sm:$0xff] }
 0x298   :  { %9390 = vst [vmem:[#allocation178_spill] sm:$0xff] %v5931_v30  ;;  %1400 = vmatpush.msra.mxu2 %v5946_v41  ;;  %v5949_v30 = vld [vmem:[#allocation3 + $0x60] sm:$0xff] }
 0x299   :  { %9391 = vst [vmem:[#allocation179_spill] sm:$0xff] %v5934_v23  ;;  %1464 = vmatpush.msrb.mxu0 %v5949_v30  ;;  %v5952_v23 = vld [vmem:[#allocation6 + $0x88] sm:$0xff] }
 0x29a   :  { %9392 = vst [vmem:[#allocation180_spill] sm:$0xff] %v5937_v40  ;;  %1401 = vmatpush.msra.mxu2 %v5952_v23  ;;  %v5956_v40 = vld [vmem:[#allocation6 + $0x58] sm:$0xff] }
 0x29b   :  { %9393 = vst [vmem:[#allocation181_spill] sm:$0xff] %v5943_v11  ;;  %1465 = vmatpush.msrb.mxu0 %v5089_v47  ;;  %v5960_v11 = vld [vmem:[#allocation6 + $0x28] sm:$0xff]  ;;  %v5969_v47 = vld [vmem:[#allocation3 + $0x178] sm:$0xff] }
 0x29c   :  { %9394 = vst [vmem:[#allocation182_spill] sm:$0xff] %v5949_v30  ;;  %1402 = vmatpush.msra.mxu2 %v5956_v40  ;;  %v5965_v30 = vld [vmem:[#allocation3 + $0x190] sm:$0xff] }
 0x29d   :  { %1466 = vmatpush.msrb.mxu0 %v5097_v57  ;;  %9395 = vst [vmem:[#allocation183_spill] sm:$0xff] %v5960_v11  ;;  %v5973_v57 = vld [vmem:[#allocation3 + $0x160] sm:$0xff] }
 0x29e   :  { %1403 = vmatpush.msra.mxu2 %v5960_v11  ;;  %v5977_v11 = vld [vmem:[#allocation3 + $0x148] sm:$0xff] }
 0x29f   :  { %1404 = vmatmul.f32.vlgmr.msra.gmra.mxu2 %v5672_v24  ;;  %1467 = vmatpush.msrb.mxu0 %v5105_v9  ;;  %v5981_v9 = vld [vmem:[#allocation3 + $0x130] sm:$0xff] }
 0x2a0   :  { %1492 = vmatpush.msrb.mxu2 %v5965_v30 }
 0x2a1   :  { %1550 = vmatpush.msra.mxu0 %v5300_v34  ;;  %v5985_v34 = vld [vmem:[#allocation3 + $0x118] sm:$0xff] }
 0x2a2   :  { %1493 = vmatpush.msrb.mxu2 %v5969_v47 }
 0x2a3   :  { %1551 = vmatpush.msra.mxu0 %v5304_v20  ;;  %v5989_v20 = vld [vmem:[#allocation3 + $0x100] sm:$0xff] }
 0x2a4   :  { %1494 = vmatpush.msrb.mxu2 %v5973_v57 }
 0x2a5   :  { %1552 = vmatpush.msra.mxu0 %v5308_v44  ;;  %v5993_v44 = vld [vmem:[#allocation3 + $0xe8] sm:$0xff] }
 0x2a6   :  { %1495 = vmatpush.msrb.mxu2 %v5977_v11 }
 0x2a7   :  { %1553 = vmatpush.msra.mxu0 %v5312_v48  ;;  %v5997_v48 = vld [vmem:[#allocation3 + $0xd0] sm:$0xff] }
 0x2a8   :  { %1496 = vmatpush.msrb.mxu2 %v5981_v9 }
 0x2a9   :  { %1554 = vmatpush.msra.mxu0 %v5316_v59  ;;  %v6001_v59 = vld [vmem:[#allocation3 + $0xb8] sm:$0xff] }
 0x2aa   :  { %1497 = vmatpush.msrb.mxu2 %v5985_v34 }
 0x2ab   :  { %1555 = vmatpush.msra.mxu0 %v5320_v45  ;;  %v6005_v45 = vld [vmem:[#allocation3 + $0xa0] sm:$0xff] }
 0x2ac   :  { %1498 = vmatpush.msrb.mxu2 %v5989_v20 }
 0x2ad   :  { %1556 = vmatpush.msra.mxu0 %v5324_v36  ;;  %v6009_v36 = vld [vmem:[#allocation3 + $0x88] sm:$0xff] }
 0x2ae   :  { %1499 = vmatpush.msrb.mxu2 %v5993_v44 }
 0x2af   :  { %1557 = vmatpush.msra.mxu0 %v5328_v7  ;;  %v6013_v7 = vld [vmem:[#allocation3 + $0x70] sm:$0xff] }
 0x2b0   :  { %1500 = vmatpush.msrb.mxu2 %v5997_v48 }
 0x2b1   :  { %1558 = vmatpush.msra.mxu0 %v5332_v8  ;;  %v6017_v8 = vld [vmem:[#allocation3 + $0x58] sm:$0xff] }
 0x2b2   :  { %1501 = vmatpush.msrb.mxu2 %v6001_v59 }
 0x2b3   :  { %1559 = vmatpush.msra.mxu0 %v5336_v19  ;;  %v6021_v19 = vld [vmem:[#allocation3 + $0x40] sm:$0xff] }
 0x2b4   :  { %1502 = vmatpush.msrb.mxu2 %v6005_v45 }
 0x2b5   :  { %1560 = vmatpush.msra.mxu0 %v5340_v22  ;;  %v6025_v22 = vld [vmem:[#allocation3 + $0x28] sm:$0xff] }
 0x2b6   :  { %1503 = vmatpush.msrb.mxu2 %v6009_v36  ;;  %9396 = vst [vmem:[#allocation184_spill] sm:$0xff] %v6025_v22 }
 0x2b7   :  { %1561 = vmatpush.msra.mxu0 %v5344_v1  ;;  %v6029_v1 = vld [vmem:[#allocation6 + $0x5d8] sm:$0xff] }
 0x2b8   :  { %1504 = vmatpush.msrb.mxu2 %v6013_v7  ;;  %9397 = vst [vmem:[#allocation185_spill] sm:$0xff] %v6029_v1 }
 0x2b9   :  { %1562 = vmatpush.msra.mxu0 %v5348_v29  ;;  %v6032_v29 = vld [vmem:[#allocation6 + $0x5a8] sm:$0xff] }
 0x2ba   :  { %1505 = vmatpush.msrb.mxu2 %v6017_v8  ;;  %9398 = vst [vmem:[#allocation186_spill] sm:$0xff] %v6032_v29 }
 0x2bb   :  { %1563 = vmatpush.msra.mxu0 %v5352_v33  ;;  %v1023_v33 = vpop.f32.mrf.mxu1 }
 0x2bc   :  { %1506 = vmatpush.msrb.mxu2 %v6021_v19 }
 0x2bd   :  { %1564 = vmatpush.msra.mxu0 %v5356_v37  ;;  %v1003_v37 = vpop.f32.mrf.mxu0 }
 0x2be   :  { %1507 = vmatpush.msrb.mxu2 %v6025_v22 }
 0x2bf   :  { %1565 = vmatpush.msra.mxu0 %v5360_v28  ;;  %v1043_v28 = vpop.f32.mrf.mxu2 }
 0x2c0   :  { %1590 = vmatpush.msra.mxu2 %v6029_v1 }
 0x2c2   :  { %1591 = vmatpush.msra.mxu2 %v6032_v29 }
 0x2c4   :  { %1592 = vmatpush.msra.mxu2 %v9220_v32 }
 0x2c6   :  { %1593 = vmatpush.msra.mxu2 %v9221_v4 }
 0x2c8   :  { %1594 = vmatpush.msra.mxu2 %v9222_v52 }
 0x2ca   :  { %1595 = vmatpush.msra.mxu2 %v5148_v60  ;;  %v983_v60 = vpop.f32.mrf.mxu3 }
 0x2cc   :  { %1596 = vmatpush.msra.mxu2 %v5152_v62  ;;  %v1127_v32 = vpop.f32.mrf.mxu1  ;;  %v1004_v62 = vadd.f32 %v1003_v37, %v983_v60 }
 0x2ce   :  { %1597 = vmatpush.msra.mxu2 %v5157_v55  ;;  %v1128_v55 = vadd.f32 %v1127_v32, %v5382_v27 }
 0x2d0   :  { %1598 = vmatpush.msra.mxu2 %v9223_v42  ;;  %v1170_v4 = vadd.f32 %v1128_v55, %v1004_v62 }
 0x2d2   :  { %1599 = vmatpush.msra.mxu2 %v9224_v16  ;;  %v1171_v52 = vmul.f32 0.5, %v1170_v4  ;;  %v1147_v42 = vpop.f32.mrf.mxu2  ;;  %v1063_v16 = vpop.f32.mrf.mxu3 }
 0x2d4   :  { %1600 = vmatpush.msra.mxu2 %v9225_v56  ;;  %3398 = vtanh.f32 %v1171_v52  ;;  %v1083_v56 = vpop.f32.mrf.mxu0 }
 0x2d5   :  { %v1084_v1 = vadd.f32 %v1083_v56, %v1063_v16  ;;  %v9408_v56 = vld [vmem:[#allocation62_spill] sm:$0xff] }
 0x2d6   :  { %1601 = vmatpush.msra.mxu2 %v5173_v26  ;;  %v1044_v26 = vadd.f32 %v1043_v28, %v1023_v33 }
 0x2d7   :  { %v1180_v60 = vadd.f32 %v1084_v1, %v5391_v14  ;;  %v9399_v14 = vld [vmem:[#allocation76_spill] sm:$0xff]  ;;  %v9402_v1 = vld [vmem:[#allocation23_spill] sm:$0xff] }
 0x2d8   :  { %1602 = vmatpush.msra.mxu2 %v5177_v58  ;;  %v1148_v58 = vadd.f32 %v1147_v42, %v5384_v17 }
 0x2da   :  { %1603 = vmatpush.msra.mxu2 %v5183_v35  ;;  %v1175_v29 = vadd.f32 %v1148_v58, %v1044_v26  ;;  %v3399_v22 = vpop.eup %3398  ;;  %v1167_v37 = vpop.f32.mrf.mxu3  ;;  %v9403_v58 = vld [vmem:[#allocation24_spill] sm:$0xff] }
 0x2dc   :  { %1604 = vmatpush.msra.mxu2 %v5193_v3  ;;  %v1176_v35 = vmul.f32 0.5, %v1175_v29  ;;  %v1173_v3 = vadd.f32 1.0, %v3399_v22  ;;  %v9400_v22 = vld [vmem:[#allocation21_spill] sm:$0xff] }
 0x2de   :  { %1605 = vmatpush.msra.mxu2 %v5199_v15  ;;  %3400 = vtanh.f32 %v1176_v35  ;;  %v1174_v32 = vmul.f32 0.5, %v1173_v3  ;;  %v1168_v15 = vadd.f32 %v1167_v37, %v5393_v18  ;;  %v9409_v35 = vld [vmem:[#allocation28_spill] sm:$0xff]  ;;  %v9410_v3 = vld [vmem:[#allocation63_spill] sm:$0xff]  ;;  %v9411_v37 = vld [vmem:[#allocation29_spill] sm:$0xff] }
 0x2e0   :  { %v1181_v62 = vmul.f32 %v1180_v60, %v1174_v32  ;;  %v9412_v60 = vld [vmem:[#allocation31_spill] sm:$0xff]  ;;  %v9413_v32 = vld [vmem:[#allocation64_spill] sm:$0xff] }
 0x2e2   :  { %v1182_v33 = vadd.f32 %v1181_v62, %v1168_v15  ;;  %v9414_v15 = vld [vmem:[#allocation65_spill] sm:$0xff]  ;;  %v9415_v62 = vld [vmem:[#allocation30_spill] sm:$0xff] }
 0x2e4   :  { %v3401_v55 = vpop.eup %3400  ;;  %3402 = vtanh.f32 %v1182_v33  ;;  %v9418_v33 = vld [vmem:[#allocation33_spill] sm:$0xff] }
 0x2e5   :  { %v1178_v4 = vadd.f32 1.0, %v3401_v55  ;;  %v9416_v55 = vld [vmem:[#allocation32_spill] sm:$0xff] }
 0x2e7   :  { %v1179_v28 = vmul.f32 0.5, %v1178_v4  ;;  %v9417_v4 = vld [vmem:[#allocation66_spill] sm:$0xff] }
 0x2e9   :  { %v1184_v52 = vsub.f32 1.0, %v1179_v28  ;;  %v1186_v29 = vmul.f32 %v1179_v28, %v5397_v6  ;;  %v9401_v6 = vld [vmem:[#allocation22_spill] sm:$0xff] }
 0x2ea   :  { %v3403_v42 = vpop.eup %3402  ;;  %v9419_v28 = vld [vmem:[#allocation34_spill] sm:$0xff] }
 0x2eb   :  { %v1185_v16 = vmul.f32 %v3403_v42, %v1184_v52  ;;  %v9420_v52 = vld [vmem:[#allocation67_spill] sm:$0xff] }
 0x2ec   :  { %v9421_v42 = vld [vmem:[#allocation35_spill] sm:$0xff] }
 0x2ed   :  { %v6054_v26 = vadd.f32 %v1186_v29, %v1185_v16  ;;  %v9422_v29 = vld [vmem:[#allocation48_spill] sm:$0xff] }
 0x2ee   :  { %v9423_v16 = vld [vmem:[#allocation68_spill] sm:$0xff] }
 0x2ef   :  { %1224 = vmatmul.f32.vlgmr.msra.gmra.mxu1 %v6054_v26  ;;  %1264 = vmatmul.f32.vlgmr.msrb.gmra.mxu3 %v6054_v26 }
 0x2f0   :  { %1368 = vmatpush.msra.mxu1 %v5401_v54  ;;  %1408 = vmatpush.msrb.mxu3 %v5404_v50  ;;  %v9404_v54 = vld [vmem:[#allocation25_spill] sm:$0xff]  ;;  %v9405_v50 = vld [vmem:[#allocation26_spill] sm:$0xff] }
 0x2f2   :  { %1369 = vmatpush.msra.mxu1 %v5407_v61  ;;  %1409 = vmatpush.msrb.mxu3 %v5410_v21  ;;  %v9406_v61 = vld [vmem:[#allocation61_spill] sm:$0xff]  ;;  %v9407_v21 = vld [vmem:[#allocation27_spill] sm:$0xff] }
 0x2f4   :  { %1370 = vmatpush.msra.mxu1 %v9399_v14  ;;  %1410 = vmatpush.msrb.mxu3 %v9400_v22  ;;  %v9424_v14 = vld [vmem:[#allocation36_spill] sm:$0xff]  ;;  %v9425_v22 = vld [vmem:[#allocation49_spill] sm:$0xff] }
 0x2f6   :  { %1371 = vmatpush.msra.mxu1 %v9401_v6  ;;  %1411 = vmatpush.msrb.mxu3 %v9402_v1  ;;  %v9426_v6 = vld [vmem:[#allocation69_spill] sm:$0xff] }
 0x2f7   :  { %1304 = vmatmul.f32.vlgmr.msrb.gmra.mxu1 %v6054_v26  ;;  %1344 = vmatmul.f32.vlgmr.msra.gmra.mxu3 %v6054_v26  ;;  %v9427_v1 = vld [vmem:[#allocation37_spill] sm:$0xff] }
 0x2f8   :  { %1372 = vmatpush.msra.mxu1 %v9403_v58  ;;  %1412 = vmatpush.msrb.mxu3 %v9404_v54  ;;  %v9428_v58 = vld [vmem:[#allocation50_spill] sm:$0xff] }
 0x2f9   :  { %v9429_v54 = vld [vmem:[#allocation70_spill] sm:$0xff] }
 0x2fa   :  { %1373 = vmatpush.msra.mxu1 %v9405_v50  ;;  %1413 = vmatpush.msrb.mxu3 %v9406_v61  ;;  %v9430_v50 = vld [vmem:[#allocation38_spill] sm:$0xff]  ;;  %v9431_v61 = vld [vmem:[#allocation51_spill] sm:$0xff] }
 0x2fc   :  { %1374 = vmatpush.msra.mxu1 %v9407_v21  ;;  %1414 = vmatpush.msrb.mxu3 %v9408_v56  ;;  %v9432_v21 = vld [vmem:[#allocation71_spill] sm:$0xff]  ;;  %v6100_v56 = vld [vmem:[#allocation3 + $0x140] sm:$0xff] }
 0x2fe   :  { %1375 = vmatpush.msra.mxu1 %v9409_v35  ;;  %1415 = vmatpush.msrb.mxu3 %v9410_v3  ;;  %v9433_v35 = vld [vmem:[#allocation39_spill] sm:$0xff]  ;;  %v6104_v3 = vld [vmem:[#allocation3 + $0x128] sm:$0xff] }
 0x300   :  { %1376 = vmatpush.msra.mxu1 %v9411_v37  ;;  %1416 = vmatpush.msrb.mxu3 %v9412_v60  ;;  %v9434_v37 = vld [vmem:[#allocation52_spill] sm:$0xff]  ;;  %v6108_v60 = vld [vmem:[#allocation3 + $0x110] sm:$0xff] }
 0x302   :  { %1377 = vmatpush.msra.mxu1 %v9413_v32  ;;  %1417 = vmatpush.msrb.mxu3 %v9414_v15  ;;  %v9435_v32 = vld [vmem:[#allocation74_spill] sm:$0xff]  ;;  %v6112_v15 = vld [vmem:[#allocation3 + $0xf8] sm:$0xff] }
 0x304   :  { %1378 = vmatpush.msra.mxu1 %v9415_v62  ;;  %1418 = vmatpush.msrb.mxu3 %v9416_v55  ;;  %v9436_v62 = vld [vmem:[#allocation40_spill] sm:$0xff]  ;;  %v6116_v55 = vld [vmem:[#allocation3 + $0xe0] sm:$0xff] }
 0x306   :  { %1379 = vmatpush.msra.mxu1 %v9417_v4  ;;  %1419 = vmatpush.msrb.mxu3 %v9418_v33  ;;  %v9437_v4 = vld [vmem:[#allocation53_spill] sm:$0xff]  ;;  %v6120_v33 = vld [vmem:[#allocation3 + $0xc8] sm:$0xff] }
 0x308   :  { %1380 = vmatpush.msra.mxu1 %v9419_v28  ;;  %1420 = vmatpush.msrb.mxu3 %v9420_v52  ;;  %v9438_v28 = vld [vmem:[#allocation75_spill] sm:$0xff] }
 0x309   :  { %v6124_v52 = vld [vmem:[#allocation3 + $0xb0] sm:$0xff] }
 0x30a   :  { %1381 = vmatpush.msra.mxu1 %v9421_v42  ;;  %1421 = vmatpush.msrb.mxu3 %v9422_v29  ;;  %v9439_v42 = vld [vmem:[#allocation41_spill] sm:$0xff]  ;;  %v6128_v29 = vld [vmem:[#allocation3 + $0x98] sm:$0xff] }
 0x30b   :  { %9440 = vst [vmem:[#allocation76_spill] sm:$0xff] %v6128_v29 }
 0x30c   :  { %1382 = vmatpush.msra.mxu1 %v9423_v16  ;;  %1422 = vmatpush.msrb.mxu3 %v9424_v14  ;;  %v9441_v16 = vld [vmem:[#allocation54_spill] sm:$0xff]  ;;  %v6132_v14 = vld [vmem:[#allocation3 + $0x80] sm:$0xff] }
 0x30d   :  { %9442 = vst [vmem:[#allocation21_spill] sm:$0xff] %v6132_v14 }
 0x30e   :  { %1383 = vmatpush.msra.mxu1 %v9425_v22  ;;  %1423 = vmatpush.msrb.mxu3 %v9426_v6  ;;  %v9443_v22 = vld [vmem:[#allocation42_spill] sm:$0xff] }
 0x30f   :  { %1384 = vmatmul.f32.vlgmr.msra.gmra.mxu1 %v6054_v26  ;;  %1424 = vmatmul.f32.vlgmr.msrb.gmra.mxu3 %v6054_v26  ;;  %v6136_v6 = vld [vmem:[#allocation3 + $0x68] sm:$0xff] }
 0x310   :  { %1472 = vmatpush.msrb.mxu1 %v9427_v1  ;;  %1530 = vmatpush.msra.mxu3 %v9428_v58  ;;  %9444 = vst [vmem:[#allocation22_spill] sm:$0xff] %v6136_v6  ;;  %v9445_v1 = vld [vmem:[#allocation55_spill] sm:$0xff] }
 0x311   :  { %v6140_v58 = vld [vmem:[#allocation3 + $0x50] sm:$0xff] }
 0x312   :  { %1473 = vmatpush.msrb.mxu1 %v9429_v54  ;;  %1531 = vmatpush.msra.mxu3 %v9430_v50  ;;  %9446 = vst [vmem:[#allocation23_spill] sm:$0xff] %v6140_v58  ;;  %v9447_v54 = vld [vmem:[#allocation43_spill] sm:$0xff]  ;;  %v6144_v50 = vld [vmem:[#allocation3 + $0x38] sm:$0xff] }
 0x313   :  { %9448 = vst [vmem:[#allocation24_spill] sm:$0xff] %v6144_v50 }
 0x314   :  { %1474 = vmatpush.msrb.mxu1 %v9431_v61  ;;  %1532 = vmatpush.msra.mxu3 %v9432_v21  ;;  %v9449_v61 = vld [vmem:[#allocation56_spill] sm:$0xff]  ;;  %v6148_v21 = vld [vmem:[#allocation3 + $0x20] sm:$0xff] }
 0x315   :  { %9450 = vst [vmem:[#allocation25_spill] sm:$0xff] %v6148_v21 }
 0x316   :  { %1475 = vmatpush.msrb.mxu1 %v6100_v56  ;;  %1533 = vmatpush.msra.mxu3 %v9433_v35  ;;  %v9451_v35 = vld [vmem:[#allocation77_spill] sm:$0xff] }
 0x318   :  { %1476 = vmatpush.msrb.mxu1 %v6104_v3  ;;  %1534 = vmatpush.msra.mxu3 %v9434_v37  ;;  %v9452_v37 = vld [vmem:[#allocation80_spill] sm:$0xff] }
 0x31a   :  { %1477 = vmatpush.msrb.mxu1 %v6108_v60  ;;  %1535 = vmatpush.msra.mxu3 %v9435_v32  ;;  %v9453_v32 = vld [vmem:[#allocation44_spill] sm:$0xff] }
 0x31c   :  { %1478 = vmatpush.msrb.mxu1 %v6112_v15  ;;  %1536 = vmatpush.msra.mxu3 %v9436_v62  ;;  %v9454_v62 = vld [vmem:[#allocation57_spill] sm:$0xff] }
 0x31e   :  { %1479 = vmatpush.msrb.mxu1 %v6116_v55  ;;  %1537 = vmatpush.msra.mxu3 %v9437_v4  ;;  %v9455_v4 = vld [vmem:[#allocation45_spill] sm:$0xff] }
 0x320   :  { %1480 = vmatpush.msrb.mxu1 %v6120_v33  ;;  %1538 = vmatpush.msra.mxu3 %v9438_v28  ;;  %v9456_v28 = vld [vmem:[#allocation58_spill] sm:$0xff] }
 0x322   :  { %1481 = vmatpush.msrb.mxu1 %v6124_v52  ;;  %1539 = vmatpush.msra.mxu3 %v9439_v42  ;;  %v9457_v42 = vld [vmem:[#allocation81_spill] sm:$0xff] }
 0x324   :  { %1482 = vmatpush.msrb.mxu1 %v6128_v29  ;;  %1540 = vmatpush.msra.mxu3 %v9441_v16  ;;  %v9458_v16 = vld [vmem:[#allocation46_spill] sm:$0xff] }
 0x326   :  { %1483 = vmatpush.msrb.mxu1 %v6132_v14  ;;  %1541 = vmatpush.msra.mxu3 %v9443_v22  ;;  %v9459_v22 = vld [vmem:[#allocation59_spill] sm:$0xff] }
 0x328   :  { %1484 = vmatpush.msrb.mxu1 %v6136_v6  ;;  %1542 = vmatpush.msra.mxu3 %v9445_v1  ;;  %v9460_v1 = vld [vmem:[#allocation83_spill] sm:$0xff] }
 0x32a   :  { %1485 = vmatpush.msrb.mxu1 %v6140_v58  ;;  %1543 = vmatpush.msra.mxu3 %v9447_v54  ;;  %v9461_v54 = vld [vmem:[#allocation47_spill] sm:$0xff] }
 0x32b   :  { %v9485_v58 = vld [vmem:[#allocation79_spill] sm:$0xff] }
 0x32c   :  { %1486 = vmatpush.msrb.mxu1 %v6144_v50  ;;  %1544 = vmatpush.msra.mxu3 %v9449_v61  ;;  %v9462_v61 = vld [vmem:[#allocation60_spill] sm:$0xff]  ;;  %v1245_v50 = vpop.f32.mrf.mxu2 }
 0x32e   :  { %1487 = vmatpush.msrb.mxu1 %v6148_v21  ;;  %1545 = vmatpush.msra.mxu3 %v9451_v35  ;;  %v9463_v35 = vld [vmem:[#allocation87_spill] sm:$0xff] }
 0x330   :  { %1570 = vmatpush.msra.mxu1 %v9452_v37  ;;  %1610 = vmatpush.msrb.mxu3 %v9453_v32  ;;  %v9464_v37 = vld [vmem:[#allocation89_spill] sm:$0xff]  ;;  %v9465_v32 = vld [vmem:[#allocation91_spill] sm:$0xff] }
 0x332   :  { %1571 = vmatpush.msra.mxu1 %v9454_v62  ;;  %1611 = vmatpush.msrb.mxu3 %v9455_v4  ;;  %v9466_v62 = vld [vmem:[#allocation94_spill] sm:$0xff]  ;;  %v9467_v4 = vld [vmem:[#allocation96_spill] sm:$0xff] }
 0x334   :  { %1572 = vmatpush.msra.mxu1 %v9456_v28  ;;  %1612 = vmatpush.msrb.mxu3 %v9457_v42  ;;  %v9468_v28 = vld [vmem:[#allocation100_spill] sm:$0xff]  ;;  %v9469_v42 = vld [vmem:[#allocation102_spill] sm:$0xff] }
 0x336   :  { %1573 = vmatpush.msra.mxu1 %v9458_v16  ;;  %1613 = vmatpush.msrb.mxu3 %v9459_v22  ;;  %v9470_v16 = vld [vmem:[#allocation104_spill] sm:$0xff]  ;;  %v9471_v22 = vld [vmem:[#allocation107_spill] sm:$0xff] }
 0x338   :  { %1574 = vmatpush.msra.mxu1 %v9460_v1  ;;  %1614 = vmatpush.msrb.mxu3 %v9461_v54  ;;  %v9472_v1 = vld [vmem:[#allocation112_spill] sm:$0xff]  ;;  %v9473_v54 = vld [vmem:[#allocation114_spill] sm:$0xff] }
 0x33a   :  { %1575 = vmatpush.msra.mxu1 %v9462_v61  ;;  %1615 = vmatpush.msrb.mxu3 %v9463_v35  ;;  %v9474_v61 = vld [vmem:[#allocation119_spill] sm:$0xff]  ;;  %v9475_v35 = vld [vmem:[#allocation121_spill] sm:$0xff] }
 0x33c   :  { %1576 = vmatpush.msra.mxu1 %v9464_v37  ;;  %1616 = vmatpush.msrb.mxu3 %v9465_v32  ;;  %v9476_v37 = vld [vmem:[#allocation126_spill] sm:$0xff]  ;;  %v9477_v32 = vld [vmem:[#allocation13_spill] sm:$0xff] }
 0x33e   :  { %1577 = vmatpush.msra.mxu1 %v9466_v62  ;;  %1617 = vmatpush.msrb.mxu3 %v9467_v4  ;;  %v9478_v62 = vld [vmem:[#allocation14_spill] sm:$0xff]  ;;  %v9479_v4 = vld [vmem:[#allocation15_spill] sm:$0xff] }
 0x340   :  { %1578 = vmatpush.msra.mxu1 %v9468_v28  ;;  %1618 = vmatpush.msrb.mxu3 %v9469_v42  ;;  %v9480_v28 = vld [vmem:[#allocation16_spill] sm:$0xff]  ;;  %v9481_v42 = vld [vmem:[#allocation17_spill] sm:$0xff] }
 0x342   :  { %1579 = vmatpush.msra.mxu1 %v9470_v16  ;;  %1619 = vmatpush.msrb.mxu3 %v9471_v22  ;;  %v9482_v16 = vld [vmem:[#allocation18_spill] sm:$0xff]  ;;  %v9483_v22 = vld [vmem:[#allocation19_spill] sm:$0xff] }
 0x344   :  { %1580 = vmatpush.msra.mxu1 %v9472_v1  ;;  %1620 = vmatpush.msrb.mxu3 %v9473_v54  ;;  %v1205_v1 = vpop.f32.mrf.mxu0 }
 0x346   :  { %1581 = vmatpush.msra.mxu1 %v9474_v61  ;;  %1621 = vmatpush.msrb.mxu3 %v9475_v35  ;;  %v9484_v35 = vld [vmem:[#allocation78_spill] sm:$0xff] }
 0x348   :  { %1582 = vmatpush.msra.mxu1 %v9476_v37  ;;  %1622 = vmatpush.msrb.mxu3 %v9477_v32 }
 0x34a   :  { %1583 = vmatpush.msra.mxu1 %v9478_v62  ;;  %1623 = vmatpush.msrb.mxu3 %v9479_v4 }
 0x34c   :  { %1584 = vmatpush.msra.mxu1 %v9480_v28  ;;  %1624 = vmatpush.msrb.mxu3 %v9481_v42  ;;  %v1285_v28 = vpop.f32.mrf.mxu0 }
 0x34e   :  { %1585 = vmatpush.msra.mxu1 %v9482_v16  ;;  %1625 = vmatpush.msrb.mxu3 %v9483_v22 }
 0x36c   :  { %v1225_v54 = vpop.f32.mrf.mxu1 }
 0x36d   :  { %v1226_v61 = vadd.f32 %v1225_v54, %v1205_v1  ;;  %v6189_v1 = vld [vmem:[%s8417_s3 + $0x1] ss:$0 sm:$0xff] }
 0x36f   :  { %v1434_v21 = vadd.f32 %v1226_v61, %v9484_v35  ;;  %v9486_v35 = vld [vmem:[#allocation93_spill] sm:$0xff] }
 0x371   :  { %v1435_v37 = vmul.f32 0.5, %v1434_v21 }
 0x372   :  { %v1265_v32 = vpop.f32.mrf.mxu3 }
 0x373   :  { %3404 = vtanh.f32 %v1435_v37  ;;  %v1266_v62 = vadd.f32 %v1265_v32, %v1245_v50 }
 0x374   :  { %v1305_v6 = vpop.f32.mrf.mxu1 }
 0x375   :  { %v1439_v4 = vadd.f32 %v1266_v62, %v9485_v58  ;;  %v1306_v42 = vadd.f32 %v1305_v6, %v1285_v28  ;;  %v9504_v28 = vld [vmem:[#allocation82_spill] sm:$0xff] }
 0x377   :  { %v1440_v14 = vmul.f32 0.5, %v1439_v4  ;;  %v1444_v21 = vadd.f32 %v6189_v1, %v1306_v42  ;;  %v9503_v4 = vld [vmem:[#allocation127_spill] sm:$0xff]  ;;  %v9505_v42 = vld [vmem:[#allocation128_spill] sm:$0xff] }
 0x379   :  { %v3405_v29 = vpop.eup %3404  ;;  %3406 = vtanh.f32 %v1440_v14 }
 0x37a   :  { %v1437_v16 = vadd.f32 1.0, %v3405_v29 }
 0x37c   :  { %v1438_v22 = vmul.f32 0.5, %v1437_v16  ;;  %v9506_v16 = vld [vmem:[#allocation129_spill] sm:$0xff] }
 0x37e   :  { %v1445_v54 = vmul.f32 %v1444_v21, %v1438_v22  ;;  %v9507_v22 = vld [vmem:[#allocation130_spill] sm:$0xff]  ;;  %v9508_v21 = vld [vmem:[#allocation131_spill] sm:$0xff] }
 0x37f   :  { %v3407_v61 = vpop.eup %3406 }
 0x380   :  { %v1442_v50 = vadd.f32 1.0, %v3407_v61  ;;  %v1446_v58 = vadd.f32 %v1445_v54, %v9486_v35  ;;  %v9509_v54 = vld [vmem:[#allocation132_spill] sm:$0xff]  ;;  %v9510_v61 = vld [vmem:[#allocation133_spill] sm:$0xff]  ;;  %v9512_v35 = vld [vmem:[#allocation135_spill] sm:$0xff] }
 0x382   :  { %3408 = vtanh.f32 %v1446_v58  ;;  %v1443_v37 = vmul.f32 0.5, %v1442_v50  ;;  %v9511_v50 = vld [vmem:[#allocation134_spill] sm:$0xff]  ;;  %v9513_v58 = vld [vmem:[#allocation136_spill] sm:$0xff] }
 0x384   :  { %v1448_v32 = vsub.f32 1.0, %v1443_v37  ;;  %v1450_v14 = vmul.f32 %v1443_v37, %v5672_v24  ;;  %v9487_v24 = vld [vmem:[#allocation20_spill] sm:$0xff]  ;;  %v9514_v37 = vld [vmem:[#allocation137_spill] sm:$0xff] }
 0x388   :  { %v3409_v6 = vpop.eup %3408 }
 0x389   :  { %v1449_v29 = vmul.f32 %v3409_v6, %v1448_v32  ;;  %v9515_v32 = vld [vmem:[#allocation138_spill] sm:$0xff]  ;;  %v9516_v6 = vld [vmem:[#allocation139_spill] sm:$0xff] }
 0x38b   :  { %v6194_v62 = vadd.f32 %v1450_v14, %v1449_v29  ;;  %v9517_v14 = vld [vmem:[#allocation140_spill] sm:$0xff]  ;;  %v9518_v29 = vld [vmem:[#allocation141_spill] sm:$0xff] }
 0x38d   :  { %1468 = vmatmul.f32.vlgmr.msrb.gmra.mxu0 %v6194_v62  ;;  %1488 = vmatmul.f32.vlgmr.msrb.gmra.mxu1 %v6194_v62 }
 0x38e   :  { %1508 = vmatmul.f32.vlgmr.msrb.gmra.mxu2 %v6194_v62  ;;  %1546 = vmatmul.f32.vlgmr.msra.gmra.mxu3 %v6194_v62 }
 0x38f   :  { %1650 = vmatpush.msrb.mxu1 %v5678_v31  ;;  %1690 = vmatpush.msra.mxu3 %v5681_v13  ;;  %v9488_v31 = vld [vmem:[#allocation84_spill] sm:$0xff] }
 0x390   :  { %1630 = vmatpush.msrb.mxu0 %v5684_v39  ;;  %1670 = vmatpush.msrb.mxu2 %v5687_v2  ;;  %v9489_v13 = vld [vmem:[#allocation88_spill] sm:$0xff]  ;;  %v9490_v39 = vld [vmem:[#allocation90_spill] sm:$0xff] }
 0x391   :  { %1651 = vmatpush.msrb.mxu1 %v5690_v49  ;;  %1691 = vmatpush.msra.mxu3 %v5693_v63  ;;  %v9491_v2 = vld [vmem:[#allocation92_spill] sm:$0xff]  ;;  %v9492_v49 = vld [vmem:[#allocation95_spill] sm:$0xff]  ;;  %v9493_v63 = vld [vmem:[#allocation97_spill] sm:$0xff] }
 0x392   :  { %1631 = vmatpush.msrb.mxu0 %v5696_v46  ;;  %1671 = vmatpush.msrb.mxu2 %v5699_v10  ;;  %v9494_v46 = vld [vmem:[#allocation101_spill] sm:$0xff]  ;;  %v9495_v10 = vld [vmem:[#allocation103_spill] sm:$0xff] }
 0x393   :  { %1652 = vmatpush.msrb.mxu1 %v5702_v38  ;;  %1692 = vmatpush.msra.mxu3 %v5705_v53  ;;  %v9496_v38 = vld [vmem:[#allocation105_spill] sm:$0xff]  ;;  %v9497_v53 = vld [vmem:[#allocation108_spill] sm:$0xff] }
 0x394   :  { %1632 = vmatpush.msrb.mxu0 %v5708_v43  ;;  %1672 = vmatpush.msrb.mxu2 %v5711_v25  ;;  %v9498_v43 = vld [vmem:[#allocation109_spill] sm:$0xff] }
 0x395   :  { %1653 = vmatpush.msrb.mxu1 %v5714_v12  ;;  %1693 = vmatpush.msra.mxu3 %v5717_v51  ;;  %v9499_v25 = vld [vmem:[#allocation113_spill] sm:$0xff]  ;;  %v9500_v12 = vld [vmem:[#allocation115_spill] sm:$0xff] }
 0x396   :  { %1586 = vmatmul.f32.vlgmr.msra.gmra.mxu1 %v6194_v62  ;;  %1626 = vmatmul.f32.vlgmr.msrb.gmra.mxu3 %v6194_v62  ;;  %v9501_v51 = vld [vmem:[#allocation73_spill] sm:$0xff] }
 0x397   :  { %1654 = vmatpush.msrb.mxu1 %v5722_v0  ;;  %1694 = vmatpush.msra.mxu3 %v9487_v24  ;;  %v9502_v0 = vld [vmem:[#allocation72_spill] sm:$0xff]  ;;  %v9519_v24 = vld [vmem:[#allocation142_spill] sm:$0xff] }
 0x398   :  { %1633 = vmatpush.msrb.mxu0 %v9488_v31  ;;  %1673 = vmatpush.msrb.mxu2 %v9489_v13  ;;  %v9520_v31 = vld [vmem:[#allocation143_spill] sm:$0xff]  ;;  %v9521_v13 = vld [vmem:[#allocation144_spill] sm:$0xff] }
 0x399   :  { %1655 = vmatpush.msrb.mxu1 %v9490_v39  ;;  %1695 = vmatpush.msra.mxu3 %v9491_v2  ;;  %v9522_v39 = vld [vmem:[#allocation145_spill] sm:$0xff]  ;;  %v9523_v2 = vld [vmem:[#allocation146_spill] sm:$0xff] }
 0x39a   :  { %1634 = vmatpush.msrb.mxu0 %v9492_v49  ;;  %1674 = vmatpush.msrb.mxu2 %v9493_v63  ;;  %v9524_v49 = vld [vmem:[#allocation147_spill] sm:$0xff]  ;;  %v9525_v63 = vld [vmem:[#allocation148_spill] sm:$0xff] }
 0x39b   :  { %1656 = vmatpush.msrb.mxu1 %v9494_v46  ;;  %1696 = vmatpush.msra.mxu3 %v9495_v10  ;;  %v9526_v46 = vld [vmem:[#allocation149_spill] sm:$0xff]  ;;  %v9527_v10 = vld [vmem:[#allocation150_spill] sm:$0xff] }
 0x39c   :  { %1635 = vmatpush.msrb.mxu0 %v9496_v38  ;;  %1675 = vmatpush.msrb.mxu2 %v9497_v53  ;;  %v9528_v38 = vld [vmem:[#allocation151_spill] sm:$0xff]  ;;  %v9529_v53 = vld [vmem:[#allocation152_spill] sm:$0xff] }
 0x39d   :  { %1657 = vmatpush.msrb.mxu1 %v9498_v43  ;;  %1697 = vmatpush.msra.mxu3 %v9499_v25  ;;  %v9530_v43 = vld [vmem:[#allocation153_spill] sm:$0xff]  ;;  %v9531_v25 = vld [vmem:[#allocation154_spill] sm:$0xff] }
 0x39e   :  { %1636 = vmatpush.msrb.mxu0 %v9500_v12  ;;  %1676 = vmatpush.msrb.mxu2 %v9501_v51  ;;  %v9532_v12 = vld [vmem:[#allocation155_spill] sm:$0xff]  ;;  %v9533_v51 = vld [vmem:[#allocation156_spill] sm:$0xff] }
 0x39f   :  { %1658 = vmatpush.msrb.mxu1 %v9502_v0  ;;  %1698 = vmatpush.msra.mxu3 %v9503_v4  ;;  %v9534_v0 = vld [vmem:[#allocation157_spill] sm:$0xff]  ;;  %v9535_v4 = vld [vmem:[#allocation158_spill] sm:$0xff] }
 0x3a0   :  { %1637 = vmatpush.msrb.mxu0 %v9504_v28  ;;  %1677 = vmatpush.msrb.mxu2 %v9505_v42  ;;  %v9536_v28 = vld [vmem:[#allocation159_spill] sm:$0xff]  ;;  %v9537_v42 = vld [vmem:[#allocation160_spill] sm:$0xff] }
 0x3a1   :  { %1659 = vmatpush.msrb.mxu1 %v9506_v16  ;;  %1699 = vmatpush.msra.mxu3 %v9507_v22  ;;  %v9538_v16 = vld [vmem:[#allocation161_spill] sm:$0xff]  ;;  %v9539_v22 = vld [vmem:[#allocation162_spill] sm:$0xff] }
 0x3a2   :  { %1638 = vmatpush.msrb.mxu0 %v9508_v21  ;;  %1678 = vmatpush.msrb.mxu2 %v9509_v54  ;;  %v9540_v21 = vld [vmem:[#allocation163_spill] sm:$0xff]  ;;  %v9541_v54 = vld [vmem:[#allocation164_spill] sm:$0xff] }
 0x3a3   :  { %1660 = vmatpush.msrb.mxu1 %v9510_v61  ;;  %1700 = vmatpush.msra.mxu3 %v9511_v50  ;;  %v9542_v61 = vld [vmem:[#allocation165_spill] sm:$0xff]  ;;  %v9543_v50 = vld [vmem:[#allocation166_spill] sm:$0xff] }
 0x3a4   :  { %1639 = vmatpush.msrb.mxu0 %v9512_v35  ;;  %1679 = vmatpush.msrb.mxu2 %v9513_v58  ;;  %v9544_v35 = vld [vmem:[#allocation167_spill] sm:$0xff]  ;;  %v9545_v58 = vld [vmem:[#allocation168_spill] sm:$0xff] }
 0x3a5   :  { %1661 = vmatpush.msrb.mxu1 %v9514_v37  ;;  %1701 = vmatpush.msra.mxu3 %v9515_v32  ;;  %v9546_v37 = vld [vmem:[#allocation169_spill] sm:$0xff]  ;;  %v9547_v32 = vld [vmem:[#allocation170_spill] sm:$0xff] }
 0x3a6   :  { %1640 = vmatpush.msrb.mxu0 %v9516_v6  ;;  %1680 = vmatpush.msrb.mxu2 %v9517_v14  ;;  %v9548_v6 = vld [vmem:[#allocation171_spill] sm:$0xff]  ;;  %v9549_v14 = vld [vmem:[#allocation172_spill] sm:$0xff] }
 0x3a7   :  { %1662 = vmatpush.msrb.mxu1 %v9518_v29  ;;  %1702 = vmatpush.msra.mxu3 %v9519_v24  ;;  %v9550_v29 = vld [vmem:[#allocation173_spill] sm:$0xff]  ;;  %v9551_v24 = vld [vmem:[#allocation174_spill] sm:$0xff] }
 0x3a8   :  { %1641 = vmatpush.msrb.mxu0 %v9520_v31  ;;  %1681 = vmatpush.msrb.mxu2 %v9521_v13  ;;  %v9552_v31 = vld [vmem:[#allocation175_spill] sm:$0xff]  ;;  %v9553_v13 = vld [vmem:[#allocation176_spill] sm:$0xff] }
 0x3a9   :  { %1663 = vmatpush.msrb.mxu1 %v9522_v39  ;;  %1703 = vmatpush.msra.mxu3 %v9523_v2  ;;  %v9554_v39 = vld [vmem:[#allocation177_spill] sm:$0xff]  ;;  %v9555_v2 = vld [vmem:[#allocation178_spill] sm:$0xff] }
 0x3aa   :  { %1642 = vmatpush.msrb.mxu0 %v9524_v49  ;;  %1682 = vmatpush.msrb.mxu2 %v9525_v63  ;;  %v9556_v49 = vld [vmem:[#allocation179_spill] sm:$0xff]  ;;  %v9557_v63 = vld [vmem:[#allocation180_spill] sm:$0xff] }
 0x3ab   :  { %1664 = vmatpush.msrb.mxu1 %v9526_v46  ;;  %1704 = vmatpush.msra.mxu3 %v9527_v10  ;;  %v9558_v46 = vld [vmem:[#allocation181_spill] sm:$0xff]  ;;  %v9559_v10 = vld [vmem:[#allocation182_spill] sm:$0xff] }
 0x3ac   :  { %1643 = vmatpush.msrb.mxu0 %v9528_v38  ;;  %1683 = vmatpush.msrb.mxu2 %v9529_v53  ;;  %v6295_v38 = vld [vmem:[#allocation3 + $0x48] sm:$0xff]  ;;  %v6299_v53 = vld [vmem:[#allocation3 + $0x30] sm:$0xff] }
 0x3ad   :  { %1665 = vmatpush.msrb.mxu1 %v9530_v43  ;;  %1705 = vmatpush.msra.mxu3 %v9531_v25  ;;  %v9560_v43 = vld [vmem:[#allocation183_spill] sm:$0xff]  ;;  %v6320_v25 = vld [vmem:[#allocation6 + $0x540] sm:$0xff] }
 0x3ae   :  { %1666 = vmatmul.f32.vlgmr.msrb.gmra.mxu1 %v6194_v62  ;;  %1706 = vmatmul.f32.vlgmr.msra.gmra.mxu3 %v6194_v62 }
 0x3af   :  { %1730 = vmatpush.msra.mxu1 %v9532_v12  ;;  %1644 = vmatpush.msrb.mxu0 %v9533_v51  ;;  %v6368_v12 = vld [vmem:[#allocation6 + $0x300] sm:$0xff]  ;;  %v9563_v51 = vld [vmem:[#allocation186_spill] sm:$0xff] }
 0x3b0   :  { %1684 = vmatpush.msrb.mxu2 %v9534_v0  ;;  %1794 = vmatpush.msrb.mxu3 %v9535_v4  ;;  %v6376_v0 = vld [vmem:[#allocation6 + $0x548] sm:$0xff] }
 0x3b1   :  { %1731 = vmatpush.msra.mxu1 %v9536_v28  ;;  %1645 = vmatpush.msrb.mxu0 %v9537_v42  ;;  %v6382_v4 = vld [vmem:[#allocation6 + $0x4e8] sm:$0xff]  ;;  %v6385_v28 = vld [vmem:[#allocation6 + $0x4b8] sm:$0xff] }
 0x3b2   :  { %1685 = vmatpush.msrb.mxu2 %v9538_v16  ;;  %1795 = vmatpush.msrb.mxu3 %v9539_v22  ;;  %v6388_v42 = vld [vmem:[#allocation6 + $0x488] sm:$0xff]  ;;  %v6391_v16 = vld [vmem:[#allocation6 + $0x458] sm:$0xff] }
 0x3b3   :  { %1732 = vmatpush.msra.mxu1 %v9540_v21  ;;  %v6394_v22 = vld [vmem:[#allocation6 + $0x428] sm:$0xff]  ;;  %v1365_v21 = vpop.f32.mrf.mxu0 }
 0x3b4   :  { %1796 = vmatpush.msrb.mxu3 %v9541_v54  ;;  %v1385_v54 = vpop.f32.mrf.mxu1 }
 0x3b5   :  { %1733 = vmatpush.msra.mxu1 %v9542_v61  ;;  %v6397_v61 = vld [vmem:[#allocation6 + $0x3f8] sm:$0xff] }
 0x3b6   :  { %1797 = vmatpush.msrb.mxu3 %v9543_v50  ;;  %v6400_v50 = vld [vmem:[#allocation6 + $0x3c8] sm:$0xff] }
 0x3b7   :  { %1734 = vmatpush.msra.mxu1 %v9544_v35  ;;  %v6403_v35 = vld [vmem:[#allocation6 + $0x398] sm:$0xff] }
 0x3b8   :  { %1798 = vmatpush.msrb.mxu3 %v9545_v58  ;;  %v1345_v58 = vpop.f32.mrf.mxu3 }
 0x3b9   :  { %1735 = vmatpush.msra.mxu1 %v9546_v37  ;;  %v6406_v37 = vld [vmem:[#allocation6 + $0x368] sm:$0xff] }
 0x3ba   :  { %1799 = vmatpush.msrb.mxu3 %v9547_v32  ;;  %v1325_v32 = vpop.f32.mrf.mxu2 }
 0x3bb   :  { %1736 = vmatpush.msra.mxu1 %v9548_v6 }
 0x3bc   :  { %1800 = vmatpush.msrb.mxu3 %v9549_v14 }
 0x3bd   :  { %1737 = vmatpush.msra.mxu1 %v9550_v29  ;;  %v6409_v29 = vld [vmem:[#allocation6 + $0x338] sm:$0xff] }
 0x3be   :  { %1801 = vmatpush.msrb.mxu3 %v9551_v24  ;;  %v1346_v24 = vadd.f32 %v1345_v58, %v1325_v32  ;;  %v6420_v32 = vld [vmem:[%s8417_s3 + $0x9] ss:$0 sm:$0xff] }
 0x3bf   :  { %1738 = vmatpush.msra.mxu1 %v9552_v31  ;;  %v1386_v31 = vadd.f32 %v1385_v54, %v1365_v21 }
 0x3c0   :  { %1802 = vmatpush.msrb.mxu3 %v9553_v13 }
 0x3c1   :  { %1739 = vmatpush.msra.mxu1 %v9554_v39 }
 0x3c2   :  { %1803 = vmatpush.msrb.mxu3 %v9555_v2  ;;  %v6414_v2 = vld [vmem:[#allocation6 + $0x308] sm:$0xff] }
 0x3c3   :  { %1740 = vmatpush.msra.mxu1 %v9556_v49 }
 0x3c4   :  { %1804 = vmatpush.msrb.mxu3 %v9557_v63 }
 0x3c5   :  { %1741 = vmatpush.msra.mxu1 %v5940_v5  ;;  %v6304_v5 = vld [vmem:[#allocation3 + $0x18] sm:$0xff] }
 0x3c6   :  { %1805 = vmatpush.msrb.mxu3 %v9558_v46 }
 0x3c7   :  { %1742 = vmatpush.msra.mxu1 %v5946_v41  ;;  %v6308_v41 = vld [vmem:[#allocation6 + $0x5d0] sm:$0xff] }
 0x3c8   :  { %1806 = vmatpush.msrb.mxu3 %v9559_v10 }
 0x3c9   :  { %1743 = vmatpush.msra.mxu1 %v5952_v23  ;;  %v6312_v23 = vld [vmem:[#allocation6 + $0x5a0] sm:$0xff] }
 0x3ca   :  { %1807 = vmatpush.msrb.mxu3 %v6295_v38 }
 0x3cb   :  { %1744 = vmatpush.msra.mxu1 %v5956_v40  ;;  %v6316_v40 = vld [vmem:[#allocation6 + $0x570] sm:$0xff] }
 0x3cc   :  { %1808 = vmatpush.msrb.mxu3 %v6299_v53 }
 0x3cd   :  { %1745 = vmatpush.msra.mxu1 %v9560_v43  ;;  %v1405_v43 = vpop.f32.mrf.mxu2 }
 0x3ce   :  { %1746 = vmatmul.f32.vlgmr.msra.gmra.mxu1 %v6194_v62  ;;  %1809 = vmatpush.msrb.mxu3 %v6304_v5 }
 0x3cf   :  { %1834 = vmatpush.msrb.mxu1 %v5965_v30  ;;  %v6324_v30 = vld [vmem:[#allocation6 + $0x510] sm:$0xff] }
 0x3d0   :  { %1892 = vmatpush.msra.mxu3 %v6308_v41 }
 0x3d1   :  { %1835 = vmatpush.msrb.mxu1 %v5969_v47  ;;  %v6328_v47 = vld [vmem:[#allocation6 + $0x4e0] sm:$0xff] }
 0x3d2   :  { %1893 = vmatpush.msra.mxu3 %v6312_v23 }
 0x3d3   :  { %1836 = vmatpush.msrb.mxu1 %v5973_v57  ;;  %v6332_v57 = vld [vmem:[#allocation6 + $0x4b0] sm:$0xff] }
 0x3d4   :  { %1894 = vmatpush.msra.mxu3 %v6316_v40 }
 0x3d5   :  { %1837 = vmatpush.msrb.mxu1 %v5977_v11  ;;  %v6336_v11 = vld [vmem:[#allocation6 + $0x480] sm:$0xff] }
 0x3d6   :  { %1895 = vmatpush.msra.mxu3 %v6320_v25 }
 0x3d7   :  { %1838 = vmatpush.msrb.mxu1 %v5981_v9  ;;  %v6340_v9 = vld [vmem:[#allocation6 + $0x450] sm:$0xff] }
 0x3d8   :  { %1896 = vmatpush.msra.mxu3 %v6324_v30 }
 0x3d9   :  { %1839 = vmatpush.msrb.mxu1 %v5985_v34  ;;  %v6344_v34 = vld [vmem:[#allocation6 + $0x420] sm:$0xff] }
 0x3da   :  { %1897 = vmatpush.msra.mxu3 %v6328_v47 }
 0x3db   :  { %1840 = vmatpush.msrb.mxu1 %v5989_v20  ;;  %v6348_v20 = vld [vmem:[#allocation6 + $0x3f0] sm:$0xff] }
 0x3dc   :  { %1898 = vmatpush.msra.mxu3 %v6332_v57 }
 0x3dd   :  { %1841 = vmatpush.msrb.mxu1 %v5993_v44  ;;  %v6352_v44 = vld [vmem:[#allocation6 + $0x3c0] sm:$0xff] }
 0x3de   :  { %1899 = vmatpush.msra.mxu3 %v6336_v11 }
 0x3df   :  { %1842 = vmatpush.msrb.mxu1 %v5997_v48  ;;  %v6356_v48 = vld [vmem:[#allocation6 + $0x390] sm:$0xff] }
 0x3e0   :  { %1900 = vmatpush.msra.mxu3 %v6340_v9 }
 0x3e1   :  { %1843 = vmatpush.msrb.mxu1 %v6001_v59  ;;  %v6360_v59 = vld [vmem:[#allocation6 + $0x360] sm:$0xff] }
 0x3e2   :  { %1901 = vmatpush.msra.mxu3 %v6344_v34 }
 0x3e3   :  { %1844 = vmatpush.msrb.mxu1 %v6005_v45  ;;  %v6364_v45 = vld [vmem:[#allocation6 + $0x330] sm:$0xff] }
 0x3e4   :  { %1902 = vmatpush.msra.mxu3 %v6348_v20 }
 0x3e5   :  { %1845 = vmatpush.msrb.mxu1 %v6009_v36  ;;  %v9561_v36 = vld [vmem:[#allocation184_spill] sm:$0xff] }
 0x3e6   :  { %1903 = vmatpush.msra.mxu3 %v6352_v44 }
 0x3e7   :  { %1846 = vmatpush.msrb.mxu1 %v6013_v7  ;;  %v9562_v7 = vld [vmem:[#allocation185_spill] sm:$0xff] }
 0x3e8   :  { %1904 = vmatpush.msra.mxu3 %v6356_v48 }
 0x3e9   :  { %1847 = vmatpush.msrb.mxu1 %v6017_v8  ;;  %v6373_v8 = vld [vmem:[#allocation6 + $0x578] sm:$0xff] }
 0x3ea   :  { %1905 = vmatpush.msra.mxu3 %v6360_v59 }
 0x3eb   :  { %1848 = vmatpush.msrb.mxu1 %v6021_v19  ;;  %v6379_v19 = vld [vmem:[#allocation6 + $0x518] sm:$0xff] }
 0x3ec   :  { %1906 = vmatpush.msra.mxu3 %v6364_v45 }
 0x3ed   :  { %1849 = vmatpush.msrb.mxu1 %v9561_v36  ;;  %v1425_v36 = vpop.f32.mrf.mxu3 }
 0x3ee   :  { %1907 = vmatpush.msra.mxu3 %v6368_v12 }
 0x3ef   :  { %1932 = vmatpush.msra.mxu1 %v9562_v7  ;;  %v1426_v7 = vadd.f32 %v1425_v36, %v1405_v43 }
 0x3f1   :  { %1933 = vmatpush.msra.mxu1 %v9563_v51 }
 0x3f3   :  { %1934 = vmatpush.msra.mxu1 %v6373_v8 }
 0x3f5   :  { %1935 = vmatpush.msra.mxu1 %v6376_v0 }
 0x3f7   :  { %1936 = vmatpush.msra.mxu1 %v6379_v19 }
 0x3f9   :  { %1937 = vmatpush.msra.mxu1 %v6382_v4 }
 0x3fb   :  { %1938 = vmatpush.msra.mxu1 %v6385_v28 }
 0x3fd   :  { %1939 = vmatpush.msra.mxu1 %v6388_v42 }
 0x3ff   :  { %1940 = vmatpush.msra.mxu1 %v6391_v16 }
 0x401   :  { %1941 = vmatpush.msra.mxu1 %v6394_v22 }
 0x403   :  { %1942 = vmatpush.msra.mxu1 %v6397_v61 }
 0x405   :  { %1943 = vmatpush.msra.mxu1 %v6400_v50 }
 0x407   :  { %1944 = vmatpush.msra.mxu1 %v6403_v35 }
 0x409   :  { %1945 = vmatpush.msra.mxu1 %v6406_v37 }
 0x40a   :  { %v1469_v6 = vpop.f32.mrf.mxu0  ;;  %v1489_v14 = vpop.f32.mrf.mxu1 }
 0x40b   :  { %1946 = vmatpush.msra.mxu1 %v6409_v29  ;;  %v1470_v13 = vadd.f32 %v1469_v6, %v5382_v27  ;;  %v1490_v39 = vadd.f32 %v1489_v14, %v5384_v17  ;;  %v1522_v6 = vadd.f32 %v6420_v32, %v1426_v7  ;;  %v6429_v7 = vld [vmem:[#allocation6 + $0x5f0] sm:$0xff] }
 0x40d   :  { %1947 = vmatpush.msra.mxu1 %v6414_v2  ;;  %v1512_v49 = vadd.f32 %v1470_v13, %v1346_v24  ;;  %v1517_v63 = vadd.f32 %v1490_v39, %v1386_v31 }
 0x40f   :  { %v1513_v46 = vmul.f32 0.5, %v1512_v49  ;;  %v1518_v10 = vmul.f32 0.5, %v1517_v63 }
 0x411   :  { %3410 = vtanh.f32 %v1513_v46  ;;  %v1509_v21 = vpop.f32.mrf.mxu2 }
 0x412   :  { %3412 = vtanh.f32 %v1518_v10  ;;  %v1510_v24 = vadd.f32 %v1509_v21, %v5393_v18  ;;  %v6441_v21 = vld [vmem:[#allocation6 + $0x590] sm:$0xff] }
 0x417   :  { %v3411_v51 = vpop.eup %3410 }
 0x418   :  { %v1515_v58 = vadd.f32 1.0, %v3411_v51  ;;  %v3413_v54 = vpop.eup %3412  ;;  %v6432_v51 = vld [vmem:[#allocation6 + $0x5f8] sm:$0xff] }
 0x419   :  { %v1520_v13 = vadd.f32 1.0, %v3413_v54  ;;  %v6444_v54 = vld [vmem:[#allocation6 + $0x598] sm:$0xff] }
 0x41a   :  { %v1516_v14 = vmul.f32 0.5, %v1515_v58  ;;  %v6435_v58 = vld [vmem:[#allocation6 + $0x5c0] sm:$0xff]  ;;  %9564 = vst [vmem:[#allocation26_spill] sm:$0xff] %v6444_v54 }
 0x41b   :  { %v1521_v49 = vmul.f32 0.5, %v1520_v13  ;;  %v6461_v13 = vld [vmem:[#allocation6 + $0x500] sm:$0xff] }
 0x41c   :  { %v1523_v31 = vmul.f32 %v1522_v6, %v1516_v14  ;;  %v6447_v6 = vld [vmem:[#allocation6 + $0x560] sm:$0xff]  ;;  %v6450_v14 = vld [vmem:[#allocation6 + $0x568] sm:$0xff]  ;;  %9569 = vst [vmem:[#allocation63_spill] sm:$0xff] %v6461_v13 }
 0x41d   :  { %v1526_v63 = vsub.f32 1.0, %v1521_v49  ;;  %v1528_v10 = vmul.f32 %v1521_v49, %v6054_v26  ;;  %v6438_v26 = vld [vmem:[#allocation6 + $0x5c8] sm:$0xff]  ;;  %9565 = vst [vmem:[#allocation61_spill] sm:$0xff] %v6447_v6  ;;  %v6467_v49 = vld [vmem:[#allocation6 + $0x4d0] sm:$0xff] }
 0x41e   :  { %v1524_v39 = vadd.f32 %v1523_v31, %v1510_v24  ;;  %9566 = vst [vmem:[#allocation27_spill] sm:$0xff] %v6450_v14  ;;  %v6455_v24 = vld [vmem:[#allocation6 + $0x530] sm:$0xff]  ;;  %v6458_v31 = vld [vmem:[#allocation6 + $0x538] sm:$0xff] }
 0x41f   :  { %9567 = vst [vmem:[#allocation62_spill] sm:$0xff] %v6455_v24 }
 0x420   :  { %3414 = vtanh.f32 %v1524_v39  ;;  %9568 = vst [vmem:[#allocation28_spill] sm:$0xff] %v6458_v31  ;;  %v6464_v39 = vld [vmem:[#allocation6 + $0x508] sm:$0xff] }
 0x421   :  { %9570 = vst [vmem:[#allocation29_spill] sm:$0xff] %v6464_v39 }
 0x422   :  { %9571 = vst [vmem:[#allocation31_spill] sm:$0xff] %v6467_v49 }
 0x426   :  { %v3415_v46 = vpop.eup %3414 }
 0x427   :  { %v1527_v43 = vmul.f32 %v3415_v46, %v1526_v63  ;;  %v6470_v63 = vld [vmem:[#allocation6 + $0x4d8] sm:$0xff]  ;;  %v6473_v46 = vld [vmem:[#allocation6 + $0x4a0] sm:$0xff] }
 0x428   :  { %9572 = vst [vmem:[#allocation64_spill] sm:$0xff] %v6470_v63 }
 0x429   :  { %v6425_v36 = vadd.f32 %v1528_v10, %v1527_v43  ;;  %9573 = vst [vmem:[#allocation65_spill] sm:$0xff] %v6473_v46  ;;  %v6476_v10 = vld [vmem:[#allocation6 + $0x4a8] sm:$0xff]  ;;  %v6479_v43 = vld [vmem:[#allocation6 + $0x470] sm:$0xff] }
 0x42a   :  { %9574 = vst [vmem:[#allocation30_spill] sm:$0xff] %v6476_v10 }
 0x42b   :  { %1566 = vmatmul.f32.vlgmr.msra.gmra.mxu0 %v6425_v36  ;;  %1606 = vmatmul.f32.vlgmr.msra.gmra.mxu2 %v6425_v36  ;;  %9575 = vst [vmem:[#allocation32_spill] sm:$0xff] %v6479_v43 }
 0x42c   :  { %1710 = vmatpush.msra.mxu0 %v6429_v7  ;;  %1750 = vmatpush.msra.mxu2 %v6432_v51 }
 0x42e   :  { %1711 = vmatpush.msra.mxu0 %v6435_v58  ;;  %1751 = vmatpush.msra.mxu2 %v6438_v26 }
 0x430   :  { %1712 = vmatpush.msra.mxu0 %v6441_v21  ;;  %1752 = vmatpush.msra.mxu2 %v6444_v54 }
 0x432   :  { %1713 = vmatpush.msra.mxu0 %v6447_v6  ;;  %1753 = vmatpush.msra.mxu2 %v6450_v14 }
 0x433   :  { %1646 = vmatmul.f32.vlgmr.msrb.gmra.mxu0 %v6425_v36  ;;  %1686 = vmatmul.f32.vlgmr.msrb.gmra.mxu2 %v6425_v36 }
 0x434   :  { %1714 = vmatpush.msra.mxu0 %v6455_v24  ;;  %1754 = vmatpush.msra.mxu2 %v6458_v31 }
 0x436   :  { %1715 = vmatpush.msra.mxu0 %v6461_v13  ;;  %1755 = vmatpush.msra.mxu2 %v6464_v39  ;;  %v6482_v39 = vld [vmem:[#allocation6 + $0x478] sm:$0xff] }
 0x437   :  { %9576 = vst [vmem:[#allocation66_spill] sm:$0xff] %v6482_v39 }
 0x438   :  { %1716 = vmatpush.msra.mxu0 %v6467_v49  ;;  %1756 = vmatpush.msra.mxu2 %v6470_v63  ;;  %v6485_v49 = vld [vmem:[#allocation6 + $0x440] sm:$0xff]  ;;  %v6488_v63 = vld [vmem:[#allocation6 + $0x448] sm:$0xff] }
 0x439   :  { %9577 = vst [vmem:[#allocation33_spill] sm:$0xff] %v6485_v49 }
 0x43a   :  { %1717 = vmatpush.msra.mxu0 %v6473_v46  ;;  %1757 = vmatpush.msra.mxu2 %v6476_v10  ;;  %9578 = vst [vmem:[#allocation34_spill] sm:$0xff] %v6488_v63  ;;  %v6491_v46 = vld [vmem:[#allocation6 + $0x410] sm:$0xff]  ;;  %v6494_v10 = vld [vmem:[#allocation6 + $0x418] sm:$0xff] }
 0x43b   :  { %9579 = vst [vmem:[#allocation67_spill] sm:$0xff] %v6491_v46 }
 0x43c   :  { %1718 = vmatpush.msra.mxu0 %v6479_v43  ;;  %1758 = vmatpush.msra.mxu2 %v6482_v39  ;;  %9580 = vst [vmem:[#allocation35_spill] sm:$0xff] %v6494_v10  ;;  %v6497_v43 = vld [vmem:[#allocation6 + $0x3e0] sm:$0xff]  ;;  %v6500_v39 = vld [vmem:[#allocation6 + $0x3e8] sm:$0xff] }
 0x43d   :  { %9581 = vst [vmem:[#allocation48_spill] sm:$0xff] %v6497_v43 }
 0x43e   :  { %1719 = vmatpush.msra.mxu0 %v6485_v49  ;;  %1759 = vmatpush.msra.mxu2 %v6488_v63  ;;  %9582 = vst [vmem:[#allocation68_spill] sm:$0xff] %v6500_v39  ;;  %v6503_v49 = vld [vmem:[#allocation6 + $0x3b0] sm:$0xff]  ;;  %v6506_v63 = vld [vmem:[#allocation6 + $0x3b8] sm:$0xff] }
 0x43f   :  { %9583 = vst [vmem:[#allocation36_spill] sm:$0xff] %v6503_v49 }
 0x440   :  { %1720 = vmatpush.msra.mxu0 %v6491_v46  ;;  %1760 = vmatpush.msra.mxu2 %v6494_v10  ;;  %9584 = vst [vmem:[#allocation49_spill] sm:$0xff] %v6506_v63  ;;  %v6509_v46 = vld [vmem:[#allocation6 + $0x380] sm:$0xff]  ;;  %v6512_v10 = vld [vmem:[#allocation6 + $0x388] sm:$0xff] }
 0x441   :  { %9585 = vst [vmem:[#allocation69_spill] sm:$0xff] %v6509_v46 }
 0x442   :  { %1721 = vmatpush.msra.mxu0 %v6497_v43  ;;  %1761 = vmatpush.msra.mxu2 %v6500_v39  ;;  %9586 = vst [vmem:[#allocation37_spill] sm:$0xff] %v6512_v10  ;;  %v6515_v43 = vld [vmem:[#allocation6 + $0x350] sm:$0xff]  ;;  %v6518_v39 = vld [vmem:[#allocation6 + $0x358] sm:$0xff] }
 0x443   :  { %9587 = vst [vmem:[#allocation50_spill] sm:$0xff] %v6515_v43 }
 0x444   :  { %1722 = vmatpush.msra.mxu0 %v6503_v49  ;;  %1762 = vmatpush.msra.mxu2 %v6506_v63  ;;  %9588 = vst [vmem:[#allocation70_spill] sm:$0xff] %v6518_v39  ;;  %v6521_v49 = vld [vmem:[#allocation6 + $0x320] sm:$0xff]  ;;  %v6524_v63 = vld [vmem:[#allocation6 + $0x328] sm:$0xff] }
 0x445   :  { %9589 = vst [vmem:[#allocation38_spill] sm:$0xff] %v6521_v49 }
 0x446   :  { %1723 = vmatpush.msra.mxu0 %v6509_v46  ;;  %1763 = vmatpush.msra.mxu2 %v6512_v10  ;;  %9590 = vst [vmem:[#allocation51_spill] sm:$0xff] %v6524_v63  ;;  %v6529_v10 = vld [vmem:[#allocation3 + $0x188] sm:$0xff] }
 0x447   :  { %9591 = vst [vmem:[#allocation71_spill] sm:$0xff] %v6529_v10  ;;  %v6544_v46 = vld [vmem:[#allocation6 + $0x270] sm:$0xff] }
 0x448   :  { %1724 = vmatpush.msra.mxu0 %v6515_v43  ;;  %1764 = vmatpush.msra.mxu2 %v6518_v39  ;;  %v6532_v43 = vld [vmem:[#allocation6 + $0x2d0] sm:$0xff]  ;;  %v6535_v39 = vld [vmem:[#allocation3 + $0x170] sm:$0xff]  ;;  %9596 = vst [vmem:[#allocation53_spill] sm:$0xff] %v6544_v46 }
 0x449   :  { %9592 = vst [vmem:[#allocation39_spill] sm:$0xff] %v6532_v43 }
 0x44a   :  { %1725 = vmatpush.msra.mxu0 %v6521_v49  ;;  %1765 = vmatpush.msra.mxu2 %v6524_v63  ;;  %9593 = vst [vmem:[#allocation52_spill] sm:$0xff] %v6535_v39  ;;  %v6538_v49 = vld [vmem:[#allocation6 + $0x2a0] sm:$0xff] }
 0x44b   :  { %1726 = vmatmul.f32.vlgmr.msra.gmra.mxu0 %v6425_v36  ;;  %1766 = vmatmul.f32.vlgmr.msra.gmra.mxu2 %v6425_v36  ;;  %9594 = vst [vmem:[#allocation74_spill] sm:$0xff] %v6538_v49  ;;  %v6541_v63 = vld [vmem:[#allocation3 + $0x158] sm:$0xff] }
 0x44c   :  { %1814 = vmatpush.msrb.mxu0 %v6529_v10  ;;  %1872 = vmatpush.msrb.mxu2 %v6532_v43  ;;  %9595 = vst [vmem:[#allocation40_spill] sm:$0xff] %v6541_v63  ;;  %v6548_v10 = vld [vmem:[#allocation6 + $0x240] sm:$0xff]  ;;  %v9649_v43 = vld [vmem:[#allocation86_spill] sm:$0xff] }
 0x44d   :  { %9597 = vst [vmem:[#allocation75_spill] sm:$0xff] %v6548_v10 }
 0x44e   :  { %1815 = vmatpush.msrb.mxu0 %v6535_v39  ;;  %1873 = vmatpush.msrb.mxu2 %v6538_v49  ;;  %v6552_v39 = vld [vmem:[#allocation6 + $0x210] sm:$0xff]  ;;  %v6556_v49 = vld [vmem:[#allocation6 + $0x1e0] sm:$0xff] }
 0x44f   :  { %9598 = vst [vmem:[#allocation41_spill] sm:$0xff] %v6552_v39 }
 0x450   :  { %1816 = vmatpush.msrb.mxu0 %v6541_v63  ;;  %1874 = vmatpush.msrb.mxu2 %v6544_v46  ;;  %9599 = vst [vmem:[#allocation54_spill] sm:$0xff] %v6556_v49  ;;  %v6560_v46 = vld [vmem:[#allocation6 + $0x1b0] sm:$0xff] }
 0x451   :  { %9600 = vst [vmem:[#allocation42_spill] sm:$0xff] %v6560_v46 }
 0x452   :  { %1817 = vmatpush.msrb.mxu0 %v6100_v56  ;;  %1875 = vmatpush.msrb.mxu2 %v6548_v10  ;;  %v6564_v56 = vld [vmem:[#allocation6 + $0x180] sm:$0xff]  ;;  %v1587_v10 = vpop.f32.mrf.mxu1 }
 0x453   :  { %9601 = vst [vmem:[#allocation55_spill] sm:$0xff] %v6564_v56 }
 0x454   :  { %1818 = vmatpush.msrb.mxu0 %v6104_v3  ;;  %1876 = vmatpush.msrb.mxu2 %v6552_v39  ;;  %v6568_v3 = vld [vmem:[#allocation6 + $0x150] sm:$0xff] }
 0x455   :  { %9602 = vst [vmem:[#allocation43_spill] sm:$0xff] %v6568_v3 }
 0x456   :  { %1819 = vmatpush.msrb.mxu0 %v6108_v60  ;;  %1877 = vmatpush.msrb.mxu2 %v6556_v49  ;;  %v6572_v60 = vld [vmem:[#allocation6 + $0x120] sm:$0xff] }
 0x457   :  { %9603 = vst [vmem:[#allocation56_spill] sm:$0xff] %v6572_v60 }
 0x458   :  { %1820 = vmatpush.msrb.mxu0 %v6112_v15  ;;  %1878 = vmatpush.msrb.mxu2 %v6560_v46  ;;  %v9604_v15 = vld [vmem:[#allocation76_spill] sm:$0xff]  ;;  %v6576_v46 = vld [vmem:[#allocation6 + $0xf0] sm:$0xff] }
 0x459   :  { %9605 = vst [vmem:[#allocation77_spill] sm:$0xff] %v6576_v46 }
 0x45a   :  { %1821 = vmatpush.msrb.mxu0 %v6116_v55  ;;  %1879 = vmatpush.msrb.mxu2 %v6564_v56  ;;  %v9606_v55 = vld [vmem:[#allocation21_spill] sm:$0xff]  ;;  %v6580_v56 = vld [vmem:[#allocation6 + $0xc0] sm:$0xff] }
 0x45b   :  { %9607 = vst [vmem:[#allocation80_spill] sm:$0xff] %v6580_v56 }
 0x45c   :  { %1822 = vmatpush.msrb.mxu0 %v6120_v33  ;;  %1880 = vmatpush.msrb.mxu2 %v6568_v3  ;;  %v9608_v33 = vld [vmem:[#allocation22_spill] sm:$0xff] }
 0x45d   :  { %v6584_v3 = vld [vmem:[#allocation6 + $0x90] sm:$0xff] }
 0x45e   :  { %1823 = vmatpush.msrb.mxu0 %v6124_v52  ;;  %1881 = vmatpush.msrb.mxu2 %v6572_v60  ;;  %9609 = vst [vmem:[#allocation44_spill] sm:$0xff] %v6584_v3  ;;  %v9610_v52 = vld [vmem:[#allocation23_spill] sm:$0xff]  ;;  %v6588_v60 = vld [vmem:[#allocation6 + $0x60] sm:$0xff] }
 0x45f   :  { %9611 = vst [vmem:[#allocation57_spill] sm:$0xff] %v6588_v60 }
 0x460   :  { %1824 = vmatpush.msrb.mxu0 %v9604_v15  ;;  %1882 = vmatpush.msrb.mxu2 %v6576_v46  ;;  %v9612_v15 = vld [vmem:[#allocation24_spill] sm:$0xff]  ;;  %v6592_v46 = vld [vmem:[#allocation6 + $0x30] sm:$0xff] }
 0x461   :  { %9613 = vst [vmem:[#allocation45_spill] sm:$0xff] %v6592_v46 }
 0x462   :  { %1825 = vmatpush.msrb.mxu0 %v9606_v55  ;;  %1883 = vmatpush.msrb.mxu2 %v6580_v56  ;;  %v9614_v55 = vld [vmem:[#allocation25_spill] sm:$0xff]  ;;  %v6596_v56 = vld [vmem:[#allocation6] sm:$0xff] }
 0x463   :  { %9615 = vst [vmem:[#allocation58_spill] sm:$0xff] %v6596_v56 }
 0x464   :  { %1826 = vmatpush.msrb.mxu0 %v9608_v33  ;;  %1884 = vmatpush.msrb.mxu2 %v6584_v3  ;;  %v6599_v33 = vld [vmem:[#allocation6 + $0x2d8] sm:$0xff] }
 0x465   :  { %9616 = vst [vmem:[#allocation81_spill] sm:$0xff] %v6599_v33 }
 0x466   :  { %1827 = vmatpush.msrb.mxu0 %v9610_v52  ;;  %1885 = vmatpush.msrb.mxu2 %v6588_v60  ;;  %v6602_v52 = vld [vmem:[#allocation6 + $0x2e0] sm:$0xff]  ;;  %v6605_v60 = vld [vmem:[#allocation6 + $0x2a8] sm:$0xff] }
 0x467   :  { %9617 = vst [vmem:[#allocation46_spill] sm:$0xff] %v6602_v52 }
 0x468   :  { %1828 = vmatpush.msrb.mxu0 %v9612_v15  ;;  %1886 = vmatpush.msrb.mxu2 %v6592_v46  ;;  %9618 = vst [vmem:[#allocation59_spill] sm:$0xff] %v6605_v60  ;;  %v6608_v15 = vld [vmem:[#allocation6 + $0x2b0] sm:$0xff] }
 0x469   :  { %9619 = vst [vmem:[#allocation83_spill] sm:$0xff] %v6608_v15 }
 0x46a   :  { %1829 = vmatpush.msrb.mxu0 %v9614_v55  ;;  %1887 = vmatpush.msrb.mxu2 %v6596_v56  ;;  %v6611_v55 = vld [vmem:[#allocation6 + $0x278] sm:$0xff]  ;;  %v6614_v56 = vld [vmem:[#allocation6 + $0x280] sm:$0xff] }
 0x46b   :  { %9620 = vst [vmem:[#allocation47_spill] sm:$0xff] %v6611_v55 }
 0x46c   :  { %1912 = vmatpush.msra.mxu0 %v6599_v33  ;;  %1952 = vmatpush.msra.mxu2 %v6602_v52  ;;  %9621 = vst [vmem:[#allocation60_spill] sm:$0xff] %v6614_v56  ;;  %v6617_v33 = vld [vmem:[#allocation6 + $0x248] sm:$0xff]  ;;  %v6620_v52 = vld [vmem:[#allocation6 + $0x250] sm:$0xff] }
 0x46d   :  { %9622 = vst [vmem:[#allocation87_spill] sm:$0xff] %v6617_v33 }
 0x46e   :  { %1913 = vmatpush.msra.mxu0 %v6605_v60  ;;  %1953 = vmatpush.msra.mxu2 %v6608_v15  ;;  %9623 = vst [vmem:[#allocation89_spill] sm:$0xff] %v6620_v52  ;;  %v6623_v60 = vld [vmem:[#allocation6 + $0x218] sm:$0xff]  ;;  %v6626_v15 = vld [vmem:[#allocation6 + $0x220] sm:$0xff] }
 0x46f   :  { %9624 = vst [vmem:[#allocation91_spill] sm:$0xff] %v6623_v60 }
 0x470   :  { %1914 = vmatpush.msra.mxu0 %v6611_v55  ;;  %1954 = vmatpush.msra.mxu2 %v6614_v56  ;;  %9625 = vst [vmem:[#allocation94_spill] sm:$0xff] %v6626_v15  ;;  %v6629_v55 = vld [vmem:[#allocation6 + $0x1e8] sm:$0xff]  ;;  %v6632_v56 = vld [vmem:[#allocation6 + $0x1f0] sm:$0xff] }
 0x471   :  { %9626 = vst [vmem:[#allocation96_spill] sm:$0xff] %v6629_v55 }
 0x472   :  { %1915 = vmatpush.msra.mxu0 %v6617_v33  ;;  %1955 = vmatpush.msra.mxu2 %v6620_v52  ;;  %9627 = vst [vmem:[#allocation100_spill] sm:$0xff] %v6632_v56  ;;  %v6635_v33 = vld [vmem:[#allocation6 + $0x1b8] sm:$0xff]  ;;  %v6638_v52 = vld [vmem:[#allocation6 + $0x1c0] sm:$0xff] }
 0x473   :  { %9628 = vst [vmem:[#allocation102_spill] sm:$0xff] %v6635_v33 }
 0x474   :  { %1916 = vmatpush.msra.mxu0 %v6623_v60  ;;  %1956 = vmatpush.msra.mxu2 %v6626_v15  ;;  %9629 = vst [vmem:[#allocation104_spill] sm:$0xff] %v6638_v52  ;;  %v6641_v60 = vld [vmem:[#allocation6 + $0x188] sm:$0xff]  ;;  %v6644_v15 = vld [vmem:[#allocation6 + $0x190] sm:$0xff] }
 0x475   :  { %9630 = vst [vmem:[#allocation107_spill] sm:$0xff] %v6641_v60 }
 0x476   :  { %1917 = vmatpush.msra.mxu0 %v6629_v55  ;;  %1957 = vmatpush.msra.mxu2 %v6632_v56  ;;  %9631 = vst [vmem:[#allocation112_spill] sm:$0xff] %v6644_v15  ;;  %v6647_v55 = vld [vmem:[#allocation6 + $0x158] sm:$0xff]  ;;  %v6650_v56 = vld [vmem:[#allocation6 + $0x160] sm:$0xff] }
 0x477   :  { %9632 = vst [vmem:[#allocation114_spill] sm:$0xff] %v6647_v55 }
 0x478   :  { %1918 = vmatpush.msra.mxu0 %v6635_v33  ;;  %1958 = vmatpush.msra.mxu2 %v6638_v52  ;;  %9633 = vst [vmem:[#allocation119_spill] sm:$0xff] %v6650_v56  ;;  %v6653_v33 = vld [vmem:[#allocation6 + $0x128] sm:$0xff]  ;;  %v6656_v52 = vld [vmem:[#allocation6 + $0x130] sm:$0xff] }
 0x479   :  { %9634 = vst [vmem:[#allocation121_spill] sm:$0xff] %v6653_v33 }
 0x47a   :  { %1919 = vmatpush.msra.mxu0 %v6641_v60  ;;  %1959 = vmatpush.msra.mxu2 %v6644_v15  ;;  %9635 = vst [vmem:[#allocation126_spill] sm:$0xff] %v6656_v52  ;;  %v6659_v60 = vld [vmem:[#allocation6 + $0xf8] sm:$0xff]  ;;  %v6662_v15 = vld [vmem:[#allocation6 + $0x100] sm:$0xff] }
 0x47b   :  { %9636 = vst [vmem:[#allocation13_spill] sm:$0xff] %v6659_v60 }
 0x47c   :  { %1920 = vmatpush.msra.mxu0 %v6647_v55  ;;  %1960 = vmatpush.msra.mxu2 %v6650_v56  ;;  %9637 = vst [vmem:[#allocation14_spill] sm:$0xff] %v6662_v15  ;;  %v6665_v55 = vld [vmem:[#allocation6 + $0xc8] sm:$0xff]  ;;  %v6668_v56 = vld [vmem:[#allocation6 + $0xd0] sm:$0xff] }
 0x47d   :  { %9638 = vst [vmem:[#allocation15_spill] sm:$0xff] %v6665_v55 }
 0x47e   :  { %1921 = vmatpush.msra.mxu0 %v6653_v33  ;;  %1961 = vmatpush.msra.mxu2 %v6656_v52  ;;  %9639 = vst [vmem:[#allocation16_spill] sm:$0xff] %v6668_v56  ;;  %v6671_v33 = vld [vmem:[#allocation6 + $0x98] sm:$0xff]  ;;  %v6674_v52 = vld [vmem:[#allocation6 + $0xa0] sm:$0xff] }
 0x47f   :  { %9640 = vst [vmem:[#allocation17_spill] sm:$0xff] %v6671_v33 }
 0x480   :  { %1922 = vmatpush.msra.mxu0 %v6659_v60  ;;  %1962 = vmatpush.msra.mxu2 %v6662_v15  ;;  %9641 = vst [vmem:[#allocation18_spill] sm:$0xff] %v6674_v52  ;;  %v6677_v60 = vld [vmem:[#allocation6 + $0x68] sm:$0xff]  ;;  %v6680_v15 = vld [vmem:[#allocation6 + $0x70] sm:$0xff] }
 0x481   :  { %9642 = vst [vmem:[#allocation19_spill] sm:$0xff] %v6677_v60 }
 0x482   :  { %1923 = vmatpush.msra.mxu0 %v6665_v55  ;;  %1963 = vmatpush.msra.mxu2 %v6668_v56  ;;  %9643 = vst [vmem:[#allocation78_spill] sm:$0xff] %v6680_v15  ;;  %v6683_v55 = vld [vmem:[#allocation6 + $0x38] sm:$0xff]  ;;  %v6686_v56 = vld [vmem:[#allocation6 + $0x40] sm:$0xff] }
 0x483   :  { %9644 = vst [vmem:[#allocation79_spill] sm:$0xff] %v6683_v55 }
 0x484   :  { %1924 = vmatpush.msra.mxu0 %v6671_v33  ;;  %1964 = vmatpush.msra.mxu2 %v6674_v52  ;;  %9645 = vst [vmem:[#allocation93_spill] sm:$0xff] %v6686_v56  ;;  %v6689_v33 = vld [vmem:[#allocation6 + $0x8] sm:$0xff]  ;;  %v6692_v52 = vld [vmem:[#allocation6 + $0x10] sm:$0xff] }
 0x485   :  { %9646 = vst [vmem:[#allocation20_spill] sm:$0xff] %v6689_v33 }
 0x486   :  { %1925 = vmatpush.msra.mxu0 %v6677_v60  ;;  %1965 = vmatpush.msra.mxu2 %v6680_v15  ;;  %9647 = vst [vmem:[#allocation84_spill] sm:$0xff] %v6692_v52  ;;  %v1547_v60 = vpop.f32.mrf.mxu3  ;;  %v9648_v15 = vld [vmem:[#allocation85_spill] sm:$0xff] }
 0x488   :  { %1926 = vmatpush.msra.mxu0 %v6683_v55  ;;  %1966 = vmatpush.msra.mxu2 %v6686_v56 }
 0x48a   :  { %1927 = vmatpush.msra.mxu0 %v6689_v33  ;;  %1967 = vmatpush.msra.mxu2 %v6692_v52 }
 0x48e   :  { %v1627_v31 = vpop.f32.mrf.mxu3 }
 0x4a8   :  { %v1567_v46 = vpop.f32.mrf.mxu0 }
 0x4a9   :  { %v1568_v3 = vadd.f32 %v1567_v46, %v1547_v60 }
 0x4ab   :  { %v1776_v49 = vadd.f32 %v1568_v3, %v9648_v15 }
 0x4ad   :  { %v1777_v39 = vmul.f32 0.5, %v1776_v49  ;;  %v9650_v49 = vld [vmem:[#allocation106_spill] sm:$0xff] }
 0x4ae   :  { %v1607_v55 = vpop.f32.mrf.mxu2 }
 0x4af   :  { %3416 = vtanh.f32 %v1777_v39  ;;  %v1608_v63 = vadd.f32 %v1607_v55, %v1587_v10 }
 0x4b0   :  { %v1647_v13 = vpop.f32.mrf.mxu0 }
 0x4b1   :  { %v1781_v56 = vadd.f32 %v1608_v63, %v9649_v43  ;;  %v1648_v33 = vadd.f32 %v1647_v13, %v1627_v31  ;;  %v6724_v31 = vld [vmem:[#allocation6 + $0x5b0] sm:$0xff]  ;;  %v6727_v13 = vld [vmem:[#allocation6 + $0x5b8] sm:$0xff] }
 0x4b3   :  { %v1782_v24 = vmul.f32 0.5, %v1781_v56  ;;  %v1786_v54 = vadd.f32 %v6189_v1, %v1648_v33  ;;  %v6706_v1 = vld [vmem:[#allocation6 + $0x2e8] sm:$0xff] }
 0x4b4   :  { %v6730_v33 = vld [vmem:[#allocation6 + $0x288] sm:$0xff] }
 0x4b5   :  { %v3417_v14 = vpop.eup %3416  ;;  %3418 = vtanh.f32 %v1782_v24  ;;  %v6721_v24 = vld [vmem:[#allocation6 + $0x2c0] sm:$0xff] }
 0x4b6   :  { %v1779_v6 = vadd.f32 1.0, %v3417_v14  ;;  %v6718_v14 = vld [vmem:[#allocation6 + $0x2b8] sm:$0xff] }
 0x4b8   :  { %v1780_v52 = vmul.f32 0.5, %v1779_v6  ;;  %v6715_v6 = vld [vmem:[#allocation6 + $0x5e8] sm:$0xff] }
 0x4ba   :  { %v1787_v46 = vmul.f32 %v1786_v54, %v1780_v52  ;;  %v6709_v54 = vld [vmem:[#allocation6 + $0x2f0] sm:$0xff] }
 0x4bb   :  { %v3419_v60 = vpop.eup %3418  ;;  %v6733_v52 = vld [vmem:[#allocation6 + $0x290] sm:$0xff] }
 0x4bc   :  { %v1784_v3 = vadd.f32 1.0, %v3419_v60  ;;  %v1788_v15 = vadd.f32 %v1787_v46, %v9650_v49  ;;  %v6736_v46 = vld [vmem:[#allocation6 + $0x580] sm:$0xff]  ;;  %v6739_v60 = vld [vmem:[#allocation6 + $0x588] sm:$0xff] }
 0x4bd   :  { %v6745_v49 = vld [vmem:[#allocation6 + $0x260] sm:$0xff] }
 0x4be   :  { %3420 = vtanh.f32 %v1788_v15  ;;  %v1785_v39 = vmul.f32 0.5, %v1784_v3  ;;  %v6742_v3 = vld [vmem:[#allocation6 + $0x258] sm:$0xff]  ;;  %v6750_v15 = vld [vmem:[#allocation6 + $0x228] sm:$0xff] }
 0x4bf   :  { %9651 = vst [vmem:[#allocation88_spill] sm:$0xff] %v6750_v15 }
 0x4c0   :  { %v1790_v10 = vsub.f32 1.0, %v1785_v39  ;;  %v1792_v63 = vmul.f32 %v1785_v39, %v6194_v62  ;;  %v6712_v62 = vld [vmem:[#allocation6 + $0x5e0] sm:$0xff]  ;;  %v6753_v39 = vld [vmem:[#allocation6 + $0x230] sm:$0xff] }
 0x4c1   :  { %9652 = vst [vmem:[#allocation90_spill] sm:$0xff] %v6753_v39 }
 0x4c4   :  { %v3421_v55 = vpop.eup %3420 }
 0x4c5   :  { %v1791_v43 = vmul.f32 %v3421_v55, %v1790_v10  ;;  %v6756_v10 = vld [vmem:[#allocation6 + $0x550] sm:$0xff]  ;;  %v6759_v55 = vld [vmem:[#allocation6 + $0x558] sm:$0xff] }
 0x4c6   :  { %9653 = vst [vmem:[#allocation92_spill] sm:$0xff] %v6756_v10 }
 0x4c7   :  { %v6700_v56 = vadd.f32 %v1792_v63, %v1791_v43  ;;  %9654 = vst [vmem:[#allocation95_spill] sm:$0xff] %v6759_v55  ;;  %v6762_v63 = vld [vmem:[#allocation6 + $0x1f8] sm:$0xff]  ;;  %v6765_v43 = vld [vmem:[#allocation6 + $0x200] sm:$0xff] }
 0x4c8   :  { %9655 = vst [vmem:[#allocation97_spill] sm:$0xff] %v6762_v63 }
 0x4c9   :  { %1810 = vmatmul.f32.vlgmr.msrb.gmra.mxu3 %v6700_v56  ;;  %1830 = vmatmul.f32.vlgmr.msrb.gmra.mxu0 %v6700_v56  ;;  %9656 = vst [vmem:[#allocation101_spill] sm:$0xff] %v6765_v43 }
 0x4ca   :  { %1850 = vmatmul.f32.vlgmr.msrb.gmra.mxu1 %v6700_v56  ;;  %1888 = vmatmul.f32.vlgmr.msrb.gmra.mxu2 %v6700_v56 }
 0x4cb   :  { %1992 = vmatpush.msrb.mxu0 %v6706_v1  ;;  %2032 = vmatpush.msrb.mxu2 %v6709_v54 }
 0x4cc   :  { %1972 = vmatpush.msrb.mxu3 %v6712_v62  ;;  %2012 = vmatpush.msrb.mxu1 %v6715_v6 }
 0x4cd   :  { %1993 = vmatpush.msrb.mxu0 %v6718_v14  ;;  %2033 = vmatpush.msrb.mxu2 %v6721_v24 }
 0x4ce   :  { %1973 = vmatpush.msrb.mxu3 %v6724_v31  ;;  %2013 = vmatpush.msrb.mxu1 %v6727_v13 }
 0x4cf   :  { %1994 = vmatpush.msrb.mxu0 %v6730_v33  ;;  %2034 = vmatpush.msrb.mxu2 %v6733_v52 }
 0x4d0   :  { %1974 = vmatpush.msrb.mxu3 %v6736_v46  ;;  %2014 = vmatpush.msrb.mxu1 %v6739_v60 }
 0x4d1   :  { %1995 = vmatpush.msrb.mxu0 %v6742_v3  ;;  %2035 = vmatpush.msrb.mxu2 %v6745_v49 }
 0x4d2   :  { %1928 = vmatmul.f32.vlgmr.msra.gmra.mxu0 %v6700_v56  ;;  %1968 = vmatmul.f32.vlgmr.msra.gmra.mxu2 %v6700_v56 }
 0x4d3   :  { %1996 = vmatpush.msrb.mxu0 %v6750_v15  ;;  %2036 = vmatpush.msrb.mxu2 %v6753_v39  ;;  %v6768_v15 = vld [vmem:[#allocation6 + $0x520] sm:$0xff]  ;;  %v6771_v39 = vld [vmem:[#allocation6 + $0x528] sm:$0xff] }
 0x4d4   :  { %1975 = vmatpush.msrb.mxu3 %v6756_v10  ;;  %2015 = vmatpush.msrb.mxu1 %v6759_v55  ;;  %9657 = vst [vmem:[#allocation103_spill] sm:$0xff] %v6768_v15  ;;  %v6774_v10 = vld [vmem:[#allocation6 + $0x1c8] sm:$0xff]  ;;  %v6777_v55 = vld [vmem:[#allocation6 + $0x1d0] sm:$0xff] }
 0x4d5   :  { %1997 = vmatpush.msrb.mxu0 %v6762_v63  ;;  %2037 = vmatpush.msrb.mxu2 %v6765_v43  ;;  %9658 = vst [vmem:[#allocation105_spill] sm:$0xff] %v6771_v39  ;;  %v6780_v63 = vld [vmem:[#allocation6 + $0x4f0] sm:$0xff]  ;;  %v6783_v43 = vld [vmem:[#allocation6 + $0x4f8] sm:$0xff] }
 0x4d6   :  { %1976 = vmatpush.msrb.mxu3 %v6768_v15  ;;  %2016 = vmatpush.msrb.mxu1 %v6771_v39  ;;  %9659 = vst [vmem:[#allocation108_spill] sm:$0xff] %v6774_v10  ;;  %v6786_v15 = vld [vmem:[#allocation6 + $0x198] sm:$0xff]  ;;  %v6789_v39 = vld [vmem:[#allocation6 + $0x1a0] sm:$0xff] }
 0x4d7   :  { %1998 = vmatpush.msrb.mxu0 %v6774_v10  ;;  %9660 = vst [vmem:[#allocation109_spill] sm:$0xff] %v6777_v55  ;;  %2038 = vmatpush.msrb.mxu2 %v6777_v55  ;;  %v6792_v10 = vld [vmem:[#allocation6 + $0x4c0] sm:$0xff]  ;;  %v6795_v55 = vld [vmem:[#allocation6 + $0x4c8] sm:$0xff] }
 0x4d8   :  { %9661 = vst [vmem:[#allocation113_spill] sm:$0xff] %v6780_v63  ;;  %1977 = vmatpush.msrb.mxu3 %v6780_v63  ;;  %2017 = vmatpush.msrb.mxu1 %v6783_v43  ;;  %v6798_v63 = vld [vmem:[#allocation6 + $0x168] sm:$0xff] }
 0x4d9   :  { %9662 = vst [vmem:[#allocation115_spill] sm:$0xff] %v6783_v43  ;;  %1999 = vmatpush.msrb.mxu0 %v6786_v15  ;;  %2039 = vmatpush.msrb.mxu2 %v6789_v39  ;;  %v6801_v43 = vld [vmem:[#allocation6 + $0x170] sm:$0xff] }
 0x4da   :  { %9663 = vst [vmem:[#allocation73_spill] sm:$0xff] %v6786_v15  ;;  %1978 = vmatpush.msrb.mxu3 %v6792_v10  ;;  %2018 = vmatpush.msrb.mxu1 %v6795_v55  ;;  %v6804_v15 = vld [vmem:[#allocation6 + $0x490] sm:$0xff] }
 0x4db   :  { %9664 = vst [vmem:[#allocation72_spill] sm:$0xff] %v6789_v39  ;;  %2000 = vmatpush.msrb.mxu0 %v6798_v63  ;;  %2040 = vmatpush.msrb.mxu2 %v6801_v43  ;;  %v6807_v39 = vld [vmem:[#allocation6 + $0x498] sm:$0xff] }
 0x4dc   :  { %9665 = vst [vmem:[#allocation127_spill] sm:$0xff] %v6792_v10  ;;  %1979 = vmatpush.msrb.mxu3 %v6804_v15  ;;  %2019 = vmatpush.msrb.mxu1 %v6807_v39  ;;  %v6810_v10 = vld [vmem:[#allocation6 + $0x138] sm:$0xff] }
 0x4dd   :  { %9666 = vst [vmem:[#allocation82_spill] sm:$0xff] %v6795_v55  ;;  %2001 = vmatpush.msrb.mxu0 %v6810_v10  ;;  %v6813_v55 = vld [vmem:[#allocation6 + $0x140] sm:$0xff] }
 0x4de   :  { %9667 = vst [vmem:[#allocation128_spill] sm:$0xff] %v6798_v63  ;;  %2041 = vmatpush.msrb.mxu2 %v6813_v55  ;;  %v6816_v63 = vld [vmem:[#allocation6 + $0x460] sm:$0xff] }
 0x4df   :  { %9668 = vst [vmem:[#allocation129_spill] sm:$0xff] %v6801_v43  ;;  %1980 = vmatpush.msrb.mxu3 %v6816_v63  ;;  %v6819_v43 = vld [vmem:[#allocation6 + $0x468] sm:$0xff] }
 0x4e0   :  { %9669 = vst [vmem:[#allocation130_spill] sm:$0xff] %v6804_v15  ;;  %2020 = vmatpush.msrb.mxu1 %v6819_v43  ;;  %v6822_v15 = vld [vmem:[#allocation6 + $0x108] sm:$0xff] }
 0x4e1   :  { %9670 = vst [vmem:[#allocation131_spill] sm:$0xff] %v6807_v39  ;;  %2002 = vmatpush.msrb.mxu0 %v6822_v15  ;;  %v6825_v39 = vld [vmem:[#allocation6 + $0x110] sm:$0xff] }
 0x4e2   :  { %9671 = vst [vmem:[#allocation132_spill] sm:$0xff] %v6810_v10  ;;  %2042 = vmatpush.msrb.mxu2 %v6825_v39  ;;  %v6828_v10 = vld [vmem:[#allocation6 + $0x430] sm:$0xff] }
 0x4e3   :  { %9672 = vst [vmem:[#allocation133_spill] sm:$0xff] %v6813_v55  ;;  %1981 = vmatpush.msrb.mxu3 %v6828_v10  ;;  %v6831_v55 = vld [vmem:[#allocation6 + $0x438] sm:$0xff] }
 0x4e4   :  { %9673 = vst [vmem:[#allocation134_spill] sm:$0xff] %v6816_v63  ;;  %2021 = vmatpush.msrb.mxu1 %v6831_v55  ;;  %v6834_v63 = vld [vmem:[#allocation6 + $0xd8] sm:$0xff] }
 0x4e5   :  { %9674 = vst [vmem:[#allocation135_spill] sm:$0xff] %v6819_v43  ;;  %2003 = vmatpush.msrb.mxu0 %v6834_v63  ;;  %v6837_v43 = vld [vmem:[#allocation6 + $0xe0] sm:$0xff] }
 0x4e6   :  { %9675 = vst [vmem:[#allocation136_spill] sm:$0xff] %v6822_v15  ;;  %2043 = vmatpush.msrb.mxu2 %v6837_v43  ;;  %v6840_v15 = vld [vmem:[#allocation6 + $0x400] sm:$0xff] }
 0x4e7   :  { %9676 = vst [vmem:[#allocation137_spill] sm:$0xff] %v6825_v39  ;;  %1982 = vmatpush.msrb.mxu3 %v6840_v15  ;;  %v6843_v39 = vld [vmem:[#allocation6 + $0x408] sm:$0xff] }
 0x4e8   :  { %9677 = vst [vmem:[#allocation138_spill] sm:$0xff] %v6828_v10  ;;  %2022 = vmatpush.msrb.mxu1 %v6843_v39  ;;  %v6846_v10 = vld [vmem:[#allocation6 + $0xa8] sm:$0xff] }
 0x4e9   :  { %9678 = vst [vmem:[#allocation139_spill] sm:$0xff] %v6831_v55  ;;  %2004 = vmatpush.msrb.mxu0 %v6846_v10  ;;  %v6849_v55 = vld [vmem:[#allocation6 + $0xb0] sm:$0xff] }
 0x4ea   :  { %9679 = vst [vmem:[#allocation140_spill] sm:$0xff] %v6834_v63  ;;  %2044 = vmatpush.msrb.mxu2 %v6849_v55  ;;  %v6852_v63 = vld [vmem:[#allocation6 + $0x3d0] sm:$0xff] }
 0x4eb   :  { %9680 = vst [vmem:[#allocation141_spill] sm:$0xff] %v6837_v43  ;;  %1983 = vmatpush.msrb.mxu3 %v6852_v63  ;;  %v6855_v43 = vld [vmem:[#allocation6 + $0x3d8] sm:$0xff] }
 0x4ec   :  { %9681 = vst [vmem:[#allocation142_spill] sm:$0xff] %v6840_v15  ;;  %2023 = vmatpush.msrb.mxu1 %v6855_v43  ;;  %v6858_v15 = vld [vmem:[#allocation6 + $0x78] sm:$0xff] }
 0x4ed   :  { %9682 = vst [vmem:[#allocation143_spill] sm:$0xff] %v6843_v39  ;;  %2005 = vmatpush.msrb.mxu0 %v6858_v15  ;;  %v6861_v39 = vld [vmem:[#allocation6 + $0x80] sm:$0xff] }
 0x4ee   :  { %9683 = vst [vmem:[#allocation144_spill] sm:$0xff] %v6846_v10  ;;  %2045 = vmatpush.msrb.mxu2 %v6861_v39  ;;  %v6864_v10 = vld [vmem:[#allocation6 + $0x3a0] sm:$0xff] }
 0x4ef   :  { %9684 = vst [vmem:[#allocation145_spill] sm:$0xff] %v6849_v55  ;;  %1984 = vmatpush.msrb.mxu3 %v6864_v10  ;;  %v6867_v55 = vld [vmem:[#allocation6 + $0x3a8] sm:$0xff] }
 0x4f0   :  { %9685 = vst [vmem:[#allocation146_spill] sm:$0xff] %v6852_v63  ;;  %2024 = vmatpush.msrb.mxu1 %v6867_v55  ;;  %v6870_v63 = vld [vmem:[#allocation6 + $0x48] sm:$0xff] }
 0x4f1   :  { %9686 = vst [vmem:[#allocation147_spill] sm:$0xff] %v6855_v43  ;;  %2006 = vmatpush.msrb.mxu0 %v6870_v63  ;;  %v6873_v43 = vld [vmem:[#allocation6 + $0x50] sm:$0xff] }
 0x4f2   :  { %9687 = vst [vmem:[#allocation148_spill] sm:$0xff] %v6858_v15  ;;  %2046 = vmatpush.msrb.mxu2 %v6873_v43  ;;  %v6876_v15 = vld [vmem:[#allocation6 + $0x370] sm:$0xff] }
 0x4f3   :  { %9688 = vst [vmem:[#allocation149_spill] sm:$0xff] %v6861_v39  ;;  %1985 = vmatpush.msrb.mxu3 %v6876_v15  ;;  %v6879_v39 = vld [vmem:[#allocation6 + $0x378] sm:$0xff] }
 0x4f4   :  { %9689 = vst [vmem:[#allocation150_spill] sm:$0xff] %v6864_v10  ;;  %2025 = vmatpush.msrb.mxu1 %v6879_v39  ;;  %v6882_v10 = vld [vmem:[#allocation6 + $0x18] sm:$0xff] }
 0x4f5   :  { %9690 = vst [vmem:[#allocation151_spill] sm:$0xff] %v6867_v55  ;;  %2007 = vmatpush.msrb.mxu0 %v6882_v10  ;;  %v6885_v55 = vld [vmem:[#allocation6 + $0x20] sm:$0xff] }
 0x4f6   :  { %9691 = vst [vmem:[#allocation152_spill] sm:$0xff] %v6870_v63  ;;  %2047 = vmatpush.msrb.mxu2 %v6885_v55  ;;  %2008 = vmatmul.f32.vlgmr.msrb.gmra.mxu0 %v6700_v56  ;;  %v6905_v63 = vld [vmem:[#allocation6 + $0x310] sm:$0xff] }
 0x4f7   :  { %9692 = vst [vmem:[#allocation153_spill] sm:$0xff] %v6873_v43  ;;  %2048 = vmatmul.f32.vlgmr.msrb.gmra.mxu2 %v6700_v56  ;;  %v6890_v43 = vld [vmem:[#allocation6 + $0x2f8] sm:$0xff] }
 0x4f8   :  { %9693 = vst [vmem:[#allocation154_spill] sm:$0xff] %v6876_v15  ;;  %2072 = vmatpush.msra.mxu0 %v6890_v43  ;;  %v6893_v15 = vld [vmem:[#allocation6 + $0x340] sm:$0xff] }
 0x4f9   :  { %9694 = vst [vmem:[#allocation155_spill] sm:$0xff] %v6879_v39  ;;  %1986 = vmatpush.msrb.mxu3 %v6893_v15  ;;  %v6896_v39 = vld [vmem:[#allocation6 + $0x348] sm:$0xff] }
 0x4fa   :  { %9695 = vst [vmem:[#allocation156_spill] sm:$0xff] %v6882_v10  ;;  %2026 = vmatpush.msrb.mxu1 %v6896_v39  ;;  %v6899_v10 = vld [vmem:[#allocation3 + $0x180] sm:$0xff] }
 0x4fb   :  { %9696 = vst [vmem:[#allocation157_spill] sm:$0xff] %v6885_v55  ;;  %2136 = vmatpush.msra.mxu2 %v6899_v10  ;;  %v6902_v55 = vld [vmem:[#allocation6 + $0x2c8] sm:$0xff]  ;;  %1987 = vmatpush.msrb.mxu3 %v6905_v63 }
 0x4fc   :  { %9697 = vst [vmem:[#allocation158_spill] sm:$0xff] %v6890_v43  ;;  %2073 = vmatpush.msra.mxu0 %v6902_v55  ;;  %v6908_v43 = vld [vmem:[#allocation6 + $0x318] sm:$0xff] }
 0x4fd   :  { %9698 = vst [vmem:[#allocation159_spill] sm:$0xff] %v6893_v15  ;;  %2027 = vmatpush.msrb.mxu1 %v6908_v43  ;;  %v6911_v15 = vld [vmem:[#allocation3 + $0x168] sm:$0xff] }
 0x4fe   :  { %9699 = vst [vmem:[#allocation160_spill] sm:$0xff] %v6896_v39  ;;  %2137 = vmatpush.msra.mxu2 %v6911_v15  ;;  %v6914_v39 = vld [vmem:[#allocation6 + $0x298] sm:$0xff] }
 0x4ff   :  { %9700 = vst [vmem:[#allocation161_spill] sm:$0xff] %v6899_v10  ;;  %2074 = vmatpush.msra.mxu0 %v6914_v39  ;;  %v6917_v10 = vld [vmem:[#allocation3 + $0x150] sm:$0xff] }
 0x500   :  { %9701 = vst [vmem:[#allocation162_spill] sm:$0xff] %v6902_v55  ;;  %2138 = vmatpush.msra.mxu2 %v6917_v10  ;;  %v6920_v55 = vld [vmem:[#allocation6 + $0x268] sm:$0xff] }
 0x501   :  { %9702 = vst [vmem:[#allocation163_spill] sm:$0xff] %v6905_v63  ;;  %2075 = vmatpush.msra.mxu0 %v6920_v55  ;;  %v6923_v63 = vld [vmem:[#allocation3 + $0x138] sm:$0xff] }
 0x502   :  { %9703 = vst [vmem:[#allocation164_spill] sm:$0xff] %v6908_v43  ;;  %2139 = vmatpush.msra.mxu2 %v6923_v63  ;;  %v6926_v43 = vld [vmem:[#allocation6 + $0x238] sm:$0xff] }
 0x503   :  { %9704 = vst [vmem:[#allocation165_spill] sm:$0xff] %v6911_v15  ;;  %2076 = vmatpush.msra.mxu0 %v6926_v43  ;;  %v6929_v15 = vld [vmem:[#allocation3 + $0x120] sm:$0xff] }
 0x504   :  { %9705 = vst [vmem:[#allocation166_spill] sm:$0xff] %v6914_v39  ;;  %2140 = vmatpush.msra.mxu2 %v6929_v15  ;;  %v6932_v39 = vld [vmem:[#allocation6 + $0x208] sm:$0xff] }
 0x505   :  { %9706 = vst [vmem:[#allocation167_spill] sm:$0xff] %v6917_v10  ;;  %2077 = vmatpush.msra.mxu0 %v6932_v39  ;;  %v6935_v10 = vld [vmem:[#allocation3 + $0x108] sm:$0xff] }
 0x506   :  { %9707 = vst [vmem:[#allocation168_spill] sm:$0xff] %v6920_v55  ;;  %2141 = vmatpush.msra.mxu2 %v6935_v10  ;;  %v6938_v55 = vld [vmem:[#allocation6 + $0x1d8] sm:$0xff] }
 0x507   :  { %9708 = vst [vmem:[#allocation169_spill] sm:$0xff] %v6923_v63  ;;  %2078 = vmatpush.msra.mxu0 %v6938_v55  ;;  %v6941_v63 = vld [vmem:[#allocation3 + $0xf0] sm:$0xff] }
 0x508   :  { %9709 = vst [vmem:[#allocation170_spill] sm:$0xff] %v6926_v43  ;;  %2142 = vmatpush.msra.mxu2 %v6941_v63  ;;  %v6944_v43 = vld [vmem:[#allocation6 + $0x1a8] sm:$0xff] }
 0x509   :  { %9710 = vst [vmem:[#allocation171_spill] sm:$0xff] %v6929_v15  ;;  %2079 = vmatpush.msra.mxu0 %v6944_v43  ;;  %v6947_v15 = vld [vmem:[#allocation3 + $0xd8] sm:$0xff] }
 0x50a   :  { %9711 = vst [vmem:[#allocation172_spill] sm:$0xff] %v6932_v39  ;;  %2143 = vmatpush.msra.mxu2 %v6947_v15  ;;  %v6950_v39 = vld [vmem:[#allocation6 + $0x178] sm:$0xff] }
 0x50b   :  { %9712 = vst [vmem:[#allocation173_spill] sm:$0xff] %v6935_v10  ;;  %2080 = vmatpush.msra.mxu0 %v6950_v39  ;;  %v6953_v10 = vld [vmem:[#allocation3 + $0xc0] sm:$0xff] }
 0x50c   :  { %9713 = vst [vmem:[#allocation174_spill] sm:$0xff] %v6938_v55  ;;  %2144 = vmatpush.msra.mxu2 %v6953_v10  ;;  %v6956_v55 = vld [vmem:[#allocation6 + $0x148] sm:$0xff] }
 0x50d   :  { %9714 = vst [vmem:[#allocation175_spill] sm:$0xff] %v6941_v63  ;;  %2081 = vmatpush.msra.mxu0 %v6956_v55  ;;  %v6959_v63 = vld [vmem:[#allocation3 + $0xa8] sm:$0xff] }
 0x50e   :  { %9715 = vst [vmem:[#allocation176_spill] sm:$0xff] %v6944_v43  ;;  %2145 = vmatpush.msra.mxu2 %v6959_v63  ;;  %v6962_v43 = vld [vmem:[#allocation6 + $0x118] sm:$0xff] }
 0x50f   :  { %9716 = vst [vmem:[#allocation177_spill] sm:$0xff] %v6947_v15  ;;  %2082 = vmatpush.msra.mxu0 %v6962_v43  ;;  %v6965_v15 = vld [vmem:[#allocation3 + $0x90] sm:$0xff] }
 0x510   :  { %9717 = vst [vmem:[#allocation178_spill] sm:$0xff] %v6950_v39  ;;  %2146 = vmatpush.msra.mxu2 %v6965_v15  ;;  %v6968_v39 = vld [vmem:[#allocation6 + $0xe8] sm:$0xff] }
 0x511   :  { %9718 = vst [vmem:[#allocation179_spill] sm:$0xff] %v6953_v10  ;;  %2083 = vmatpush.msra.mxu0 %v6968_v39  ;;  %v6971_v10 = vld [vmem:[#allocation3 + $0x78] sm:$0xff] }
 0x512   :  { %9719 = vst [vmem:[#allocation180_spill] sm:$0xff] %v6956_v55  ;;  %2147 = vmatpush.msra.mxu2 %v6971_v10  ;;  %v6974_v55 = vld [vmem:[#allocation6 + $0xb8] sm:$0xff] }
 0x513   :  { %9720 = vst [vmem:[#allocation181_spill] sm:$0xff] %v6959_v63  ;;  %2084 = vmatpush.msra.mxu0 %v6974_v55  ;;  %v6977_v63 = vld [vmem:[#allocation3 + $0x60] sm:$0xff] }
 0x514   :  { %9721 = vst [vmem:[#allocation182_spill] sm:$0xff] %v6962_v43  ;;  %2148 = vmatpush.msra.mxu2 %v6977_v63  ;;  %v6980_v43 = vld [vmem:[#allocation6 + $0x88] sm:$0xff] }
 0x515   :  { %9722 = vst [vmem:[#allocation183_spill] sm:$0xff] %v6965_v15  ;;  %2085 = vmatpush.msra.mxu0 %v6980_v43  ;;  %v6984_v15 = vld [vmem:[#allocation6 + $0x58] sm:$0xff] }
 0x516   :  { %9723 = vst [vmem:[#allocation184_spill] sm:$0xff] %v6971_v10  ;;  %2149 = vmatpush.msra.mxu2 %v6295_v38  ;;  %v6988_v10 = vld [vmem:[#allocation6 + $0x28] sm:$0xff]  ;;  %v6997_v38 = vld [vmem:[#allocation3 + $0x178] sm:$0xff] }
 0x517   :  { %9724 = vst [vmem:[#allocation185_spill] sm:$0xff] %v6977_v63  ;;  %2086 = vmatpush.msra.mxu0 %v6984_v15  ;;  %v6993_v63 = vld [vmem:[#allocation3 + $0x190] sm:$0xff] }
 0x518   :  { %2150 = vmatpush.msra.mxu2 %v6299_v53  ;;  %9725 = vst [vmem:[#allocation186_spill] sm:$0xff] %v6988_v10  ;;  %v7001_v53 = vld [vmem:[#allocation3 + $0x160] sm:$0xff] }
 0x519   :  { %2087 = vmatpush.msra.mxu0 %v6988_v10  ;;  %v7005_v10 = vld [vmem:[#allocation3 + $0x148] sm:$0xff] }
 0x51a   :  { %2088 = vmatmul.f32.vlgmr.msra.gmra.mxu0 %v6700_v56  ;;  %2151 = vmatpush.msra.mxu2 %v6304_v5  ;;  %v7009_v5 = vld [vmem:[#allocation3 + $0x130] sm:$0xff] }
 0x51b   :  { %2176 = vmatpush.msrb.mxu0 %v6993_v63 }
 0x51c   :  { %2234 = vmatpush.msrb.mxu2 %v6308_v41  ;;  %v7013_v41 = vld [vmem:[#allocation3 + $0x118] sm:$0xff] }
 0x51d   :  { %2177 = vmatpush.msrb.mxu0 %v6997_v38 }
 0x51e   :  { %2235 = vmatpush.msrb.mxu2 %v6312_v23  ;;  %v7017_v23 = vld [vmem:[#allocation3 + $0x100] sm:$0xff] }
 0x51f   :  { %2178 = vmatpush.msrb.mxu0 %v7001_v53 }
 0x520   :  { %2236 = vmatpush.msrb.mxu2 %v6316_v40  ;;  %v7021_v40 = vld [vmem:[#allocation3 + $0xe8] sm:$0xff] }
 0x521   :  { %2179 = vmatpush.msrb.mxu0 %v7005_v10 }
 0x522   :  { %2237 = vmatpush.msrb.mxu2 %v6320_v25  ;;  %v7025_v25 = vld [vmem:[#allocation3 + $0xd0] sm:$0xff] }
 0x523   :  { %2180 = vmatpush.msrb.mxu0 %v7009_v5 }
 0x524   :  { %2238 = vmatpush.msrb.mxu2 %v6324_v30  ;;  %v7029_v30 = vld [vmem:[#allocation3 + $0xb8] sm:$0xff] }
 0x525   :  { %2181 = vmatpush.msrb.mxu0 %v7013_v41 }
 0x526   :  { %2239 = vmatpush.msrb.mxu2 %v6328_v47  ;;  %v7033_v47 = vld [vmem:[#allocation3 + $0xa0] sm:$0xff] }
 0x527   :  { %2182 = vmatpush.msrb.mxu0 %v7017_v23 }
 0x528   :  { %2240 = vmatpush.msrb.mxu2 %v6332_v57  ;;  %v7037_v57 = vld [vmem:[#allocation3 + $0x88] sm:$0xff] }
 0x529   :  { %2183 = vmatpush.msrb.mxu0 %v7021_v40 }
 0x52a   :  { %2241 = vmatpush.msrb.mxu2 %v6336_v11  ;;  %v7041_v11 = vld [vmem:[#allocation3 + $0x70] sm:$0xff] }
 0x52b   :  { %2184 = vmatpush.msrb.mxu0 %v7025_v25 }
 0x52c   :  { %2242 = vmatpush.msrb.mxu2 %v6340_v9  ;;  %v7045_v9 = vld [vmem:[#allocation3 + $0x58] sm:$0xff] }
 0x52d   :  { %2185 = vmatpush.msrb.mxu0 %v7029_v30 }
 0x52e   :  { %2243 = vmatpush.msrb.mxu2 %v6344_v34  ;;  %v7049_v34 = vld [vmem:[#allocation3 + $0x40] sm:$0xff] }
 0x52f   :  { %2186 = vmatpush.msrb.mxu0 %v7033_v47  ;;  %9726 = vst [vmem:[#allocation76_spill] sm:$0xff] %v7049_v34 }
 0x530   :  { %2244 = vmatpush.msrb.mxu2 %v6348_v20  ;;  %v7053_v20 = vld [vmem:[#allocation3 + $0x28] sm:$0xff] }
 0x531   :  { %2187 = vmatpush.msrb.mxu0 %v7037_v57  ;;  %9727 = vst [vmem:[#allocation21_spill] sm:$0xff] %v7053_v20 }
 0x532   :  { %2245 = vmatpush.msrb.mxu2 %v6352_v44  ;;  %v7057_v44 = vld [vmem:[#allocation6 + $0x5d8] sm:$0xff] }
 0x533   :  { %2188 = vmatpush.msrb.mxu0 %v7041_v11  ;;  %9728 = vst [vmem:[#allocation22_spill] sm:$0xff] %v7057_v44 }
 0x534   :  { %2246 = vmatpush.msrb.mxu2 %v6356_v48  ;;  %v7060_v48 = vld [vmem:[#allocation6 + $0x5a8] sm:$0xff] }
 0x535   :  { %2189 = vmatpush.msrb.mxu0 %v7045_v9  ;;  %9729 = vst [vmem:[#allocation23_spill] sm:$0xff] %v7060_v48 }
 0x536   :  { %2247 = vmatpush.msrb.mxu2 %v6360_v59  ;;  %v1727_v59 = vpop.f32.mrf.mxu0 }
 0x537   :  { %2190 = vmatpush.msrb.mxu0 %v7049_v34 }
 0x538   :  { %2248 = vmatpush.msrb.mxu2 %v6364_v45  ;;  %v1707_v45 = vpop.f32.mrf.mxu3 }
 0x539   :  { %2191 = vmatpush.msrb.mxu0 %v7053_v20 }
 0x53a   :  { %2249 = vmatpush.msrb.mxu2 %v6368_v12 }
 0x53b   :  { %2274 = vmatpush.msra.mxu0 %v7057_v44 }
 0x53d   :  { %2275 = vmatpush.msra.mxu0 %v7060_v48 }
 0x53f   :  { %2276 = vmatpush.msra.mxu0 %v6373_v8  ;;  %v1687_v8 = vpop.f32.mrf.mxu2 }
 0x541   :  { %2277 = vmatpush.msra.mxu0 %v6376_v0 }
 0x543   :  { %2278 = vmatpush.msra.mxu0 %v6379_v19  ;;  %v1667_v19 = vpop.f32.mrf.mxu1 }
 0x545   :  { %2279 = vmatpush.msra.mxu0 %v6382_v4  ;;  %v1728_v4 = vadd.f32 %v1727_v59, %v1707_v45 }
 0x546   :  { %v1831_v12 = vpop.f32.mrf.mxu0 }
 0x547   :  { %2280 = vmatpush.msra.mxu0 %v6385_v28  ;;  %v1832_v0 = vadd.f32 %v1831_v12, %v5384_v17 }
 0x549   :  { %2281 = vmatpush.msra.mxu0 %v6388_v42  ;;  %v1688_v42 = vadd.f32 %v1687_v8, %v1667_v19 }
 0x54b   :  { %2282 = vmatpush.msra.mxu0 %v6391_v16  ;;  %v1747_v48 = vpop.f32.mrf.mxu1 }
 0x54c   :  { %v1811_v28 = vpop.f32.mrf.mxu3 }
 0x54d   :  { %2283 = vmatpush.msra.mxu0 %v6394_v22  ;;  %v1812_v16 = vadd.f32 %v1811_v28, %v5382_v27  ;;  %v1859_v22 = vadd.f32 %v1832_v0, %v1728_v4 }
 0x54f   :  { %2284 = vmatpush.msra.mxu0 %v6397_v61  ;;  %v1854_v61 = vadd.f32 %v1812_v16, %v1688_v42 }
 0x551   :  { %2285 = vmatpush.msra.mxu0 %v6400_v50  ;;  %v1855_v50 = vmul.f32 0.5, %v1854_v61  ;;  %v9740_v61 = vld [vmem:[#allocation30_spill] sm:$0xff] }
 0x553   :  { %2286 = vmatpush.msra.mxu0 %v6403_v35  ;;  %v1860_v35 = vmul.f32 0.5, %v1859_v22  ;;  %3422 = vtanh.f32 %v1855_v50  ;;  %v1851_v20 = vpop.f32.mrf.mxu1  ;;  %v9741_v50 = vld [vmem:[#allocation32_spill] sm:$0xff] }
 0x554   :  { %v1852_v45 = vadd.f32 %v1851_v20, %v5393_v18  ;;  %v9733_v20 = vld [vmem:[#allocation62_spill] sm:$0xff] }
 0x555   :  { %2287 = vmatpush.msra.mxu0 %v6406_v37  ;;  %v1767_v37 = vpop.f32.mrf.mxu2  ;;  %3424 = vtanh.f32 %v1860_v35  ;;  %v9742_v35 = vld [vmem:[#allocation66_spill] sm:$0xff] }
 0x557   :  { %2288 = vmatpush.msra.mxu0 %v6409_v29  ;;  %v1768_v29 = vadd.f32 %v1767_v37, %v1747_v48  ;;  %v9743_v37 = vld [vmem:[#allocation33_spill] sm:$0xff] }
 0x559   :  { %2289 = vmatpush.msra.mxu0 %v6414_v2  ;;  %v3423_v44 = vpop.eup %3422  ;;  %v1864_v12 = vadd.f32 %v6420_v32, %v1768_v29  ;;  %v9730_v32 = vld [vmem:[#allocation26_spill] sm:$0xff] }
 0x55a   :  { %v1857_v2 = vadd.f32 1.0, %v3423_v44  ;;  %v9739_v44 = vld [vmem:[#allocation65_spill] sm:$0xff]  ;;  %v9744_v29 = vld [vmem:[#allocation34_spill] sm:$0xff] }
 0x55b   :  { %v3425_v34 = vpop.eup %3424 }
 0x55c   :  { %v1858_v59 = vmul.f32 0.5, %v1857_v2  ;;  %v1862_v19 = vadd.f32 1.0, %v3425_v34  ;;  %v9732_v34 = vld [vmem:[#allocation27_spill] sm:$0xff] }
 0x55d   :  { %v9745_v2 = vld [vmem:[#allocation67_spill] sm:$0xff] }
 0x55e   :  { %v1865_v8 = vmul.f32 %v1864_v12, %v1858_v59  ;;  %v1863_v4 = vmul.f32 0.5, %v1862_v19  ;;  %v9746_v12 = vld [vmem:[#allocation35_spill] sm:$0xff]  ;;  %v9747_v59 = vld [vmem:[#allocation48_spill] sm:$0xff]  ;;  %v9750_v19 = vld [vmem:[#allocation49_spill] sm:$0xff] }
 0x560   :  { %v1866_v0 = vadd.f32 %v1865_v8, %v1852_v45  ;;  %v1868_v28 = vsub.f32 1.0, %v1863_v4  ;;  %v1870_v16 = vmul.f32 %v1863_v4, %v6425_v36  ;;  %v9731_v36 = vld [vmem:[#allocation61_spill] sm:$0xff]  ;;  %v9748_v45 = vld [vmem:[#allocation68_spill] sm:$0xff] }
 0x561   :  { %v9749_v8 = vld [vmem:[#allocation36_spill] sm:$0xff]  ;;  %v9752_v4 = vld [vmem:[#allocation37_spill] sm:$0xff] }
 0x562   :  { %3426 = vtanh.f32 %v1866_v0  ;;  %v9751_v0 = vld [vmem:[#allocation69_spill] sm:$0xff] }
 0x568   :  { %v3427_v42 = vpop.eup %3426 }
 0x569   :  { %v1869_v22 = vmul.f32 %v3427_v42, %v1868_v28  ;;  %v9753_v28 = vld [vmem:[#allocation50_spill] sm:$0xff] }
 0x56a   :  { %v9754_v42 = vld [vmem:[#allocation70_spill] sm:$0xff] }
 0x56b   :  { %v7082_v48 = vadd.f32 %v1870_v16, %v1869_v22  ;;  %v9755_v16 = vld [vmem:[#allocation38_spill] sm:$0xff]  ;;  %v9756_v22 = vld [vmem:[#allocation51_spill] sm:$0xff] }
 0x56d   :  { %1908 = vmatmul.f32.vlgmr.msra.gmra.mxu3 %v7082_v48  ;;  %1948 = vmatmul.f32.vlgmr.msra.gmra.mxu1 %v7082_v48 }
 0x56e   :  { %2052 = vmatpush.msra.mxu3 %v6429_v7  ;;  %2092 = vmatpush.msra.mxu1 %v6432_v51  ;;  %v9734_v7 = vld [vmem:[#allocation28_spill] sm:$0xff]  ;;  %v9735_v51 = vld [vmem:[#allocation63_spill] sm:$0xff] }
 0x570   :  { %2053 = vmatpush.msra.mxu3 %v6435_v58  ;;  %2093 = vmatpush.msra.mxu1 %v6438_v26  ;;  %v9736_v58 = vld [vmem:[#allocation29_spill] sm:$0xff]  ;;  %v9737_v26 = vld [vmem:[#allocation31_spill] sm:$0xff] }
 0x572   :  { %2054 = vmatpush.msra.mxu3 %v6441_v21  ;;  %2094 = vmatpush.msra.mxu1 %v9730_v32  ;;  %v9738_v21 = vld [vmem:[#allocation64_spill] sm:$0xff]  ;;  %v9757_v32 = vld [vmem:[#allocation71_spill] sm:$0xff] }
 0x574   :  { %2055 = vmatpush.msra.mxu3 %v9731_v36  ;;  %2095 = vmatpush.msra.mxu1 %v9732_v34  ;;  %v9758_v36 = vld [vmem:[#allocation39_spill] sm:$0xff]  ;;  %v9759_v34 = vld [vmem:[#allocation52_spill] sm:$0xff] }
 0x575   :  { %1988 = vmatmul.f32.vlgmr.msrb.gmra.mxu3 %v7082_v48  ;;  %2028 = vmatmul.f32.vlgmr.msrb.gmra.mxu1 %v7082_v48 }
 0x576   :  { %2056 = vmatpush.msra.mxu3 %v9733_v20  ;;  %2096 = vmatpush.msra.mxu1 %v9734_v7  ;;  %v9760_v20 = vld [vmem:[#allocation74_spill] sm:$0xff]  ;;  %v9761_v7 = vld [vmem:[#allocation40_spill] sm:$0xff] }
 0x578   :  { %2057 = vmatpush.msra.mxu3 %v9735_v51  ;;  %2097 = vmatpush.msra.mxu1 %v9736_v58  ;;  %v9762_v51 = vld [vmem:[#allocation53_spill] sm:$0xff] }
 0x579   :  { %v7128_v58 = vld [vmem:[#allocation3 + $0x140] sm:$0xff] }
 0x57a   :  { %2058 = vmatpush.msra.mxu3 %v9737_v26  ;;  %2098 = vmatpush.msra.mxu1 %v9738_v21  ;;  %v9763_v26 = vld [vmem:[#allocation75_spill] sm:$0xff]  ;;  %v7132_v21 = vld [vmem:[#allocation3 + $0x128] sm:$0xff] }
 0x57c   :  { %2059 = vmatpush.msra.mxu3 %v9739_v44  ;;  %2099 = vmatpush.msra.mxu1 %v9740_v61  ;;  %v9764_v44 = vld [vmem:[#allocation41_spill] sm:$0xff]  ;;  %v7136_v61 = vld [vmem:[#allocation3 + $0x110] sm:$0xff] }
 0x57e   :  { %2060 = vmatpush.msra.mxu3 %v9741_v50  ;;  %2100 = vmatpush.msra.mxu1 %v9742_v35  ;;  %v9765_v50 = vld [vmem:[#allocation54_spill] sm:$0xff]  ;;  %v7140_v35 = vld [vmem:[#allocation3 + $0xf8] sm:$0xff] }
 0x580   :  { %2061 = vmatpush.msra.mxu3 %v9743_v37  ;;  %2101 = vmatpush.msra.mxu1 %v9744_v29  ;;  %v9766_v37 = vld [vmem:[#allocation42_spill] sm:$0xff]  ;;  %v7144_v29 = vld [vmem:[#allocation3 + $0xe0] sm:$0xff] }
 0x582   :  { %2062 = vmatpush.msra.mxu3 %v9745_v2  ;;  %2102 = vmatpush.msra.mxu1 %v9746_v12  ;;  %v9767_v2 = vld [vmem:[#allocation55_spill] sm:$0xff]  ;;  %v7148_v12 = vld [vmem:[#allocation3 + $0xc8] sm:$0xff] }
 0x584   :  { %2063 = vmatpush.msra.mxu3 %v9747_v59  ;;  %2103 = vmatpush.msra.mxu1 %v9748_v45  ;;  %v9768_v59 = vld [vmem:[#allocation43_spill] sm:$0xff] }
 0x585   :  { %v7152_v45 = vld [vmem:[#allocation3 + $0xb0] sm:$0xff] }
 0x586   :  { %2064 = vmatpush.msra.mxu3 %v9749_v8  ;;  %2104 = vmatpush.msra.mxu1 %v9750_v19  ;;  %v9769_v8 = vld [vmem:[#allocation56_spill] sm:$0xff] }
 0x587   :  { %v7156_v19 = vld [vmem:[#allocation3 + $0x98] sm:$0xff] }
 0x588   :  { %2065 = vmatpush.msra.mxu3 %v9751_v0  ;;  %2105 = vmatpush.msra.mxu1 %v9752_v4  ;;  %v9770_v0 = vld [vmem:[#allocation77_spill] sm:$0xff] }
 0x589   :  { %v7160_v4 = vld [vmem:[#allocation3 + $0x80] sm:$0xff] }
 0x58a   :  { %2066 = vmatpush.msra.mxu3 %v9753_v28  ;;  %2106 = vmatpush.msra.mxu1 %v9754_v42  ;;  %9771 = vst [vmem:[#allocation24_spill] sm:$0xff] %v7160_v4  ;;  %v9772_v28 = vld [vmem:[#allocation80_spill] sm:$0xff]  ;;  %v7164_v42 = vld [vmem:[#allocation3 + $0x68] sm:$0xff] }
 0x58b   :  { %9773 = vst [vmem:[#allocation25_spill] sm:$0xff] %v7164_v42 }
 0x58c   :  { %2067 = vmatpush.msra.mxu3 %v9755_v16  ;;  %2107 = vmatpush.msra.mxu1 %v9756_v22  ;;  %v9774_v16 = vld [vmem:[#allocation44_spill] sm:$0xff]  ;;  %v7168_v22 = vld [vmem:[#allocation3 + $0x50] sm:$0xff] }
 0x58d   :  { %2068 = vmatmul.f32.vlgmr.msra.gmra.mxu3 %v7082_v48  ;;  %2108 = vmatmul.f32.vlgmr.msra.gmra.mxu1 %v7082_v48  ;;  %9775 = vst [vmem:[#allocation85_spill] sm:$0xff] %v7168_v22 }
 0x58e   :  { %2156 = vmatpush.msrb.mxu3 %v9757_v32  ;;  %2214 = vmatpush.msrb.mxu1 %v9758_v36  ;;  %v9776_v32 = vld [vmem:[#allocation57_spill] sm:$0xff]  ;;  %v7172_v36 = vld [vmem:[#allocation3 + $0x38] sm:$0xff] }
 0x58f   :  { %9777 = vst [vmem:[#allocation86_spill] sm:$0xff] %v7172_v36 }
 0x590   :  { %2157 = vmatpush.msrb.mxu3 %v9759_v34  ;;  %2215 = vmatpush.msrb.mxu1 %v9760_v20  ;;  %v9778_v34 = vld [vmem:[#allocation45_spill] sm:$0xff] }
 0x591   :  { %v7176_v20 = vld [vmem:[#allocation3 + $0x20] sm:$0xff] }
 0x592   :  { %2158 = vmatpush.msrb.mxu3 %v9761_v7  ;;  %2216 = vmatpush.msrb.mxu1 %v9762_v51  ;;  %9779 = vst [vmem:[#allocation106_spill] sm:$0xff] %v7176_v20  ;;  %v9780_v7 = vld [vmem:[#allocation58_spill] sm:$0xff]  ;;  %v9781_v51 = vld [vmem:[#allocation81_spill] sm:$0xff] }
 0x594   :  { %2159 = vmatpush.msrb.mxu3 %v7128_v58  ;;  %2217 = vmatpush.msrb.mxu1 %v9763_v26  ;;  %v9782_v26 = vld [vmem:[#allocation46_spill] sm:$0xff] }
 0x596   :  { %2160 = vmatpush.msrb.mxu3 %v7132_v21  ;;  %2218 = vmatpush.msrb.mxu1 %v9764_v44  ;;  %v9783_v44 = vld [vmem:[#allocation59_spill] sm:$0xff] }
 0x598   :  { %2161 = vmatpush.msrb.mxu3 %v7136_v61  ;;  %2219 = vmatpush.msrb.mxu1 %v9765_v50  ;;  %v9784_v50 = vld [vmem:[#allocation83_spill] sm:$0xff] }
 0x59a   :  { %2162 = vmatpush.msrb.mxu3 %v7140_v35  ;;  %2220 = vmatpush.msrb.mxu1 %v9766_v37  ;;  %v9785_v37 = vld [vmem:[#allocation47_spill] sm:$0xff] }
 0x59c   :  { %2163 = vmatpush.msrb.mxu3 %v7144_v29  ;;  %2221 = vmatpush.msrb.mxu1 %v9767_v2  ;;  %v9786_v2 = vld [vmem:[#allocation60_spill] sm:$0xff] }
 0x59e   :  { %2164 = vmatpush.msrb.mxu3 %v7148_v12  ;;  %2222 = vmatpush.msrb.mxu1 %v9768_v59  ;;  %v9787_v59 = vld [vmem:[#allocation87_spill] sm:$0xff] }
 0x5a0   :  { %2165 = vmatpush.msrb.mxu3 %v7152_v45  ;;  %2223 = vmatpush.msrb.mxu1 %v9769_v8  ;;  %v9788_v8 = vld [vmem:[#allocation89_spill] sm:$0xff] }
 0x5a2   :  { %2166 = vmatpush.msrb.mxu3 %v7156_v19  ;;  %2224 = vmatpush.msrb.mxu1 %v9770_v0  ;;  %v9789_v0 = vld [vmem:[#allocation91_spill] sm:$0xff] }
 0x5a4   :  { %2167 = vmatpush.msrb.mxu3 %v7160_v4  ;;  %2225 = vmatpush.msrb.mxu1 %v9772_v28  ;;  %v9790_v28 = vld [vmem:[#allocation94_spill] sm:$0xff] }
 0x5a6   :  { %2168 = vmatpush.msrb.mxu3 %v7164_v42  ;;  %2226 = vmatpush.msrb.mxu1 %v9774_v16  ;;  %v9791_v16 = vld [vmem:[#allocation96_spill] sm:$0xff] }
 0x5a8   :  { %2169 = vmatpush.msrb.mxu3 %v7168_v22  ;;  %2227 = vmatpush.msrb.mxu1 %v9776_v32  ;;  %v9792_v32 = vld [vmem:[#allocation100_spill] sm:$0xff] }
 0x5aa   :  { %2170 = vmatpush.msrb.mxu3 %v7172_v36  ;;  %2228 = vmatpush.msrb.mxu1 %v9778_v34  ;;  %v9793_v34 = vld [vmem:[#allocation102_spill] sm:$0xff] }
 0x5ac   :  { %2171 = vmatpush.msrb.mxu3 %v7176_v20  ;;  %2229 = vmatpush.msrb.mxu1 %v9780_v7  ;;  %v9794_v7 = vld [vmem:[#allocation104_spill] sm:$0xff]  ;;  %v9814_v20 = vld [vmem:[#allocation98_spill] sm:$0xff] }
 0x5ae   :  { %2254 = vmatpush.msra.mxu3 %v9781_v51  ;;  %2294 = vmatpush.msra.mxu1 %v9782_v26  ;;  %v9795_v51 = vld [vmem:[#allocation107_spill] sm:$0xff]  ;;  %v9796_v26 = vld [vmem:[#allocation112_spill] sm:$0xff] }
 0x5b0   :  { %2255 = vmatpush.msra.mxu3 %v9783_v44  ;;  %2295 = vmatpush.msra.mxu1 %v9784_v50  ;;  %v9797_v44 = vld [vmem:[#allocation114_spill] sm:$0xff]  ;;  %v9798_v50 = vld [vmem:[#allocation119_spill] sm:$0xff] }
 0x5b2   :  { %2256 = vmatpush.msra.mxu3 %v9785_v37  ;;  %2296 = vmatpush.msra.mxu1 %v9786_v2  ;;  %v9799_v37 = vld [vmem:[#allocation121_spill] sm:$0xff]  ;;  %v9800_v2 = vld [vmem:[#allocation126_spill] sm:$0xff] }
 0x5b4   :  { %2257 = vmatpush.msra.mxu3 %v9787_v59  ;;  %2297 = vmatpush.msra.mxu1 %v9788_v8  ;;  %v9801_v59 = vld [vmem:[#allocation13_spill] sm:$0xff]  ;;  %v9802_v8 = vld [vmem:[#allocation14_spill] sm:$0xff] }
 0x5b6   :  { %2258 = vmatpush.msra.mxu3 %v9789_v0  ;;  %2298 = vmatpush.msra.mxu1 %v9790_v28  ;;  %v9803_v0 = vld [vmem:[#allocation15_spill] sm:$0xff]  ;;  %v9804_v28 = vld [vmem:[#allocation16_spill] sm:$0xff] }
 0x5b8   :  { %2259 = vmatpush.msra.mxu3 %v9791_v16  ;;  %2299 = vmatpush.msra.mxu1 %v9792_v32  ;;  %v9805_v16 = vld [vmem:[#allocation17_spill] sm:$0xff]  ;;  %v9806_v32 = vld [vmem:[#allocation18_spill] sm:$0xff] }
 0x5ba   :  { %2260 = vmatpush.msra.mxu3 %v9793_v34  ;;  %2300 = vmatpush.msra.mxu1 %v9794_v7  ;;  %v9807_v34 = vld [vmem:[#allocation19_spill] sm:$0xff]  ;;  %v9808_v7 = vld [vmem:[#allocation78_spill] sm:$0xff] }
 0x5bc   :  { %2261 = vmatpush.msra.mxu3 %v9795_v51  ;;  %2301 = vmatpush.msra.mxu1 %v9796_v26  ;;  %v9809_v51 = vld [vmem:[#allocation79_spill] sm:$0xff]  ;;  %v9810_v26 = vld [vmem:[#allocation93_spill] sm:$0xff] }
 0x5be   :  { %2262 = vmatpush.msra.mxu3 %v9797_v44  ;;  %2302 = vmatpush.msra.mxu1 %v9798_v50  ;;  %v9811_v44 = vld [vmem:[#allocation20_spill] sm:$0xff] }
 0x5bf   :  { %v9812_v50 = vld [vmem:[#allocation84_spill] sm:$0xff] }
 0x5c0   :  { %2263 = vmatpush.msra.mxu3 %v9799_v37  ;;  %2303 = vmatpush.msra.mxu1 %v9800_v2  ;;  %v1929_v2 = vpop.f32.mrf.mxu0 }
 0x5c2   :  { %2264 = vmatpush.msra.mxu3 %v9801_v59  ;;  %2304 = vmatpush.msra.mxu1 %v9802_v8  ;;  %v1889_v8 = vpop.f32.mrf.mxu2 }
 0x5c4   :  { %2265 = vmatpush.msra.mxu3 %v9803_v0  ;;  %2305 = vmatpush.msra.mxu1 %v9804_v28 }
 0x5c6   :  { %2266 = vmatpush.msra.mxu3 %v9805_v16  ;;  %2306 = vmatpush.msra.mxu1 %v9806_v32  ;;  %v9813_v16 = vld [vmem:[#allocation99_spill] sm:$0xff] }
 0x5c8   :  { %2267 = vmatpush.msra.mxu3 %v9807_v34  ;;  %2307 = vmatpush.msra.mxu1 %v9808_v7 }
 0x5ca   :  { %2268 = vmatpush.msra.mxu3 %v9809_v51  ;;  %2308 = vmatpush.msra.mxu1 %v9810_v26  ;;  %v1969_v26 = vpop.f32.mrf.mxu2 }
 0x5cc   :  { %2269 = vmatpush.msra.mxu3 %v9811_v44  ;;  %2309 = vmatpush.msra.mxu1 %v9812_v50 }
 0x5ea   :  { %v1949_v37 = vpop.f32.mrf.mxu1 }
 0x5eb   :  { %v1950_v59 = vadd.f32 %v1949_v37, %v1929_v2  ;;  %v7217_v37 = vld [vmem:[%s8417_s3 + $0x1] ss:$0 sm:$0xff] }
 0x5ed   :  { %v2123_v32 = vadd.f32 %v1950_v59, %v9813_v16 }
 0x5ef   :  { %v2124_v7 = vmul.f32 0.5, %v2123_v32 }
 0x5f0   :  { %v1909_v0 = vpop.f32.mrf.mxu3 }
 0x5f1   :  { %v1910_v28 = vadd.f32 %v1909_v0, %v1889_v8  ;;  %v9815_v8 = vld [vmem:[#allocation116_spill] sm:$0xff] }
 0x5f3   :  { %v2118_v34 = vadd.f32 %v1910_v28, %v9814_v20 }
 0x5f5   :  { %v2119_v36 = vmul.f32 0.5, %v2118_v34 }
 0x5f7   :  { %3428 = vtanh.f32 %v2119_v36 }
 0x5f8   :  { %v1989_v51 = vpop.f32.mrf.mxu3  ;;  %3430 = vtanh.f32 %v2124_v7 }
 0x5f9   :  { %v1990_v22 = vadd.f32 %v1989_v51, %v1969_v26  ;;  %v9834_v51 = vld [vmem:[#allocation130_spill] sm:$0xff]  ;;  %v9835_v26 = vld [vmem:[#allocation131_spill] sm:$0xff] }
 0x5fb   :  { %v2128_v2 = vadd.f32 %v7217_v37, %v1990_v22  ;;  %v9833_v22 = vld [vmem:[#allocation129_spill] sm:$0xff] }
 0x5fd   :  { %v3429_v44 = vpop.eup %3428 }
 0x5fe   :  { %v2121_v42 = vadd.f32 1.0, %v3429_v44  ;;  %v3431_v50 = vpop.eup %3430  ;;  %v9836_v44 = vld [vmem:[#allocation132_spill] sm:$0xff] }
 0x5ff   :  { %v2126_v20 = vadd.f32 1.0, %v3431_v50  ;;  %v9837_v50 = vld [vmem:[#allocation133_spill] sm:$0xff] }
 0x600   :  { %v2122_v4 = vmul.f32 0.5, %v2121_v42  ;;  %v9832_v42 = vld [vmem:[#allocation128_spill] sm:$0xff] }
 0x601   :  { %v2127_v36 = vmul.f32 0.5, %v2126_v20  ;;  %v9840_v20 = vld [vmem:[#allocation136_spill] sm:$0xff] }
 0x602   :  { %v2129_v59 = vmul.f32 %v2128_v2, %v2122_v4  ;;  %v9831_v4 = vld [vmem:[#allocation82_spill] sm:$0xff] }
 0x603   :  { %v2132_v28 = vsub.f32 1.0, %v2127_v36  ;;  %v2134_v32 = vmul.f32 %v2127_v36, %v6700_v56  ;;  %v9816_v56 = vld [vmem:[#allocation88_spill] sm:$0xff]  ;;  %v9838_v2 = vld [vmem:[#allocation134_spill] sm:$0xff]  ;;  %v9843_v36 = vld [vmem:[#allocation139_spill] sm:$0xff] }
 0x604   :  { %v2130_v0 = vadd.f32 %v2129_v59, %v9815_v8  ;;  %v9839_v59 = vld [vmem:[#allocation135_spill] sm:$0xff]  ;;  %v9841_v8 = vld [vmem:[#allocation137_spill] sm:$0xff] }
 0x606   :  { %3432 = vtanh.f32 %v2130_v0  ;;  %v9842_v0 = vld [vmem:[#allocation138_spill] sm:$0xff] }
 0x60c   :  { %v3433_v16 = vpop.eup %3432 }
 0x60d   :  { %v2133_v34 = vmul.f32 %v3433_v16, %v2132_v28  ;;  %v9844_v28 = vld [vmem:[#allocation140_spill] sm:$0xff]  ;;  %v9845_v16 = vld [vmem:[#allocation141_spill] sm:$0xff] }
 0x60f   :  { %v7222_v7 = vadd.f32 %v2134_v32, %v2133_v34  ;;  %v9846_v32 = vld [vmem:[#allocation142_spill] sm:$0xff]  ;;  %v9847_v34 = vld [vmem:[#allocation143_spill] sm:$0xff] }
 0x611   :  { %2152 = vmatmul.f32.vlgmr.msra.gmra.mxu2 %v7222_v7  ;;  %2172 = vmatmul.f32.vlgmr.msrb.gmra.mxu3 %v7222_v7 }
 0x612   :  { %2192 = vmatmul.f32.vlgmr.msrb.gmra.mxu0 %v7222_v7  ;;  %2230 = vmatmul.f32.vlgmr.msrb.gmra.mxu1 %v7222_v7 }
 0x613   :  { %2334 = vmatpush.msrb.mxu3 %v6706_v1  ;;  %2374 = vmatpush.msrb.mxu1 %v6709_v54  ;;  %v9817_v1 = vld [vmem:[#allocation90_spill] sm:$0xff]  ;;  %v9818_v54 = vld [vmem:[#allocation92_spill] sm:$0xff] }
 0x614   :  { %2314 = vmatpush.msra.mxu2 %v6712_v62  ;;  %2354 = vmatpush.msrb.mxu0 %v6715_v6  ;;  %v9819_v62 = vld [vmem:[#allocation95_spill] sm:$0xff]  ;;  %v9820_v6 = vld [vmem:[#allocation97_spill] sm:$0xff] }
 0x615   :  { %2335 = vmatpush.msrb.mxu3 %v6718_v14  ;;  %2375 = vmatpush.msrb.mxu1 %v6721_v24  ;;  %v9821_v14 = vld [vmem:[#allocation101_spill] sm:$0xff]  ;;  %v9822_v24 = vld [vmem:[#allocation103_spill] sm:$0xff] }
 0x616   :  { %2315 = vmatpush.msra.mxu2 %v6724_v31  ;;  %2355 = vmatpush.msrb.mxu0 %v6727_v13  ;;  %v9823_v31 = vld [vmem:[#allocation105_spill] sm:$0xff]  ;;  %v9824_v13 = vld [vmem:[#allocation108_spill] sm:$0xff] }
 0x617   :  { %2336 = vmatpush.msrb.mxu3 %v6730_v33  ;;  %2376 = vmatpush.msrb.mxu1 %v6733_v52  ;;  %v9825_v33 = vld [vmem:[#allocation109_spill] sm:$0xff] }
 0x618   :  { %2316 = vmatpush.msra.mxu2 %v6736_v46  ;;  %2356 = vmatpush.msrb.mxu0 %v6739_v60  ;;  %v9826_v52 = vld [vmem:[#allocation113_spill] sm:$0xff]  ;;  %v9827_v46 = vld [vmem:[#allocation115_spill] sm:$0xff] }
 0x619   :  { %2337 = vmatpush.msrb.mxu3 %v6742_v3  ;;  %2377 = vmatpush.msrb.mxu1 %v6745_v49  ;;  %v9828_v60 = vld [vmem:[#allocation73_spill] sm:$0xff]  ;;  %v9829_v3 = vld [vmem:[#allocation72_spill] sm:$0xff]  ;;  %v9830_v49 = vld [vmem:[#allocation127_spill] sm:$0xff] }
 0x61a   :  { %2270 = vmatmul.f32.vlgmr.msra.gmra.mxu3 %v7222_v7  ;;  %2310 = vmatmul.f32.vlgmr.msra.gmra.mxu1 %v7222_v7 }
 0x61b   :  { %2338 = vmatpush.msrb.mxu3 %v9816_v56  ;;  %2378 = vmatpush.msrb.mxu1 %v9817_v1  ;;  %v9848_v56 = vld [vmem:[#allocation144_spill] sm:$0xff]  ;;  %v9849_v1 = vld [vmem:[#allocation145_spill] sm:$0xff] }
 0x61c   :  { %2317 = vmatpush.msra.mxu2 %v9818_v54  ;;  %2357 = vmatpush.msrb.mxu0 %v9819_v62  ;;  %v9850_v54 = vld [vmem:[#allocation146_spill] sm:$0xff]  ;;  %v9851_v62 = vld [vmem:[#allocation147_spill] sm:$0xff] }
 0x61d   :  { %2339 = vmatpush.msrb.mxu3 %v9820_v6  ;;  %2379 = vmatpush.msrb.mxu1 %v9821_v14  ;;  %v9852_v6 = vld [vmem:[#allocation148_spill] sm:$0xff]  ;;  %v9853_v14 = vld [vmem:[#allocation149_spill] sm:$0xff] }
 0x61e   :  { %2318 = vmatpush.msra.mxu2 %v9822_v24  ;;  %2358 = vmatpush.msrb.mxu0 %v9823_v31  ;;  %v9854_v24 = vld [vmem:[#allocation150_spill] sm:$0xff]  ;;  %v9855_v31 = vld [vmem:[#allocation151_spill] sm:$0xff] }
 0x61f   :  { %2340 = vmatpush.msrb.mxu3 %v9824_v13  ;;  %2380 = vmatpush.msrb.mxu1 %v9825_v33  ;;  %v9856_v13 = vld [vmem:[#allocation152_spill] sm:$0xff]  ;;  %v9857_v33 = vld [vmem:[#allocation153_spill] sm:$0xff] }
 0x620   :  { %2319 = vmatpush.msra.mxu2 %v9826_v52  ;;  %2359 = vmatpush.msrb.mxu0 %v9827_v46  ;;  %v9858_v52 = vld [vmem:[#allocation154_spill] sm:$0xff]  ;;  %v9859_v46 = vld [vmem:[#allocation155_spill] sm:$0xff] }
 0x621   :  { %2341 = vmatpush.msrb.mxu3 %v9828_v60  ;;  %2381 = vmatpush.msrb.mxu1 %v9829_v3  ;;  %v9860_v60 = vld [vmem:[#allocation156_spill] sm:$0xff]  ;;  %v9861_v3 = vld [vmem:[#allocation157_spill] sm:$0xff] }
 0x622   :  { %2320 = vmatpush.msra.mxu2 %v9830_v49  ;;  %2360 = vmatpush.msrb.mxu0 %v9831_v4  ;;  %v9862_v49 = vld [vmem:[#allocation158_spill] sm:$0xff]  ;;  %v9863_v4 = vld [vmem:[#allocation159_spill] sm:$0xff] }
 0x623   :  { %2342 = vmatpush.msrb.mxu3 %v9832_v42  ;;  %2382 = vmatpush.msrb.mxu1 %v9833_v22  ;;  %v9864_v42 = vld [vmem:[#allocation160_spill] sm:$0xff]  ;;  %v9865_v22 = vld [vmem:[#allocation161_spill] sm:$0xff] }
 0x624   :  { %2321 = vmatpush.msra.mxu2 %v9834_v51  ;;  %2361 = vmatpush.msrb.mxu0 %v9835_v26  ;;  %v9866_v51 = vld [vmem:[#allocation162_spill] sm:$0xff]  ;;  %v9867_v26 = vld [vmem:[#allocation163_spill] sm:$0xff] }
 0x625   :  { %2343 = vmatpush.msrb.mxu3 %v9836_v44  ;;  %2383 = vmatpush.msrb.mxu1 %v9837_v50  ;;  %v9868_v44 = vld [vmem:[#allocation164_spill] sm:$0xff]  ;;  %v9869_v50 = vld [vmem:[#allocation165_spill] sm:$0xff] }
 0x626   :  { %2322 = vmatpush.msra.mxu2 %v9838_v2  ;;  %2362 = vmatpush.msrb.mxu0 %v9839_v59  ;;  %v9870_v2 = vld [vmem:[#allocation166_spill] sm:$0xff]  ;;  %v9871_v59 = vld [vmem:[#allocation167_spill] sm:$0xff] }
 0x627   :  { %2344 = vmatpush.msrb.mxu3 %v9840_v20  ;;  %2384 = vmatpush.msrb.mxu1 %v9841_v8  ;;  %v9872_v20 = vld [vmem:[#allocation168_spill] sm:$0xff]  ;;  %v9873_v8 = vld [vmem:[#allocation169_spill] sm:$0xff] }
 0x628   :  { %2323 = vmatpush.msra.mxu2 %v9842_v0  ;;  %2363 = vmatpush.msrb.mxu0 %v9843_v36  ;;  %v9874_v0 = vld [vmem:[#allocation170_spill] sm:$0xff]  ;;  %v9875_v36 = vld [vmem:[#allocation171_spill] sm:$0xff] }
 0x629   :  { %2345 = vmatpush.msrb.mxu3 %v9844_v28  ;;  %2385 = vmatpush.msrb.mxu1 %v9845_v16  ;;  %v9876_v28 = vld [vmem:[#allocation172_spill] sm:$0xff]  ;;  %v9877_v16 = vld [vmem:[#allocation173_spill] sm:$0xff] }
 0x62a   :  { %2324 = vmatpush.msra.mxu2 %v9846_v32  ;;  %2364 = vmatpush.msrb.mxu0 %v9847_v34  ;;  %v9878_v32 = vld [vmem:[#allocation174_spill] sm:$0xff]  ;;  %v9879_v34 = vld [vmem:[#allocation175_spill] sm:$0xff] }
 0x62b   :  { %2346 = vmatpush.msrb.mxu3 %v9848_v56  ;;  %2386 = vmatpush.msrb.mxu1 %v9849_v1  ;;  %v9880_v56 = vld [vmem:[#allocation176_spill] sm:$0xff]  ;;  %v9881_v1 = vld [vmem:[#allocation177_spill] sm:$0xff] }
 0x62c   :  { %2325 = vmatpush.msra.mxu2 %v9850_v54  ;;  %2365 = vmatpush.msrb.mxu0 %v9851_v62  ;;  %v9882_v54 = vld [vmem:[#allocation178_spill] sm:$0xff]  ;;  %v9883_v62 = vld [vmem:[#allocation179_spill] sm:$0xff] }
 0x62d   :  { %2347 = vmatpush.msrb.mxu3 %v9852_v6  ;;  %2387 = vmatpush.msrb.mxu1 %v9853_v14  ;;  %v9884_v6 = vld [vmem:[#allocation180_spill] sm:$0xff]  ;;  %v9885_v14 = vld [vmem:[#allocation181_spill] sm:$0xff] }
 0x62e   :  { %2326 = vmatpush.msra.mxu2 %v9854_v24  ;;  %2366 = vmatpush.msrb.mxu0 %v9855_v31  ;;  %v9886_v24 = vld [vmem:[#allocation182_spill] sm:$0xff]  ;;  %v9887_v31 = vld [vmem:[#allocation183_spill] sm:$0xff] }
 0x62f   :  { %2348 = vmatpush.msrb.mxu3 %v9856_v13  ;;  %2388 = vmatpush.msrb.mxu1 %v9857_v33  ;;  %v9888_v13 = vld [vmem:[#allocation184_spill] sm:$0xff]  ;;  %v9889_v33 = vld [vmem:[#allocation185_spill] sm:$0xff] }
 0x630   :  { %2327 = vmatpush.msra.mxu2 %v9858_v52  ;;  %2367 = vmatpush.msrb.mxu0 %v9859_v46  ;;  %v7323_v52 = vld [vmem:[#allocation3 + $0x48] sm:$0xff]  ;;  %v7327_v46 = vld [vmem:[#allocation3 + $0x30] sm:$0xff] }
 0x631   :  { %2349 = vmatpush.msrb.mxu3 %v9860_v60  ;;  %2389 = vmatpush.msrb.mxu1 %v9861_v3  ;;  %v9890_v60 = vld [vmem:[#allocation186_spill] sm:$0xff]  ;;  %v7348_v3 = vld [vmem:[#allocation6 + $0x540] sm:$0xff] }
 0x632   :  { %2350 = vmatmul.f32.vlgmr.msrb.gmra.mxu3 %v7222_v7  ;;  %2390 = vmatmul.f32.vlgmr.msrb.gmra.mxu1 %v7222_v7 }
 0x633   :  { %2414 = vmatpush.msra.mxu3 %v9862_v49  ;;  %2328 = vmatpush.msra.mxu2 %v9863_v4  ;;  %v7392_v49 = vld [vmem:[#allocation6 + $0x330] sm:$0xff]  ;;  %v7396_v4 = vld [vmem:[#allocation6 + $0x300] sm:$0xff] }
 0x634   :  { %2368 = vmatpush.msrb.mxu0 %v9864_v42  ;;  %2478 = vmatpush.msra.mxu1 %v9865_v22  ;;  %v9894_v42 = vld [vmem:[#allocation23_spill] sm:$0xff]  ;;  %v7404_v22 = vld [vmem:[#allocation6 + $0x548] sm:$0xff] }
 0x635   :  { %2415 = vmatpush.msra.mxu3 %v9866_v51  ;;  %2329 = vmatpush.msra.mxu2 %v9867_v26  ;;  %v7407_v51 = vld [vmem:[#allocation6 + $0x518] sm:$0xff]  ;;  %v7410_v26 = vld [vmem:[#allocation6 + $0x4e8] sm:$0xff] }
 0x636   :  { %2369 = vmatpush.msrb.mxu0 %v9868_v44  ;;  %2479 = vmatpush.msra.mxu1 %v9869_v50  ;;  %v7413_v44 = vld [vmem:[#allocation6 + $0x4b8] sm:$0xff]  ;;  %v7416_v50 = vld [vmem:[#allocation6 + $0x488] sm:$0xff] }
 0x637   :  { %2416 = vmatpush.msra.mxu3 %v9870_v2  ;;  %v7419_v2 = vld [vmem:[#allocation6 + $0x458] sm:$0xff] }
 0x638   :  { %2480 = vmatpush.msra.mxu1 %v9871_v59  ;;  %v7422_v59 = vld [vmem:[#allocation6 + $0x428] sm:$0xff] }
 0x639   :  { %2417 = vmatpush.msra.mxu3 %v9872_v20  ;;  %v7425_v20 = vld [vmem:[#allocation6 + $0x3f8] sm:$0xff] }
 0x63a   :  { %2481 = vmatpush.msra.mxu1 %v9873_v8  ;;  %v7428_v8 = vld [vmem:[#allocation6 + $0x3c8] sm:$0xff] }
 0x63b   :  { %2418 = vmatpush.msra.mxu3 %v9874_v0  ;;  %v7431_v0 = vld [vmem:[#allocation6 + $0x398] sm:$0xff] }
 0x63c   :  { %2482 = vmatpush.msra.mxu1 %v9875_v36  ;;  %9895 = vst [vmem:[#allocation26_spill] sm:$0xff] %v7431_v0  ;;  %v2049_v36 = vpop.f32.mrf.mxu2 }
 0x63d   :  { %2419 = vmatpush.msra.mxu3 %v9876_v28  ;;  %v2069_v28 = vpop.f32.mrf.mxu3 }
 0x63e   :  { %2483 = vmatpush.msra.mxu1 %v9877_v16  ;;  %v7434_v16 = vld [vmem:[#allocation6 + $0x368] sm:$0xff] }
 0x63f   :  { %2420 = vmatpush.msra.mxu3 %v9878_v32  ;;  %9896 = vst [vmem:[#allocation61_spill] sm:$0xff] %v7434_v16  ;;  %v7437_v32 = vld [vmem:[#allocation6 + $0x338] sm:$0xff] }
 0x640   :  { %2484 = vmatpush.msra.mxu1 %v9879_v34  ;;  %9897 = vst [vmem:[#allocation27_spill] sm:$0xff] %v7437_v32  ;;  %v7440_v34 = vld [vmem:[#allocation6 + $0x308] sm:$0xff] }
 0x641   :  { %2421 = vmatpush.msra.mxu3 %v9880_v56  ;;  %9898 = vst [vmem:[#allocation62_spill] sm:$0xff] %v7440_v34  ;;  %v2029_v56 = vpop.f32.mrf.mxu1 }
 0x642   :  { %2485 = vmatpush.msra.mxu1 %v9881_v1  ;;  %v2009_v1 = vpop.f32.mrf.mxu0 }
 0x643   :  { %2422 = vmatpush.msra.mxu3 %v9882_v54 }
 0x644   :  { %2486 = vmatpush.msra.mxu1 %v9883_v62 }
 0x645   :  { %2423 = vmatpush.msra.mxu3 %v9884_v6  ;;  %v2030_v6 = vadd.f32 %v2029_v56, %v2009_v1 }
 0x646   :  { %2487 = vmatpush.msra.mxu1 %v9885_v14  ;;  %v2070_v14 = vadd.f32 %v2069_v28, %v2049_v36  ;;  %v7448_v36 = vld [vmem:[%s8417_s3 + $0x9] ss:$0 sm:$0xff] }
 0x647   :  { %2424 = vmatpush.msra.mxu3 %v9886_v24 }
 0x648   :  { %2488 = vmatpush.msra.mxu1 %v9887_v31 }
 0x649   :  { %2425 = vmatpush.msra.mxu3 %v6968_v39  ;;  %v7332_v39 = vld [vmem:[#allocation3 + $0x18] sm:$0xff] }
 0x64a   :  { %2489 = vmatpush.msra.mxu1 %v9888_v13 }
 0x64b   :  { %2426 = vmatpush.msra.mxu3 %v6974_v55  ;;  %v7336_v55 = vld [vmem:[#allocation6 + $0x5d0] sm:$0xff] }
 0x64c   :  { %2490 = vmatpush.msra.mxu1 %v9889_v33 }
 0x64d   :  { %2427 = vmatpush.msra.mxu3 %v6980_v43  ;;  %v7344_v43 = vld [vmem:[#allocation6 + $0x570] sm:$0xff] }
 0x64e   :  { %2491 = vmatpush.msra.mxu1 %v7323_v52 }
 0x64f   :  { %2428 = vmatpush.msra.mxu3 %v6984_v15  ;;  %v7340_v15 = vld [vmem:[#allocation6 + $0x5a0] sm:$0xff] }
 0x650   :  { %2492 = vmatpush.msra.mxu1 %v7327_v46 }
 0x651   :  { %2429 = vmatpush.msra.mxu3 %v9890_v60 }
 0x652   :  { %2430 = vmatmul.f32.vlgmr.msra.gmra.mxu3 %v7222_v7  ;;  %2493 = vmatpush.msra.mxu1 %v7332_v39 }
 0x653   :  { %2518 = vmatpush.msrb.mxu3 %v6993_v63  ;;  %v7352_v63 = vld [vmem:[#allocation6 + $0x510] sm:$0xff] }
 0x654   :  { %2576 = vmatpush.msrb.mxu1 %v7336_v55 }
 0x655   :  { %2519 = vmatpush.msrb.mxu3 %v6997_v38  ;;  %v7356_v38 = vld [vmem:[#allocation6 + $0x4e0] sm:$0xff] }
 0x656   :  { %2577 = vmatpush.msrb.mxu1 %v7340_v15 }
 0x657   :  { %2520 = vmatpush.msrb.mxu3 %v7001_v53  ;;  %v7360_v53 = vld [vmem:[#allocation6 + $0x4b0] sm:$0xff] }
 0x658   :  { %2578 = vmatpush.msrb.mxu1 %v7344_v43 }
 0x659   :  { %2521 = vmatpush.msrb.mxu3 %v7005_v10  ;;  %v7364_v10 = vld [vmem:[#allocation6 + $0x480] sm:$0xff] }
 0x65a   :  { %2579 = vmatpush.msrb.mxu1 %v7348_v3 }
 0x65b   :  { %2522 = vmatpush.msrb.mxu3 %v7009_v5  ;;  %v7368_v5 = vld [vmem:[#allocation6 + $0x450] sm:$0xff] }
 0x65c   :  { %2580 = vmatpush.msrb.mxu1 %v7352_v63 }
 0x65d   :  { %2523 = vmatpush.msrb.mxu3 %v7013_v41  ;;  %v7372_v41 = vld [vmem:[#allocation6 + $0x420] sm:$0xff] }
 0x65e   :  { %2581 = vmatpush.msrb.mxu1 %v7356_v38 }
 0x65f   :  { %2524 = vmatpush.msrb.mxu3 %v7017_v23  ;;  %v7376_v23 = vld [vmem:[#allocation6 + $0x3f0] sm:$0xff] }
 0x660   :  { %2582 = vmatpush.msrb.mxu1 %v7360_v53 }
 0x661   :  { %2525 = vmatpush.msrb.mxu3 %v7021_v40  ;;  %v7380_v40 = vld [vmem:[#allocation6 + $0x3c0] sm:$0xff] }
 0x662   :  { %2583 = vmatpush.msrb.mxu1 %v7364_v10 }
 0x663   :  { %2526 = vmatpush.msrb.mxu3 %v7025_v25  ;;  %v7384_v25 = vld [vmem:[#allocation6 + $0x390] sm:$0xff] }
 0x664   :  { %2584 = vmatpush.msrb.mxu1 %v7368_v5 }
 0x665   :  { %2527 = vmatpush.msrb.mxu3 %v7029_v30  ;;  %v7388_v30 = vld [vmem:[#allocation6 + $0x360] sm:$0xff] }
 0x666   :  { %2585 = vmatpush.msrb.mxu1 %v7372_v41 }
 0x667   :  { %2528 = vmatpush.msrb.mxu3 %v7033_v47  ;;  %v9891_v47 = vld [vmem:[#allocation76_spill] sm:$0xff] }
 0x668   :  { %2586 = vmatpush.msrb.mxu1 %v7376_v23 }
 0x669   :  { %2529 = vmatpush.msrb.mxu3 %v7037_v57  ;;  %v9892_v57 = vld [vmem:[#allocation21_spill] sm:$0xff] }
 0x66a   :  { %2587 = vmatpush.msrb.mxu1 %v7380_v40 }
 0x66b   :  { %2530 = vmatpush.msrb.mxu3 %v7041_v11  ;;  %v9893_v11 = vld [vmem:[#allocation22_spill] sm:$0xff] }
 0x66c   :  { %2588 = vmatpush.msrb.mxu1 %v7384_v25 }
 0x66d   :  { %2531 = vmatpush.msrb.mxu3 %v7045_v9  ;;  %v7401_v9 = vld [vmem:[#allocation6 + $0x578] sm:$0xff] }
 0x66e   :  { %2589 = vmatpush.msrb.mxu1 %v7388_v30 }
 0x66f   :  { %2532 = vmatpush.msrb.mxu3 %v9891_v47 }
 0x670   :  { %2590 = vmatpush.msrb.mxu1 %v7392_v49 }
 0x671   :  { %2533 = vmatpush.msrb.mxu3 %v9892_v57  ;;  %v2089_v57 = vpop.f32.mrf.mxu0 }
 0x672   :  { %2591 = vmatpush.msrb.mxu1 %v7396_v4 }
 0x673   :  { %2616 = vmatpush.msra.mxu3 %v9893_v11  ;;  %v2109_v11 = vpop.f32.mrf.mxu1 }
 0x675   :  { %2617 = vmatpush.msra.mxu3 %v9894_v42  ;;  %v2110_v42 = vadd.f32 %v2109_v11, %v2089_v57  ;;  %v7475_v57 = vld [vmem:[#allocation6 + $0x560] sm:$0xff]  ;;  %v7478_v11 = vld [vmem:[#allocation6 + $0x568] sm:$0xff] }
 0x677   :  { %2618 = vmatpush.msra.mxu3 %v7401_v9  ;;  %v2206_v28 = vadd.f32 %v7448_v36, %v2110_v42  ;;  %v7483_v42 = vld [vmem:[#allocation6 + $0x530] sm:$0xff] }
 0x678   :  { %9899 = vst [vmem:[#allocation28_spill] sm:$0xff] %v7483_v42 }
 0x679   :  { %2619 = vmatpush.msra.mxu3 %v7404_v22 }
 0x67b   :  { %2620 = vmatpush.msra.mxu3 %v7407_v51 }
 0x67d   :  { %2621 = vmatpush.msra.mxu3 %v7410_v26 }
 0x67f   :  { %2622 = vmatpush.msra.mxu3 %v7413_v44 }
 0x681   :  { %2623 = vmatpush.msra.mxu3 %v7416_v50 }
 0x683   :  { %2624 = vmatpush.msra.mxu3 %v7419_v2 }
 0x685   :  { %2625 = vmatpush.msra.mxu3 %v7422_v59 }
 0x687   :  { %2626 = vmatpush.msra.mxu3 %v7425_v20 }
 0x689   :  { %2627 = vmatpush.msra.mxu3 %v7428_v8 }
 0x68b   :  { %2628 = vmatpush.msra.mxu3 %v7431_v0 }
 0x68d   :  { %2629 = vmatpush.msra.mxu3 %v7434_v16 }
 0x68f   :  { %2630 = vmatpush.msra.mxu3 %v7437_v32  ;;  %v2193_v16 = vpop.f32.mrf.mxu0 }
 0x690   :  { %v2194_v1 = vadd.f32 %v2193_v16, %v5393_v18  ;;  %v7460_v16 = vld [vmem:[#allocation6 + $0x5f8] sm:$0xff] }
 0x691   :  { %2631 = vmatpush.msra.mxu3 %v7440_v34 }
 0x694   :  { %v2153_v54 = vpop.f32.mrf.mxu2  ;;  %v2173_v62 = vpop.f32.mrf.mxu3 }
 0x695   :  { %v2154_v24 = vadd.f32 %v2153_v54, %v5382_v27  ;;  %v2174_v31 = vadd.f32 %v2173_v62, %v5384_v17 }
 0x697   :  { %v2196_v13 = vadd.f32 %v2154_v24, %v2030_v6  ;;  %v2201_v33 = vadd.f32 %v2174_v31, %v2070_v14 }
 0x699   :  { %v2197_v60 = vmul.f32 0.5, %v2196_v13  ;;  %v2202_v47 = vmul.f32 0.5, %v2201_v33 }
 0x69b   :  { %3434 = vtanh.f32 %v2197_v60  ;;  %v7457_v60 = vld [vmem:[#allocation6 + $0x5f0] sm:$0xff] }
 0x69c   :  { %3436 = vtanh.f32 %v2202_v47  ;;  %v7472_v47 = vld [vmem:[#allocation6 + $0x598] sm:$0xff] }
 0x6a1   :  { %v3435_v34 = vpop.eup %3434 }
 0x6a2   :  { %v2199_v32 = vadd.f32 1.0, %v3435_v34  ;;  %v3437_v0 = vpop.eup %3436 }
 0x6a3   :  { %v2204_v62 = vadd.f32 1.0, %v3437_v0  ;;  %v7463_v0 = vld [vmem:[#allocation6 + $0x5c0] sm:$0xff] }
 0x6a4   :  { %v2200_v56 = vmul.f32 0.5, %v2199_v32  ;;  %v7466_v32 = vld [vmem:[#allocation6 + $0x5c8] sm:$0xff] }
 0x6a5   :  { %v2205_v14 = vmul.f32 0.5, %v2204_v62  ;;  %v7498_v62 = vld [vmem:[#allocation6 + $0x4d8] sm:$0xff] }
 0x6a6   :  { %v2207_v54 = vmul.f32 %v2206_v28, %v2200_v56  ;;  %v7486_v28 = vld [vmem:[#allocation6 + $0x538] sm:$0xff]  ;;  %v7489_v56 = vld [vmem:[#allocation6 + $0x500] sm:$0xff]  ;;  %9904 = vst [vmem:[#allocation65_spill] sm:$0xff] %v7498_v62 }
 0x6a7   :  { %v2210_v24 = vsub.f32 1.0, %v2205_v14  ;;  %v2212_v13 = vmul.f32 %v2205_v14, %v7082_v48  ;;  %v7469_v48 = vld [vmem:[#allocation6 + $0x590] sm:$0xff]  ;;  %9900 = vst [vmem:[#allocation63_spill] sm:$0xff] %v7486_v28  ;;  %v7504_v14 = vld [vmem:[#allocation6 + $0x4a8] sm:$0xff] }
 0x6a8   :  { %v2208_v6 = vadd.f32 %v2207_v54, %v2194_v1  ;;  %9901 = vst [vmem:[#allocation29_spill] sm:$0xff] %v7489_v56  ;;  %v7492_v1 = vld [vmem:[#allocation6 + $0x508] sm:$0xff]  ;;  %v7495_v54 = vld [vmem:[#allocation6 + $0x4d0] sm:$0xff] }
 0x6a9   :  { %9902 = vst [vmem:[#allocation31_spill] sm:$0xff] %v7492_v1 }
 0x6aa   :  { %3438 = vtanh.f32 %v2208_v6  ;;  %9903 = vst [vmem:[#allocation64_spill] sm:$0xff] %v7495_v54  ;;  %v7501_v6 = vld [vmem:[#allocation6 + $0x4a0] sm:$0xff] }
 0x6ab   :  { %9905 = vst [vmem:[#allocation30_spill] sm:$0xff] %v7501_v6 }
 0x6ac   :  { %9906 = vst [vmem:[#allocation32_spill] sm:$0xff] %v7504_v14 }
 0x6b0   :  { %v3439_v31 = vpop.eup %3438 }
 0x6b1   :  { %v2211_v34 = vmul.f32 %v3439_v31, %v2210_v24  ;;  %v7507_v24 = vld [vmem:[#allocation6 + $0x470] sm:$0xff]  ;;  %v7510_v31 = vld [vmem:[#allocation6 + $0x478] sm:$0xff] }
 0x6b2   :  { %9907 = vst [vmem:[#allocation66_spill] sm:$0xff] %v7507_v24 }
 0x6b3   :  { %v7453_v33 = vadd.f32 %v2212_v13, %v2211_v34  ;;  %9908 = vst [vmem:[#allocation33_spill] sm:$0xff] %v7510_v31  ;;  %v7513_v34 = vld [vmem:[#allocation6 + $0x440] sm:$0xff]  ;;  %v7516_v13 = vld [vmem:[#allocation6 + $0x448] sm:$0xff] }
 0x6b4   :  { %9909 = vst [vmem:[#allocation34_spill] sm:$0xff] %v7513_v34 }
 0x6b5   :  { %2250 = vmatmul.f32.vlgmr.msrb.gmra.mxu2 %v7453_v33  ;;  %2290 = vmatmul.f32.vlgmr.msra.gmra.mxu0 %v7453_v33  ;;  %9910 = vst [vmem:[#allocation67_spill] sm:$0xff] %v7516_v13 }
 0x6b6   :  { %2394 = vmatpush.msrb.mxu2 %v7457_v60  ;;  %2434 = vmatpush.msra.mxu0 %v7460_v16 }
 0x6b8   :  { %2395 = vmatpush.msrb.mxu2 %v7463_v0  ;;  %2435 = vmatpush.msra.mxu0 %v7466_v32 }
 0x6ba   :  { %2396 = vmatpush.msrb.mxu2 %v7469_v48  ;;  %2436 = vmatpush.msra.mxu0 %v7472_v47 }
 0x6bc   :  { %2397 = vmatpush.msrb.mxu2 %v7475_v57  ;;  %2437 = vmatpush.msra.mxu0 %v7478_v11 }
 0x6bd   :  { %2330 = vmatmul.f32.vlgmr.msra.gmra.mxu2 %v7453_v33  ;;  %2370 = vmatmul.f32.vlgmr.msrb.gmra.mxu0 %v7453_v33 }
 0x6be   :  { %2398 = vmatpush.msrb.mxu2 %v7483_v42  ;;  %2438 = vmatpush.msra.mxu0 %v7486_v28 }
 0x6c0   :  { %2399 = vmatpush.msrb.mxu2 %v7489_v56  ;;  %2439 = vmatpush.msra.mxu0 %v7492_v1 }
 0x6c2   :  { %2400 = vmatpush.msrb.mxu2 %v7495_v54  ;;  %2440 = vmatpush.msra.mxu0 %v7498_v62 }
 0x6c4   :  { %2401 = vmatpush.msrb.mxu2 %v7501_v6  ;;  %2441 = vmatpush.msra.mxu0 %v7504_v14  ;;  %v7519_v6 = vld [vmem:[#allocation6 + $0x410] sm:$0xff]  ;;  %v7522_v14 = vld [vmem:[#allocation6 + $0x418] sm:$0xff] }
 0x6c5   :  { %9911 = vst [vmem:[#allocation35_spill] sm:$0xff] %v7519_v6 }
 0x6c6   :  { %2402 = vmatpush.msrb.mxu2 %v7507_v24  ;;  %2442 = vmatpush.msra.mxu0 %v7510_v31  ;;  %9912 = vst [vmem:[#allocation48_spill] sm:$0xff] %v7522_v14  ;;  %v7525_v24 = vld [vmem:[#allocation6 + $0x3e0] sm:$0xff]  ;;  %v7528_v31 = vld [vmem:[#allocation6 + $0x3e8] sm:$0xff] }
 0x6c7   :  { %9913 = vst [vmem:[#allocation68_spill] sm:$0xff] %v7525_v24 }
 0x6c8   :  { %2403 = vmatpush.msrb.mxu2 %v7513_v34  ;;  %2443 = vmatpush.msra.mxu0 %v7516_v13  ;;  %9914 = vst [vmem:[#allocation36_spill] sm:$0xff] %v7528_v31  ;;  %v7531_v34 = vld [vmem:[#allocation6 + $0x3b0] sm:$0xff]  ;;  %v7534_v13 = vld [vmem:[#allocation6 + $0x3b8] sm:$0xff] }
 0x6c9   :  { %9915 = vst [vmem:[#allocation49_spill] sm:$0xff] %v7531_v34 }
 0x6ca   :  { %2404 = vmatpush.msrb.mxu2 %v7519_v6  ;;  %2444 = vmatpush.msra.mxu0 %v7522_v14  ;;  %9916 = vst [vmem:[#allocation69_spill] sm:$0xff] %v7534_v13  ;;  %v7537_v6 = vld [vmem:[#allocation6 + $0x380] sm:$0xff]  ;;  %v7540_v14 = vld [vmem:[#allocation6 + $0x388] sm:$0xff] }
 0x6cb   :  { %9917 = vst [vmem:[#allocation37_spill] sm:$0xff] %v7537_v6 }
 0x6cc   :  { %2405 = vmatpush.msrb.mxu2 %v7525_v24  ;;  %2445 = vmatpush.msra.mxu0 %v7528_v31  ;;  %9918 = vst [vmem:[#allocation50_spill] sm:$0xff] %v7540_v14  ;;  %v7543_v24 = vld [vmem:[#allocation6 + $0x350] sm:$0xff]  ;;  %v7546_v31 = vld [vmem:[#allocation6 + $0x358] sm:$0xff] }
 0x6cd   :  { %9919 = vst [vmem:[#allocation70_spill] sm:$0xff] %v7543_v24 }
 0x6ce   :  { %2406 = vmatpush.msrb.mxu2 %v7531_v34  ;;  %2446 = vmatpush.msra.mxu0 %v7534_v13  ;;  %9920 = vst [vmem:[#allocation38_spill] sm:$0xff] %v7546_v31  ;;  %v7549_v34 = vld [vmem:[#allocation6 + $0x320] sm:$0xff]  ;;  %v7552_v13 = vld [vmem:[#allocation6 + $0x328] sm:$0xff] }
 0x6cf   :  { %9921 = vst [vmem:[#allocation51_spill] sm:$0xff] %v7549_v34 }
 0x6d0   :  { %2407 = vmatpush.msrb.mxu2 %v7537_v6  ;;  %2447 = vmatpush.msra.mxu0 %v7540_v14  ;;  %9922 = vst [vmem:[#allocation71_spill] sm:$0xff] %v7552_v13  ;;  %v7557_v14 = vld [vmem:[#allocation3 + $0x188] sm:$0xff] }
 0x6d1   :  { %9923 = vst [vmem:[#allocation39_spill] sm:$0xff] %v7557_v14  ;;  %v7572_v6 = vld [vmem:[#allocation6 + $0x270] sm:$0xff] }
 0x6d2   :  { %2408 = vmatpush.msrb.mxu2 %v7543_v24  ;;  %2448 = vmatpush.msra.mxu0 %v7546_v31  ;;  %v7560_v24 = vld [vmem:[#allocation6 + $0x2d0] sm:$0xff]  ;;  %v7563_v31 = vld [vmem:[#allocation3 + $0x170] sm:$0xff]  ;;  %9928 = vst [vmem:[#allocation75_spill] sm:$0xff] %v7572_v6 }
 0x6d3   :  { %9924 = vst [vmem:[#allocation52_spill] sm:$0xff] %v7560_v24 }
 0x6d4   :  { %2409 = vmatpush.msrb.mxu2 %v7549_v34  ;;  %2449 = vmatpush.msra.mxu0 %v7552_v13  ;;  %9925 = vst [vmem:[#allocation74_spill] sm:$0xff] %v7563_v31  ;;  %v7566_v34 = vld [vmem:[#allocation6 + $0x2a0] sm:$0xff] }
 0x6d5   :  { %2410 = vmatmul.f32.vlgmr.msrb.gmra.mxu2 %v7453_v33  ;;  %2450 = vmatmul.f32.vlgmr.msra.gmra.mxu0 %v7453_v33  ;;  %9926 = vst [vmem:[#allocation40_spill] sm:$0xff] %v7566_v34  ;;  %v7569_v13 = vld [vmem:[#allocation3 + $0x158] sm:$0xff] }
 0x6d6   :  { %2498 = vmatpush.msra.mxu2 %v7557_v14  ;;  %2556 = vmatpush.msrb.mxu0 %v7560_v24  ;;  %9927 = vst [vmem:[#allocation53_spill] sm:$0xff] %v7569_v13  ;;  %v7576_v14 = vld [vmem:[#allocation6 + $0x240] sm:$0xff] }
 0x6d7   :  { %9929 = vst [vmem:[#allocation41_spill] sm:$0xff] %v7576_v14 }
 0x6d8   :  { %2499 = vmatpush.msra.mxu2 %v7563_v31  ;;  %2557 = vmatpush.msrb.mxu0 %v7566_v34  ;;  %v7580_v31 = vld [vmem:[#allocation6 + $0x210] sm:$0xff]  ;;  %v7584_v34 = vld [vmem:[#allocation6 + $0x1e0] sm:$0xff] }
 0x6d9   :  { %9930 = vst [vmem:[#allocation54_spill] sm:$0xff] %v7580_v31 }
 0x6da   :  { %2500 = vmatpush.msra.mxu2 %v7569_v13  ;;  %2558 = vmatpush.msrb.mxu0 %v7572_v6  ;;  %9931 = vst [vmem:[#allocation42_spill] sm:$0xff] %v7584_v34  ;;  %v7588_v6 = vld [vmem:[#allocation6 + $0x1b0] sm:$0xff] }
 0x6db   :  { %9932 = vst [vmem:[#allocation55_spill] sm:$0xff] %v7588_v6 }
 0x6dc   :  { %2501 = vmatpush.msra.mxu2 %v7128_v58  ;;  %2559 = vmatpush.msrb.mxu0 %v7576_v14  ;;  %v7592_v58 = vld [vmem:[#allocation6 + $0x180] sm:$0xff]  ;;  %v9980_v14 = vld [vmem:[#allocation110_spill] sm:$0xff] }
 0x6dd   :  { %9933 = vst [vmem:[#allocation43_spill] sm:$0xff] %v7592_v58 }
 0x6de   :  { %2502 = vmatpush.msra.mxu2 %v7132_v21  ;;  %2560 = vmatpush.msrb.mxu0 %v7580_v31  ;;  %v7596_v21 = vld [vmem:[#allocation6 + $0x150] sm:$0xff]  ;;  %v9979_v31 = vld [vmem:[#allocation111_spill] sm:$0xff] }
 0x6df   :  { %9934 = vst [vmem:[#allocation56_spill] sm:$0xff] %v7596_v21 }
 0x6e0   :  { %2503 = vmatpush.msra.mxu2 %v7136_v61  ;;  %2561 = vmatpush.msrb.mxu0 %v7584_v34  ;;  %v7600_v61 = vld [vmem:[#allocation6 + $0x120] sm:$0xff] }
 0x6e1   :  { %9935 = vst [vmem:[#allocation77_spill] sm:$0xff] %v7600_v61 }
 0x6e2   :  { %2504 = vmatpush.msra.mxu2 %v7140_v35  ;;  %2562 = vmatpush.msrb.mxu0 %v7588_v6  ;;  %v7604_v35 = vld [vmem:[#allocation6 + $0xf0] sm:$0xff] }
 0x6e3   :  { %9936 = vst [vmem:[#allocation80_spill] sm:$0xff] %v7604_v35 }
 0x6e4   :  { %2505 = vmatpush.msra.mxu2 %v7144_v29  ;;  %2563 = vmatpush.msrb.mxu0 %v7592_v58  ;;  %v9937_v29 = vld [vmem:[#allocation24_spill] sm:$0xff] }
 0x6e5   :  { %v7608_v58 = vld [vmem:[#allocation6 + $0xc0] sm:$0xff] }
 0x6e6   :  { %2506 = vmatpush.msra.mxu2 %v7148_v12  ;;  %2564 = vmatpush.msrb.mxu0 %v7596_v21  ;;  %9938 = vst [vmem:[#allocation44_spill] sm:$0xff] %v7608_v58  ;;  %v9939_v12 = vld [vmem:[#allocation25_spill] sm:$0xff]  ;;  %v7612_v21 = vld [vmem:[#allocation6 + $0x90] sm:$0xff] }
 0x6e7   :  { %9940 = vst [vmem:[#allocation57_spill] sm:$0xff] %v7612_v21 }
 0x6e8   :  { %2507 = vmatpush.msra.mxu2 %v7152_v45  ;;  %2565 = vmatpush.msrb.mxu0 %v7600_v61  ;;  %v9941_v45 = vld [vmem:[#allocation85_spill] sm:$0xff]  ;;  %v7616_v61 = vld [vmem:[#allocation6 + $0x60] sm:$0xff] }
 0x6e9   :  { %9942 = vst [vmem:[#allocation45_spill] sm:$0xff] %v7616_v61 }
 0x6ea   :  { %2508 = vmatpush.msra.mxu2 %v7156_v19  ;;  %2566 = vmatpush.msrb.mxu0 %v7604_v35  ;;  %v9943_v19 = vld [vmem:[#allocation86_spill] sm:$0xff] }
 0x6eb   :  { %v7620_v35 = vld [vmem:[#allocation6 + $0x30] sm:$0xff] }
 0x6ec   :  { %2509 = vmatpush.msra.mxu2 %v9937_v29  ;;  %2567 = vmatpush.msrb.mxu0 %v7608_v58  ;;  %9944 = vst [vmem:[#allocation58_spill] sm:$0xff] %v7620_v35  ;;  %v9945_v29 = vld [vmem:[#allocation106_spill] sm:$0xff]  ;;  %v7624_v58 = vld [vmem:[#allocation6] sm:$0xff] }
 0x6ed   :  { %9946 = vst [vmem:[#allocation81_spill] sm:$0xff] %v7624_v58 }
 0x6ee   :  { %2510 = vmatpush.msra.mxu2 %v9939_v12  ;;  %2568 = vmatpush.msrb.mxu0 %v7612_v21  ;;  %v7627_v12 = vld [vmem:[#allocation6 + $0x2d8] sm:$0xff] }
 0x6ef   :  { %9947 = vst [vmem:[#allocation46_spill] sm:$0xff] %v7627_v12 }
 0x6f0   :  { %2511 = vmatpush.msra.mxu2 %v9941_v45  ;;  %2569 = vmatpush.msrb.mxu0 %v7616_v61  ;;  %v7630_v45 = vld [vmem:[#allocation6 + $0x2e0] sm:$0xff]  ;;  %v7633_v61 = vld [vmem:[#allocation6 + $0x2a8] sm:$0xff] }
 0x6f1   :  { %9948 = vst [vmem:[#allocation59_spill] sm:$0xff] %v7630_v45 }
 0x6f2   :  { %2512 = vmatpush.msra.mxu2 %v9943_v19  ;;  %2570 = vmatpush.msrb.mxu0 %v7620_v35  ;;  %9949 = vst [vmem:[#allocation83_spill] sm:$0xff] %v7633_v61  ;;  %v7636_v19 = vld [vmem:[#allocation6 + $0x2b0] sm:$0xff]  ;;  %v2271_v35 = vpop.f32.mrf.mxu3 }
 0x6f3   :  { %9950 = vst [vmem:[#allocation47_spill] sm:$0xff] %v7636_v19 }
 0x6f4   :  { %2513 = vmatpush.msra.mxu2 %v9945_v29  ;;  %2571 = vmatpush.msrb.mxu0 %v7624_v58  ;;  %v7639_v29 = vld [vmem:[#allocation6 + $0x278] sm:$0xff]  ;;  %v7642_v58 = vld [vmem:[#allocation6 + $0x280] sm:$0xff] }
 0x6f5   :  { %9951 = vst [vmem:[#allocation60_spill] sm:$0xff] %v7639_v29 }
 0x6f6   :  { %2596 = vmatpush.msrb.mxu2 %v7627_v12  ;;  %2636 = vmatpush.msra.mxu0 %v7630_v45  ;;  %9952 = vst [vmem:[#allocation87_spill] sm:$0xff] %v7642_v58  ;;  %v7645_v12 = vld [vmem:[#allocation6 + $0x248] sm:$0xff]  ;;  %v7648_v45 = vld [vmem:[#allocation6 + $0x250] sm:$0xff] }
 0x6f7   :  { %9953 = vst [vmem:[#allocation89_spill] sm:$0xff] %v7645_v12 }
 0x6f8   :  { %2597 = vmatpush.msrb.mxu2 %v7633_v61  ;;  %2637 = vmatpush.msra.mxu0 %v7636_v19  ;;  %9954 = vst [vmem:[#allocation91_spill] sm:$0xff] %v7648_v45  ;;  %v7651_v61 = vld [vmem:[#allocation6 + $0x218] sm:$0xff]  ;;  %v7654_v19 = vld [vmem:[#allocation6 + $0x220] sm:$0xff] }
 0x6f9   :  { %9955 = vst [vmem:[#allocation94_spill] sm:$0xff] %v7651_v61 }
 0x6fa   :  { %2598 = vmatpush.msrb.mxu2 %v7639_v29  ;;  %2638 = vmatpush.msra.mxu0 %v7642_v58  ;;  %9956 = vst [vmem:[#allocation96_spill] sm:$0xff] %v7654_v19  ;;  %v7657_v29 = vld [vmem:[#allocation6 + $0x1e8] sm:$0xff]  ;;  %v7660_v58 = vld [vmem:[#allocation6 + $0x1f0] sm:$0xff] }
 0x6fb   :  { %9957 = vst [vmem:[#allocation100_spill] sm:$0xff] %v7657_v29 }
 0x6fc   :  { %2599 = vmatpush.msrb.mxu2 %v7645_v12  ;;  %2639 = vmatpush.msra.mxu0 %v7648_v45  ;;  %9958 = vst [vmem:[#allocation102_spill] sm:$0xff] %v7660_v58  ;;  %v7663_v12 = vld [vmem:[#allocation6 + $0x1b8] sm:$0xff]  ;;  %v7666_v45 = vld [vmem:[#allocation6 + $0x1c0] sm:$0xff] }
 0x6fd   :  { %9959 = vst [vmem:[#allocation104_spill] sm:$0xff] %v7663_v12 }
 0x6fe   :  { %2600 = vmatpush.msrb.mxu2 %v7651_v61  ;;  %2640 = vmatpush.msra.mxu0 %v7654_v19  ;;  %9960 = vst [vmem:[#allocation107_spill] sm:$0xff] %v7666_v45  ;;  %v7669_v61 = vld [vmem:[#allocation6 + $0x188] sm:$0xff]  ;;  %v7672_v19 = vld [vmem:[#allocation6 + $0x190] sm:$0xff] }
 0x6ff   :  { %9961 = vst [vmem:[#allocation112_spill] sm:$0xff] %v7669_v61 }
 0x700   :  { %2601 = vmatpush.msrb.mxu2 %v7657_v29  ;;  %2641 = vmatpush.msra.mxu0 %v7660_v58  ;;  %9962 = vst [vmem:[#allocation114_spill] sm:$0xff] %v7672_v19  ;;  %v7675_v29 = vld [vmem:[#allocation6 + $0x158] sm:$0xff]  ;;  %v7678_v58 = vld [vmem:[#allocation6 + $0x160] sm:$0xff] }
 0x701   :  { %9963 = vst [vmem:[#allocation119_spill] sm:$0xff] %v7675_v29 }
 0x702   :  { %2602 = vmatpush.msrb.mxu2 %v7663_v12  ;;  %2642 = vmatpush.msra.mxu0 %v7666_v45  ;;  %9964 = vst [vmem:[#allocation121_spill] sm:$0xff] %v7678_v58  ;;  %v7681_v12 = vld [vmem:[#allocation6 + $0x128] sm:$0xff]  ;;  %v7684_v45 = vld [vmem:[#allocation6 + $0x130] sm:$0xff] }
 0x703   :  { %9965 = vst [vmem:[#allocation126_spill] sm:$0xff] %v7681_v12 }
 0x704   :  { %2603 = vmatpush.msrb.mxu2 %v7669_v61  ;;  %2643 = vmatpush.msra.mxu0 %v7672_v19  ;;  %9966 = vst [vmem:[#allocation13_spill] sm:$0xff] %v7684_v45  ;;  %v7687_v61 = vld [vmem:[#allocation6 + $0xf8] sm:$0xff]  ;;  %v7690_v19 = vld [vmem:[#allocation6 + $0x100] sm:$0xff] }
 0x705   :  { %9967 = vst [vmem:[#allocation14_spill] sm:$0xff] %v7687_v61 }
 0x706   :  { %2604 = vmatpush.msrb.mxu2 %v7675_v29  ;;  %2644 = vmatpush.msra.mxu0 %v7678_v58  ;;  %9968 = vst [vmem:[#allocation15_spill] sm:$0xff] %v7690_v19  ;;  %v7693_v29 = vld [vmem:[#allocation6 + $0xc8] sm:$0xff]  ;;  %v7696_v58 = vld [vmem:[#allocation6 + $0xd0] sm:$0xff] }
 0x707   :  { %9969 = vst [vmem:[#allocation16_spill] sm:$0xff] %v7693_v29 }
 0x708   :  { %2605 = vmatpush.msrb.mxu2 %v7681_v12  ;;  %2645 = vmatpush.msra.mxu0 %v7684_v45  ;;  %9970 = vst [vmem:[#allocation17_spill] sm:$0xff] %v7696_v58  ;;  %v7699_v12 = vld [vmem:[#allocation6 + $0x98] sm:$0xff]  ;;  %v7702_v45 = vld [vmem:[#allocation6 + $0xa0] sm:$0xff] }
 0x709   :  { %9971 = vst [vmem:[#allocation18_spill] sm:$0xff] %v7699_v12 }
 0x70a   :  { %2606 = vmatpush.msrb.mxu2 %v7687_v61  ;;  %2646 = vmatpush.msra.mxu0 %v7690_v19  ;;  %9972 = vst [vmem:[#allocation19_spill] sm:$0xff] %v7702_v45  ;;  %v7705_v61 = vld [vmem:[#allocation6 + $0x68] sm:$0xff]  ;;  %v7708_v19 = vld [vmem:[#allocation6 + $0x70] sm:$0xff] }
 0x70b   :  { %9973 = vst [vmem:[#allocation78_spill] sm:$0xff] %v7705_v61 }
 0x70c   :  { %2607 = vmatpush.msrb.mxu2 %v7693_v29  ;;  %2647 = vmatpush.msra.mxu0 %v7696_v58  ;;  %9974 = vst [vmem:[#allocation79_spill] sm:$0xff] %v7708_v19  ;;  %v7711_v29 = vld [vmem:[#allocation6 + $0x38] sm:$0xff]  ;;  %v7714_v58 = vld [vmem:[#allocation6 + $0x40] sm:$0xff] }
 0x70d   :  { %9975 = vst [vmem:[#allocation93_spill] sm:$0xff] %v7711_v29 }
 0x70e   :  { %2608 = vmatpush.msrb.mxu2 %v7699_v12  ;;  %2648 = vmatpush.msra.mxu0 %v7702_v45  ;;  %9976 = vst [vmem:[#allocation20_spill] sm:$0xff] %v7714_v58  ;;  %v7717_v12 = vld [vmem:[#allocation6 + $0x8] sm:$0xff]  ;;  %v7720_v45 = vld [vmem:[#allocation6 + $0x10] sm:$0xff] }
 0x70f   :  { %9977 = vst [vmem:[#allocation84_spill] sm:$0xff] %v7717_v12 }
 0x710   :  { %2609 = vmatpush.msrb.mxu2 %v7705_v61  ;;  %2649 = vmatpush.msra.mxu0 %v7708_v19  ;;  %9978 = vst [vmem:[#allocation99_spill] sm:$0xff] %v7720_v45  ;;  %v2231_v19 = vpop.f32.mrf.mxu1 }
 0x712   :  { %2610 = vmatpush.msrb.mxu2 %v7711_v29  ;;  %2650 = vmatpush.msra.mxu0 %v7714_v58 }
 0x714   :  { %2611 = vmatpush.msrb.mxu2 %v7717_v12  ;;  %2651 = vmatpush.msra.mxu0 %v7720_v45 }
 0x718   :  { %v2311_v12 = vpop.f32.mrf.mxu1 }
 0x732   :  { %v2291_v61 = vpop.f32.mrf.mxu0 }
 0x733   :  { %v2292_v21 = vadd.f32 %v2291_v61, %v2271_v35 }
 0x735   :  { %v2465_v29 = vadd.f32 %v2292_v21, %v9979_v31  ;;  %v7758_v21 = vld [vmem:[#allocation6 + $0x288] sm:$0xff] }
 0x737   :  { %v2466_v58 = vmul.f32 0.5, %v2465_v29  ;;  %v7767_v29 = vld [vmem:[#allocation6 + $0x588] sm:$0xff] }
 0x738   :  { %v2251_v6 = vpop.f32.mrf.mxu2 }
 0x739   :  { %v2252_v34 = vadd.f32 %v2251_v6, %v2231_v19  ;;  %v9981_v6 = vld [vmem:[#allocation120_spill] sm:$0xff] }
 0x73b   :  { %v2460_v13 = vadd.f32 %v2252_v34, %v9980_v14 }
 0x73d   :  { %v2461_v24 = vmul.f32 0.5, %v2460_v13 }
 0x73f   :  { %3440 = vtanh.f32 %v2461_v24 }
 0x740   :  { %v2331_v62 = vpop.f32.mrf.mxu2  ;;  %3442 = vtanh.f32 %v2466_v58 }
 0x741   :  { %v2332_v54 = vadd.f32 %v2331_v62, %v2311_v12  ;;  %v7755_v62 = vld [vmem:[#allocation6 + $0x5b8] sm:$0xff]  ;;  %v7761_v12 = vld [vmem:[#allocation6 + $0x290] sm:$0xff] }
 0x743   :  { %v2470_v61 = vadd.f32 %v7217_v37, %v2332_v54  ;;  %v7734_v37 = vld [vmem:[#allocation6 + $0x2e8] sm:$0xff]  ;;  %v7752_v54 = vld [vmem:[#allocation6 + $0x5b0] sm:$0xff] }
 0x745   :  { %v3441_v1 = vpop.eup %3440 }
 0x746   :  { %v2463_v56 = vadd.f32 1.0, %v3441_v1  ;;  %v3443_v45 = vpop.eup %3442  ;;  %v7749_v1 = vld [vmem:[#allocation6 + $0x2c0] sm:$0xff] }
 0x747   :  { %v2468_v42 = vadd.f32 1.0, %v3443_v45  ;;  %v7764_v45 = vld [vmem:[#allocation6 + $0x580] sm:$0xff] }
 0x748   :  { %v2464_v28 = vmul.f32 0.5, %v2463_v56  ;;  %v7746_v56 = vld [vmem:[#allocation6 + $0x2b8] sm:$0xff] }
 0x749   :  { %v2469_v31 = vmul.f32 0.5, %v2468_v42  ;;  %v7737_v42 = vld [vmem:[#allocation6 + $0x2f0] sm:$0xff] }
 0x74a   :  { %v2471_v35 = vmul.f32 %v2470_v61, %v2464_v28  ;;  %v7743_v28 = vld [vmem:[#allocation6 + $0x5e8] sm:$0xff]  ;;  %v7770_v61 = vld [vmem:[#allocation6 + $0x258] sm:$0xff] }
 0x74b   :  { %v2474_v14 = vsub.f32 1.0, %v2469_v31  ;;  %v2476_v24 = vmul.f32 %v2469_v31, %v7222_v7  ;;  %v7740_v7 = vld [vmem:[#allocation6 + $0x5e0] sm:$0xff]  ;;  %v7784_v31 = vld [vmem:[#allocation6 + $0x550] sm:$0xff] }
 0x74c   :  { %v2472_v19 = vadd.f32 %v2471_v35, %v9981_v6  ;;  %v7773_v35 = vld [vmem:[#allocation6 + $0x260] sm:$0xff]  ;;  %v7778_v6 = vld [vmem:[#allocation6 + $0x228] sm:$0xff]  ;;  %9983 = vst [vmem:[#allocation116_spill] sm:$0xff] %v7784_v31 }
 0x74e   :  { %3444 = vtanh.f32 %v2472_v19  ;;  %v7781_v19 = vld [vmem:[#allocation6 + $0x230] sm:$0xff] }
 0x74f   :  { %9982 = vst [vmem:[#allocation98_spill] sm:$0xff] %v7781_v19 }
 0x754   :  { %v3445_v34 = vpop.eup %3444 }
 0x755   :  { %v2475_v13 = vmul.f32 %v3445_v34, %v2474_v14  ;;  %v7787_v14 = vld [vmem:[#allocation6 + $0x558] sm:$0xff] }
 0x756   :  { %9984 = vst [vmem:[#allocation88_spill] sm:$0xff] %v7787_v14  ;;  %v7790_v34 = vld [vmem:[#allocation6 + $0x1f8] sm:$0xff] }
 0x757   :  { %v7728_v58 = vadd.f32 %v2476_v24, %v2475_v13  ;;  %9985 = vst [vmem:[#allocation90_spill] sm:$0xff] %v7790_v34  ;;  %v7793_v24 = vld [vmem:[#allocation6 + $0x200] sm:$0xff] }
 0x758   :  { %9986 = vst [vmem:[#allocation92_spill] sm:$0xff] %v7793_v24  ;;  %v7796_v13 = vld [vmem:[#allocation6 + $0x520] sm:$0xff] }
 0x759   :  { %2494 = vmatmul.f32.vlgmr.msra.gmra.mxu1 %v7728_v58  ;;  %2514 = vmatmul.f32.vlgmr.msra.gmra.mxu2 %v7728_v58  ;;  %9987 = vst [vmem:[#allocation95_spill] sm:$0xff] %v7796_v13 }
 0x75a   :  { %2534 = vmatmul.f32.vlgmr.msrb.gmra.mxu3 %v7728_v58  ;;  %2572 = vmatmul.f32.vlgmr.msrb.gmra.mxu0 %v7728_v58 }
 0x75b   :  { %2676 = vmatpush.msra.mxu2 %v7734_v37  ;;  %2716 = vmatpush.msrb.mxu0 %v7737_v42 }
 0x75c   :  { %2656 = vmatpush.msra.mxu1 %v7740_v7  ;;  %2696 = vmatpush.msrb.mxu3 %v7743_v28 }
 0x75d   :  { %2677 = vmatpush.msra.mxu2 %v7746_v56  ;;  %2717 = vmatpush.msrb.mxu0 %v7749_v1 }
 0x75e   :  { %2657 = vmatpush.msra.mxu1 %v7752_v54  ;;  %2697 = vmatpush.msrb.mxu3 %v7755_v62 }
 0x75f   :  { %2678 = vmatpush.msra.mxu2 %v7758_v21  ;;  %2718 = vmatpush.msrb.mxu0 %v7761_v12 }
 0x760   :  { %2658 = vmatpush.msra.mxu1 %v7764_v45  ;;  %2698 = vmatpush.msrb.mxu3 %v7767_v29 }
 0x761   :  { %2679 = vmatpush.msra.mxu2 %v7770_v61  ;;  %2719 = vmatpush.msrb.mxu0 %v7773_v35 }
 0x762   :  { %2612 = vmatmul.f32.vlgmr.msrb.gmra.mxu2 %v7728_v58  ;;  %2652 = vmatmul.f32.vlgmr.msra.gmra.mxu0 %v7728_v58 }
 0x763   :  { %2680 = vmatpush.msra.mxu2 %v7778_v6  ;;  %2720 = vmatpush.msrb.mxu0 %v7781_v19  ;;  %v7799_v19 = vld [vmem:[#allocation6 + $0x528] sm:$0xff] }
 0x764   :  { %2659 = vmatpush.msra.mxu1 %v7784_v31  ;;  %2699 = vmatpush.msrb.mxu3 %v7787_v14  ;;  %9988 = vst [vmem:[#allocation97_spill] sm:$0xff] %v7799_v19  ;;  %v7802_v31 = vld [vmem:[#allocation6 + $0x1c8] sm:$0xff]  ;;  %v7805_v14 = vld [vmem:[#allocation6 + $0x1d0] sm:$0xff] }
 0x765   :  { %2681 = vmatpush.msra.mxu2 %v7790_v34  ;;  %2721 = vmatpush.msrb.mxu0 %v7793_v24  ;;  %9989 = vst [vmem:[#allocation101_spill] sm:$0xff] %v7802_v31  ;;  %v7808_v34 = vld [vmem:[#allocation6 + $0x4f0] sm:$0xff]  ;;  %v7811_v24 = vld [vmem:[#allocation6 + $0x4f8] sm:$0xff] }
 0x766   :  { %2660 = vmatpush.msra.mxu1 %v7796_v13  ;;  %2700 = vmatpush.msrb.mxu3 %v7799_v19  ;;  %9990 = vst [vmem:[#allocation103_spill] sm:$0xff] %v7805_v14  ;;  %v7814_v13 = vld [vmem:[#allocation6 + $0x198] sm:$0xff]  ;;  %v7817_v19 = vld [vmem:[#allocation6 + $0x1a0] sm:$0xff] }
 0x767   :  { %2682 = vmatpush.msra.mxu2 %v7802_v31  ;;  %2722 = vmatpush.msrb.mxu0 %v7805_v14  ;;  %9991 = vst [vmem:[#allocation105_spill] sm:$0xff] %v7808_v34  ;;  %v7820_v31 = vld [vmem:[#allocation6 + $0x4c0] sm:$0xff]  ;;  %v7823_v14 = vld [vmem:[#allocation6 + $0x4c8] sm:$0xff] }
 0x768   :  { %2661 = vmatpush.msra.mxu1 %v7808_v34  ;;  %9992 = vst [vmem:[#allocation108_spill] sm:$0xff] %v7811_v24  ;;  %2701 = vmatpush.msrb.mxu3 %v7811_v24  ;;  %v7826_v34 = vld [vmem:[#allocation6 + $0x168] sm:$0xff]  ;;  %v7829_v24 = vld [vmem:[#allocation6 + $0x170] sm:$0xff] }
 0x769   :  { %9993 = vst [vmem:[#allocation109_spill] sm:$0xff] %v7814_v13  ;;  %2683 = vmatpush.msra.mxu2 %v7814_v13  ;;  %2723 = vmatpush.msrb.mxu0 %v7817_v19  ;;  %v7832_v13 = vld [vmem:[#allocation6 + $0x490] sm:$0xff] }
 0x76a   :  { %9994 = vst [vmem:[#allocation113_spill] sm:$0xff] %v7817_v19  ;;  %2662 = vmatpush.msra.mxu1 %v7820_v31  ;;  %2702 = vmatpush.msrb.mxu3 %v7823_v14  ;;  %v7835_v19 = vld [vmem:[#allocation6 + $0x498] sm:$0xff] }
 0x76b   :  { %9995 = vst [vmem:[#allocation115_spill] sm:$0xff] %v7820_v31  ;;  %2684 = vmatpush.msra.mxu2 %v7826_v34  ;;  %2724 = vmatpush.msrb.mxu0 %v7829_v24  ;;  %v7838_v31 = vld [vmem:[#allocation6 + $0x138] sm:$0xff] }
 0x76c   :  { %9996 = vst [vmem:[#allocation73_spill] sm:$0xff] %v7823_v14  ;;  %2663 = vmatpush.msra.mxu1 %v7832_v13  ;;  %2703 = vmatpush.msrb.mxu3 %v7835_v19  ;;  %v7841_v14 = vld [vmem:[#allocation6 + $0x140] sm:$0xff] }
 0x76d   :  { %9997 = vst [vmem:[#allocation72_spill] sm:$0xff] %v7826_v34  ;;  %2685 = vmatpush.msra.mxu2 %v7838_v31  ;;  %2725 = vmatpush.msrb.mxu0 %v7841_v14  ;;  %v7844_v34 = vld [vmem:[#allocation6 + $0x460] sm:$0xff] }
 0x76e   :  { %9998 = vst [vmem:[#allocation127_spill] sm:$0xff] %v7829_v24  ;;  %2664 = vmatpush.msra.mxu1 %v7844_v34  ;;  %v7847_v24 = vld [vmem:[#allocation6 + $0x468] sm:$0xff] }
 0x76f   :  { %9999 = vst [vmem:[#allocation82_spill] sm:$0xff] %v7832_v13  ;;  %2704 = vmatpush.msrb.mxu3 %v7847_v24  ;;  %v7850_v13 = vld [vmem:[#allocation6 + $0x108] sm:$0xff] }
 0x770   :  { %10000 = vst [vmem:[#allocation128_spill] sm:$0xff] %v7835_v19  ;;  %2686 = vmatpush.msra.mxu2 %v7850_v13  ;;  %v7853_v19 = vld [vmem:[#allocation6 + $0x110] sm:$0xff] }
 0x771   :  { %10001 = vst [vmem:[#allocation129_spill] sm:$0xff] %v7838_v31  ;;  %2726 = vmatpush.msrb.mxu0 %v7853_v19  ;;  %v7856_v31 = vld [vmem:[#allocation6 + $0x430] sm:$0xff] }
 0x772   :  { %10002 = vst [vmem:[#allocation130_spill] sm:$0xff] %v7841_v14  ;;  %2665 = vmatpush.msra.mxu1 %v7856_v31  ;;  %v7859_v14 = vld [vmem:[#allocation6 + $0x438] sm:$0xff] }
 0x773   :  { %10003 = vst [vmem:[#allocation131_spill] sm:$0xff] %v7844_v34  ;;  %2705 = vmatpush.msrb.mxu3 %v7859_v14  ;;  %v7862_v34 = vld [vmem:[#allocation6 + $0xd8] sm:$0xff] }
 0x774   :  { %10004 = vst [vmem:[#allocation132_spill] sm:$0xff] %v7847_v24  ;;  %2687 = vmatpush.msra.mxu2 %v7862_v34  ;;  %v7865_v24 = vld [vmem:[#allocation6 + $0xe0] sm:$0xff] }
 0x775   :  { %10005 = vst [vmem:[#allocation133_spill] sm:$0xff] %v7850_v13  ;;  %2727 = vmatpush.msrb.mxu0 %v7865_v24  ;;  %v7868_v13 = vld [vmem:[#allocation6 + $0x400] sm:$0xff] }
 0x776   :  { %10006 = vst [vmem:[#allocation134_spill] sm:$0xff] %v7853_v19  ;;  %2666 = vmatpush.msra.mxu1 %v7868_v13  ;;  %v7871_v19 = vld [vmem:[#allocation6 + $0x408] sm:$0xff] }
 0x777   :  { %10007 = vst [vmem:[#allocation135_spill] sm:$0xff] %v7856_v31  ;;  %2706 = vmatpush.msrb.mxu3 %v7871_v19  ;;  %v7874_v31 = vld [vmem:[#allocation6 + $0xa8] sm:$0xff] }
 0x778   :  { %10008 = vst [vmem:[#allocation136_spill] sm:$0xff] %v7859_v14  ;;  %2688 = vmatpush.msra.mxu2 %v7874_v31  ;;  %v7877_v14 = vld [vmem:[#allocation6 + $0xb0] sm:$0xff] }
 0x779   :  { %10009 = vst [vmem:[#allocation137_spill] sm:$0xff] %v7862_v34  ;;  %2728 = vmatpush.msrb.mxu0 %v7877_v14  ;;  %v7880_v34 = vld [vmem:[#allocation6 + $0x3d0] sm:$0xff] }
 0x77a   :  { %10010 = vst [vmem:[#allocation138_spill] sm:$0xff] %v7865_v24  ;;  %2667 = vmatpush.msra.mxu1 %v7880_v34  ;;  %v7883_v24 = vld [vmem:[#allocation6 + $0x3d8] sm:$0xff] }
 0x77b   :  { %10011 = vst [vmem:[#allocation139_spill] sm:$0xff] %v7868_v13  ;;  %2707 = vmatpush.msrb.mxu3 %v7883_v24  ;;  %v7886_v13 = vld [vmem:[#allocation6 + $0x78] sm:$0xff] }
 0x77c   :  { %10012 = vst [vmem:[#allocation140_spill] sm:$0xff] %v7871_v19  ;;  %2689 = vmatpush.msra.mxu2 %v7886_v13  ;;  %v7889_v19 = vld [vmem:[#allocation6 + $0x80] sm:$0xff] }
 0x77d   :  { %10013 = vst [vmem:[#allocation141_spill] sm:$0xff] %v7874_v31  ;;  %2729 = vmatpush.msrb.mxu0 %v7889_v19  ;;  %v7892_v31 = vld [vmem:[#allocation6 + $0x3a0] sm:$0xff] }
 0x77e   :  { %10014 = vst [vmem:[#allocation142_spill] sm:$0xff] %v7877_v14  ;;  %2668 = vmatpush.msra.mxu1 %v7892_v31  ;;  %v7895_v14 = vld [vmem:[#allocation6 + $0x3a8] sm:$0xff] }
 0x77f   :  { %10015 = vst [vmem:[#allocation143_spill] sm:$0xff] %v7880_v34  ;;  %2708 = vmatpush.msrb.mxu3 %v7895_v14  ;;  %v7898_v34 = vld [vmem:[#allocation6 + $0x48] sm:$0xff] }
 0x780   :  { %10016 = vst [vmem:[#allocation144_spill] sm:$0xff] %v7883_v24  ;;  %2690 = vmatpush.msra.mxu2 %v7898_v34  ;;  %v7901_v24 = vld [vmem:[#allocation6 + $0x50] sm:$0xff] }
 0x781   :  { %10017 = vst [vmem:[#allocation145_spill] sm:$0xff] %v7886_v13  ;;  %2730 = vmatpush.msrb.mxu0 %v7901_v24  ;;  %v7904_v13 = vld [vmem:[#allocation6 + $0x370] sm:$0xff] }
 0x782   :  { %10018 = vst [vmem:[#allocation146_spill] sm:$0xff] %v7889_v19  ;;  %2669 = vmatpush.msra.mxu1 %v7904_v13  ;;  %v7907_v19 = vld [vmem:[#allocation6 + $0x378] sm:$0xff] }
 0x783   :  { %10019 = vst [vmem:[#allocation147_spill] sm:$0xff] %v7892_v31  ;;  %2709 = vmatpush.msrb.mxu3 %v7907_v19  ;;  %v7910_v31 = vld [vmem:[#allocation6 + $0x18] sm:$0xff] }
 0x784   :  { %10020 = vst [vmem:[#allocation148_spill] sm:$0xff] %v7895_v14  ;;  %2691 = vmatpush.msra.mxu2 %v7910_v31  ;;  %v7913_v14 = vld [vmem:[#allocation6 + $0x20] sm:$0xff] }
 0x785   :  { %10021 = vst [vmem:[#allocation149_spill] sm:$0xff] %v7898_v34  ;;  %2731 = vmatpush.msrb.mxu0 %v7913_v14  ;;  %2692 = vmatmul.f32.vlgmr.msra.gmra.mxu2 %v7728_v58  ;;  %v7933_v34 = vld [vmem:[#allocation6 + $0x310] sm:$0xff] }
 0x786   :  { %10022 = vst [vmem:[#allocation150_spill] sm:$0xff] %v7901_v24  ;;  %2732 = vmatmul.f32.vlgmr.msrb.gmra.mxu0 %v7728_v58  ;;  %v7918_v24 = vld [vmem:[#allocation6 + $0x2f8] sm:$0xff] }
 0x787   :  { %10023 = vst [vmem:[#allocation151_spill] sm:$0xff] %v7904_v13  ;;  %2756 = vmatpush.msrb.mxu2 %v7918_v24  ;;  %v7921_v13 = vld [vmem:[#allocation6 + $0x340] sm:$0xff] }
 0x788   :  { %10024 = vst [vmem:[#allocation152_spill] sm:$0xff] %v7907_v19  ;;  %2670 = vmatpush.msra.mxu1 %v7921_v13  ;;  %v7924_v19 = vld [vmem:[#allocation6 + $0x348] sm:$0xff] }
 0x789   :  { %10025 = vst [vmem:[#allocation153_spill] sm:$0xff] %v7910_v31  ;;  %2710 = vmatpush.msrb.mxu3 %v7924_v19  ;;  %v7927_v31 = vld [vmem:[#allocation3 + $0x180] sm:$0xff] }
 0x78a   :  { %10026 = vst [vmem:[#allocation154_spill] sm:$0xff] %v7913_v14  ;;  %2820 = vmatpush.msra.mxu0 %v7927_v31  ;;  %v7930_v14 = vld [vmem:[#allocation6 + $0x2c8] sm:$0xff]  ;;  %2671 = vmatpush.msra.mxu1 %v7933_v34 }
 0x78b   :  { %10027 = vst [vmem:[#allocation155_spill] sm:$0xff] %v7918_v24  ;;  %2757 = vmatpush.msrb.mxu2 %v7930_v14  ;;  %v7936_v24 = vld [vmem:[#allocation6 + $0x318] sm:$0xff] }
 0x78c   :  { %10028 = vst [vmem:[#allocation156_spill] sm:$0xff] %v7921_v13  ;;  %2711 = vmatpush.msrb.mxu3 %v7936_v24  ;;  %v7939_v13 = vld [vmem:[#allocation3 + $0x168] sm:$0xff] }
 0x78d   :  { %10029 = vst [vmem:[#allocation157_spill] sm:$0xff] %v7924_v19  ;;  %2821 = vmatpush.msra.mxu0 %v7939_v13  ;;  %v7942_v19 = vld [vmem:[#allocation6 + $0x298] sm:$0xff] }
 0x78e   :  { %10030 = vst [vmem:[#allocation158_spill] sm:$0xff] %v7927_v31  ;;  %2758 = vmatpush.msrb.mxu2 %v7942_v19  ;;  %v7945_v31 = vld [vmem:[#allocation3 + $0x150] sm:$0xff] }
 0x78f   :  { %10031 = vst [vmem:[#allocation159_spill] sm:$0xff] %v7930_v14  ;;  %2822 = vmatpush.msra.mxu0 %v7945_v31  ;;  %v7948_v14 = vld [vmem:[#allocation6 + $0x268] sm:$0xff] }
 0x790   :  { %10032 = vst [vmem:[#allocation160_spill] sm:$0xff] %v7933_v34  ;;  %2759 = vmatpush.msrb.mxu2 %v7948_v14  ;;  %v7951_v34 = vld [vmem:[#allocation3 + $0x138] sm:$0xff] }
 0x791   :  { %10033 = vst [vmem:[#allocation161_spill] sm:$0xff] %v7936_v24  ;;  %2823 = vmatpush.msra.mxu0 %v7951_v34  ;;  %v7954_v24 = vld [vmem:[#allocation6 + $0x238] sm:$0xff] }
 0x792   :  { %10034 = vst [vmem:[#allocation162_spill] sm:$0xff] %v7939_v13  ;;  %2760 = vmatpush.msrb.mxu2 %v7954_v24  ;;  %v7957_v13 = vld [vmem:[#allocation3 + $0x120] sm:$0xff] }
 0x793   :  { %10035 = vst [vmem:[#allocation163_spill] sm:$0xff] %v7942_v19  ;;  %2824 = vmatpush.msra.mxu0 %v7957_v13  ;;  %v7960_v19 = vld [vmem:[#allocation6 + $0x208] sm:$0xff] }
 0x794   :  { %10036 = vst [vmem:[#allocation164_spill] sm:$0xff] %v7945_v31  ;;  %2761 = vmatpush.msrb.mxu2 %v7960_v19  ;;  %v7963_v31 = vld [vmem:[#allocation3 + $0x108] sm:$0xff] }
 0x795   :  { %10037 = vst [vmem:[#allocation165_spill] sm:$0xff] %v7948_v14  ;;  %2825 = vmatpush.msra.mxu0 %v7963_v31  ;;  %v7966_v14 = vld [vmem:[#allocation6 + $0x1d8] sm:$0xff] }
 0x796   :  { %10038 = vst [vmem:[#allocation166_spill] sm:$0xff] %v7951_v34  ;;  %2762 = vmatpush.msrb.mxu2 %v7966_v14  ;;  %v7969_v34 = vld [vmem:[#allocation3 + $0xf0] sm:$0xff] }
 0x797   :  { %10039 = vst [vmem:[#allocation167_spill] sm:$0xff] %v7954_v24  ;;  %2826 = vmatpush.msra.mxu0 %v7969_v34  ;;  %v7972_v24 = vld [vmem:[#allocation6 + $0x1a8] sm:$0xff] }
 0x798   :  { %10040 = vst [vmem:[#allocation168_spill] sm:$0xff] %v7957_v13  ;;  %2763 = vmatpush.msrb.mxu2 %v7972_v24  ;;  %v7975_v13 = vld [vmem:[#allocation3 + $0xd8] sm:$0xff] }
 0x799   :  { %10041 = vst [vmem:[#allocation169_spill] sm:$0xff] %v7960_v19  ;;  %2827 = vmatpush.msra.mxu0 %v7975_v13  ;;  %v7978_v19 = vld [vmem:[#allocation6 + $0x178] sm:$0xff] }
 0x79a   :  { %10042 = vst [vmem:[#allocation170_spill] sm:$0xff] %v7963_v31  ;;  %2764 = vmatpush.msrb.mxu2 %v7978_v19  ;;  %v7981_v31 = vld [vmem:[#allocation3 + $0xc0] sm:$0xff] }
 0x79b   :  { %10043 = vst [vmem:[#allocation171_spill] sm:$0xff] %v7966_v14  ;;  %2828 = vmatpush.msra.mxu0 %v7981_v31  ;;  %v7984_v14 = vld [vmem:[#allocation6 + $0x148] sm:$0xff] }
 0x79c   :  { %10044 = vst [vmem:[#allocation172_spill] sm:$0xff] %v7969_v34  ;;  %2765 = vmatpush.msrb.mxu2 %v7984_v14  ;;  %v7987_v34 = vld [vmem:[#allocation3 + $0xa8] sm:$0xff] }
 0x79d   :  { %10045 = vst [vmem:[#allocation173_spill] sm:$0xff] %v7972_v24  ;;  %2829 = vmatpush.msra.mxu0 %v7987_v34  ;;  %v7990_v24 = vld [vmem:[#allocation6 + $0x118] sm:$0xff] }
 0x79e   :  { %10046 = vst [vmem:[#allocation174_spill] sm:$0xff] %v7975_v13  ;;  %2766 = vmatpush.msrb.mxu2 %v7990_v24  ;;  %v7993_v13 = vld [vmem:[#allocation3 + $0x90] sm:$0xff] }
 0x79f   :  { %10047 = vst [vmem:[#allocation175_spill] sm:$0xff] %v7978_v19  ;;  %2830 = vmatpush.msra.mxu0 %v7993_v13  ;;  %v7996_v19 = vld [vmem:[#allocation6 + $0xe8] sm:$0xff] }
 0x7a0   :  { %10048 = vst [vmem:[#allocation176_spill] sm:$0xff] %v7981_v31  ;;  %2767 = vmatpush.msrb.mxu2 %v7996_v19  ;;  %v7999_v31 = vld [vmem:[#allocation3 + $0x78] sm:$0xff] }
 0x7a1   :  { %10049 = vst [vmem:[#allocation177_spill] sm:$0xff] %v7984_v14  ;;  %2831 = vmatpush.msra.mxu0 %v7999_v31  ;;  %v8002_v14 = vld [vmem:[#allocation6 + $0xb8] sm:$0xff] }
 0x7a2   :  { %10050 = vst [vmem:[#allocation178_spill] sm:$0xff] %v7987_v34  ;;  %2768 = vmatpush.msrb.mxu2 %v8002_v14  ;;  %v8005_v34 = vld [vmem:[#allocation3 + $0x60] sm:$0xff] }
 0x7a3   :  { %10051 = vst [vmem:[#allocation179_spill] sm:$0xff] %v7990_v24  ;;  %2832 = vmatpush.msra.mxu0 %v8005_v34  ;;  %v8008_v24 = vld [vmem:[#allocation6 + $0x88] sm:$0xff] }
 0x7a4   :  { %10052 = vst [vmem:[#allocation180_spill] sm:$0xff] %v7993_v13  ;;  %2769 = vmatpush.msrb.mxu2 %v8008_v24  ;;  %v8012_v13 = vld [vmem:[#allocation6 + $0x58] sm:$0xff] }
 0x7a5   :  { %10053 = vst [vmem:[#allocation181_spill] sm:$0xff] %v7999_v31  ;;  %2833 = vmatpush.msra.mxu0 %v7323_v52  ;;  %v8016_v31 = vld [vmem:[#allocation6 + $0x28] sm:$0xff]  ;;  %v8025_v52 = vld [vmem:[#allocation3 + $0x178] sm:$0xff] }
 0x7a6   :  { %10054 = vst [vmem:[#allocation182_spill] sm:$0xff] %v8005_v34  ;;  %2770 = vmatpush.msrb.mxu2 %v8012_v13  ;;  %v8021_v34 = vld [vmem:[#allocation3 + $0x190] sm:$0xff] }
 0x7a7   :  { %2834 = vmatpush.msra.mxu0 %v7327_v46  ;;  %10055 = vst [vmem:[#allocation183_spill] sm:$0xff] %v8016_v31  ;;  %v8029_v46 = vld [vmem:[#allocation3 + $0x160] sm:$0xff] }
 0x7a8   :  { %2771 = vmatpush.msrb.mxu2 %v8016_v31  ;;  %v8033_v31 = vld [vmem:[#allocation3 + $0x148] sm:$0xff] }
 0x7a9   :  { %2772 = vmatmul.f32.vlgmr.msrb.gmra.mxu2 %v7728_v58  ;;  %2835 = vmatpush.msra.mxu0 %v7332_v39  ;;  %v8037_v39 = vld [vmem:[#allocation3 + $0x130] sm:$0xff] }
 0x7aa   :  { %2860 = vmatpush.msra.mxu2 %v8021_v34 }
 0x7ab   :  { %2918 = vmatpush.msrb.mxu0 %v7336_v55  ;;  %v8041_v55 = vld [vmem:[#allocation3 + $0x118] sm:$0xff] }
 0x7ac   :  { %2861 = vmatpush.msra.mxu2 %v8025_v52 }
 0x7ad   :  { %2919 = vmatpush.msrb.mxu0 %v7340_v15  ;;  %v8045_v15 = vld [vmem:[#allocation3 + $0x100] sm:$0xff] }
 0x7ae   :  { %2862 = vmatpush.msra.mxu2 %v8029_v46 }
 0x7af   :  { %2920 = vmatpush.msrb.mxu0 %v7344_v43  ;;  %v8049_v43 = vld [vmem:[#allocation3 + $0xe8] sm:$0xff] }
 0x7b0   :  { %2863 = vmatpush.msra.mxu2 %v8033_v31 }
 0x7b1   :  { %2921 = vmatpush.msrb.mxu0 %v7348_v3  ;;  %v8053_v3 = vld [vmem:[#allocation3 + $0xd0] sm:$0xff] }
 0x7b2   :  { %2864 = vmatpush.msra.mxu2 %v8037_v39 }
 0x7b3   :  { %2922 = vmatpush.msrb.mxu0 %v7352_v63  ;;  %v8057_v63 = vld [vmem:[#allocation3 + $0xb8] sm:$0xff] }
 0x7b4   :  { %2865 = vmatpush.msra.mxu2 %v8041_v55 }
 0x7b5   :  { %2923 = vmatpush.msrb.mxu0 %v7356_v38  ;;  %v8061_v38 = vld [vmem:[#allocation3 + $0xa0] sm:$0xff] }
 0x7b6   :  { %2866 = vmatpush.msra.mxu2 %v8045_v15 }
 0x7b7   :  { %2924 = vmatpush.msrb.mxu0 %v7360_v53  ;;  %v8065_v53 = vld [vmem:[#allocation3 + $0x88] sm:$0xff] }
 0x7b8   :  { %2867 = vmatpush.msra.mxu2 %v8049_v43  ;;  %10056 = vst [vmem:[#allocation184_spill] sm:$0xff] %v8065_v53 }
 0x7b9   :  { %2925 = vmatpush.msrb.mxu0 %v7364_v10  ;;  %v8069_v10 = vld [vmem:[#allocation3 + $0x70] sm:$0xff] }
 0x7ba   :  { %2868 = vmatpush.msra.mxu2 %v8053_v3  ;;  %10057 = vst [vmem:[#allocation185_spill] sm:$0xff] %v8069_v10 }
 0x7bb   :  { %2926 = vmatpush.msrb.mxu0 %v7368_v5  ;;  %v8073_v5 = vld [vmem:[#allocation3 + $0x58] sm:$0xff] }
 0x7bc   :  { %2869 = vmatpush.msra.mxu2 %v8057_v63  ;;  %10058 = vst [vmem:[#allocation186_spill] sm:$0xff] %v8073_v5 }
 0x7bd   :  { %2927 = vmatpush.msrb.mxu0 %v7372_v41  ;;  %v8077_v41 = vld [vmem:[#allocation3 + $0x40] sm:$0xff] }
 0x7be   :  { %2870 = vmatpush.msra.mxu2 %v8061_v38  ;;  %10059 = vst [vmem:[#allocation76_spill] sm:$0xff] %v8077_v41 }
 0x7bf   :  { %2928 = vmatpush.msrb.mxu0 %v7376_v23  ;;  %v8081_v23 = vld [vmem:[#allocation3 + $0x28] sm:$0xff] }
 0x7c0   :  { %2871 = vmatpush.msra.mxu2 %v8065_v53  ;;  %10060 = vst [vmem:[#allocation21_spill] sm:$0xff] %v8081_v23 }
 0x7c1   :  { %2929 = vmatpush.msrb.mxu0 %v7380_v40  ;;  %v4184_v40 = vld [vmem:[#allocation6 + $0x5d8] sm:$0xff] }
 0x7c2   :  { %2872 = vmatpush.msra.mxu2 %v8069_v10 }
 0x7c3   :  { %2930 = vmatpush.msrb.mxu0 %v7384_v25  ;;  %v4185_v25 = vld [vmem:[#allocation6 + $0x5a8] sm:$0xff] }
 0x7c4   :  { %2873 = vmatpush.msra.mxu2 %v8073_v5 }
 0x7c5   :  { %2931 = vmatpush.msrb.mxu0 %v7388_v30  ;;  %v2391_v30 = vpop.f32.mrf.mxu1 }
 0x7c6   :  { %2874 = vmatpush.msra.mxu2 %v8077_v41 }
 0x7c7   :  { %2932 = vmatpush.msrb.mxu0 %v7392_v49  ;;  %v10061_v49 = vld [vmem:[#allocation26_spill] sm:$0xff] }
 0x7c8   :  { %2875 = vmatpush.msra.mxu2 %v8081_v23 }
 0x7c9   :  { %2933 = vmatpush.msrb.mxu0 %v7396_v4  ;;  %v2371_v4 = vpop.f32.mrf.mxu0 }
 0x7ca   :  { %2958 = vmatpush.msrb.mxu2 %v4184_v40  ;;  %v10064_v40 = vld [vmem:[#allocation62_spill] sm:$0xff] }
 0x7cc   :  { %2959 = vmatpush.msrb.mxu2 %v4185_v25 }
 0x7ce   :  { %2960 = vmatpush.msrb.mxu2 %v7401_v9  ;;  %v2411_v9 = vpop.f32.mrf.mxu2 }
 0x7d0   :  { %2961 = vmatpush.msrb.mxu2 %v7404_v22  ;;  %v10062_v22 = vld [vmem:[#allocation61_spill] sm:$0xff] }
 0x7d1   :  { %v2451_v41 = vpop.f32.mrf.mxu0 }
 0x7d2   :  { %2962 = vmatpush.msrb.mxu2 %v7407_v51  ;;  %v2351_v51 = vpop.f32.mrf.mxu3 }
 0x7d4   :  { %2963 = vmatpush.msrb.mxu2 %v7410_v26 }
 0x7d6   :  { %2964 = vmatpush.msrb.mxu2 %v7413_v44  ;;  %v2495_v26 = vpop.f32.mrf.mxu1  ;;  %v10063_v44 = vld [vmem:[#allocation27_spill] sm:$0xff] }
 0x7d8   :  { %2965 = vmatpush.msrb.mxu2 %v7416_v50  ;;  %v2372_v50 = vadd.f32 %v2371_v4, %v2351_v51 }
 0x7da   :  { %2966 = vmatpush.msrb.mxu2 %v7419_v2  ;;  %v2496_v2 = vadd.f32 %v2495_v26, %v5382_v27  ;;  %v2431_v23 = vpop.f32.mrf.mxu3 }
 0x7db   :  { %v2452_v10 = vadd.f32 %v2451_v41, %v2431_v23 }
 0x7dc   :  { %2967 = vmatpush.msrb.mxu2 %v7422_v59  ;;  %v2538_v59 = vadd.f32 %v2496_v2, %v2372_v50 }
 0x7dd   :  { %v2548_v51 = vadd.f32 %v7448_v36, %v2452_v10  ;;  %v10065_v36 = vld [vmem:[#allocation28_spill] sm:$0xff]  ;;  %v10076_v10 = vld [vmem:[#allocation67_spill] sm:$0xff] }
 0x7de   :  { %2968 = vmatpush.msrb.mxu2 %v7425_v20  ;;  %v2539_v25 = vmul.f32 0.5, %v2538_v59  ;;  %v2515_v20 = vpop.f32.mrf.mxu2 }
 0x7e0   :  { %2969 = vmatpush.msrb.mxu2 %v7428_v8  ;;  %v2412_v8 = vadd.f32 %v2411_v9, %v2391_v30  ;;  %3446 = vtanh.f32 %v2539_v25 }
 0x7e2   :  { %2970 = vmatpush.msrb.mxu2 %v10061_v49  ;;  %v2516_v49 = vadd.f32 %v2515_v20, %v5384_v17  ;;  %v2535_v4 = vpop.f32.mrf.mxu3 }
 0x7e3   :  { %v2536_v50 = vadd.f32 %v2535_v4, %v5393_v18  ;;  %v10081_v4 = vld [vmem:[#allocation49_spill] sm:$0xff] }
 0x7e4   :  { %2971 = vmatpush.msrb.mxu2 %v10062_v22  ;;  %v2543_v5 = vadd.f32 %v2516_v49, %v2412_v8  ;;  %v10077_v8 = vld [vmem:[#allocation35_spill] sm:$0xff]  ;;  %v10078_v49 = vld [vmem:[#allocation48_spill] sm:$0xff] }
 0x7e6   :  { %2972 = vmatpush.msrb.mxu2 %v10063_v44  ;;  %v2544_v22 = vmul.f32 0.5, %v2543_v5  ;;  %v3447_v53 = vpop.eup %3446 }
 0x7e7   :  { %v2541_v44 = vadd.f32 1.0, %v3447_v53  ;;  %v10075_v53 = vld [vmem:[#allocation34_spill] sm:$0xff] }
 0x7e8   :  { %2973 = vmatpush.msrb.mxu2 %v10064_v40  ;;  %3448 = vtanh.f32 %v2544_v22  ;;  %v10079_v22 = vld [vmem:[#allocation68_spill] sm:$0xff] }
 0x7e9   :  { %v2542_v26 = vmul.f32 0.5, %v2541_v44  ;;  %v10080_v44 = vld [vmem:[#allocation36_spill] sm:$0xff] }
 0x7eb   :  { %v2549_v2 = vmul.f32 %v2548_v51, %v2542_v26  ;;  %v10082_v51 = vld [vmem:[#allocation69_spill] sm:$0xff] }
 0x7ec   :  { %v10083_v26 = vld [vmem:[#allocation37_spill] sm:$0xff] }
 0x7ed   :  { %v2550_v30 = vadd.f32 %v2549_v2, %v2536_v50  ;;  %v10084_v50 = vld [vmem:[#allocation50_spill] sm:$0xff] }
 0x7ee   :  { %v3449_v40 = vpop.eup %3448  ;;  %v10085_v2 = vld [vmem:[#allocation70_spill] sm:$0xff] }
 0x7ef   :  { %v2546_v59 = vadd.f32 1.0, %v3449_v40  ;;  %3450 = vtanh.f32 %v2550_v30  ;;  %v10086_v40 = vld [vmem:[#allocation38_spill] sm:$0xff]  ;;  %v10088_v30 = vld [vmem:[#allocation71_spill] sm:$0xff] }
 0x7f1   :  { %v2547_v9 = vmul.f32 0.5, %v2546_v59  ;;  %v10087_v59 = vld [vmem:[#allocation51_spill] sm:$0xff] }
 0x7f3   :  { %v2552_v25 = vsub.f32 1.0, %v2547_v9  ;;  %v2554_v5 = vmul.f32 %v2547_v9, %v7453_v33  ;;  %v10066_v33 = vld [vmem:[#allocation63_spill] sm:$0xff] }
 0x7f4   :  { %v10089_v9 = vld [vmem:[#allocation39_spill] sm:$0xff] }
 0x7f5   :  { %v3451_v20 = vpop.eup %3450 }
 0x7f6   :  { %v2553_v41 = vmul.f32 %v3451_v20, %v2552_v25  ;;  %v10090_v25 = vld [vmem:[#allocation52_spill] sm:$0xff]  ;;  %v10091_v20 = vld [vmem:[#allocation74_spill] sm:$0xff] }
 0x7f8   :  { %v8104_v23 = vadd.f32 %v2554_v5, %v2553_v41  ;;  %v10092_v5 = vld [vmem:[#allocation40_spill] sm:$0xff]  ;;  %v10093_v41 = vld [vmem:[#allocation53_spill] sm:$0xff] }
 0x7fa   :  { %2592 = vmatmul.f32.vlgmr.msrb.gmra.mxu1 %v8104_v23  ;;  %2632 = vmatmul.f32.vlgmr.msra.gmra.mxu3 %v8104_v23 }
 0x7fb   :  { %2736 = vmatpush.msrb.mxu1 %v7457_v60  ;;  %2776 = vmatpush.msra.mxu3 %v7460_v16  ;;  %v10067_v60 = vld [vmem:[#allocation29_spill] sm:$0xff]  ;;  %v10068_v16 = vld [vmem:[#allocation31_spill] sm:$0xff] }
 0x7fd   :  { %2737 = vmatpush.msrb.mxu1 %v7463_v0  ;;  %2777 = vmatpush.msra.mxu3 %v7466_v32  ;;  %v10069_v0 = vld [vmem:[#allocation64_spill] sm:$0xff]  ;;  %v10070_v32 = vld [vmem:[#allocation65_spill] sm:$0xff] }
 0x7ff   :  { %2738 = vmatpush.msrb.mxu1 %v7469_v48  ;;  %2778 = vmatpush.msra.mxu3 %v7472_v47  ;;  %v10071_v48 = vld [vmem:[#allocation30_spill] sm:$0xff]  ;;  %v10072_v47 = vld [vmem:[#allocation32_spill] sm:$0xff] }
 0x801   :  { %2739 = vmatpush.msrb.mxu1 %v7475_v57  ;;  %2779 = vmatpush.msra.mxu3 %v7478_v11  ;;  %v10073_v57 = vld [vmem:[#allocation66_spill] sm:$0xff]  ;;  %v10074_v11 = vld [vmem:[#allocation33_spill] sm:$0xff] }
 0x802   :  { %2672 = vmatmul.f32.vlgmr.msra.gmra.mxu1 %v8104_v23  ;;  %2712 = vmatmul.f32.vlgmr.msrb.gmra.mxu3 %v8104_v23 }
 0x803   :  { %2740 = vmatpush.msrb.mxu1 %v10065_v36  ;;  %2780 = vmatpush.msra.mxu3 %v10066_v33  ;;  %v10094_v36 = vld [vmem:[#allocation75_spill] sm:$0xff]  ;;  %v8150_v33 = vld [vmem:[#allocation3 + $0x140] sm:$0xff] }
 0x805   :  { %2741 = vmatpush.msrb.mxu1 %v10067_v60  ;;  %2781 = vmatpush.msra.mxu3 %v10068_v16  ;;  %v10095_v60 = vld [vmem:[#allocation41_spill] sm:$0xff]  ;;  %v8154_v16 = vld [vmem:[#allocation3 + $0x128] sm:$0xff] }
 0x807   :  { %2742 = vmatpush.msrb.mxu1 %v10069_v0  ;;  %2782 = vmatpush.msra.mxu3 %v10070_v32  ;;  %v10096_v0 = vld [vmem:[#allocation54_spill] sm:$0xff]  ;;  %v8158_v32 = vld [vmem:[#allocation3 + $0x110] sm:$0xff] }
 0x809   :  { %2743 = vmatpush.msrb.mxu1 %v10071_v48  ;;  %2783 = vmatpush.msra.mxu3 %v10072_v47  ;;  %v10097_v48 = vld [vmem:[#allocation42_spill] sm:$0xff]  ;;  %v8162_v47 = vld [vmem:[#allocation3 + $0xf8] sm:$0xff] }
 0x80b   :  { %2744 = vmatpush.msrb.mxu1 %v10073_v57  ;;  %2784 = vmatpush.msra.mxu3 %v10074_v11  ;;  %v10098_v57 = vld [vmem:[#allocation55_spill] sm:$0xff]  ;;  %v8166_v11 = vld [vmem:[#allocation3 + $0xe0] sm:$0xff] }
 0x80d   :  { %2745 = vmatpush.msrb.mxu1 %v10075_v53  ;;  %2785 = vmatpush.msra.mxu3 %v10076_v10  ;;  %v10099_v53 = vld [vmem:[#allocation43_spill] sm:$0xff]  ;;  %v8170_v10 = vld [vmem:[#allocation3 + $0xc8] sm:$0xff] }
 0x80f   :  { %2746 = vmatpush.msrb.mxu1 %v10077_v8  ;;  %2786 = vmatpush.msra.mxu3 %v10078_v49  ;;  %v10100_v8 = vld [vmem:[#allocation56_spill] sm:$0xff]  ;;  %v8174_v49 = vld [vmem:[#allocation3 + $0xb0] sm:$0xff] }
 0x811   :  { %2747 = vmatpush.msrb.mxu1 %v10079_v22  ;;  %2787 = vmatpush.msra.mxu3 %v10080_v44  ;;  %v10101_v22 = vld [vmem:[#allocation77_spill] sm:$0xff]  ;;  %v8178_v44 = vld [vmem:[#allocation3 + $0x98] sm:$0xff] }
 0x813   :  { %2748 = vmatpush.msrb.mxu1 %v10081_v4  ;;  %2788 = vmatpush.msra.mxu3 %v10082_v51  ;;  %v10102_v4 = vld [vmem:[#allocation80_spill] sm:$0xff]  ;;  %v8182_v51 = vld [vmem:[#allocation3 + $0x80] sm:$0xff] }
 0x815   :  { %2749 = vmatpush.msrb.mxu1 %v10083_v26  ;;  %2789 = vmatpush.msra.mxu3 %v10084_v50  ;;  %v10103_v26 = vld [vmem:[#allocation44_spill] sm:$0xff]  ;;  %v8186_v50 = vld [vmem:[#allocation3 + $0x68] sm:$0xff] }
 0x817   :  { %2750 = vmatpush.msrb.mxu1 %v10085_v2  ;;  %2790 = vmatpush.msra.mxu3 %v10086_v40  ;;  %v10104_v2 = vld [vmem:[#allocation57_spill] sm:$0xff]  ;;  %v8190_v40 = vld [vmem:[#allocation3 + $0x50] sm:$0xff] }
 0x819   :  { %2751 = vmatpush.msrb.mxu1 %v10087_v59  ;;  %2791 = vmatpush.msra.mxu3 %v10088_v30  ;;  %v10105_v59 = vld [vmem:[#allocation45_spill] sm:$0xff]  ;;  %v8194_v30 = vld [vmem:[#allocation3 + $0x38] sm:$0xff] }
 0x81a   :  { %2752 = vmatmul.f32.vlgmr.msrb.gmra.mxu1 %v8104_v23  ;;  %2792 = vmatmul.f32.vlgmr.msra.gmra.mxu3 %v8104_v23  ;;  %10106 = vst [vmem:[#allocation22_spill] sm:$0xff] %v8194_v30 }
 0x81b   :  { %2840 = vmatpush.msra.mxu1 %v10089_v9  ;;  %2898 = vmatpush.msrb.mxu3 %v10090_v25  ;;  %v10107_v9 = vld [vmem:[#allocation58_spill] sm:$0xff]  ;;  %v8198_v25 = vld [vmem:[#allocation3 + $0x20] sm:$0xff] }
 0x81c   :  { %10108 = vst [vmem:[#allocation23_spill] sm:$0xff] %v8198_v25 }
 0x81d   :  { %2841 = vmatpush.msra.mxu1 %v10091_v20  ;;  %2899 = vmatpush.msrb.mxu3 %v10092_v5  ;;  %v10109_v20 = vld [vmem:[#allocation81_spill] sm:$0xff]  ;;  %v10110_v5 = vld [vmem:[#allocation46_spill] sm:$0xff] }
 0x81f   :  { %2842 = vmatpush.msra.mxu1 %v10093_v41  ;;  %2900 = vmatpush.msrb.mxu3 %v10094_v36  ;;  %v10111_v41 = vld [vmem:[#allocation59_spill] sm:$0xff] }
 0x820   :  { %v10112_v36 = vld [vmem:[#allocation83_spill] sm:$0xff] }
 0x821   :  { %2843 = vmatpush.msra.mxu1 %v8150_v33  ;;  %2901 = vmatpush.msrb.mxu3 %v10095_v60  ;;  %v10113_v60 = vld [vmem:[#allocation47_spill] sm:$0xff] }
 0x823   :  { %2844 = vmatpush.msra.mxu1 %v8154_v16  ;;  %2902 = vmatpush.msrb.mxu3 %v10096_v0  ;;  %v10114_v0 = vld [vmem:[#allocation60_spill] sm:$0xff] }
 0x825   :  { %2845 = vmatpush.msra.mxu1 %v8158_v32  ;;  %2903 = vmatpush.msrb.mxu3 %v10097_v48  ;;  %v10115_v48 = vld [vmem:[#allocation87_spill] sm:$0xff] }
 0x827   :  { %2846 = vmatpush.msra.mxu1 %v8162_v47  ;;  %2904 = vmatpush.msrb.mxu3 %v10098_v57  ;;  %v10116_v57 = vld [vmem:[#allocation89_spill] sm:$0xff] }
 0x829   :  { %2847 = vmatpush.msra.mxu1 %v8166_v11  ;;  %2905 = vmatpush.msrb.mxu3 %v10099_v53  ;;  %v10117_v53 = vld [vmem:[#allocation91_spill] sm:$0xff] }
 0x82b   :  { %2848 = vmatpush.msra.mxu1 %v8170_v10  ;;  %2906 = vmatpush.msrb.mxu3 %v10100_v8  ;;  %v10118_v8 = vld [vmem:[#allocation94_spill] sm:$0xff] }
 0x82d   :  { %2849 = vmatpush.msra.mxu1 %v8174_v49  ;;  %2907 = vmatpush.msrb.mxu3 %v10101_v22  ;;  %v10119_v22 = vld [vmem:[#allocation96_spill] sm:$0xff] }
 0x82f   :  { %2850 = vmatpush.msra.mxu1 %v8178_v44  ;;  %2908 = vmatpush.msrb.mxu3 %v10102_v4  ;;  %v10120_v4 = vld [vmem:[#allocation100_spill] sm:$0xff] }
 0x831   :  { %2851 = vmatpush.msra.mxu1 %v8182_v51  ;;  %2909 = vmatpush.msrb.mxu3 %v10103_v26  ;;  %v10121_v26 = vld [vmem:[#allocation102_spill] sm:$0xff] }
 0x833   :  { %2852 = vmatpush.msra.mxu1 %v8186_v50  ;;  %2910 = vmatpush.msrb.mxu3 %v10104_v2  ;;  %v10122_v2 = vld [vmem:[#allocation104_spill] sm:$0xff] }
 0x835   :  { %2853 = vmatpush.msra.mxu1 %v8190_v40  ;;  %2911 = vmatpush.msrb.mxu3 %v10105_v59  ;;  %v10123_v59 = vld [vmem:[#allocation107_spill] sm:$0xff] }
 0x837   :  { %2854 = vmatpush.msra.mxu1 %v8194_v30  ;;  %2912 = vmatpush.msrb.mxu3 %v10107_v9  ;;  %v10124_v9 = vld [vmem:[#allocation112_spill] sm:$0xff] }
 0x839   :  { %2855 = vmatpush.msra.mxu1 %v8198_v25  ;;  %2913 = vmatpush.msrb.mxu3 %v10109_v20  ;;  %v10125_v20 = vld [vmem:[#allocation114_spill] sm:$0xff] }
 0x83b   :  { %2938 = vmatpush.msrb.mxu1 %v10110_v5  ;;  %2978 = vmatpush.msra.mxu3 %v10111_v41  ;;  %v10126_v5 = vld [vmem:[#allocation119_spill] sm:$0xff]  ;;  %v10127_v41 = vld [vmem:[#allocation121_spill] sm:$0xff] }
 0x83d   :  { %2939 = vmatpush.msrb.mxu1 %v10112_v36  ;;  %2979 = vmatpush.msra.mxu3 %v10113_v60  ;;  %v10128_v36 = vld [vmem:[#allocation126_spill] sm:$0xff]  ;;  %v10129_v60 = vld [vmem:[#allocation13_spill] sm:$0xff] }
 0x83f   :  { %2940 = vmatpush.msrb.mxu1 %v10114_v0  ;;  %2980 = vmatpush.msra.mxu3 %v10115_v48  ;;  %v10130_v0 = vld [vmem:[#allocation14_spill] sm:$0xff]  ;;  %v10131_v48 = vld [vmem:[#allocation15_spill] sm:$0xff] }
 0x841   :  { %2941 = vmatpush.msrb.mxu1 %v10116_v57  ;;  %2981 = vmatpush.msra.mxu3 %v10117_v53  ;;  %v10132_v57 = vld [vmem:[#allocation16_spill] sm:$0xff]  ;;  %v10133_v53 = vld [vmem:[#allocation17_spill] sm:$0xff] }
 0x843   :  { %2942 = vmatpush.msrb.mxu1 %v10118_v8  ;;  %2982 = vmatpush.msra.mxu3 %v10119_v22  ;;  %v10134_v8 = vld [vmem:[#allocation18_spill] sm:$0xff]  ;;  %v10135_v22 = vld [vmem:[#allocation19_spill] sm:$0xff] }
 0x845   :  { %2943 = vmatpush.msrb.mxu1 %v10120_v4  ;;  %2983 = vmatpush.msra.mxu3 %v10121_v26  ;;  %v10136_v4 = vld [vmem:[#allocation78_spill] sm:$0xff]  ;;  %v10137_v26 = vld [vmem:[#allocation79_spill] sm:$0xff] }
 0x847   :  { %2944 = vmatpush.msrb.mxu1 %v10122_v2  ;;  %2984 = vmatpush.msra.mxu3 %v10123_v59  ;;  %v10138_v2 = vld [vmem:[#allocation93_spill] sm:$0xff]  ;;  %v10139_v59 = vld [vmem:[#allocation20_spill] sm:$0xff] }
 0x849   :  { %2945 = vmatpush.msrb.mxu1 %v10124_v9  ;;  %2985 = vmatpush.msra.mxu3 %v10125_v20  ;;  %v10140_v9 = vld [vmem:[#allocation84_spill] sm:$0xff]  ;;  %v10141_v20 = vld [vmem:[#allocation99_spill] sm:$0xff] }
 0x84b   :  { %2946 = vmatpush.msrb.mxu1 %v10126_v5  ;;  %2986 = vmatpush.msra.mxu3 %v10127_v41  ;;  %v2573_v5 = vpop.f32.mrf.mxu0 }
 0x84d   :  { %2947 = vmatpush.msrb.mxu1 %v10128_v36  ;;  %2987 = vmatpush.msra.mxu3 %v10129_v60  ;;  %v10142_v60 = vld [vmem:[#allocation117_spill] sm:$0xff] }
 0x84f   :  { %2948 = vmatpush.msrb.mxu1 %v10130_v0  ;;  %2988 = vmatpush.msra.mxu3 %v10131_v48 }
 0x851   :  { %2949 = vmatpush.msrb.mxu1 %v10132_v57  ;;  %2989 = vmatpush.msra.mxu3 %v10133_v53  ;;  %v2613_v57 = vpop.f32.mrf.mxu2 }
 0x853   :  { %2950 = vmatpush.msrb.mxu1 %v10134_v8  ;;  %2990 = vmatpush.msra.mxu3 %v10135_v22  ;;  %v10143_v22 = vld [vmem:[#allocation118_spill] sm:$0xff] }
 0x855   :  { %2951 = vmatpush.msrb.mxu1 %v10136_v4  ;;  %2991 = vmatpush.msra.mxu3 %v10137_v26 }
 0x857   :  { %2952 = vmatpush.msrb.mxu1 %v10138_v2  ;;  %2992 = vmatpush.msra.mxu3 %v10139_v59  ;;  %v2653_v2 = vpop.f32.mrf.mxu0 }
 0x859   :  { %2953 = vmatpush.msrb.mxu1 %v10140_v9  ;;  %2993 = vmatpush.msra.mxu3 %v10141_v20 }
 0x877   :  { %v2593_v41 = vpop.f32.mrf.mxu1 }
 0x878   :  { %v2594_v36 = vadd.f32 %v2593_v41, %v2573_v5  ;;  %v8239_v5 = vld [vmem:[%s8417_s3 + $0x1] ss:$0 sm:$0xff] }
 0x87a   :  { %v2802_v0 = vadd.f32 %v2594_v36, %v10142_v60 }
 0x87c   :  { %v2803_v48 = vmul.f32 0.5, %v2802_v0 }
 0x87d   :  { %v2633_v53 = vpop.f32.mrf.mxu3 }
 0x87e   :  { %3452 = vtanh.f32 %v2803_v48  ;;  %v2634_v8 = vadd.f32 %v2633_v53, %v2613_v57  ;;  %v10144_v48 = vld [vmem:[#allocation124_spill] sm:$0xff] }
 0x87f   :  { %v2673_v26 = vpop.f32.mrf.mxu1 }
 0x880   :  { %v2807_v4 = vadd.f32 %v2634_v8, %v10143_v22  ;;  %v2674_v59 = vadd.f32 %v2673_v26, %v2653_v2  ;;  %v10161_v26 = vld [vmem:[#allocation127_spill] sm:$0xff]  ;;  %v10162_v2 = vld [vmem:[#allocation82_spill] sm:$0xff] }
 0x882   :  { %v2808_v25 = vmul.f32 0.5, %v2807_v4  ;;  %v2812_v41 = vadd.f32 %v8239_v5, %v2674_v59  ;;  %v10163_v59 = vld [vmem:[#allocation128_spill] sm:$0xff] }
 0x884   :  { %v3453_v30 = vpop.eup %3452  ;;  %3454 = vtanh.f32 %v2808_v25 }
 0x885   :  { %v2805_v9 = vadd.f32 1.0, %v3453_v30 }
 0x887   :  { %v2806_v20 = vmul.f32 0.5, %v2805_v9  ;;  %v10164_v9 = vld [vmem:[#allocation129_spill] sm:$0xff] }
 0x889   :  { %v2813_v36 = vmul.f32 %v2812_v41, %v2806_v20  ;;  %v10165_v20 = vld [vmem:[#allocation130_spill] sm:$0xff]  ;;  %v10166_v41 = vld [vmem:[#allocation131_spill] sm:$0xff] }
 0x88a   :  { %v3455_v60 = vpop.eup %3454 }
 0x88b   :  { %v2810_v0 = vadd.f32 1.0, %v3455_v60  ;;  %v2814_v57 = vadd.f32 %v2813_v36, %v10144_v48  ;;  %v10167_v36 = vld [vmem:[#allocation132_spill] sm:$0xff]  ;;  %v10168_v60 = vld [vmem:[#allocation133_spill] sm:$0xff]  ;;  %v10170_v48 = vld [vmem:[#allocation135_spill] sm:$0xff] }
 0x88d   :  { %3456 = vtanh.f32 %v2814_v57  ;;  %v2811_v53 = vmul.f32 0.5, %v2810_v0  ;;  %v10169_v0 = vld [vmem:[#allocation134_spill] sm:$0xff]  ;;  %v10171_v57 = vld [vmem:[#allocation136_spill] sm:$0xff] }
 0x88f   :  { %v2816_v8 = vsub.f32 1.0, %v2811_v53  ;;  %v2818_v25 = vmul.f32 %v2811_v53, %v7728_v58  ;;  %v10145_v58 = vld [vmem:[#allocation98_spill] sm:$0xff]  ;;  %v10172_v53 = vld [vmem:[#allocation137_spill] sm:$0xff] }
 0x893   :  { %v3457_v22 = vpop.eup %3456 }
 0x894   :  { %v2817_v30 = vmul.f32 %v3457_v22, %v2816_v8  ;;  %v10173_v8 = vld [vmem:[#allocation138_spill] sm:$0xff]  ;;  %v10174_v22 = vld [vmem:[#allocation139_spill] sm:$0xff] }
 0x896   :  { %v8244_v4 = vadd.f32 %v2818_v25, %v2817_v30  ;;  %v10175_v25 = vld [vmem:[#allocation140_spill] sm:$0xff]  ;;  %v10176_v30 = vld [vmem:[#allocation141_spill] sm:$0xff] }
 0x898   :  { %2836 = vmatmul.f32.vlgmr.msra.gmra.mxu0 %v8244_v4  ;;  %2856 = vmatmul.f32.vlgmr.msra.gmra.mxu1 %v8244_v4 }
 0x899   :  { %2876 = vmatmul.f32.vlgmr.msra.gmra.mxu2 %v8244_v4  ;;  %2914 = vmatmul.f32.vlgmr.msrb.gmra.mxu3 %v8244_v4 }
 0x89a   :  { %3018 = vmatpush.msra.mxu1 %v7734_v37  ;;  %3058 = vmatpush.msrb.mxu3 %v7737_v42  ;;  %v10146_v37 = vld [vmem:[#allocation116_spill] sm:$0xff] }
 0x89b   :  { %2998 = vmatpush.msra.mxu0 %v7740_v7  ;;  %3038 = vmatpush.msra.mxu2 %v7743_v28  ;;  %v10147_v42 = vld [vmem:[#allocation88_spill] sm:$0xff]  ;;  %v10148_v7 = vld [vmem:[#allocation90_spill] sm:$0xff] }
 0x89c   :  { %3019 = vmatpush.msra.mxu1 %v7746_v56  ;;  %3059 = vmatpush.msrb.mxu3 %v7749_v1  ;;  %v10149_v28 = vld [vmem:[#allocation92_spill] sm:$0xff]  ;;  %v10150_v56 = vld [vmem:[#allocation95_spill] sm:$0xff]  ;;  %v10151_v1 = vld [vmem:[#allocation97_spill] sm:$0xff] }
 0x89d   :  { %2999 = vmatpush.msra.mxu0 %v7752_v54  ;;  %3039 = vmatpush.msra.mxu2 %v7755_v62  ;;  %v10152_v54 = vld [vmem:[#allocation101_spill] sm:$0xff]  ;;  %v10153_v62 = vld [vmem:[#allocation103_spill] sm:$0xff] }
 0x89e   :  { %3020 = vmatpush.msra.mxu1 %v7758_v21  ;;  %3060 = vmatpush.msrb.mxu3 %v7761_v12  ;;  %v10154_v21 = vld [vmem:[#allocation105_spill] sm:$0xff]  ;;  %v10155_v12 = vld [vmem:[#allocation108_spill] sm:$0xff] }
 0x89f   :  { %3000 = vmatpush.msra.mxu0 %v7764_v45  ;;  %3040 = vmatpush.msra.mxu2 %v7767_v29  ;;  %v10156_v45 = vld [vmem:[#allocation109_spill] sm:$0xff] }
 0x8a0   :  { %3021 = vmatpush.msra.mxu1 %v7770_v61  ;;  %3061 = vmatpush.msrb.mxu3 %v7773_v35  ;;  %v10157_v29 = vld [vmem:[#allocation113_spill] sm:$0xff]  ;;  %v10158_v61 = vld [vmem:[#allocation115_spill] sm:$0xff] }
 0x8a1   :  { %2954 = vmatmul.f32.vlgmr.msrb.gmra.mxu1 %v8244_v4  ;;  %2994 = vmatmul.f32.vlgmr.msra.gmra.mxu3 %v8244_v4  ;;  %v10159_v35 = vld [vmem:[#allocation73_spill] sm:$0xff] }
 0x8a2   :  { %3022 = vmatpush.msra.mxu1 %v7778_v6  ;;  %3062 = vmatpush.msrb.mxu3 %v10145_v58  ;;  %v10160_v6 = vld [vmem:[#allocation72_spill] sm:$0xff]  ;;  %v10177_v58 = vld [vmem:[#allocation142_spill] sm:$0xff] }
 0x8a3   :  { %3001 = vmatpush.msra.mxu0 %v10146_v37  ;;  %3041 = vmatpush.msra.mxu2 %v10147_v42  ;;  %v10178_v37 = vld [vmem:[#allocation143_spill] sm:$0xff]  ;;  %v10179_v42 = vld [vmem:[#allocation144_spill] sm:$0xff] }
 0x8a4   :  { %3023 = vmatpush.msra.mxu1 %v10148_v7  ;;  %3063 = vmatpush.msrb.mxu3 %v10149_v28  ;;  %v10180_v7 = vld [vmem:[#allocation145_spill] sm:$0xff]  ;;  %v10181_v28 = vld [vmem:[#allocation146_spill] sm:$0xff] }
 0x8a5   :  { %3002 = vmatpush.msra.mxu0 %v10150_v56  ;;  %3042 = vmatpush.msra.mxu2 %v10151_v1  ;;  %v10182_v56 = vld [vmem:[#allocation147_spill] sm:$0xff]  ;;  %v10183_v1 = vld [vmem:[#allocation148_spill] sm:$0xff] }
 0x8a6   :  { %3024 = vmatpush.msra.mxu1 %v10152_v54  ;;  %3064 = vmatpush.msrb.mxu3 %v10153_v62  ;;  %v10184_v54 = vld [vmem:[#allocation149_spill] sm:$0xff]  ;;  %v10185_v62 = vld [vmem:[#allocation150_spill] sm:$0xff] }
 0x8a7   :  { %3003 = vmatpush.msra.mxu0 %v10154_v21  ;;  %3043 = vmatpush.msra.mxu2 %v10155_v12  ;;  %v10186_v21 = vld [vmem:[#allocation151_spill] sm:$0xff]  ;;  %v10187_v12 = vld [vmem:[#allocation152_spill] sm:$0xff] }
 0x8a8   :  { %3025 = vmatpush.msra.mxu1 %v10156_v45  ;;  %3065 = vmatpush.msrb.mxu3 %v10157_v29  ;;  %v10188_v45 = vld [vmem:[#allocation153_spill] sm:$0xff]  ;;  %v10189_v29 = vld [vmem:[#allocation154_spill] sm:$0xff] }
 0x8a9   :  { %3004 = vmatpush.msra.mxu0 %v10158_v61  ;;  %3044 = vmatpush.msra.mxu2 %v10159_v35  ;;  %v10190_v61 = vld [vmem:[#allocation155_spill] sm:$0xff]  ;;  %v10191_v35 = vld [vmem:[#allocation156_spill] sm:$0xff] }
 0x8aa   :  { %3026 = vmatpush.msra.mxu1 %v10160_v6  ;;  %3066 = vmatpush.msrb.mxu3 %v10161_v26  ;;  %v10192_v6 = vld [vmem:[#allocation157_spill] sm:$0xff]  ;;  %v10193_v26 = vld [vmem:[#allocation158_spill] sm:$0xff] }
 0x8ab   :  { %3005 = vmatpush.msra.mxu0 %v10162_v2  ;;  %3045 = vmatpush.msra.mxu2 %v10163_v59  ;;  %v10194_v2 = vld [vmem:[#allocation159_spill] sm:$0xff]  ;;  %v10195_v59 = vld [vmem:[#allocation160_spill] sm:$0xff] }
 0x8ac   :  { %3027 = vmatpush.msra.mxu1 %v10164_v9  ;;  %3067 = vmatpush.msrb.mxu3 %v10165_v20  ;;  %v10196_v9 = vld [vmem:[#allocation161_spill] sm:$0xff]  ;;  %v10197_v20 = vld [vmem:[#allocation162_spill] sm:$0xff] }
 0x8ad   :  { %3006 = vmatpush.msra.mxu0 %v10166_v41  ;;  %3046 = vmatpush.msra.mxu2 %v10167_v36  ;;  %v10198_v41 = vld [vmem:[#allocation163_spill] sm:$0xff]  ;;  %v10199_v36 = vld [vmem:[#allocation164_spill] sm:$0xff] }
 0x8ae   :  { %3028 = vmatpush.msra.mxu1 %v10168_v60  ;;  %3068 = vmatpush.msrb.mxu3 %v10169_v0  ;;  %v10200_v60 = vld [vmem:[#allocation165_spill] sm:$0xff]  ;;  %v10201_v0 = vld [vmem:[#allocation166_spill] sm:$0xff] }
 0x8af   :  { %3007 = vmatpush.msra.mxu0 %v10170_v48  ;;  %3047 = vmatpush.msra.mxu2 %v10171_v57  ;;  %v10202_v48 = vld [vmem:[#allocation167_spill] sm:$0xff]  ;;  %v10203_v57 = vld [vmem:[#allocation168_spill] sm:$0xff] }
 0x8b0   :  { %3029 = vmatpush.msra.mxu1 %v10172_v53  ;;  %3069 = vmatpush.msrb.mxu3 %v10173_v8  ;;  %v10204_v53 = vld [vmem:[#allocation169_spill] sm:$0xff]  ;;  %v10205_v8 = vld [vmem:[#allocation170_spill] sm:$0xff] }
 0x8b1   :  { %3008 = vmatpush.msra.mxu0 %v10174_v22  ;;  %3048 = vmatpush.msra.mxu2 %v10175_v25  ;;  %v10206_v22 = vld [vmem:[#allocation171_spill] sm:$0xff]  ;;  %v10207_v25 = vld [vmem:[#allocation172_spill] sm:$0xff] }
 0x8b2   :  { %3030 = vmatpush.msra.mxu1 %v10176_v30  ;;  %3070 = vmatpush.msrb.mxu3 %v10177_v58  ;;  %v10208_v30 = vld [vmem:[#allocation173_spill] sm:$0xff]  ;;  %v10209_v58 = vld [vmem:[#allocation174_spill] sm:$0xff] }
 0x8b3   :  { %3009 = vmatpush.msra.mxu0 %v10178_v37  ;;  %3049 = vmatpush.msra.mxu2 %v10179_v42  ;;  %v10210_v37 = vld [vmem:[#allocation175_spill] sm:$0xff]  ;;  %v10211_v42 = vld [vmem:[#allocation176_spill] sm:$0xff] }
 0x8b4   :  { %3031 = vmatpush.msra.mxu1 %v10180_v7  ;;  %3071 = vmatpush.msrb.mxu3 %v10181_v28  ;;  %v10212_v7 = vld [vmem:[#allocation177_spill] sm:$0xff]  ;;  %v10213_v28 = vld [vmem:[#allocation178_spill] sm:$0xff] }
 0x8b5   :  { %3010 = vmatpush.msra.mxu0 %v10182_v56  ;;  %3050 = vmatpush.msra.mxu2 %v10183_v1  ;;  %v10214_v56 = vld [vmem:[#allocation179_spill] sm:$0xff]  ;;  %v10215_v1 = vld [vmem:[#allocation180_spill] sm:$0xff] }
 0x8b6   :  { %3032 = vmatpush.msra.mxu1 %v10184_v54  ;;  %3072 = vmatpush.msrb.mxu3 %v10185_v62  ;;  %v10216_v54 = vld [vmem:[#allocation181_spill] sm:$0xff]  ;;  %v10217_v62 = vld [vmem:[#allocation182_spill] sm:$0xff] }
 0x8b7   :  { %3011 = vmatpush.msra.mxu0 %v10186_v21  ;;  %3051 = vmatpush.msra.mxu2 %v10187_v12  ;;  %v4200_v21 = vld [vmem:[#allocation3 + $0x48] sm:$0xff]  ;;  %v4201_v12 = vld [vmem:[#allocation3 + $0x30] sm:$0xff] }
 0x8b8   :  { %3033 = vmatpush.msra.mxu1 %v10188_v45  ;;  %3073 = vmatpush.msrb.mxu3 %v10189_v29  ;;  %v10218_v45 = vld [vmem:[#allocation183_spill] sm:$0xff]  ;;  %v4202_v29 = vld [vmem:[#allocation3 + $0x18] sm:$0xff] }
 0x8b9   :  { %3034 = vmatmul.f32.vlgmr.msra.gmra.mxu1 %v8244_v4  ;;  %3074 = vmatmul.f32.vlgmr.msrb.gmra.mxu3 %v8244_v4 }
 0x8ba   :  { %3098 = vmatpush.msrb.mxu1 %v10190_v61  ;;  %3012 = vmatpush.msra.mxu0 %v10191_v35 }
 0x8bb   :  { %3052 = vmatpush.msra.mxu2 %v10192_v6  ;;  %3162 = vmatpush.msra.mxu3 %v10193_v26 }
 0x8bc   :  { %3099 = vmatpush.msrb.mxu1 %v10194_v2  ;;  %3013 = vmatpush.msra.mxu0 %v10195_v59 }
 0x8bd   :  { %3053 = vmatpush.msra.mxu2 %v10196_v9  ;;  %3163 = vmatpush.msra.mxu3 %v10197_v20 }
 0x8be   :  { %3100 = vmatpush.msrb.mxu1 %v10198_v41 }
 0x8bf   :  { %3164 = vmatpush.msra.mxu3 %v10199_v36 }
 0x8c0   :  { %3101 = vmatpush.msrb.mxu1 %v10200_v60 }
 0x8c1   :  { %3165 = vmatpush.msra.mxu3 %v10201_v0  ;;  %v8369_v0 = vld [vmem:[%s8417_s3 + $0x9] ss:$0 sm:$0xff] }
 0x8c2   :  { %3102 = vmatpush.msrb.mxu1 %v10202_v48 }
 0x8c3   :  { %3166 = vmatpush.msra.mxu3 %v10203_v57 }
 0x8c4   :  { %3103 = vmatpush.msrb.mxu1 %v10204_v53 }
 0x8c5   :  { %3167 = vmatpush.msra.mxu3 %v10205_v8 }
 0x8c6   :  { %3104 = vmatpush.msrb.mxu1 %v10206_v22 }
 0x8c7   :  { %3168 = vmatpush.msra.mxu3 %v10207_v25 }
 0x8c8   :  { %3105 = vmatpush.msrb.mxu1 %v10208_v30 }
 0x8c9   :  { %3169 = vmatpush.msra.mxu3 %v10209_v58 }
 0x8ca   :  { %3106 = vmatpush.msrb.mxu1 %v10210_v37 }
 0x8cb   :  { %3170 = vmatpush.msra.mxu3 %v10211_v42 }
 0x8cc   :  { %3107 = vmatpush.msrb.mxu1 %v10212_v7 }
 0x8cd   :  { %3171 = vmatpush.msra.mxu3 %v10213_v28 }
 0x8ce   :  { %3108 = vmatpush.msrb.mxu1 %v10214_v56  ;;  %v4204_v56 = vld [vmem:[#allocation6 + $0x5f0] sm:$0xff] }
 0x8cf   :  { %3172 = vmatpush.msra.mxu3 %v10215_v1  ;;  %v4205_v1 = vld [vmem:[#allocation6 + $0x5f8] sm:$0xff] }
 0x8d0   :  { %3109 = vmatpush.msrb.mxu1 %v7996_v19  ;;  %v10219_v19 = vld [vmem:[#allocation184_spill] sm:$0xff] }
 0x8d1   :  { %3173 = vmatpush.msra.mxu3 %v10216_v54  ;;  %v4206_v54 = vld [vmem:[#allocation6 + $0x5c0] sm:$0xff] }
 0x8d2   :  { %3110 = vmatpush.msrb.mxu1 %v8002_v14  ;;  %v10220_v14 = vld [vmem:[#allocation185_spill] sm:$0xff] }
 0x8d3   :  { %3174 = vmatpush.msra.mxu3 %v10217_v62  ;;  %v4207_v62 = vld [vmem:[#allocation6 + $0x5c8] sm:$0xff] }
 0x8d4   :  { %3111 = vmatpush.msrb.mxu1 %v8008_v24  ;;  %v10223_v24 = vld [vmem:[#allocation21_spill] sm:$0xff] }
 0x8d5   :  { %3175 = vmatpush.msra.mxu3 %v4200_v21  ;;  %v4208_v21 = vld [vmem:[#allocation6 + $0x590] sm:$0xff] }
 0x8d6   :  { %3112 = vmatpush.msrb.mxu1 %v8012_v13  ;;  %v2733_v13 = vpop.f32.mrf.mxu0 }
 0x8d7   :  { %3176 = vmatpush.msra.mxu3 %v4201_v12  ;;  %v4209_v12 = vld [vmem:[#allocation6 + $0x598] sm:$0xff] }
 0x8d8   :  { %3113 = vmatpush.msrb.mxu1 %v10218_v45  ;;  %v4211_v45 = vld [vmem:[#allocation6 + $0x568] sm:$0xff] }
 0x8d9   :  { %3114 = vmatmul.f32.vlgmr.msrb.gmra.mxu1 %v8244_v4  ;;  %3177 = vmatpush.msra.mxu3 %v4202_v29  ;;  %v4212_v29 = vld [vmem:[#allocation6 + $0x530] sm:$0xff] }
 0x8da   :  { %3202 = vmatpush.msra.mxu1 %v8021_v34  ;;  %v10221_v34 = vld [vmem:[#allocation186_spill] sm:$0xff] }
 0x8dc   :  { %3203 = vmatpush.msra.mxu1 %v8025_v52  ;;  %v2753_v52 = vpop.f32.mrf.mxu1 }
 0x8de   :  { %3204 = vmatpush.msra.mxu1 %v8029_v46  ;;  %v2713_v46 = vpop.f32.mrf.mxu3 }
 0x8e0   :  { %3205 = vmatpush.msra.mxu1 %v8033_v31  ;;  %v10222_v31 = vld [vmem:[#allocation76_spill] sm:$0xff] }
 0x8e2   :  { %3206 = vmatpush.msra.mxu1 %v8037_v39  ;;  %v2693_v39 = vpop.f32.mrf.mxu2 }
 0x8e4   :  { %3207 = vmatpush.msra.mxu1 %v8041_v55 }
 0x8e6   :  { %3208 = vmatpush.msra.mxu1 %v8045_v15  ;;  %v2793_v59 = vpop.f32.mrf.mxu3 }
 0x8e8   :  { %3209 = vmatpush.msra.mxu1 %v8049_v43  ;;  %v2714_v43 = vadd.f32 %v2713_v46, %v2693_v39  ;;  %v4220_v46 = vld [vmem:[#allocation6 + $0x470] sm:$0xff]  ;;  %v4221_v39 = vld [vmem:[#allocation6 + $0x478] sm:$0xff] }
 0x8ea   :  { %3210 = vmatpush.msra.mxu1 %v8053_v3  ;;  %v2754_v3 = vadd.f32 %v2753_v52, %v2733_v13  ;;  %v2773_v2 = vpop.f32.mrf.mxu2  ;;  %v4218_v13 = vld [vmem:[#allocation6 + $0x4a0] sm:$0xff]  ;;  %v4219_v52 = vld [vmem:[#allocation6 + $0x4a8] sm:$0xff] }
 0x8eb   :  { %v2794_v9 = vadd.f32 %v2793_v59, %v2773_v2  ;;  %v4232_v2 = vld [vmem:[#allocation6 + $0x350] sm:$0xff]  ;;  %v4233_v59 = vld [vmem:[#allocation6 + $0x358] sm:$0xff] }
 0x8ec   :  { %3211 = vmatpush.msra.mxu1 %v8057_v63 }
 0x8ed   :  { %v2890_v48 = vadd.f32 %v8369_v0, %v2794_v9  ;;  %v4234_v9 = vld [vmem:[#allocation6 + $0x320] sm:$0xff] }
 0x8ee   :  { %3212 = vmatpush.msra.mxu1 %v8061_v38 }
 0x8f0   :  { %3213 = vmatpush.msra.mxu1 %v10219_v19  ;;  %v4213_v19 = vld [vmem:[#allocation6 + $0x538] sm:$0xff] }
 0x8f2   :  { %3214 = vmatpush.msra.mxu1 %v10220_v14  ;;  %v4214_v14 = vld [vmem:[#allocation6 + $0x500] sm:$0xff] }
 0x8f4   :  { %3215 = vmatpush.msra.mxu1 %v10221_v34  ;;  %v4215_v34 = vld [vmem:[#allocation6 + $0x508] sm:$0xff] }
 0x8f6   :  { %3216 = vmatpush.msra.mxu1 %v10222_v31  ;;  %v4216_v31 = vld [vmem:[#allocation6 + $0x4d0] sm:$0xff] }
 0x8f8   :  { %3217 = vmatpush.msra.mxu1 %v10223_v24  ;;  %v4217_v24 = vld [vmem:[#allocation6 + $0x4d8] sm:$0xff] }
 0x915   :  { %v2837_v55 = vpop.f32.mrf.mxu0  ;;  %v2857_v15 = vpop.f32.mrf.mxu1 }
 0x916   :  { %v2838_v63 = vadd.f32 %v2837_v55, %v5382_v27  ;;  %v2858_v38 = vadd.f32 %v2857_v15, %v5384_v17  ;;  %v4222_v55 = vld [vmem:[#allocation6 + $0x440] sm:$0xff]  ;;  %v4223_v15 = vld [vmem:[#allocation6 + $0x448] sm:$0xff] }
 0x918   :  { %v2880_v61 = vadd.f32 %v2838_v63, %v2714_v43  ;;  %v2885_v35 = vadd.f32 %v2858_v38, %v2754_v3  ;;  %v4224_v43 = vld [vmem:[#allocation6 + $0x410] sm:$0xff]  ;;  %v4225_v3 = vld [vmem:[#allocation6 + $0x418] sm:$0xff]  ;;  %v4226_v63 = vld [vmem:[#allocation6 + $0x3e0] sm:$0xff] }
 0x919   :  { %v4227_v38 = vld [vmem:[#allocation6 + $0x3e8] sm:$0xff] }
 0x91a   :  { %v2881_v6 = vmul.f32 0.5, %v2880_v61  ;;  %v2886_v26 = vmul.f32 0.5, %v2885_v35  ;;  %v4228_v61 = vld [vmem:[#allocation6 + $0x3b0] sm:$0xff]  ;;  %v4229_v35 = vld [vmem:[#allocation6 + $0x3b8] sm:$0xff] }
 0x91c   :  { %3458 = vtanh.f32 %v2881_v6  ;;  %v2877_v36 = vpop.f32.mrf.mxu2  ;;  %v4230_v6 = vld [vmem:[#allocation6 + $0x380] sm:$0xff] }
 0x91d   :  { %3460 = vtanh.f32 %v2886_v26  ;;  %v2878_v53 = vadd.f32 %v2877_v36, %v5393_v18  ;;  %v4231_v26 = vld [vmem:[#allocation6 + $0x388] sm:$0xff]  ;;  %v4237_v36 = vld [vmem:[#allocation3 + $0x170] sm:$0xff] }
 0x922   :  { %v3459_v20 = vpop.eup %3458 }
 0x923   :  { %v2883_v41 = vadd.f32 1.0, %v3459_v20  ;;  %v3461_v60 = vpop.eup %3460  ;;  %v4235_v20 = vld [vmem:[#allocation6 + $0x328] sm:$0xff] }
 0x924   :  { %v2888_v22 = vadd.f32 1.0, %v3461_v60  ;;  %v4238_v60 = vld [vmem:[#allocation3 + $0x158] sm:$0xff] }
 0x925   :  { %v2884_v57 = vmul.f32 0.5, %v2883_v41  ;;  %v4236_v41 = vld [vmem:[#allocation3 + $0x188] sm:$0xff] }
 0x926   :  { %v2889_v30 = vmul.f32 0.5, %v2888_v22 }
 0x927   :  { %v2891_v8 = vmul.f32 %v2890_v48, %v2884_v57 }
 0x928   :  { %v2894_v58 = vsub.f32 1.0, %v2889_v30  ;;  %v2896_v42 = vmul.f32 %v2889_v30, %v8104_v23  ;;  %v4210_v23 = vld [vmem:[#allocation6 + $0x560] sm:$0xff] }
 0x929   :  { %v2892_v25 = vadd.f32 %v2891_v8, %v2878_v53  ;;  %v2955_v53 = vpop.f32.mrf.mxu1  ;;  %v10227_v8 = vld [vmem:[#allocation123_spill] sm:$0xff] }
 0x92b   :  { %3462 = vtanh.f32 %v2892_v25 }
 0x931   :  { %v3463_v37 = vpop.eup %3462 }
 0x932   :  { %v2895_v7 = vmul.f32 %v3463_v37, %v2894_v58 }
 0x934   :  { %v8374_v28 = vadd.f32 %v2896_v42, %v2895_v7 }
 0x936   :  { %2934 = vmatmul.f32.vlgmr.msrb.gmra.mxu0 %v8374_v28  ;;  %2974 = vmatmul.f32.vlgmr.msrb.gmra.mxu2 %v8374_v28 }
 0x937   :  { %3078 = vmatpush.msrb.mxu0 %v4204_v56  ;;  %3118 = vmatpush.msrb.mxu2 %v4205_v1 }
 0x939   :  { %3079 = vmatpush.msrb.mxu0 %v4206_v54  ;;  %3119 = vmatpush.msrb.mxu2 %v4207_v62  ;;  %v10228_v54 = vld [vmem:[#allocation125_spill] sm:$0xff] }
 0x93b   :  { %3080 = vmatpush.msrb.mxu0 %v4208_v21  ;;  %3120 = vmatpush.msrb.mxu2 %v4209_v12 }
 0x93d   :  { %3081 = vmatpush.msrb.mxu0 %v4210_v23  ;;  %3121 = vmatpush.msrb.mxu2 %v4211_v45 }
 0x93e   :  { %3014 = vmatmul.f32.vlgmr.msra.gmra.mxu0 %v8374_v28  ;;  %3054 = vmatmul.f32.vlgmr.msra.gmra.mxu2 %v8374_v28 }
 0x93f   :  { %3082 = vmatpush.msrb.mxu0 %v4212_v29  ;;  %3122 = vmatpush.msrb.mxu2 %v4213_v19 }
 0x941   :  { %3083 = vmatpush.msrb.mxu0 %v4214_v14  ;;  %3123 = vmatpush.msrb.mxu2 %v4215_v34  ;;  %v3255_v14 = vld [vmem:[#allocation8 + $0x78] sm:$0xff]  ;;  %v3254_v34 = vld [vmem:[#allocation8 + $0x70] sm:$0xff] }
 0x943   :  { %3084 = vmatpush.msrb.mxu0 %v4216_v31  ;;  %3124 = vmatpush.msrb.mxu2 %v4217_v24  ;;  %v3252_v31 = vld [vmem:[#allocation8 + $0x60] sm:$0xff]  ;;  %v3251_v24 = vld [vmem:[#allocation8 + $0x58] sm:$0xff] }
 0x945   :  { %3085 = vmatpush.msrb.mxu0 %v4218_v13  ;;  %3125 = vmatpush.msrb.mxu2 %v4219_v52  ;;  %v3250_v13 = vld [vmem:[#allocation8 + $0x50] sm:$0xff]  ;;  %v3249_v52 = vld [vmem:[#allocation8 + $0x48] sm:$0xff] }
 0x947   :  { %3086 = vmatpush.msrb.mxu0 %v4220_v46  ;;  %3126 = vmatpush.msrb.mxu2 %v4221_v39  ;;  %v3247_v39 = vld [vmem:[#allocation8 + $0x38] sm:$0xff] }
 0x949   :  { %3087 = vmatpush.msrb.mxu0 %v4222_v55  ;;  %3127 = vmatpush.msrb.mxu2 %v4223_v15  ;;  %v3246_v55 = vld [vmem:[#allocation8 + $0x30] sm:$0xff]  ;;  %v3245_v15 = vld [vmem:[#allocation8 + $0x28] sm:$0xff] }
 0x94b   :  { %3088 = vmatpush.msrb.mxu0 %v4224_v43  ;;  %3128 = vmatpush.msrb.mxu2 %v4225_v3  ;;  %v3244_v3 = vld [vmem:[#allocation8 + $0x20] sm:$0xff] }
 0x94d   :  { %3089 = vmatpush.msrb.mxu0 %v4226_v63  ;;  %3129 = vmatpush.msrb.mxu2 %v4227_v38  ;;  %v3243_v63 = vld [vmem:[#allocation8 + $0x18] sm:$0xff] }
 0x94f   :  { %3090 = vmatpush.msrb.mxu0 %v4228_v61  ;;  %3130 = vmatpush.msrb.mxu2 %v4229_v35  ;;  %v3242_v61 = vld [vmem:[#allocation8 + $0x10] sm:$0xff] }
 0x951   :  { %3091 = vmatpush.msrb.mxu0 %v4230_v6  ;;  %3131 = vmatpush.msrb.mxu2 %v4231_v26  ;;  %v3241_v26 = vld [vmem:[#allocation8 + $0x8] sm:$0xff] }
 0x953   :  { %3092 = vmatpush.msrb.mxu0 %v4232_v2  ;;  %3132 = vmatpush.msrb.mxu2 %v4233_v59  ;;  %v3035_v2 = vpop.f32.mrf.mxu1 }
 0x955   :  { %3093 = vmatpush.msrb.mxu0 %v4234_v9  ;;  %3133 = vmatpush.msrb.mxu2 %v4235_v20  ;;  %v3240_v20 = vld [vmem:[#allocation8] sm:$0xff] }
 0x956   :  { %3094 = vmatmul.f32.vlgmr.msrb.gmra.mxu0 %v8374_v28  ;;  %3134 = vmatmul.f32.vlgmr.msrb.gmra.mxu2 %v8374_v28 }
 0x957   :  { %3182 = vmatpush.msra.mxu0 %v4236_v41  ;;  %3258 = vmatpush.msra.mxu2 %v3255_v14  ;;  %v3280_v14 = vld [vmem:[#allocation8 + $0x88] sm:$0xff] }
 0x959   :  { %3183 = vmatpush.msra.mxu0 %v4237_v36  ;;  %3259 = vmatpush.msra.mxu2 %v3254_v34  ;;  %v3279_v34 = vld [vmem:[#allocation8 + $0x80] sm:$0xff] }
 0x95b   :  { %3184 = vmatpush.msra.mxu0 %v4238_v60  ;;  %v3294_v60 = vld [vmem:[#allocation8 + $0xf8] sm:$0xff] }
 0x95c   :  { %3297 = vmatpush.msrb.mxu3 %v3294_v60 }
 0x95d   :  { %3185 = vmatpush.msra.mxu0 %v8150_v33  ;;  %v10224_v33 = vld [vmem:[#allocation22_spill] sm:$0xff] }
 0x95f   :  { %3186 = vmatpush.msra.mxu0 %v8154_v16  ;;  %v10225_v16 = vld [vmem:[#allocation23_spill] sm:$0xff] }
 0x961   :  { %3187 = vmatpush.msra.mxu0 %v8158_v32  ;;  %v2915_v32 = vpop.f32.mrf.mxu3 }
 0x963   :  { %3188 = vmatpush.msra.mxu0 %v8162_v47 }
 0x965   :  { %3189 = vmatpush.msra.mxu0 %v8166_v11  ;;  %v10226_v11 = vld [vmem:[#allocation122_spill] sm:$0xff] }
 0x967   :  { %3190 = vmatpush.msra.mxu0 %v8170_v10 }
 0x969   :  { %3191 = vmatpush.msra.mxu0 %v8174_v49 }
 0x96b   :  { %3192 = vmatpush.msra.mxu0 %v8178_v44 }
 0x96d   :  { %3193 = vmatpush.msra.mxu0 %v8182_v51 }
 0x96f   :  { %3194 = vmatpush.msra.mxu0 %v8186_v50  ;;  %v2995_v50 = vpop.f32.mrf.mxu3 }
 0x971   :  { %3195 = vmatpush.msra.mxu0 %v8190_v40 }
 0x973   :  { %3196 = vmatpush.msra.mxu0 %v10224_v33  ;;  %v3293_v33 = vld [vmem:[#allocation8 + $0xf0] sm:$0xff] }
 0x974   :  { %3298 = vmatpush.msrb.mxu3 %v3293_v33 }
 0x975   :  { %3197 = vmatpush.msra.mxu0 %v10225_v16 }
 0x977   :  { %v3075_v43 = vpop.f32.mrf.mxu3 }
 0x9b3   :  { %v2935_v47 = vpop.f32.mrf.mxu0 }
 0x9b4   :  { %v2936_v48 = vadd.f32 %v2935_v47, %v2915_v32  ;;  %v3292_v47 = vld [vmem:[#allocation8 + $0xe8] sm:$0xff] }
 0x9b5   :  { %3299 = vmatpush.msrb.mxu3 %v3292_v47 }
 0x9b6   :  { %v3144_v57 = vadd.f32 %v2936_v48, %v10226_v11 }
 0x9b8   :  { %v3145_v10 = vmul.f32 0.5, %v3144_v57  ;;  %v3115_v57 = vpop.f32.mrf.mxu1 }
 0x9b9   :  { %v2975_v49 = vpop.f32.mrf.mxu2 }
 0x9ba   :  { %3464 = vtanh.f32 %v3145_v10  ;;  %v2976_v44 = vadd.f32 %v2975_v49, %v2955_v53  ;;  %v3290_v10 = vld [vmem:[#allocation8 + $0xd8] sm:$0xff]  ;;  %v3289_v49 = vld [vmem:[#allocation8 + $0xd0] sm:$0xff] }
 0x9bb   :  { %v3015_v22 = vpop.f32.mrf.mxu0 }
 0x9bc   :  { %v3149_v51 = vadd.f32 %v2976_v44, %v10227_v8  ;;  %v3016_v40 = vadd.f32 %v3015_v22, %v2995_v50 }
 0x9be   :  { %v3150_v25 = vmul.f32 0.5, %v3149_v51  ;;  %v3154_v42 = vadd.f32 %v8239_v5, %v3016_v40  ;;  %v3253_v5 = vld [vmem:[#allocation8 + $0x68] sm:$0xff]  ;;  %v3287_v51 = vld [vmem:[#allocation8 + $0xc0] sm:$0xff] }
 0x9bf   :  { %3260 = vmatpush.msra.mxu2 %v3253_v5  ;;  %v3378_v5 = vld [vmem:[%s8419_s5] ss:$0 sm:$0xff] }
 0x9c0   :  { %v3465_v30 = vpop.eup %3464  ;;  %3466 = vtanh.f32 %v3150_v25  ;;  %v3286_v25 = vld [vmem:[#allocation8 + $0xb8] sm:$0xff] }
 0x9c1   :  { %v3147_v58 = vadd.f32 1.0, %v3465_v30  ;;  %3261 = vmatpush.msra.mxu2 %v3252_v31  ;;  %v3055_v35 = vpop.f32.mrf.mxu2 }
 0x9c2   :  { %v3056_v41 = vadd.f32 %v3055_v35, %v3035_v2 }
 0x9c3   :  { %v3148_v37 = vmul.f32 0.5, %v3147_v58  ;;  %3262 = vmatpush.msra.mxu2 %v3251_v24 }
 0x9c5   :  { %v3155_v7 = vmul.f32 %v3154_v42, %v3148_v37  ;;  %3263 = vmatpush.msra.mxu2 %v3250_v13  ;;  %v3285_v37 = vld [vmem:[#allocation8 + $0xb0] sm:$0xff] }
 0x9c6   :  { %v3467_v56 = vpop.eup %3466 }
 0x9c7   :  { %v3152_v1 = vadd.f32 1.0, %v3467_v56  ;;  %v3156_v62 = vadd.f32 %v3155_v7, %v10228_v54  ;;  %3264 = vmatpush.msra.mxu2 %v3249_v52 }
 0x9c9   :  { %3468 = vtanh.f32 %v3156_v62  ;;  %v3153_v21 = vmul.f32 0.5, %v3152_v1  ;;  %v3284_v1 = vld [vmem:[#allocation8 + $0xa8] sm:$0xff]  ;;  %v3283_v62 = vld [vmem:[#allocation8 + $0xa0] sm:$0xff] }
 0x9cb   :  { %v3158_v12 = vsub.f32 1.0, %v3153_v21  ;;  %v3160_v45 = vmul.f32 %v3153_v21, %v8244_v4  ;;  %v3248_v4 = vld [vmem:[#allocation8 + $0x40] sm:$0xff] }
 0x9cc   :  { %3265 = vmatpush.msra.mxu2 %v3248_v4 }
 0x9ce   :  { %3266 = vmatpush.msra.mxu2 %v3247_v39 }
 0x9cf   :  { %v3469_v23 = vpop.eup %3468 }
 0x9d0   :  { %v3159_v29 = vmul.f32 %v3469_v23, %v3158_v12  ;;  %3267 = vmatpush.msra.mxu2 %v3246_v55  ;;  %v3282_v12 = vld [vmem:[#allocation8 + $0x98] sm:$0xff] }
 0x9d2   :  { %v3161_v19 = vadd.f32 %v3160_v45, %v3159_v29  ;;  %3268 = vmatpush.msra.mxu2 %v3245_v15 }
 0x9d3   :  { %v3095_v46 = vpop.f32.mrf.mxu0 }
 0x9d4   :  { %3178 = vmatmul.f32.vlgmr.msra.gmra.mxu3 %v3161_v19  ;;  %3198 = vmatmul.f32.vlgmr.msra.gmra.mxu0 %v3161_v19  ;;  %v3096_v59 = vadd.f32 %v3095_v46, %v3075_v43 }
 0x9d5   :  { %3218 = vmatmul.f32.vlgmr.msra.gmra.mxu1 %v3161_v19  ;;  %3269 = vmatpush.msra.mxu2 %v3244_v3 }
 0x9d7   :  { %3270 = vmatpush.msra.mxu2 %v3243_v63 }
 0x9d9   :  { %3271 = vmatpush.msra.mxu2 %v3242_v61  ;;  %v3135_v53 = vpop.f32.mrf.mxu2 }
 0x9da   :  { %v3136_v44 = vadd.f32 %v3135_v53, %v3115_v57 }
 0x9db   :  { %3272 = vmatpush.msra.mxu2 %v3241_v26 }
 0x9dc   :  { %v3232_v30 = vadd.f32 %v8369_v0, %v3136_v44 }
 0x9dd   :  { %3273 = vmatpush.msra.mxu2 %v3240_v20 }
 0xa51   :  { %v3199_v38 = vpop.f32.mrf.mxu0 }
 0xa52   :  { %v3200_v6 = vadd.f32 %v3199_v38, %v5384_v17  ;;  %v3291_v17 = vld [vmem:[#allocation8 + $0xe0] sm:$0xff]  ;;  %v3219_v50 = vpop.f32.mrf.mxu1 }
 0xa53   :  { %3300 = vmatpush.msrb.mxu3 %v3291_v17  ;;  %v3220_v42 = vadd.f32 %v3219_v50, %v5393_v18  ;;  %v3281_v18 = vld [vmem:[#allocation8 + $0x90] sm:$0xff] }
 0xa54   :  { %v3227_v16 = vadd.f32 %v3200_v6, %v3096_v59 }
 0xa55   :  { %3301 = vmatpush.msrb.mxu3 %v3290_v10 }
 0xa56   :  { %v3228_v11 = vmul.f32 0.5, %v3227_v16 }
 0xa57   :  { %v3179_v9 = vpop.f32.mrf.mxu3  ;;  %3302 = vmatpush.msrb.mxu3 %v3289_v49 }
 0xa58   :  { %v3180_v36 = vadd.f32 %v3179_v9, %v5382_v27  ;;  %v3288_v27 = vld [vmem:[#allocation8 + $0xc8] sm:$0xff] }
 0xa59   :  { %3303 = vmatpush.msrb.mxu3 %v3288_v27 }
 0xa5a   :  { %v3222_v32 = vadd.f32 %v3180_v36, %v3056_v41 }
 0xa5b   :  { %3304 = vmatpush.msrb.mxu3 %v3287_v51 }
 0xa5c   :  { %v3223_v48 = vmul.f32 0.5, %v3222_v32 }
 0xa5d   :  { %3305 = vmatpush.msrb.mxu3 %v3286_v25 }
 0xa5e   :  { %3470 = vtanh.f32 %v3223_v48 }
 0xa5f   :  { %3472 = vtanh.f32 %v3228_v11  ;;  %3306 = vmatpush.msrb.mxu3 %v3285_v37 }
 0xa61   :  { %3307 = vmatpush.msrb.mxu3 %v3284_v1 }
 0xa63   :  { %3308 = vmatpush.msrb.mxu3 %v3283_v62 }
 0xa64   :  { %v3471_v8 = vpop.eup %3470 }
 0xa65   :  { %v3225_v22 = vadd.f32 1.0, %v3471_v8  ;;  %v3473_v40 = vpop.eup %3472  ;;  %3309 = vmatpush.msrb.mxu3 %v3282_v12 }
 0xa66   :  { %v3230_v56 = vadd.f32 1.0, %v3473_v40 }
 0xa67   :  { %v3226_v58 = vmul.f32 0.5, %v3225_v22  ;;  %3310 = vmatpush.msrb.mxu3 %v3281_v18 }
 0xa68   :  { %v3231_v21 = vmul.f32 0.5, %v3230_v56 }
 0xa69   :  { %v3233_v7 = vmul.f32 %v3232_v30, %v3226_v58  ;;  %3311 = vmatpush.msrb.mxu3 %v3280_v14 }
 0xa6a   :  { %v3236_v23 = vsub.f32 1.0, %v3231_v21  ;;  %v3238_v45 = vmul.f32 %v3231_v21, %v8374_v28  ;;  %v3379_v28 = vld [vmem:[%s8419_s5 + $0x1] ss:$0 sm:$0xff] }
 0xa6b   :  { %v3234_v54 = vadd.f32 %v3233_v7, %v3220_v42  ;;  %3312 = vmatpush.msrb.mxu3 %v3279_v34 }
 0xa6d   :  { %3474 = vtanh.f32 %v3234_v54 }
 0xa73   :  { %v3475_v0 = vpop.eup %3474 }
 0xa74   :  { %v3237_v29 = vmul.f32 %v3475_v0, %v3236_v23 }
 0xa76   :  { %v3239_v19 = vadd.f32 %v3238_v45, %v3237_v29 }
 0xa78   :  { %3274 = vmatmul.f32.vlgmr.msra.gmra.mxu2 %v3239_v19 }
 0xafb   :  { %v3275_v31 = vpop.f32.mrf.mxu2 }
 0xafc   :  { %v3276_v24 = vadd.f32 %v3378_v5, %v3275_v31 }
 0xafe   :  { %v3278_v13 = vmax.f32 %v3276_v24, 0.0 }
 0xb00   :  { %3313 = vmatmul.f32.vlgmr.msrb.gmra.mxu3 %v3278_v13 }
 0xb83   :  { %v3314_v52 = vpop.f32.mrf.mxu3 }
 0xb84   :  { %v3315_v4 = vadd.f32 %v3379_v28, %v3314_v52 }
 0xb86   :  { %3317 = vst [vmem:[#allocation9] sm:$0xff] %v3315_v4 }
 0xb87   :  { %3328 = dma.vmem_to_hbm [thread:$0]  %s3324_s25, 128, %s3326_s28, [#allocation5]  }
 0xb88   :  { %4339 = dma.done.wait [#allocation5], 128  }
 0xb89   :  { %4340 = vsyncadd [#allocation5], 4294967168 }
 0xb8a   :  { %3333 = vsyncpa [#allocation4], 1 }
 0xb8b   :  { %3334 = vsyncpa [#allocation7], 1 }
 0xb8c   :  { %3335 = vsyncpa [#allocation5], 1 }

</bundles_post_ra>
